<compile_context>
chip_gen: v7x
topology: tpu7x:2x2x1
jax: 0.10.0
libtpu: 0.0.40
codegen_flags: <defaults>
</compile_context>

<pallas_src>
import math
import functools

import jax
import jax.numpy as jnp
from jax import lax
from jax.experimental import pallas as pl
from jax.experimental.pallas import tpu as pltpu

BN_EPS = 1e-5


# ----------------------------------------------------------------------------
# Fused DeconvLayer kernel: one grid step = one (image, row-tile) pair
# ----------------------------------------------------------------------------
def _deconv_layer_kernel(x_ref, wdcn_ref, wup_ref, o_ref, *, tile_h):
    # x_ref:    (1, H+4, W+2, Cin) bf16  spatially pre-padded input (whole image,
    #                                    resident in VMEM across the row-tile axis)
    # wdcn_ref: (9*Cin, C)         bf16  3x3 dcn taps (BN scale + 0.5 mask folded)
    # wup_ref:  (9*C, 4*C)         bf16  sub-pixel ConvTranspose taps; N packs
    #                                    (py, px, oc) so one matmul covers all phases
    # o_ref:    (1, TH*W, 4*C)     bf16  rows = (m, j), lanes = (py, px, oc)
    TH = tile_h
    R = TH + 2                                  # y rows needed: TH + 1-row halo each side
    W = x_ref.shape[2] - 2
    Cin = x_ref.shape[3]
    C = wdcn_ref.shape[1]

    t = pl.program_id(1)
    row0 = pl.multiple_of(t * TH, TH)

    # ---- stage 1: dcn (0.5*conv3x3) + BN + ReLU for y rows [row0-1, row0+TH+1)
    xw = x_ref[0, pl.ds(row0, TH + 4), :, :]                    # (TH+4, W+2, Cin)
    # Two-level im2col: 3 lane-concats over kx, then 3 leading-dim-shifted pieces
    # over ky (6 wide pieces instead of 9 narrow ones). K order = (ky, kx, ic).
    xcat = jnp.concatenate(
        [xw[:, kx:kx + W, :] for kx in range(3)], axis=-1)      # (TH+4, W, 3Cin)
    slab_x = jnp.concatenate(
        [xcat[ky:ky + R] for ky in range(3)], axis=-1)          # (R, W, 9Cin)
    acc = jnp.dot(slab_x.reshape(R * W, 9 * Cin), wdcn_ref[...],
                  preferred_element_type=jnp.float32)           # (R*W, C)
    y = jnp.maximum(acc, 0.0).reshape(R, W, C)

    # The first/last halo row is the transposed-conv zero padding of y (not a conv
    # result) only on the first/last row tile; zero just those rows, gated by the
    # tile index, instead of an iota+where mask on every tile.
    keep_top = (t > 0).astype(y.dtype)
    keep_bot = (t < pl.num_programs(1) - 1).astype(y.dtype)
    y = jnp.concatenate(
        [y[0:1] * keep_top, y[1:R - 1], y[R - 1:R] * keep_bot], axis=0)
    y = y.astype(jnp.bfloat16)

    # ---- stage 2: ConvTranspose2d(4, s=2, p=1) + BN + ReLU (sub-pixel form)
    zc = jnp.zeros((R, 1, C), jnp.bfloat16)
    yp = jnp.concatenate([zc, y, zc], axis=1)                   # (R, W+2, C)
    ycat = jnp.concatenate(
        [yp[:, kx:kx + W, :] for kx in range(3)], axis=-1)      # (R, W, 3C)
    slab_y = jnp.concatenate(
        [ycat[ky:ky + TH] for ky in range(3)], axis=-1)         # (TH, W, 9C)
    u = jnp.dot(slab_y.reshape(TH * W, 9 * C), wup_ref[...],
                preferred_element_type=jnp.float32)             # (TH*W, 4C)

    # Single fused store; the wrapper un-interleaves the (py, px) parities with one
    # XLA transpose (pure layout plumbing -> no W-way lane relayout in the kernel).
    # TODO(synk): for small C on v6e/v7x, N=4C still underfills the 256-wide MXU;
    # a column-blocked banded RHS could widen N further at modest extra flops.
    o_ref[0, :, :] = jnp.maximum(u, 0.0).astype(o_ref.dtype)


def _vmem_limit_bytes(x_block_bytes, out_block_bytes, w_bytes):
    # Double-buffered in/out blocks + weights + slack for slab temporaries.
    need = 2 * (x_block_bytes + out_block_bytes) + w_bytes
    # Floor raises v5e's 16 MiB scoped default; cap stays comfortably inside
    # v7x's 64 MiB physical VMEM (v5e/v6e have 128 MiB).
    return int(max(32 << 20, min(2 * need + (4 << 20), 48 << 20)))


def deconv_layer(x, p):
    """x: (N, H, W, Cin) bf16  ->  (N, 2H, 2W, Cout) bf16."""
    N, H, W, Cin = x.shape
    C = p["w_dcn"].shape[1]

    # Row-tile height: sweepable; larger TH amortizes the 2-halo-row recompute and
    # per-grid-step overhead, smaller TH gives the pipeline more steps to overlap.
    if H % 16 == 0:
        TH = 16
    elif H % 8 == 0:
        TH = 8
    else:
        TH = H  # TODO(synk): ragged H falls back to one whole-image row tile.
    assert H % TH == 0

    # +-2-row / +-1-col zero halo: 1 for the 3x3 conv, +1 row for the upsample halo.
    x_pad = jnp.pad(x, ((0, 0), (2, 2), (1, 1), (0, 0)))

    x_block_bytes = (H + 4) * (W + 2) * Cin * 2
    out_block_bytes = TH * W * 4 * C * 2
    w_bytes = (9 * Cin * C + 9 * C * 4 * C) * 2
    vmem_limit = _vmem_limit_bytes(x_block_bytes, out_block_bytes, w_bytes)

    kernel = functools.partial(_deconv_layer_kernel, tile_h=TH)
    out = pl.pallas_call(
        kernel,
        out_shape=jax.ShapeDtypeStruct((N, H * W, 4 * C), jnp.bfloat16),
        grid=(N, H // TH),
        in_specs=[
            # Whole padded image per n; block index ignores t so it stays resident.
            pl.BlockSpec((1, H + 4, W + 2, Cin), lambda n, t: (n, 0, 0, 0)),
            pl.BlockSpec((9 * Cin, C), lambda n, t: (0, 0)),
            pl.BlockSpec((9 * C, 4 * C), lambda n, t: (0, 0)),
        ],
        out_specs=pl.BlockSpec((1, TH * W, 4 * C), lambda n, t: (n, t, 0)),
        compiler_params=pltpu.CompilerParams(
            dimension_semantics=("parallel", "parallel"),
            vmem_limit_bytes=vmem_limit),
    )(x_pad, p["w_dcn"], p["w_up"])

    # Un-interleave sub-pixel parities with one XLA transpose in the wrapper:
    # (N, H*W, [py,px,c]) -> (N, H, W, 2, 2, C) -> (N, H, 2, W, 2, C) -> (N, 2H, 2W, C).
    out = out.reshape(N, H, W, 2, 2, C)
    out = jnp.transpose(out, (0, 1, 3, 2, 4, 5))
    return out.reshape(N, 2 * H, 2 * W, C)


def centernet_deconv(x, params):
    for p in params:
        x = deconv_layer(x, p)
    return x


# ----------------------------------------------------------------------------
# Parameter construction (deterministic, matching DeconvLayer.__init__ shapes)
# ----------------------------------------------------------------------------
def make_layer_params(key, in_c, out_c, deconv_kernel=4):
    # TODO(synk): only deconv_kernel=4 (stride=2, pad=1), as in the reference
    # CenterNet config, is supported by the sub-pixel weight packing below.
    assert deconv_kernel == 4
    k1, k2 = jax.random.split(key)
    # torch layouts: Conv2d (out_c, in_c, 3, 3); ConvTranspose2d (in=out_c, out=out_c, 4, 4)
    # (round to bf16 once so kernel and reference use identical weight values)
    w_dcn_t = (jax.random.normal(k1, (out_c, in_c, 3, 3), jnp.float32) * 0.1
               ).astype(jnp.bfloat16).astype(jnp.float32)
    w_up_t = (jax.random.normal(k2, (out_c, out_c, 4, 4), jnp.float32) * 0.001
              ).astype(jnp.bfloat16).astype(jnp.float32)

    bn_scale = 1.0 / math.sqrt(1.0 + BN_EPS)    # BN inference, default buffers

    # dcn: fold BN scale and the 0.5 modulation mask (sigmoid(0), zero-initialized
    # offset_mask_conv) into the taps; pack as rows = (ky, kx, ic), cols = oc.
    w_dcn = jnp.transpose(w_dcn_t, (2, 3, 1, 0)).reshape(9 * in_c, out_c)
    w_dcn = (0.5 * bn_scale * w_dcn).astype(jnp.bfloat16)

    # up_sample: sub-pixel decomposition of ConvTranspose2d(k=4, s=2, p=1), both
    # output parities fused into one (9C, 4C) RHS with column order (py, px, oc).
    # Output pixel (2m+py, 2j+px) = sum over a 3x3 window of zero-padded y at
    # row/col offsets (dyo, dcol) of w_up[ic, oc, 3+py-2*dyo, 3+px-2*dcol]; taps
    # whose kernel index falls outside [0,4) stay zero.
    w_up = jnp.zeros((9 * out_c, 4 * out_c), jnp.float32)
    for py in range(2):
        for dyo in range(3):
            ky = 3 + py - 2 * dyo
            if not 0 <= ky < 4:
                continue
            for dcol in range(3):
                for px in range(2):
                    kx = 3 + px - 2 * dcol
                    if not 0 <= kx < 4:
                        continue
                    r = (dyo * 3 + dcol) * out_c
                    c = (py * 2 + px) * out_c
                    w_up = w_up.at[r:r + out_c, c:c + out_c].set(
                        bn_scale * w_up_t[:, :, ky, kx])
    w_up = w_up.astype(jnp.bfloat16)

    return dict(w_dcn=w_dcn, w_up=w_up, w_dcn_raw=w_dcn_t, w_up_raw=w_up_t)


# ----------------------------------------------------------------------------
# Pure-JAX/XLA reference (f32) of the module forward, for a numerical check
# ----------------------------------------------------------------------------
def reference_forward(x, params):
    bn_scale = 1.0 / math.sqrt(1.0 + BN_EPS)
    for p in params:
        y = lax.conv_general_dilated(
            x, p["w_dcn_raw"], window_strides=(1, 1), padding=((1, 1), (1, 1)),
            dimension_numbers=("NHWC", "OIHW", "NHWC"),
            precision=lax.Precision.HIGHEST)
        y = jnp.maximum(0.5 * bn_scale * y, 0.0)
        w_t = jnp.transpose(p["w_up_raw"][:, :, ::-1, ::-1], (1, 0, 2, 3))
        z = lax.conv_general_dilated(
            y, w_t, window_strides=(1, 1), padding=((2, 2), (2, 2)),
            lhs_dilation=(2, 2), dimension_numbers=("NHWC", "OIHW", "NHWC"),
            precision=lax.Precision.HIGHEST)
        x = jnp.maximum(bn_scale * z, 0.0)
    return x


# ----------------------------------------------------------------------------
if __name__ == "__main__":
    key = jax.random.PRNGKey(0)
    kx, k1, k2, k3 = jax.random.split(key, 4)

    # cfg.MODEL.CENTERNET.DECONV_CHANNEL / DECONV_KERNEL (small synthetic cfg)
    channels = (32, 16, 16, 16)
    deconv_kernel = (4, 4, 4)

    N, H, W = 2, 8, 8
    # PyTorch-style NCHW input, converted to NHWC (channels-last) for TPU.
    x_nchw = jax.random.normal(kx, (N, channels[0], H, W), jnp.float32)
    x_nhwc = jnp.transpose(x_nchw, (0, 2, 3, 1))

    params = [
        make_layer_params(k1, channels[0], channels[1], deconv_kernel[0]),
        make_layer_params(k2, channels[1], channels[2], deconv_kernel[1]),
        make_layer_params(k3, channels[2], channels[3], deconv_kernel[2]),
    ]

    x_bf16 = x_nhwc.astype(jnp.bfloat16)
    fwd = jax.jit(centernet_deconv)
    out = fwd(x_bf16, params).astype(jnp.float32)
    out = jax.block_until_ready(out)

    # CenternetDeconv upsamples 2x per layer: (N, 8H, 8W, channels[3])
    assert out.shape == (N, 8 * H, 8 * W, channels[3]), out.shape
    assert bool(jnp.all(jnp.isfinite(out)))

    # Numerical check vs. the pure-XLA reference (bf16 matmul inputs -> loose tol).
    ref = reference_forward(x_bf16.astype(jnp.float32), params)
    err = float(jnp.max(jnp.abs(out - ref)))
    scale = float(jnp.max(jnp.abs(ref))) + 1e-30
    assert err <= 0.1 * scale, (err, scale)

    print("KERNEL_OK")
</pallas_src>

<mosaic_0001>
module attributes {stable_mosaic.version = 11 : i64} {
  func.func @_deconv_layer_kernel(%arg0: i32, %arg1: i32, %arg2: memref<1x12x10x32xbf16, #tpu.memory_space<vmem>>, %arg3: memref<288x16xbf16, #tpu.memory_space<vmem>>, %arg4: memref<144x64xbf16, #tpu.memory_space<vmem>>, %arg5: memref<1x64x64xbf16, #tpu.memory_space<vmem>>) attributes {dimension_semantics = [#tpu.dimension_semantics<parallel>, #tpu.dimension_semantics<parallel>], iteration_bounds = array<i64: 2, 1>, scalar_prefetch = 0 : i64, scratch_operands = 0 : i64, tpu.core_type = #tpu.core_type<tc>, window_params = [{transform_indices = @transform_0, window_bounds = array<i64: 1, 12, 10, 32>}, {pipeline_mode = #tpu.pipeline_mode<synchronous>, transform_indices = @transform_1, window_bounds = array<i64: 288, 16>}, {pipeline_mode = #tpu.pipeline_mode<synchronous>, transform_indices = @transform_2, window_bounds = array<i64: 144, 64>}, {transform_indices = @transform_3, window_bounds = array<i64: 1, 64, 64>}]} {
    %c8_i32 = arith.constant 8 : i32
    %0 = arith.muli %arg1, %c8_i32 : i32
    %1 = tpu.assume_multiple %0, 8 : i32
    %c0 = arith.constant 0 : index
    %2 = arith.index_cast %1 : i32 to index
    %c0_0 = arith.constant 0 : index
    %c0_1 = arith.constant 0 : index
    %3 = vector.load %arg2[%c0, %2, %c0_0, %c0_1] : memref<1x12x10x32xbf16, #tpu.memory_space<vmem>>, vector<1x12x10x32xbf16>
    %4 = vector.shape_cast %3 : vector<1x12x10x32xbf16> to vector<12x10x32xbf16>
    %5 = vector.extract_strided_slice %4 {offsets = [0, 0, 0], sizes = [12, 8, 32], strides = [1, 1, 1]} : vector<12x10x32xbf16> to vector<12x8x32xbf16>
    %6 = vector.extract_strided_slice %4 {offsets = [0, 1, 0], sizes = [12, 8, 32], strides = [1, 1, 1]} : vector<12x10x32xbf16> to vector<12x8x32xbf16>
    %7 = vector.extract_strided_slice %4 {offsets = [0, 2, 0], sizes = [12, 8, 32], strides = [1, 1, 1]} : vector<12x10x32xbf16> to vector<12x8x32xbf16>
    %8 = tpu.concatenate %5, %6, %7 in 2 : vector<12x8x32xbf16>, vector<12x8x32xbf16>, vector<12x8x32xbf16> -> vector<12x8x96xbf16>
    %9 = vector.extract_strided_slice %8 {offsets = [0, 0, 0], sizes = [10, 8, 96], strides = [1, 1, 1]} : vector<12x8x96xbf16> to vector<10x8x96xbf16>
    %10 = vector.extract_strided_slice %8 {offsets = [1, 0, 0], sizes = [10, 8, 96], strides = [1, 1, 1]} : vector<12x8x96xbf16> to vector<10x8x96xbf16>
    %11 = vector.extract_strided_slice %8 {offsets = [2, 0, 0], sizes = [10, 8, 96], strides = [1, 1, 1]} : vector<12x8x96xbf16> to vector<10x8x96xbf16>
    %12 = tpu.concatenate %9, %10, %11 in 2 : vector<10x8x96xbf16>, vector<10x8x96xbf16>, vector<10x8x96xbf16> -> vector<10x8x288xbf16>
    %13 = vector.shape_cast %12 : vector<10x8x288xbf16> to vector<80x288xbf16>
    %c0_2 = arith.constant 0 : index
    %c0_3 = arith.constant 0 : index
    %14 = vector.load %arg3[%c0_2, %c0_3] : memref<288x16xbf16, #tpu.memory_space<vmem>>, vector<288x16xbf16>
    %cst = arith.constant dense<0.000000e+00> : vector<80x16xf32>
    %15 = tpu.matmul %13, %14, %cst {dimension_numbers = #tpu.dot_dimension_numbers<[1], [0], [0], [1], [0, 0, 1, 1], [], []>} : vector<80x288xbf16>, vector<288x16xbf16>, vector<80x16xf32> -> vector<80x16xf32>
    %cst_4 = arith.constant 0.000000e+00 : f32
    %16 = vector.broadcast %cst_4 : f32 to vector<80x16xf32>
    %17 = arith.maximumf %15, %16 : vector<80x16xf32>
    %18 = vector.shape_cast %17 : vector<80x16xf32> to vector<10x8x16xf32>
    %c0_i32 = arith.constant 0 : i32
    %19 = arith.cmpi sgt, %arg1, %c0_i32 : i32
    %20 = arith.extui %19 : i1 to i32
    %21 = arith.sitofp %20 : i32 to f32
    %c0_i32_5 = arith.constant 0 : i32
    %22 = arith.cmpi slt, %arg1, %c0_i32_5 : i32
    %23 = arith.extui %22 : i1 to i32
    %24 = arith.sitofp %23 : i32 to f32
    %25 = vector.extract_strided_slice %18 {offsets = [0, 0, 0], sizes = [1, 8, 16], strides = [1, 1, 1]} : vector<10x8x16xf32> to vector<1x8x16xf32>
    %26 = vector.broadcast %21 : f32 to vector<1x8x16xf32>
    %27 = arith.mulf %25, %26 : vector<1x8x16xf32>
    %28 = vector.extract_strided_slice %18 {offsets = [1, 0, 0], sizes = [8, 8, 16], strides = [1, 1, 1]} : vector<10x8x16xf32> to vector<8x8x16xf32>
    %29 = vector.extract_strided_slice %18 {offsets = [9, 0, 0], sizes = [1, 8, 16], strides = [1, 1, 1]} : vector<10x8x16xf32> to vector<1x8x16xf32>
    %30 = vector.broadcast %24 : f32 to vector<1x8x16xf32>
    %31 = arith.mulf %29, %30 : vector<1x8x16xf32>
    %32 = tpu.concatenate %27, %28, %31 in 0 : vector<1x8x16xf32>, vector<8x8x16xf32>, vector<1x8x16xf32> -> vector<10x8x16xf32>
    %33 = arith.truncf %32 : vector<10x8x16xf32> to vector<10x8x16xbf16>
    %cst_6 = arith.constant 0.000000e+00 : bf16
    %34 = vector.broadcast %cst_6 : bf16 to vector<10x1x16xbf16>
    %35 = tpu.concatenate %34, %33, %34 in 1 : vector<10x1x16xbf16>, vector<10x8x16xbf16>, vector<10x1x16xbf16> -> vector<10x10x16xbf16>
    %36 = vector.extract_strided_slice %35 {offsets = [0, 0, 0], sizes = [10, 8, 16], strides = [1, 1, 1]} : vector<10x10x16xbf16> to vector<10x8x16xbf16>
    %37 = vector.extract_strided_slice %35 {offsets = [0, 1, 0], sizes = [10, 8, 16], strides = [1, 1, 1]} : vector<10x10x16xbf16> to vector<10x8x16xbf16>
    %38 = vector.extract_strided_slice %35 {offsets = [0, 2, 0], sizes = [10, 8, 16], strides = [1, 1, 1]} : vector<10x10x16xbf16> to vector<10x8x16xbf16>
    %39 = tpu.concatenate %36, %37, %38 in 2 : vector<10x8x16xbf16>, vector<10x8x16xbf16>, vector<10x8x16xbf16> -> vector<10x8x48xbf16>
    %40 = vector.extract_strided_slice %39 {offsets = [0, 0, 0], sizes = [8, 8, 48], strides = [1, 1, 1]} : vector<10x8x48xbf16> to vector<8x8x48xbf16>
    %41 = vector.extract_strided_slice %39 {offsets = [1, 0, 0], sizes = [8, 8, 48], strides = [1, 1, 1]} : vector<10x8x48xbf16> to vector<8x8x48xbf16>
    %42 = vector.extract_strided_slice %39 {offsets = [2, 0, 0], sizes = [8, 8, 48], strides = [1, 1, 1]} : vector<10x8x48xbf16> to vector<8x8x48xbf16>
    %43 = tpu.concatenate %40, %41, %42 in 2 : vector<8x8x48xbf16>, vector<8x8x48xbf16>, vector<8x8x48xbf16> -> vector<8x8x144xbf16>
    %44 = vector.shape_cast %43 : vector<8x8x144xbf16> to vector<64x144xbf16>
    %c0_7 = arith.constant 0 : index
    %c0_8 = arith.constant 0 : index
    %45 = vector.load %arg4[%c0_7, %c0_8] : memref<144x64xbf16, #tpu.memory_space<vmem>>, vector<144x64xbf16>
    %cst_9 = arith.constant dense<0.000000e+00> : vector<64x64xf32>
    %46 = tpu.matmul %44, %45, %cst_9 {dimension_numbers = #tpu.dot_dimension_numbers<[1], [0], [0], [1], [0, 0, 1, 1], [], []>} : vector<64x144xbf16>, vector<144x64xbf16>, vector<64x64xf32> -> vector<64x64xf32>
    %cst_10 = arith.constant 0.000000e+00 : f32
    %47 = vector.broadcast %cst_10 : f32 to vector<64x64xf32>
    %48 = arith.maximumf %46, %47 : vector<64x64xf32>
    %49 = arith.truncf %48 : vector<64x64xf32> to vector<64x64xbf16>
    %c0_11 = arith.constant 0 : index
    %c0_12 = arith.constant 0 : index
    %c0_13 = arith.constant 0 : index
    %50 = vector.load %arg5[%c0_11, %c0_12, %c0_13] : memref<1x64x64xbf16, #tpu.memory_space<vmem>>, vector<1x64x64xbf16>
    %51 = vector.shape_cast %50 : vector<1x64x64xbf16> to vector<64x64xbf16>
    %52 = vector.shape_cast %49 : vector<64x64xbf16> to vector<1x64x64xbf16>
    tpu.vector_store %arg5[%c0_11, %c0_12, %c0_13], %52 {strides = array<i32>} : memref<1x64x64xbf16, #tpu.memory_space<vmem>>, vector<1x64x64xbf16>,
    return
  }
  func.func @transform_0(%arg0: i32, %arg1: i32) -> (i32, i32, i32, i32) {
    %c0_i32 = arith.constant 0 : i32
    %c0_i32_0 = arith.constant 0 : i32
    %c0_i32_1 = arith.constant 0 : i32
    %c0_i32_2 = arith.constant 0 : i32
    return %arg0, %c0_i32, %c0_i32_0, %c0_i32_1 : i32, i32, i32, i32
  }
  func.func @transform_1(%arg0: i32, %arg1: i32) -> (i32, i32) {
    %c0_i32 = arith.constant 0 : i32
    %c0_i32_0 = arith.constant 0 : i32
    %c0_i32_1 = arith.constant 0 : i32
    return %c0_i32, %c0_i32_0 : i32, i32
  }
  func.func @transform_2(%arg0: i32, %arg1: i32) -> (i32, i32) {
    %c0_i32 = arith.constant 0 : i32
    %c0_i32_0 = arith.constant 0 : i32
    %c0_i32_1 = arith.constant 0 : i32
    return %c0_i32, %c0_i32_0 : i32, i32
  }
  func.func @transform_3(%arg0: i32, %arg1: i32) -> (i32, i32, i32) {
    %c0_i32 = arith.constant 0 : i32
    %c0_i32_0 = arith.constant 0 : i32
    return %arg0, %arg1, %c0_i32 : i32, i32, i32
  }
}

module attributes {stable_mosaic.version = 11 : i64} {
  func.func @_deconv_layer_kernel(%arg0: i32, %arg1: i32, %arg2: memref<1x20x18x16xbf16, #tpu.memory_space<vmem>>, %arg3: memref<144x16xbf16, #tpu.memory_space<vmem>>, %arg4: memref<144x64xbf16, #tpu.memory_space<vmem>>, %arg5: memref<1x256x64xbf16, #tpu.memory_space<vmem>>) attributes {dimension_semantics = [#tpu.dimension_semantics<parallel>, #tpu.dimension_semantics<parallel>], iteration_bounds = array<i64: 2, 1>, scalar_prefetch = 0 : i64, scratch_operands = 0 : i64, tpu.core_type = #tpu.core_type<tc>, window_params = [{transform_indices = @transform_0, window_bounds = array<i64: 1, 20, 18, 16>}, {pipeline_mode = #tpu.pipeline_mode<synchronous>, transform_indices = @transform_1, window_bounds = array<i64: 144, 16>}, {pipeline_mode = #tpu.pipeline_mode<synchronous>, transform_indices = @transform_2, window_bounds = array<i64: 144, 64>}, {transform_indices = @transform_3, window_bounds = array<i64: 1, 256, 64>}]} {
    %c16_i32 = arith.constant 16 : i32
    %0 = arith.muli %arg1, %c16_i32 : i32
    %1 = tpu.assume_multiple %0, 16 : i32
    %c0 = arith.constant 0 : index
    %2 = arith.index_cast %1 : i32 to index
    %c0_0 = arith.constant 0 : index
    %c0_1 = arith.constant 0 : index
    %3 = vector.load %arg2[%c0, %2, %c0_0, %c0_1] : memref<1x20x18x16xbf16, #tpu.memory_space<vmem>>, vector<1x20x18x16xbf16>
    %4 = vector.shape_cast %3 : vector<1x20x18x16xbf16> to vector<20x18x16xbf16>
    %5 = vector.extract_strided_slice %4 {offsets = [0, 0, 0], sizes = [20, 16, 16], strides = [1, 1, 1]} : vector<20x18x16xbf16> to vector<20x16x16xbf16>
    %6 = vector.extract_strided_slice %4 {offsets = [0, 1, 0], sizes = [20, 16, 16], strides = [1, 1, 1]} : vector<20x18x16xbf16> to vector<20x16x16xbf16>
    %7 = vector.extract_strided_slice %4 {offsets = [0, 2, 0], sizes = [20, 16, 16], strides = [1, 1, 1]} : vector<20x18x16xbf16> to vector<20x16x16xbf16>
    %8 = tpu.concatenate %5, %6, %7 in 2 : vector<20x16x16xbf16>, vector<20x16x16xbf16>, vector<20x16x16xbf16> -> vector<20x16x48xbf16>
    %9 = vector.extract_strided_slice %8 {offsets = [0, 0, 0], sizes = [18, 16, 48], strides = [1, 1, 1]} : vector<20x16x48xbf16> to vector<18x16x48xbf16>
    %10 = vector.extract_strided_slice %8 {offsets = [1, 0, 0], sizes = [18, 16, 48], strides = [1, 1, 1]} : vector<20x16x48xbf16> to vector<18x16x48xbf16>
    %11 = vector.extract_strided_slice %8 {offsets = [2, 0, 0], sizes = [18, 16, 48], strides = [1, 1, 1]} : vector<20x16x48xbf16> to vector<18x16x48xbf16>
    %12 = tpu.concatenate %9, %10, %11 in 2 : vector<18x16x48xbf16>, vector<18x16x48xbf16>, vector<18x16x48xbf16> -> vector<18x16x144xbf16>
    %13 = vector.shape_cast %12 : vector<18x16x144xbf16> to vector<288x144xbf16>
    %c0_2 = arith.constant 0 : index
    %c0_3 = arith.constant 0 : index
    %14 = vector.load %arg3[%c0_2, %c0_3] : memref<144x16xbf16, #tpu.memory_space<vmem>>, vector<144x16xbf16>
    %cst = arith.constant dense<0.000000e+00> : vector<288x16xf32>
    %15 = tpu.matmul %13, %14, %cst {dimension_numbers = #tpu.dot_dimension_numbers<[1], [0], [0], [1], [0, 0, 1, 1], [], []>} : vector<288x144xbf16>, vector<144x16xbf16>, vector<288x16xf32> -> vector<288x16xf32>
    %cst_4 = arith.constant 0.000000e+00 : f32
    %16 = vector.broadcast %cst_4 : f32 to vector<288x16xf32>
    %17 = arith.maximumf %15, %16 : vector<288x16xf32>
    %18 = vector.shape_cast %17 : vector<288x16xf32> to vector<18x16x16xf32>
    %c0_i32 = arith.constant 0 : i32
    %19 = arith.cmpi sgt, %arg1, %c0_i32 : i32
    %20 = arith.extui %19 : i1 to i32
    %21 = arith.sitofp %20 : i32 to f32
    %c0_i32_5 = arith.constant 0 : i32
    %22 = arith.cmpi slt, %arg1, %c0_i32_5 : i32
    %23 = arith.extui %22 : i1 to i32
    %24 = arith.sitofp %23 : i32 to f32
    %25 = vector.extract_strided_slice %18 {offsets = [0, 0, 0], sizes = [1, 16, 16], strides = [1, 1, 1]} : vector<18x16x16xf32> to vector<1x16x16xf32>
    %26 = vector.broadcast %21 : f32 to vector<1x16x16xf32>
    %27 = arith.mulf %25, %26 : vector<1x16x16xf32>
    %28 = vector.extract_strided_slice %18 {offsets = [1, 0, 0], sizes = [16, 16, 16], strides = [1, 1, 1]} : vector<18x16x16xf32> to vector<16x16x16xf32>
    %29 = vector.extract_strided_slice %18 {offsets = [17, 0, 0], sizes = [1, 16, 16], strides = [1, 1, 1]} : vector<18x16x16xf32> to vector<1x16x16xf32>
    %30 = vector.broadcast %24 : f32 to vector<1x16x16xf32>
    %31 = arith.mulf %29, %30 : vector<1x16x16xf32>
    %32 = tpu.concatenate %27, %28, %31 in 0 : vector<1x16x16xf32>, vector<16x16x16xf32>, vector<1x16x16xf32> -> vector<18x16x16xf32>
    %33 = arith.truncf %32 : vector<18x16x16xf32> to vector<18x16x16xbf16>
    %cst_6 = arith.constant 0.000000e+00 : bf16
    %34 = vector.broadcast %cst_6 : bf16 to vector<18x1x16xbf16>
    %35 = tpu.concatenate %34, %33, %34 in 1 : vector<18x1x16xbf16>, vector<18x16x16xbf16>, vector<18x1x16xbf16> -> vector<18x18x16xbf16>
    %36 = vector.extract_strided_slice %35 {offsets = [0, 0, 0], sizes = [18, 16, 16], strides = [1, 1, 1]} : vector<18x18x16xbf16> to vector<18x16x16xbf16>
    %37 = vector.extract_strided_slice %35 {offsets = [0, 1, 0], sizes = [18, 16, 16], strides = [1, 1, 1]} : vector<18x18x16xbf16> to vector<18x16x16xbf16>
    %38 = vector.extract_strided_slice %35 {offsets = [0, 2, 0], sizes = [18, 16, 16], strides = [1, 1, 1]} : vector<18x18x16xbf16> to vector<18x16x16xbf16>
    %39 = tpu.concatenate %36, %37, %38 in 2 : vector<18x16x16xbf16>, vector<18x16x16xbf16>, vector<18x16x16xbf16> -> vector<18x16x48xbf16>
    %40 = vector.extract_strided_slice %39 {offsets = [0, 0, 0], sizes = [16, 16, 48], strides = [1, 1, 1]} : vector<18x16x48xbf16> to vector<16x16x48xbf16>
    %41 = vector.extract_strided_slice %39 {offsets = [1, 0, 0], sizes = [16, 16, 48], strides = [1, 1, 1]} : vector<18x16x48xbf16> to vector<16x16x48xbf16>
    %42 = vector.extract_strided_slice %39 {offsets = [2, 0, 0], sizes = [16, 16, 48], strides = [1, 1, 1]} : vector<18x16x48xbf16> to vector<16x16x48xbf16>
    %43 = tpu.concatenate %40, %41, %42 in 2 : vector<16x16x48xbf16>, vector<16x16x48xbf16>, vector<16x16x48xbf16> -> vector<16x16x144xbf16>
    %44 = vector.shape_cast %43 : vector<16x16x144xbf16> to vector<256x144xbf16>
    %c0_7 = arith.constant 0 : index
    %c0_8 = arith.constant 0 : index
    %45 = vector.load %arg4[%c0_7, %c0_8] : memref<144x64xbf16, #tpu.memory_space<vmem>>, vector<144x64xbf16>
    %cst_9 = arith.constant dense<0.000000e+00> : vector<256x64xf32>
    %46 = tpu.matmul %44, %45, %cst_9 {dimension_numbers = #tpu.dot_dimension_numbers<[1], [0], [0], [1], [0, 0, 1, 1], [], []>} : vector<256x144xbf16>, vector<144x64xbf16>, vector<256x64xf32> -> vector<256x64xf32>
    %cst_10 = arith.constant 0.000000e+00 : f32
    %47 = vector.broadcast %cst_10 : f32 to vector<256x64xf32>
    %48 = arith.maximumf %46, %47 : vector<256x64xf32>
    %49 = arith.truncf %48 : vector<256x64xf32> to vector<256x64xbf16>
    %c0_11 = arith.constant 0 : index
    %c0_12 = arith.constant 0 : index
    %c0_13 = arith.constant 0 : index
    %50 = vector.load %arg5[%c0_11, %c0_12, %c0_13] : memref<1x256x64xbf16, #tpu.memory_space<vmem>>, vector<1x256x64xbf16>
    %51 = vector.shape_cast %50 : vector<1x256x64xbf16> to vector<256x64xbf16>
    %52 = vector.shape_cast %49 : vector<256x64xbf16> to vector<1x256x64xbf16>
    tpu.vector_store %arg5[%c0_11, %c0_12, %c0_13], %52 {strides = array<i32>} : memref<1x256x64xbf16, #tpu.memory_space<vmem>>, vector<1x256x64xbf16>,
    return
  }
  func.func @transform_0(%arg0: i32, %arg1: i32) -> (i32, i32, i32, i32) {
    %c0_i32 = arith.constant 0 : i32
    %c0_i32_0 = arith.constant 0 : i32
    %c0_i32_1 = arith.constant 0 : i32
    %c0_i32_2 = arith.constant 0 : i32
    return %arg0, %c0_i32, %c0_i32_0, %c0_i32_1 : i32, i32, i32, i32
  }
  func.func @transform_1(%arg0: i32, %arg1: i32) -> (i32, i32) {
    %c0_i32 = arith.constant 0 : i32
    %c0_i32_0 = arith.constant 0 : i32
    %c0_i32_1 = arith.constant 0 : i32
    return %c0_i32, %c0_i32_0 : i32, i32
  }
  func.func @transform_2(%arg0: i32, %arg1: i32) -> (i32, i32) {
    %c0_i32 = arith.constant 0 : i32
    %c0_i32_0 = arith.constant 0 : i32
    %c0_i32_1 = arith.constant 0 : i32
    return %c0_i32, %c0_i32_0 : i32, i32
  }
  func.func @transform_3(%arg0: i32, %arg1: i32) -> (i32, i32, i32) {
    %c0_i32 = arith.constant 0 : i32
    %c0_i32_0 = arith.constant 0 : i32
    return %arg0, %arg1, %c0_i32 : i32, i32, i32
  }
}

module attributes {stable_mosaic.version = 11 : i64} {
  func.func @_deconv_layer_kernel(%arg0: i32, %arg1: i32, %arg2: memref<1x36x34x16xbf16, #tpu.memory_space<vmem>>, %arg3: memref<144x16xbf16, #tpu.memory_space<vmem>>, %arg4: memref<144x64xbf16, #tpu.memory_space<vmem>>, %arg5: memref<1x512x64xbf16, #tpu.memory_space<vmem>>) attributes {dimension_semantics = [#tpu.dimension_semantics<parallel>, #tpu.dimension_semantics<parallel>], iteration_bounds = array<i64: 2, 2>, scalar_prefetch = 0 : i64, scratch_operands = 0 : i64, tpu.core_type = #tpu.core_type<tc>, window_params = [{transform_indices = @transform_0, window_bounds = array<i64: 1, 36, 34, 16>}, {pipeline_mode = #tpu.pipeline_mode<synchronous>, transform_indices = @transform_1, window_bounds = array<i64: 144, 16>}, {pipeline_mode = #tpu.pipeline_mode<synchronous>, transform_indices = @transform_2, window_bounds = array<i64: 144, 64>}, {transform_indices = @transform_3, window_bounds = array<i64: 1, 512, 64>}]} {
    %c16_i32 = arith.constant 16 : i32
    %0 = arith.muli %arg1, %c16_i32 : i32
    %1 = tpu.assume_multiple %0, 16 : i32
    %c0 = arith.constant 0 : index
    %2 = arith.index_cast %1 : i32 to index
    %c0_0 = arith.constant 0 : index
    %c0_1 = arith.constant 0 : index
    %3 = vector.load %arg2[%c0, %2, %c0_0, %c0_1] : memref<1x36x34x16xbf16, #tpu.memory_space<vmem>>, vector<1x20x34x16xbf16>
    %4 = vector.shape_cast %3 : vector<1x20x34x16xbf16> to vector<20x34x16xbf16>
    %5 = vector.extract_strided_slice %4 {offsets = [0, 0, 0], sizes = [20, 32, 16], strides = [1, 1, 1]} : vector<20x34x16xbf16> to vector<20x32x16xbf16>
    %6 = vector.extract_strided_slice %4 {offsets = [0, 1, 0], sizes = [20, 32, 16], strides = [1, 1, 1]} : vector<20x34x16xbf16> to vector<20x32x16xbf16>
    %7 = vector.extract_strided_slice %4 {offsets = [0, 2, 0], sizes = [20, 32, 16], strides = [1, 1, 1]} : vector<20x34x16xbf16> to vector<20x32x16xbf16>
    %8 = tpu.concatenate %5, %6, %7 in 2 : vector<20x32x16xbf16>, vector<20x32x16xbf16>, vector<20x32x16xbf16> -> vector<20x32x48xbf16>
    %9 = vector.extract_strided_slice %8 {offsets = [0, 0, 0], sizes = [18, 32, 48], strides = [1, 1, 1]} : vector<20x32x48xbf16> to vector<18x32x48xbf16>
    %10 = vector.extract_strided_slice %8 {offsets = [1, 0, 0], sizes = [18, 32, 48], strides = [1, 1, 1]} : vector<20x32x48xbf16> to vector<18x32x48xbf16>
    %11 = vector.extract_strided_slice %8 {offsets = [2, 0, 0], sizes = [18, 32, 48], strides = [1, 1, 1]} : vector<20x32x48xbf16> to vector<18x32x48xbf16>
    %12 = tpu.concatenate %9, %10, %11 in 2 : vector<18x32x48xbf16>, vector<18x32x48xbf16>, vector<18x32x48xbf16> -> vector<18x32x144xbf16>
    %13 = vector.shape_cast %12 : vector<18x32x144xbf16> to vector<576x144xbf16>
    %c0_2 = arith.constant 0 : index
    %c0_3 = arith.constant 0 : index
    %14 = vector.load %arg3[%c0_2, %c0_3] : memref<144x16xbf16, #tpu.memory_space<vmem>>, vector<144x16xbf16>
    %cst = arith.constant dense<0.000000e+00> : vector<576x16xf32>
    %15 = tpu.matmul %13, %14, %cst {dimension_numbers = #tpu.dot_dimension_numbers<[1], [0], [0], [1], [0, 0, 1, 1], [], []>} : vector<576x144xbf16>, vector<144x16xbf16>, vector<576x16xf32> -> vector<576x16xf32>
    %cst_4 = arith.constant 0.000000e+00 : f32
    %16 = vector.broadcast %cst_4 : f32 to vector<576x16xf32>
    %17 = arith.maximumf %15, %16 : vector<576x16xf32>
    %18 = vector.shape_cast %17 : vector<576x16xf32> to vector<18x32x16xf32>
    %c0_i32 = arith.constant 0 : i32
    %19 = arith.cmpi sgt, %arg1, %c0_i32 : i32
    %20 = arith.extui %19 : i1 to i32
    %21 = arith.sitofp %20 : i32 to f32
    %c1_i32 = arith.constant 1 : i32
    %22 = arith.cmpi slt, %arg1, %c1_i32 : i32
    %23 = arith.extui %22 : i1 to i32
    %24 = arith.sitofp %23 : i32 to f32
    %25 = vector.extract_strided_slice %18 {offsets = [0, 0, 0], sizes = [1, 32, 16], strides = [1, 1, 1]} : vector<18x32x16xf32> to vector<1x32x16xf32>
    %26 = vector.broadcast %21 : f32 to vector<1x32x16xf32>
    %27 = arith.mulf %25, %26 : vector<1x32x16xf32>
    %28 = vector.extract_strided_slice %18 {offsets = [1, 0, 0], sizes = [16, 32, 16], strides = [1, 1, 1]} : vector<18x32x16xf32> to vector<16x32x16xf32>
    %29 = vector.extract_strided_slice %18 {offsets = [17, 0, 0], sizes = [1, 32, 16], strides = [1, 1, 1]} : vector<18x32x16xf32> to vector<1x32x16xf32>
    %30 = vector.broadcast %24 : f32 to vector<1x32x16xf32>
    %31 = arith.mulf %29, %30 : vector<1x32x16xf32>
    %32 = tpu.concatenate %27, %28, %31 in 0 : vector<1x32x16xf32>, vector<16x32x16xf32>, vector<1x32x16xf32> -> vector<18x32x16xf32>
    %33 = arith.truncf %32 : vector<18x32x16xf32> to vector<18x32x16xbf16>
    %cst_5 = arith.constant 0.000000e+00 : bf16
    %34 = vector.broadcast %cst_5 : bf16 to vector<18x1x16xbf16>
    %35 = tpu.concatenate %34, %33, %34 in 1 : vector<18x1x16xbf16>, vector<18x32x16xbf16>, vector<18x1x16xbf16> -> vector<18x34x16xbf16>
    %36 = vector.extract_strided_slice %35 {offsets = [0, 0, 0], sizes = [18, 32, 16], strides = [1, 1, 1]} : vector<18x34x16xbf16> to vector<18x32x16xbf16>
    %37 = vector.extract_strided_slice %35 {offsets = [0, 1, 0], sizes = [18, 32, 16], strides = [1, 1, 1]} : vector<18x34x16xbf16> to vector<18x32x16xbf16>
    %38 = vector.extract_strided_slice %35 {offsets = [0, 2, 0], sizes = [18, 32, 16], strides = [1, 1, 1]} : vector<18x34x16xbf16> to vector<18x32x16xbf16>
    %39 = tpu.concatenate %36, %37, %38 in 2 : vector<18x32x16xbf16>, vector<18x32x16xbf16>, vector<18x32x16xbf16> -> vector<18x32x48xbf16>
    %40 = vector.extract_strided_slice %39 {offsets = [0, 0, 0], sizes = [16, 32, 48], strides = [1, 1, 1]} : vector<18x32x48xbf16> to vector<16x32x48xbf16>
    %41 = vector.extract_strided_slice %39 {offsets = [1, 0, 0], sizes = [16, 32, 48], strides = [1, 1, 1]} : vector<18x32x48xbf16> to vector<16x32x48xbf16>
    %42 = vector.extract_strided_slice %39 {offsets = [2, 0, 0], sizes = [16, 32, 48], strides = [1, 1, 1]} : vector<18x32x48xbf16> to vector<16x32x48xbf16>
    %43 = tpu.concatenate %40, %41, %42 in 2 : vector<16x32x48xbf16>, vector<16x32x48xbf16>, vector<16x32x48xbf16> -> vector<16x32x144xbf16>
    %44 = vector.shape_cast %43 : vector<16x32x144xbf16> to vector<512x144xbf16>
    %c0_6 = arith.constant 0 : index
    %c0_7 = arith.constant 0 : index
    %45 = vector.load %arg4[%c0_6, %c0_7] : memref<144x64xbf16, #tpu.memory_space<vmem>>, vector<144x64xbf16>
    %cst_8 = arith.constant dense<0.000000e+00> : vector<512x64xf32>
    %46 = tpu.matmul %44, %45, %cst_8 {dimension_numbers = #tpu.dot_dimension_numbers<[1], [0], [0], [1], [0, 0, 1, 1], [], []>} : vector<512x144xbf16>, vector<144x64xbf16>, vector<512x64xf32> -> vector<512x64xf32>
    %cst_9 = arith.constant 0.000000e+00 : f32
    %47 = vector.broadcast %cst_9 : f32 to vector<512x64xf32>
    %48 = arith.maximumf %46, %47 : vector<512x64xf32>
    %49 = arith.truncf %48 : vector<512x64xf32> to vector<512x64xbf16>
    %c0_10 = arith.constant 0 : index
    %c0_11 = arith.constant 0 : index
    %c0_12 = arith.constant 0 : index
    %50 = vector.load %arg5[%c0_10, %c0_11, %c0_12] : memref<1x512x64xbf16, #tpu.memory_space<vmem>>, vector<1x512x64xbf16>
    %51 = vector.shape_cast %50 : vector<1x512x64xbf16> to vector<512x64xbf16>
    %52 = vector.shape_cast %49 : vector<512x64xbf16> to vector<1x512x64xbf16>
    tpu.vector_store %arg5[%c0_10, %c0_11, %c0_12], %52 {strides = array<i32>} : memref<1x512x64xbf16, #tpu.memory_space<vmem>>, vector<1x512x64xbf16>,
    return
  }
  func.func @transform_0(%arg0: i32, %arg1: i32) -> (i32, i32, i32, i32) {
    %c0_i32 = arith.constant 0 : i32
    %c0_i32_0 = arith.constant 0 : i32
    %c0_i32_1 = arith.constant 0 : i32
    %c0_i32_2 = arith.constant 0 : i32
    return %arg0, %c0_i32, %c0_i32_0, %c0_i32_1 : i32, i32, i32, i32
  }
  func.func @transform_1(%arg0: i32, %arg1: i32) -> (i32, i32) {
    %c0_i32 = arith.constant 0 : i32
    %c0_i32_0 = arith.constant 0 : i32
    %c0_i32_1 = arith.constant 0 : i32
    return %c0_i32, %c0_i32_0 : i32, i32
  }
  func.func @transform_2(%arg0: i32, %arg1: i32) -> (i32, i32) {
    %c0_i32 = arith.constant 0 : i32
    %c0_i32_0 = arith.constant 0 : i32
    %c0_i32_1 = arith.constant 0 : i32
    return %c0_i32, %c0_i32_0 : i32, i32
  }
  func.func @transform_3(%arg0: i32, %arg1: i32) -> (i32, i32, i32) {
    %c0_i32 = arith.constant 0 : i32
    %c0_i32_0 = arith.constant 0 : i32
    return %arg0, %arg1, %c0_i32 : i32, i32, i32
  }
}

</mosaic_0001>

<bundles_post_ra>
// kernel: centernet_deconv.3
= control target key start
LH: loop header
LB: loop body
LE: loop exit
PB: predicated region body
PF: predicated region fallthrough
CT: control target
= control target key end

     0   :  { %s1958_s12 = smov 0   ;;  %s1960_s13 = smov 0   ;;  %s2520_s0 = inlined_call_operand.vmem [shape: bf16[2,12,10,32], index: 0, kind: input, shape index: {}]   ;;  %s2521_s1 = inlined_call_operand.vmem [shape: bf16[288,16], index: 1, kind: input, shape index: {}]   ;;  %s2522_s2 = inlined_call_operand.vmem [shape: bf16[144,64], index: 2, kind: input, shape index: {}]   ;;  %s2523_s3 = inlined_call_operand.vmem [shape: bf16[2,64,64], index: 3, kind: output, shape index: {}]  }
   0x1   :  { %s1962_s14 = smov 0  }
   0x2 LB: > { %s25_s15 = sadd.s32 1, %s1924_s13  ;;  %p1663_p0 = scmp.ge.s32.totalorder %s1928_s14, 1  ;;  %s1928_s14 = sphi %s1962_s14, %s13_s14   ;;  %s1924_s13 = sphi %s1960_s13, %s2529_s13   ;;  %s1920_s12 = sphi %s1958_s12, %s2528_s12  }
   0x3   : > { %p27_p1 = scmp.ge.s32.totalorder %s25_s15, 2  ;;  %p151_p2 = scmp.lt.s32.totalorder %s1928_s14, 3 }
   0x5   : > { %s2531_s15 = smov (%p27_p1, %s25_s15), 0  ;;  %p152_p3 = pnand %p1663_p0, %p151_p2 }
   0x6   : > { %p179_p4 = scmp.lt.s32.totalorder (!%p152_p3), %s1920_s12, 1  ;;  %s1930_s20 = smov (!%p152_p3), 64   ;;  %vm427_vm0 = vcmask (!%p152_p3), 261120   ;;  %vm464_vm1 = vcmask (!%p152_p3), 523264   ;;  %vm1933_vm2 = vmmov (!%p152_p3), 0   ;;  %vm540_vm3 = vcmask (!%p152_p3), 785408  }
   0x7   : > { %155 = sbr.rel (%p152_p3) target bundleno = 1003 (0x3eb), region = 32  ;;  %s1931_s21 = smov (!%p152_p3), 32   ;;  %vm1071_vm4 = vcmask (!%p152_p3), 1040384   ;;  %vm1072_vm5 = vsmask.f32 (!%p152_p3), 256  ;;  %vm1084_vm6 = vcmask (!%p152_p3), 1044480  }
   0x8   : > { %s1934_s10 = smov (!%p152_p3), 96   ;;  %vm1085_vm7 = vsmask.f32 (!%p152_p3), 4352  ;;  %vm2259_vm8 = vmand (!%p152_p3), %vm1071_vm4, %vm1072_vm5  ;;  %vm1227_vm10 = vcmask (!%p152_p3), 130048   ;;  %s1937_s5 = smov (!%p152_p3), 48   ;;  %vm1309_vm11 = vcmask (!%p152_p3), 392192  }
   0x9   : > { %vm2263_vm9 = vmand (!%p152_p3), %vm1084_vm6, %vm1085_vm7  ;;  %vm1567_vm12 = vcmask (!%p152_p3), 519168  }
   0xe   : > { %s2533_s12 = smov (!%p179_p4, %s1920_s12), 1 }
   0xf   : > { %s1834_s16 = smul.u32 96, %s2533_s12  ;;  %s1748_s8 = sshll.u32 %s2533_s12, 5 }
  0x11   : > { %s1982_s19 = scalar_lea.vmem %s2520_s0, %s1834_s16 }
  0x12   : > { %v1985_v0 = vld [vmem:[%s1982_s19 + $0x8] sm:$0xf]  ;;  %v202_v1 = vld [vmem:[%s1982_s19 + $0xc] sm:$0x1]  ;;  %v1989_v2 = vld [vmem:[%s1982_s19 + $0x10] sm:$0xf] }
  0x13   : > { %v1668_v3 = vcombine.low %v1985_v0, %v202_v1  ;;  %v204_v4 = vld [vmem:[%s1982_s19 + $0x14] sm:$0x1]  ;;  %v1994_v5 = vld [vmem:[%s1982_s19 + $0x18] sm:$0xf]  ;;  %v206_v6 = vld [vmem:[%s1982_s19 + $0x1c] sm:$0x1] }
  0x14   : > { %v1669_v7 = vcombine.low %v1989_v2, %v204_v4  ;;  %v1670_v8 = vcombine.low %v1994_v5, %v206_v6  ;;  %v2000_v9 = vld [vmem:[%s1982_s19 + $0x20] sm:$0xf]  ;;  %v208_v10 = vld [vmem:[%s1982_s19 + $0x24] sm:$0x1]  ;;  %v2004_v11 = vld [vmem:[%s1982_s19 + $0x28] sm:$0xf] }
  0x15   : > { %v291_v12 = vshrl.u32 %v1668_v3, 16  ;;  %v293_v13 = vshll.u32 %v1668_v3, 16  ;;  %v392_v14 = vrot.slane %v1668_v3, 1  ;;  %v210_v15 = vld [vmem:[%s1982_s19 + $0x2c] sm:$0x1]  ;;  %v1671_v21 = vcombine.low %v2000_v9, %v208_v10 }
  0x16   : > { %v300_v16 = vshll.u32 %v1669_v7, 16  ;;  %v305_v17 = vshrl.u32 %v1670_v8, 16  ;;  %v307_v18 = vshll.u32 %v1670_v8, 16  ;;  %v298_v20 = vshrl.u32 %v1669_v7, 16  ;;  %v2011_v25 = vld [vmem:[%s1982_s19 + $0x30] sm:$0xf] }
  0x17   : > { %v295_v19 = vrot.slane %v293_v13, 1  ;;  %405 = vrot.lane.b32.xlu1 %v392_v14, %s1930_s20  ;;  %v1672_v24 = vcombine.low %v2004_v11, %v210_v15  ;;  %v212_v27 = vld [vmem:[%s1982_s19 + $0x34] sm:$0x1]  ;;  %v2015_v28 = vld [vmem:[%s1982_s19 + $0x38] sm:$0xf]  ;;  %v314_v34 = vshll.u32 %v1671_v21, 16 }
  0x18   : > { %v302_v22 = vrot.slane %v300_v16, 1  ;;  %v309_v23 = vrot.slane %v307_v18, 1  ;;  %v214_v29 = vld [vmem:[%s1982_s19 + $0x3c] sm:$0x1]  ;;  %v2019_v31 = vld [vmem:[%s1982_s19 + $0x40] sm:$0xf]  ;;  %v1673_v40 = vcombine.low %v2011_v25, %v212_v27 }
  0x19   : > { %v296_v26 = vor.u32 %v295_v19, %v291_v12  ;;  %v216_v32 = vld [vmem:[%s1982_s19 + $0x44] sm:$0x1]  ;;  %v321_v35 = vshll.u32 %v1672_v24, 16  ;;  %v2024_v36 = vld [vmem:[%s1982_s19 + $0x48] sm:$0xf]  ;;  %v394_v38 = vrot.slane %v1670_v8, 1  ;;  %v1674_v41 = vcombine.low %v2015_v28, %v214_v29 }
  0x1a   : > { %v310_v30 = vor.u32 %v309_v23, %v305_v17  ;;  %v303_v33 = vor.u32 %v302_v22, %v298_v20  ;;  %v218_v37 = vld [vmem:[%s1982_s19 + $0x4c] sm:$0x1]  ;;  %v319_v39 = vshrl.u32 %v1672_v24, 16  ;;  %v1675_v43 = vcombine.low %v2019_v31, %v216_v32  ;;  %v2038_v4 = vld [vmem:[%s1982_s19 + $0x58] sm:$0xf] }
  0x1b   : > { %369 = vrot.lane.b32.xlu0 %v296_v26, %s1931_s21  ;;  %v323_v42 = vrot.slane %v321_v35, 1  ;;  %v1676_v44 = vcombine.low %v2024_v36, %v218_v37  ;;  %v393_v45 = vrot.slane %v1669_v7, 1  ;;  %v312_v46 = vshrl.u32 %v1671_v21, 16  ;;  %v222_v6 = vld [vmem:[%s1982_s19 + $0x5c] sm:$0x1]  ;;  %v1880_v35 = vld [vmem:[%s2521_s1] sm:$0xff]  }
  0x1c   : > { %373 = vrot.lane.b32.xlu1 %v310_v30, %s1931_s21  ;;  %v316_v47 = vrot.slane %v314_v34, 1  ;;  %v328_v49 = vshll.u32 %v1673_v40, 16  ;;  %v335_v50 = vshll.u32 %v1674_v41, 16  ;;  %v395_v51 = vrot.slane %v1671_v21, 1  ;;  %v2043_v8 = vld [vmem:[%s1982_s19 + $0x50] sm:$0xf] }
  0x1d   : > { %v324_v48 = vor.u32 %v323_v42, %v319_v39  ;;  %v342_v52 = vshll.u32 %v1675_v43, 16  ;;  %v349_v53 = vshll.u32 %v1676_v44, 16  ;;  %v396_v55 = vrot.slane %v1672_v24, 1  ;;  %v220_v10 = vld [vmem:[%s1982_s19 + $0x54] sm:$0x1]  ;;  %v1879_v34 = vld [vmem:[%s2521_s1 + $0x40] sm:$0xff]  }
  0x1e   : > { %v317_v54 = vor.u32 %v316_v47, %v312_v46  ;;  %v326_v56 = vshrl.u32 %v1673_v40, 16  ;;  %v397_v57 = vrot.slane %v1673_v40, 1  ;;  %v330_v58 = vrot.slane %v328_v49, 1  ;;  %v2054_v19 = vld [vmem:[%s1982_s19] sm:$0xf]  ;;  %v1881_v37 = vld [vmem:[%s2521_s1 + $0x48] sm:$0xff]   ;;  %1757 = vmatprep.subr.bf16.mxu0 %v1879_v34 }
  0x1f   : > { %371 = vrot.lane.b32.xlu0 %v303_v33, %s1931_s21  ;;  %v333_v59 = vshrl.u32 %v1674_v41, 16  ;;  %v337_v60 = vrot.slane %v335_v50, 1  ;;  %v398_v61 = vrot.slane %v1674_v41, 1  ;;  %v340_v62 = vshrl.u32 %v1675_v43, 16  ;;  %v200_v23 = vld [vmem:[%s1982_s19 + $0x4] sm:$0x1]  ;;  %1758 = vmatpush3.bf16.msra.mxu0 %v1880_v35 }
  0x20   : > { %409 = vrot.lane.b32.xlu1 %v394_v38, %s1930_s20  ;;  %v347_v63 = vshrl.u32 %v1676_v44, 16  ;;  %v344_v1 = vrot.slane %v342_v52, 1  ;;  %v351_v3 = vrot.slane %v349_v53, 1  ;;  %v331_v12 = vor.u32 %v330_v58, %v326_v56  ;;  %v1882_v39 = vld [vmem:[%s2521_s1 + $0x8] sm:$0xff]   ;;  %1759 = vmatprep.subr.bf16.mxu0 %v1881_v37  ;;  %v1885_v47 = vld [vmem:[%s2521_s1 + $0x58] sm:$0xff]   ;;  %v1887_v49 = vld [vmem:[%s2521_s1 + $0x60] sm:$0xff]  }
  0x21   : > { %v338_v7 = vor.u32 %v337_v60, %v333_v59  ;;  %v1678_v13 = vcombine.low %v2038_v4, %v222_v6  ;;  %v1677_v14 = vcombine.low %v2043_v8, %v220_v10  ;;  %v400_v20 = vrot.slane %v1676_v44, 1  ;;  %v1888_v50 = vld [vmem:[%s2521_s1 + $0x20] sm:$0xff]   ;;  %v1890_v52 = vld [vmem:[%s2521_s1 + $0x28] sm:$0xff]   ;;  %v1895_v59 = vld [vmem:[%s2521_s1 + $0x78] sm:$0xff]  }
  0x22   : > { %v352_v15 = vor.u32 %v351_v3, %v347_v63  ;;  %v345_v17 = vor.u32 %v344_v1, %v340_v62  ;;  %v399_v24 = vrot.slane %v1675_v43, 1  ;;  %v1667_v29 = vcombine.low %v2054_v19, %v200_v23  ;;  %v1883_v43 = vld [vmem:[%s2521_s1 + $0x50] sm:$0xff]   ;;  %v1891_v53 = vld [vmem:[%s2521_s1 + $0x80] sm:$0xff]   ;;  %v1894_v58 = vld [vmem:[%s2521_s1 + $0x88] sm:$0xff]  }
  0x23   : > { %407 = vrot.lane.b32.xlu0 %v393_v45, %s1930_s20  ;;  %v363_v16 = vshll.u32 %v1678_v13, 16  ;;  %v356_v18 = vshll.u32 %v1677_v14, 16  ;;  %v361_v21 = vshrl.u32 %v1678_v13, 16  ;;  %v354_v26 = vshrl.u32 %v1677_v14, 16  ;;  %1760 = vmatpush3.bf16.msra.mxu0 %v1882_v39  ;;  %v1884_v45 = vld [vmem:[%s2521_s1 + $0x10] sm:$0xff]  }
  0x24   : > { %377 = vrot.lane.b32.xlu1 %v324_v48, %s1931_s21  ;;  %v286_v33 = vshll.u32 %v1667_v29, 16  ;;  %v402_v38 = vrot.slane %v1678_v13, 1  ;;  %v401_v40 = vrot.slane %v1677_v14, 1  ;;  %v284_v41 = vshrl.u32 %v1667_v29, 16  ;;  %1761 = vmatprep.subr.bf16.mxu0 %v1883_v43  ;;  %v1886_v48 = vld [vmem:[%s2521_s1 + $0x18] sm:$0xff]  }
  0x25   : > { %v365_v22 = vrot.slane %v363_v16, 1  ;;  %v358_v27 = vrot.slane %v356_v18, 1  ;;  %v391_v44 = vrot.slane %v1667_v29, 1 }
  0x26   : > { %v288_v42 = vrot.slane %v286_v33, 1 }
  0x27   : > { %375 = vrot.lane.b32.xlu0 %v317_v54, %s1931_s21  ;;  %v366_v30 = vor.u32 %v365_v22, %v361_v21  ;;  %v359_v32 = vor.u32 %v358_v27, %v354_v26  ;;  %1762 = vmatpush3.bf16.msra.mxu0 %v1884_v45  ;;  %v1932_v54 = vmov 0.0  }
  0x28   : > { %413 = vrot.lane.b32.xlu1 %v396_v55, %s1930_s20  ;;  %v289_v46 = vor.u32 %v288_v42, %v284_v41  ;;  %1763 = vmatprep.subr.bf16.mxu0 %v1885_v47  ;;  %v1892_v55 = vld [vmem:[%s2521_s1 + $0x70] sm:$0xff]  }
  0x29   : > { %1810 = vmatprep.subr.bf16.mxu1 %v1932_v54  ;;  %1814 = vmatprep.mubr.msk.bf16.mxu1 %vm1933_vm2, %v1932_v54 }
  0x2a   : > { %1811 = vmatpush3.bf16.msra.mxu1 %v1891_v53 }
  0x2b   : > { %411 = vrot.lane.b32.xlu0 %v395_v51, %s1930_s20  ;;  %1764 = vmatpush3.bf16.msra.mxu0 %v1886_v48  ;;  %v1889_v51 = vld [vmem:[%s2521_s1 + $0x68] sm:$0xff]  }
  0x2c   : > { %381 = vrot.lane.b32.xlu1 %v338_v7, %s1931_s21  ;;  %1765 = vmatprep.subr.bf16.mxu0 %v1887_v49 }
  0x2d   : > { %1812 = vmatprep.subr.bf16.mxu1 %v1932_v54 }
  0x2e   : > { %1813 = vmatpush3.bf16.msra.mxu1 %v1894_v58 }
  0x2f   : > { %379 = vrot.lane.b32.xlu0 %v331_v12, %s1931_s21  ;;  %1766 = vmatpush3.bf16.msra.mxu0 %v1888_v50 }
  0x30   : > { %417 = vrot.lane.b32.xlu1 %v398_v61, %s1930_s20  ;;  %1767 = vmatprep.subr.bf16.mxu0 %v1889_v51  ;;  %v1896_v61 = vld [vmem:[%s2521_s1 + $0x38] sm:$0xff]  }
  0x33   : > { %415 = vrot.lane.b32.xlu0 %v397_v57, %s1930_s20  ;;  %1768 = vmatpush3.bf16.msra.mxu0 %v1890_v52  ;;  %v1893_v57 = vld [vmem:[%s2521_s1 + $0x30] sm:$0xff]  }
  0x34   : > { %385 = vrot.lane.b32.xlu1 %v352_v15, %s1931_s21  ;;  %1769 = vmatprep.subr.bf16.mxu0 %v1892_v55 }
  0x37   : > { %383 = vrot.lane.b32.xlu0 %v345_v17, %s1931_s21  ;;  %1770 = vmatpush3.bf16.msra.mxu0 %v1893_v57 }
  0x38   : > { %421 = vrot.lane.b32.xlu1 %v400_v20, %s1930_s20  ;;  %1771 = vmatprep.subr.bf16.mxu0 %v1895_v59 }
  0x3b   : > { %419 = vrot.lane.b32.xlu0 %v399_v24, %s1930_s20  ;;  %1772 = vmatpush3.bf16.msra.mxu0 %v1896_v61 }
  0x3c   : > { %389 = vrot.lane.b32.xlu1 %v366_v30, %s1931_s21 }
  0x3f   : > { %387 = vrot.lane.b32.xlu0 %v359_v32, %s1931_s21 }
  0x40   : > { %425 = vrot.lane.b32.xlu1 %v402_v38, %s1930_s20 }
  0x43   : > { %423 = vrot.lane.b32.xlu0 %v401_v40, %s1930_s20 }
  0x44   : > { %403 = vrot.lane.b32.xlu1 %v391_v44, %s1930_s20 }
  0x47   : > { %367 = vrot.lane.b32.xlu0 %v289_v46, %s1931_s21 }
  0x89   : > { %v406_v56 = vpop.permute.xlu1 %405 }
  0x8d   : > { %v370_v60 = vpop.permute.xlu0 %369 }
  0x8e   : > { %v433_v62 = vsel %vm427_vm0, %v1985_v0, %v370_v60  ;;  %v374_v63 = vpop.permute.xlu1 %373 }
  0x8f   : > { %v2127_v1 = vsel %vm464_vm1, %v433_v62, %v406_v56  ;;  %v439_v13 = vsel %vm427_vm0, %v1994_v5, %v374_v63 }
  0x90   : > { %499 = vrot.lane.b32.xlu0 %v2127_v1, %s1934_s10 }
  0x91   : > { %v372_v3 = vpop.permute.xlu0 %371 }
  0x92   : > { %v410_v6 = vpop.permute.xlu1 %409  ;;  %v436_v7 = vsel %vm427_vm0, %v1989_v2, %v372_v3 }
  0x93   : > { %v2145_v15 = vsel %vm464_vm1, %v439_v13, %v410_v6 }
  0x95   : > { %v408_v0 = vpop.permute.xlu0 %407 }
  0x96   : > { %v2136_v10 = vsel %vm464_vm1, %v436_v7, %v408_v0  ;;  %v378_v12 = vpop.permute.xlu1 %377 }
  0x97   : > { %501 = vrot.lane.b32.xlu1 %v2136_v10, %s1934_s10  ;;  %520 = vrot.lane.b32.xlu0 %v2136_v10, %s1930_s20  ;;  %v445_v20 = vsel %vm427_vm0, %v2004_v11, %v378_v12 }
  0x99   : > { %v376_v14 = vpop.permute.xlu0 %375 }
  0x9a   : > { %v414_v16 = vpop.permute.xlu1 %413  ;;  %v442_v2 = vsel %vm427_vm0, %v2000_v9, %v376_v14 }
  0x9b   : > { %522 = vrot.lane.b32.xlu1 %v2145_v15, %s1930_s20  ;;  %503 = vrot.lane.b32.xlu0 %v2145_v15, %s1934_s10  ;;  %v2163_v22 = vsel %vm464_vm1, %v445_v20, %v414_v16 }
  0x9d   : > { %v412_v5 = vpop.permute.xlu0 %411 }
  0x9e   : > { %v2154_v17 = vsel %vm464_vm1, %v442_v2, %v412_v5  ;;  %v382_v18 = vpop.permute.xlu1 %381 }
  0x9f   : > { %505 = vrot.lane.b32.xlu1 %v2154_v17, %s1934_s10  ;;  %524 = vrot.lane.b32.xlu0 %v2154_v17, %s1930_s20  ;;  %v451_v27 = vsel %vm427_vm0, %v2015_v28, %v382_v18 }
  0xa1   : > { %v380_v21 = vpop.permute.xlu0 %379 }
  0xa2   : > { %v418_v23 = vpop.permute.xlu1 %417  ;;  %v448_v9 = vsel %vm427_vm0, %v2011_v25, %v380_v21 }
  0xa3   : > { %526 = vrot.lane.b32.xlu1 %v2163_v22, %s1930_s20  ;;  %507 = vrot.lane.b32.xlu0 %v2163_v22, %s1934_s10  ;;  %v2181_v30 = vsel %vm464_vm1, %v451_v27, %v418_v23 }
  0xa5   : > { %v416_v11 = vpop.permute.xlu0 %415 }
  0xa6   : > { %v2172_v24 = vsel %vm464_vm1, %v448_v9, %v416_v11  ;;  %v386_v26 = vpop.permute.xlu1 %385 }
  0xa7   : > { %509 = vrot.lane.b32.xlu1 %v2172_v24, %s1934_s10  ;;  %528 = vrot.lane.b32.xlu0 %v2172_v24, %s1930_s20  ;;  %v457_v34 = vsel %vm427_vm0, %v2024_v36, %v386_v26 }
  0xa9   : > { %v384_v29 = vpop.permute.xlu0 %383 }
  0xaa   : > { %v422_v25 = vpop.permute.xlu1 %421  ;;  %v454_v28 = vsel %vm427_vm0, %v2019_v31, %v384_v29 }
  0xab   : > { %530 = vrot.lane.b32.xlu1 %v2181_v30, %s1930_s20  ;;  %511 = vrot.lane.b32.xlu0 %v2181_v30, %s1934_s10  ;;  %v2199_v38 = vsel %vm464_vm1, %v457_v34, %v422_v25 }
  0xad   : > { %v420_v32 = vpop.permute.xlu0 %419 }
  0xae   : > { %v2190_v33 = vsel %vm464_vm1, %v454_v28, %v420_v32  ;;  %v390_v37 = vpop.permute.xlu1 %389 }
  0xaf   : > { %513 = vrot.lane.b32.xlu1 %v2190_v33, %s1934_s10  ;;  %532 = vrot.lane.b32.xlu0 %v2190_v33, %s1930_s20  ;;  %v463_v40 = vsel %vm427_vm0, %v2038_v4, %v390_v37 }
  0xb1   : > { %v388_v35 = vpop.permute.xlu0 %387 }
  0xb2   : > { %v460_v31 = vsel %vm427_vm0, %v2043_v8, %v388_v35  ;;  %v426_v41 = vpop.permute.xlu1 %425 }
  0xb3   : > { %534 = vrot.lane.b32.xlu1 %v2199_v38, %s1930_s20  ;;  %515 = vrot.lane.b32.xlu0 %v2199_v38, %s1934_s10  ;;  %v488_v42 = vsel %vm464_vm1, %v463_v40, %v426_v41 }
  0xb5   : > { %v424_v36 = vpop.permute.xlu0 %423 }
  0xb6   : > { %v486_v39 = vsel %vm464_vm1, %v460_v31, %v424_v36  ;;  %v404_v44 = vpop.permute.xlu1 %403 }
  0xb7   : > { %517 = vrot.lane.b32.xlu1 %v486_v39, %s1934_s10  ;;  %536 = vrot.lane.b32.xlu0 %v486_v39, %s1930_s20 }
  0xb9   : > { %v368_v43 = vpop.permute.xlu0 %367 }
  0xba   : > { %v430_v8 = vsel %vm427_vm0, %v2054_v19, %v368_v43 }
  0xbb   : > { %538 = vrot.lane.b32.xlu1 %v488_v42, %s1930_s20  ;;  %v466_v48 = vsel %vm464_vm1, %v430_v8, %v404_v44  ;;  %s1935_s20 = smov 16  }
 0x102   : > { %v500_v45 = vpop.permute.xlu0 %499 }
 0x103   : > { %v542_v55 = vsel %vm540_vm3, %v466_v48, %v500_v45 }
 0x109   : > { %v502_v46 = vpop.permute.xlu1 %501  ;;  %v521_v47 = vpop.permute.xlu0 %520 }
 0x10a   : > { %v544_v4 = vsel %vm540_vm3, %v2127_v1, %v502_v46  ;;  %v562_v52 = vsel %vm464_vm1, %v500_v45, %v521_v47 }
 0x10b   : > { %v1679_v57 = vcombine.low %v542_v55, %v544_v4 }
 0x10d   : > { %v523_v49 = vpop.permute.xlu1 %522  ;;  %v504_v50 = vpop.permute.xlu0 %503 }
 0x10e   : > { %v1681_v51 = vcombine.low %v521_v47, %v523_v49  ;;  %v564_v53 = vsel %vm464_vm1, %v502_v46, %v523_v49  ;;  %v546_v3 = vsel %vm540_vm3, %v2136_v10, %v504_v50 }
 0x10f   : > { %v1680_v56 = vcombine.low %v562_v52, %v564_v53 }
 0x110   : > { %1815 = vmatmul.mubr.msk.bf16.vlgmr.msra.gmra.mrb[0].mxu1 %vm427_vm0, %v1681_v51 }
 0x111   : > { %v506_v19 = vpop.permute.xlu1 %505  ;;  %847 = vmatprep.mubr.bf16.mxu0 %v1680_v56  ;;  %v525_v58 = vpop.permute.xlu0 %524  ;;  %1818 = vmatprep.mubr.msk.bf16.mxu1 %vm1933_vm2, %v1932_v54 }
 0x112   : > { %848 = vmatmul.mubr.bf16.vlgmr.msra.gmra.mrb[0].mxu0 %v1679_v57  ;;  %v548_v59 = vsel %vm540_vm3, %v2145_v15, %v506_v19  ;;  %v566_v62 = vsel %vm464_vm1, %v504_v50, %v525_v58 }
 0x113   : > { %v1682_v7 = vcombine.low %v546_v3, %v548_v59 }
 0x115   : > { %v527_v60 = vpop.permute.xlu1 %526  ;;  %v508_v61 = vpop.permute.xlu0 %507 }
 0x116   : > { %v568_v63 = vsel %vm464_vm1, %v506_v19, %v527_v60  ;;  %v1684_v1 = vcombine.low %v525_v58, %v527_v60  ;;  %v550_v5 = vsel %vm540_vm3, %v2154_v17, %v508_v61 }
 0x117   : > { %v1683_v6 = vcombine.low %v566_v62, %v568_v63 }
 0x118   : > { %1819 = vmatmul.mubr.msk.bf16.gmra.mrb[4].mxu1 %vm427_vm0, %v1684_v1 }
 0x119   : > { %v510_v0 = vpop.permute.xlu1 %509  ;;  %855 = vmatprep.mubr.bf16.mxu0 %v1683_v6  ;;  %v529_v12 = vpop.permute.xlu0 %528  ;;  %1822 = vmatprep.mubr.msk.bf16.mxu1 %vm1933_vm2, %v1932_v54 }
 0x11a   : > { %856 = vmatmul.mubr.bf16.gmra.mrb[4].mxu0 %v1682_v7  ;;  %v552_v13 = vsel %vm540_vm3, %v2163_v22, %v510_v0  ;;  %v570_v16 = vsel %vm464_vm1, %v508_v61, %v529_v12 }
 0x11b   : > { %v1685_v20 = vcombine.low %v550_v5, %v552_v13 }
 0x11d   : > { %v531_v14 = vpop.permute.xlu1 %530  ;;  %v512_v15 = vpop.permute.xlu0 %511 }
 0x11e   : > { %v572_v10 = vsel %vm464_vm1, %v510_v0, %v531_v14  ;;  %v1687_v2 = vcombine.low %v529_v12, %v531_v14  ;;  %v554_v29 = vsel %vm540_vm3, %v2172_v24, %v512_v15 }
 0x11f   : > { %v1686_v18 = vcombine.low %v570_v16, %v572_v10 }
 0x120   : > { %1823 = vmatmul.mubr.msk.bf16.gmra.mrb[8].mxu1 %vm427_vm0, %v1687_v2 }
 0x121   : > { %v514_v21 = vpop.permute.xlu1 %513  ;;  %863 = vmatprep.mubr.bf16.mxu0 %v1686_v18  ;;  %v533_v23 = vpop.permute.xlu0 %532  ;;  %1826 = vmatprep.mubr.msk.bf16.mxu1 %vm1933_vm2, %v1932_v54 }
 0x122   : > { %864 = vmatmul.mubr.bf16.gmra.mrb[8].mxu0 %v1685_v20  ;;  %v556_v22 = vsel %vm540_vm3, %v2181_v30, %v514_v21  ;;  %v574_v26 = vsel %vm464_vm1, %v512_v15, %v533_v23  ;;  %v1898_v15 = vld [vmem:[%s2522_s2 + $0x8] sm:$0xff]  }
 0x123   : > { %v1688_v28 = vcombine.low %v554_v29, %v556_v22 }
 0x125   : > { %v535_v9 = vpop.permute.xlu1 %534  ;;  %v516_v11 = vpop.permute.xlu0 %515 }
 0x126   : > { %v576_v17 = vsel %vm464_vm1, %v514_v21, %v535_v9  ;;  %v1690_v27 = vcombine.low %v533_v23, %v535_v9  ;;  %v558_v36 = vsel %vm540_vm3, %v2190_v33, %v516_v11 }
 0x127   : > { %v1689_v25 = vcombine.low %v574_v26, %v576_v17 }
 0x128   : > { %1827 = vmatmul.mubr.msk.bf16.gmra.mrb[12].mxu1 %vm427_vm0, %v1690_v27 }
 0x129   : > { %v518_v32 = vpop.permute.xlu1 %517  ;;  %871 = vmatprep.mubr.bf16.mxu0 %v1689_v25  ;;  %1830 = vmatprep.mubr.msk.bf16.mxu1 %vm1933_vm2, %v1932_v54  ;;  %v537_v30 = vpop.permute.xlu0 %536 }
 0x12a   : > { %872 = vmatmul.mubr.bf16.gmra.mrb[12].mxu0 %v1688_v28  ;;  %v560_v34 = vsel %vm540_vm3, %v2199_v38, %v518_v32  ;;  %v578_v37 = vsel %vm464_vm1, %v516_v11, %v537_v30 }
 0x12b   : > { %v1691_v40 = vcombine.low %v558_v36, %v560_v34 }
 0x12d   : > { %v539_v35 = vpop.permute.xlu1 %538 }
 0x12e   : > { %v580_v31 = vsel %vm464_vm1, %v518_v32, %v539_v35  ;;  %v1693_v24 = vcombine.low %v537_v30, %v539_v35 }
 0x12f   : > { %v1692_v39 = vcombine.low %v578_v37, %v580_v31 }
 0x130   : > { %1831 = vmatmul.mubr.msk.bf16.gmra.mrb[16].mxu1 %vm427_vm0, %v1693_v24 }
 0x131   : > { %879 = vmatprep.mubr.bf16.mxu0 %v1692_v39 }
 0x132   : > { %880 = vmatmul.mubr.bf16.gmra.mrb[16].mxu0 %v1691_v40 }
 0x1e3   : > { %v922_v54 = vpop.f32.mrb[0].mxu1 }
 0x1e4   : > { %v1816_v41 = vpop.f32.mrb[1].mxu1 }
 0x1e5   : > { %v1773_v42 = vpop.f32.mrb[0].mxu0  ;;  %v925_v43 = vpop.f32.mrb[2].mxu1 }
 0x1e6   : > { %v1774_v38 = vpop.f32.mrb[1].mxu0  ;;  %v1817_v44 = vpop.f32.mrb[3].mxu1 }
 0x1e7   : > { %v1775_v45 = vadd.f32 %v1774_v38, %v1773_v42  ;;  %v1776_v8 = vpop.f32.mrb[2].mxu0 }
 0x1e8   : > { %v1777_v46 = vpop.f32.mrb[3].mxu0 }
 0x1e9   : > { %v923_v47 = vadd.f32 %v1775_v45, %v922_v54  ;;  %v1778_v48 = vadd.f32 %v1777_v46, %v1776_v8 }
 0x1eb   : > { %v926_v4 = vadd.f32 %v1778_v48, %v925_v43  ;;  %v930_v49 = vpop.f32.mrb[4].mxu1  ;;  %v961_v18 = vmax.f32 %v923_v47, 0.0 }
 0x1ec   : > { %v1820_v33 = vpop.f32.mrb[5].mxu1 }
 0x1ed   : > { %v962_v50 = vmax.f32 %v926_v4, 0.0  ;;  %v1779_v51 = vpop.f32.mrb[4].mxu0  ;;  %v933_v52 = vpop.f32.mrb[6].mxu1  ;;  %v978_v34 = vmul.f32 0.0, %v961_v18 }
 0x1ee   : > { %v1780_v53 = vpop.f32.mrb[5].mxu0  ;;  %v1821_v55 = vpop.f32.mrb[7].mxu1 }
 0x1ef   : > { %v982_v56 = vpack.c.bf16 %v962_v50, %v962_v50  ;;  %v1781_v57 = vadd.f32 %v1780_v53, %v1779_v51  ;;  %v1782_v19 = vpop.f32.mrb[6].mxu0  ;;  %v2279_v51 = vpack.c.bf16 %v978_v34, %v978_v34 }
 0x1f0   : > { %v1783_v58 = vpop.f32.mrb[7].mxu0 }
 0x1f1   : > { %v999_v59 = vshrl.u32 %v982_v56, 16  ;;  %v931_v60 = vadd.f32 %v1781_v57, %v930_v49  ;;  %v1784_v61 = vadd.f32 %v1783_v58, %v1782_v19  ;;  %v1002_v63 = vshll.u32 %v982_v56, 16 }
 0x1f3   : > { %v1001_v62 = vrot.slane %v999_v59, 7  ;;  %v938_v1 = vpop.f32.mrb[8].mxu1  ;;  %v963_v6 = vmax.f32 %v931_v60, 0.0  ;;  %v934_v7 = vadd.f32 %v1784_v61, %v933_v52 }
 0x1f4   : > { %v1824_v0 = vpop.f32.mrb[9].mxu1 }
 0x1f5   : > { %v1004_v12 = vor.u32 %v1002_v63, %v1001_v62  ;;  %v1785_v13 = vpop.f32.mrb[8].mxu0  ;;  %v941_v14 = vpop.f32.mrb[10].mxu1  ;;  %v983_v16 = vpack.c.bf16 %v963_v6, %v963_v6  ;;  %v964_v10 = vmax.f32 %v934_v7, 0.0 }
 0x1f6   : > { %v1786_v2 = vpop.f32.mrb[9].mxu0  ;;  %v1825_v5 = vpop.f32.mrb[11].mxu1 }
 0x1f7   : > { %v1787_v20 = vadd.f32 %v1786_v2, %v1785_v13  ;;  %v1788_v21 = vpop.f32.mrb[10].mxu0  ;;  %v1075_v23 = vsel %vm2259_vm8, 0, %v1004_v12  ;;  %v1006_v22 = vshrl.u32 %v983_v16, 16  ;;  %v984_v9 = vpack.c.bf16 %v964_v10, %v964_v10 }
 0x1f8   : > { %v1789_v11 = vpop.f32.mrb[11].mxu0  ;;  %v2271_v26 = vsel %vm2263_vm9, %v1075_v23, 0  ;;  %v1009_v28 = vshll.u32 %v983_v16, 16 }
 0x1f9   : > { %v939_v17 = vadd.f32 %v1787_v20, %v938_v1  ;;  %v1790_v27 = vadd.f32 %v1789_v11, %v1788_v21  ;;  %v1198_v29 = vrot.slane %v2271_v26, 1  ;;  %v1008_v25 = vrot.slane %v1006_v22, 7 }
 0x1fa   : > { %v1013_v32 = vshrl.u32 %v984_v9, 16  ;;  %v1107_v30 = vshll.u32 %v2271_v26, 16  ;;  %v1105_v24 = vshrl.u32 %v2271_v26, 16  ;;  %v1016_v40 = vshll.u32 %v984_v9, 16 }
 0x1fb   : > { %v965_v35 = vmax.f32 %v939_v17, 0.0  ;;  %v942_v37 = vadd.f32 %v1790_v27, %v941_v14  ;;  %1209 = vrot.lane.b32.xlu1 %v1198_v29, %s1931_s21  ;;  %v946_v31 = vpop.f32.mrb[12].mxu1  ;;  %v1011_v36 = vor.u32 %v1009_v28, %v1008_v25  ;;  %v992_v25 = vshrl.u32 %v2279_v51, 16 }
 0x1fc   : > { %v1015_v39 = vrot.slane %v1013_v32, 7  ;;  %v1828_v54 = vpop.f32.mrb[13].mxu1  ;;  %v1109_v41 = vrot.slane %v1107_v30, 1 }
 0x1fd   : > { %v985_v42 = vpack.c.bf16 %v965_v35, %v965_v35  ;;  %v966_v43 = vmax.f32 %v942_v37, 0.0  ;;  %v1791_v38 = vpop.f32.mrb[12].mxu0  ;;  %v949_v44 = vpop.f32.mrb[14].mxu1  ;;  %v1076_v48 = vsel %vm2259_vm8, 0, %v1011_v36 }
 0x1fe   : > { %v1018_v45 = vor.u32 %v1016_v40, %v1015_v39  ;;  %v1792_v8 = vpop.f32.mrb[13].mxu0  ;;  %v1829_v46 = vpop.f32.mrb[15].mxu1  ;;  %v1110_v47 = vor.u32 %v1109_v41, %v1105_v24  ;;  %v2286_v55 = vsel %vm2263_vm9, %v1076_v48, 0 }
 0x1ff   : > { %v1020_v4 = vshrl.u32 %v985_v42, 16  ;;  %v986_v49 = vpack.c.bf16 %v966_v43, %v966_v43  ;;  %v1793_v33 = vadd.f32 %v1792_v8, %v1791_v38  ;;  %v1794_v50 = vpop.f32.mrb[14].mxu0  ;;  %v1023_v57 = vshll.u32 %v985_v42, 16 }
 0x200   : > { %v1077_v52 = vsel %vm2259_vm8, 0, %v1018_v45  ;;  %1169 = vrot.lane.b32.xlu0 %v1110_v47, %s1935_s20  ;;  %v1795_v53 = vpop.f32.mrb[15].mxu0  ;;  %v1199_v61 = vrot.slane %v2286_v55, 1  ;;  %v1114_v62 = vshll.u32 %v2286_v55, 16  ;;  %v1112_v14 = vshrl.u32 %v2286_v55, 16 }
 0x201   : > { %v1022_v56 = vrot.slane %v1020_v4, 7  ;;  %v1027_v19 = vshrl.u32 %v986_v49, 16  ;;  %v947_v58 = vadd.f32 %v1793_v33, %v946_v31  ;;  %v1030_v59 = vshll.u32 %v986_v49, 16 }
 0x202   : > { %v1796_v60 = vadd.f32 %v1795_v53, %v1794_v50  ;;  %v2292_v0 = vsel %vm2263_vm9, %v1077_v52, 0  ;;  %v1116_v16 = vrot.slane %v1114_v62, 1  ;;  %v995_v62 = vshll.u32 %v2279_v51, 16 }
 0x203   : > { %v1025_v63 = vor.u32 %v1023_v57, %v1022_v56  ;;  %v1029_v1 = vrot.slane %v1027_v19, 7  ;;  %v967_v6 = vmax.f32 %v947_v58, 0.0  ;;  %v954_v7 = vpop.f32.mrb[16].mxu1  ;;  %v1121_v10 = vshll.u32 %v2292_v0, 16 }
 0x204   : > { %v950_v12 = vadd.f32 %v1796_v60, %v949_v44  ;;  %1211 = vrot.lane.b32.xlu0 %v1199_v61, %s1931_s21  ;;  %v1832_v13 = vpop.f32.mrb[17].mxu1  ;;  %v1119_v23 = vshrl.u32 %v2292_v0, 16  ;;  %v1117_v9 = vor.u32 %v1116_v16, %v1112_v14  ;;  %v1200_v43 = vrot.slane %v2292_v0, 1 }
 0x205   : > { %v1078_v2 = vsel %vm2259_vm8, 0, %v1025_v63  ;;  %v1032_v5 = vor.u32 %v1030_v59, %v1029_v1  ;;  %v987_v18 = vpack.c.bf16 %v967_v6, %v967_v6  ;;  %v1797_v20 = vpop.f32.mrb[16].mxu0  ;;  %v957_v21 = vpop.f32.mrb[18].mxu1  ;;  %v1123_v27 = vrot.slane %v1121_v10, 1 }
 0x206   : > { %v968_v22 = vmax.f32 %v950_v12, 0.0  ;;  %v1798_v11 = vpop.f32.mrb[17].mxu0  ;;  %v1833_v17 = vpop.f32.mrb[19].mxu1  ;;  %v2302_v29 = vsel %vm2263_vm9, %v1078_v2, 0  ;;  %1171 = vrot.lane.b32.xlu1 %v1117_v9, %s1935_s20  ;;  %v994_v57 = vrot.slane %v992_v25, 7 }
 0x207   : > { %v1079_v28 = vsel %vm2259_vm8, 0, %v1032_v5  ;;  %v1034_v32 = vshrl.u32 %v987_v18, 16  ;;  %v1799_v30 = vadd.f32 %v1798_v11, %v1797_v20  ;;  %v1800_v34 = vpop.f32.mrb[18].mxu0  ;;  %v1037_v35 = vshll.u32 %v987_v18, 16 }
 0x208   : > { %v988_v37 = vpack.c.bf16 %v968_v22, %v968_v22  ;;  %v1124_v31 = vor.u32 %v1123_v27, %v1119_v23  ;;  %v1801_v24 = vpop.f32.mrb[19].mxu0  ;;  %v1128_v36 = vshll.u32 %v2302_v29, 16  ;;  %v2311_v41 = vsel %vm2263_vm9, %v1079_v28, 0 }
 0x209   : > { %v1036_v39 = vrot.slane %v1034_v32, 7  ;;  %v955_v40 = vadd.f32 %v1799_v30, %v954_v7  ;;  %v1802_v54 = vadd.f32 %v1801_v24, %v1800_v34  ;;  %v1126_v38 = vshrl.u32 %v2302_v29, 16 }
 0x20a   : > { %v1041_v42 = vshrl.u32 %v988_v37, 16  ;;  %1173 = vrot.lane.b32.xlu0 %v1124_v31, %s1935_s20  ;;  %v1130_v44 = vrot.slane %v1128_v36, 1  ;;  %v1135_v47 = vshll.u32 %v2311_v41, 16  ;;  %v1044_v4 = vshll.u32 %v988_v37, 16  ;;  %1213 = vrot.lane.b32.xlu1 %v1200_v43, %s1931_s21 }
 0x20b   : > { %v1039_v45 = vor.u32 %v1037_v35, %v1036_v39  ;;  %v969_v8 = vmax.f32 %v955_v40, 0.0  ;;  %v958_v46 = vadd.f32 %v1802_v54, %v957_v21  ;;  %v1133_v33 = vshrl.u32 %v2311_v41, 16 }
 0x20c   : > { %v1043_v48 = vrot.slane %v1041_v42, 7  ;;  %v1131_v49 = vor.u32 %v1130_v44, %v1126_v38  ;;  %v1137_v56 = vrot.slane %v1135_v47, 1  ;;  %v1201_v1 = vrot.slane %v2302_v29, 1  ;;  %v1897_v42 = vld [vmem:[%s2522_s2] sm:$0xff]  }
 0x20d   : > { %v1080_v50 = vsel %vm2259_vm8, 0, %v1039_v45  ;;  %v989_v52 = vpack.c.bf16 %v969_v8, %v969_v8  ;;  %v970_v53 = vmax.f32 %v958_v46, 0.0  ;;  %v997_v16 = vor.u32 %v995_v62, %v994_v57  ;;  %v1904_v57 = vld [vmem:[%s2522_s2 + $0x38] sm:$0xff]   ;;  %v1905_v62 = vld [vmem:[%s2522_s2 + $0x40] sm:$0xff]  }
 0x20e   : > { %v1046_v19 = vor.u32 %v1044_v4, %v1043_v48  ;;  %1175 = vrot.lane.b32.xlu0 %v1131_v49, %s1935_s20  ;;  %v2324_v58 = vsel %vm2263_vm9, %v1080_v50, 0  ;;  %v1138_v61 = vor.u32 %v1137_v56, %v1133_v33  ;;  %v1202_v20 = vrot.slane %v2311_v41, 1  ;;  %v1899_v48 = vld [vmem:[%s2522_s2 + $0x10] sm:$0xff]   ;;  %v1900_v33 = vld [vmem:[%s2522_s2 + $0x18] sm:$0xff]  }
 0x20f   : > { %v1048_v59 = vshrl.u32 %v989_v52, 16  ;;  %v980_v60 = vmul.f32 0.0, %v970_v53  ;;  %v1142_v6 = vshll.u32 %v2324_v58, 16  ;;  %v1051_v12 = vshll.u32 %v989_v52, 16  ;;  %v1901_v52 = vld [vmem:[%s2522_s2 + $0x20] sm:$0xff]   ;;  %v1902_v53 = vld [vmem:[%s2522_s2 + $0x28] sm:$0xff]  }
 0x210   : > { %v1081_v63 = vsel %vm2259_vm8, 0, %v1046_v19  ;;  %1177 = vrot.lane.b32.xlu1 %v1138_v61, %s1935_s20  ;;  %v1140_v51 = vshrl.u32 %v2324_v58, 16  ;;  %v1074_v27 = vsel %vm2259_vm8, 0, %v997_v16  ;;  %v1203_v34 = vrot.slane %v2324_v58, 1  ;;  %v1903_v56 = vld [vmem:[%s2522_s2 + $0x30] sm:$0xff]  }
 0x211   : > { %v1050_v7 = vrot.slane %v1048_v59, 7  ;;  %v990_v13 = vpack.c.bf16 %v980_v60, %v980_v60  ;;  %v2334_v14 = vsel %vm2263_vm9, %v1081_v63, 0  ;;  %v1144_v10 = vrot.slane %v1142_v6, 1 }
 0x212   : > { %1215 = vrot.lane.b32.xlu0 %v1201_v1, %s1931_s21  ;;  %v1149_v2 = vshll.u32 %v2334_v14, 16  ;;  %v1147_v23 = vshrl.u32 %v2334_v14, 16  ;;  %v2359_v24 = vsel %vm2263_vm9, %v1074_v27, 0  ;;  %v1204_v39 = vrot.slane %v2334_v14, 1 }
 0x213   : > { %v1053_v5 = vor.u32 %v1051_v12, %v1050_v7  ;;  %v1055_v18 = vshrl.u32 %v990_v13, 16  ;;  %v1145_v21 = vor.u32 %v1144_v10, %v1140_v51  ;;  %v1058_v17 = vshll.u32 %v990_v13, 16 }
 0x214   : > { %v1151_v22 = vrot.slane %v1149_v2, 1  ;;  %1217 = vrot.lane.b32.xlu1 %v1202_v20, %s1931_s21  ;;  %v1100_v54 = vshll.u32 %v2359_v24, 16  ;;  %v1936_v44 = vmov 0   ;;  %v1098_v47 = vshrl.u32 %v2359_v24, 16 }
 0x215   : > { %v1082_v9 = vsel %vm2259_vm8, 0, %v1053_v5  ;;  %v1057_v11 = vrot.slane %v1055_v18, 7  ;;  %1462 = vmatprep.subr.bf16.mxu1 %v1936_v44  ;;  %v1197_v50 = vrot.slane %v2359_v24, 1 }
 0x216   : > { %1179 = vrot.lane.b32.xlu0 %v1145_v21, %s1935_s20  ;;  %v1152_v25 = vor.u32 %v1151_v22, %v1147_v23  ;;  %v2349_v28 = vsel %vm2263_vm9, %v1082_v9, 0  ;;  %1463 = vmatpush1.bf16.msra.mxu1 %v1897_v42  ;;  %v1102_v46 = vrot.slane %v1100_v54, 1 }
 0x217   : > { %v1060_v32 = vor.u32 %v1058_v17, %v1057_v11  ;;  %v1156_v30 = vshll.u32 %v2349_v28, 16  ;;  %v1154_v37 = vshrl.u32 %v2349_v28, 16  ;;  %1464 = vmatprep.subr.bf16.mxu1 %v1936_v44  ;;  %v1205_v8 = vrot.slane %v2349_v28, 1 }
 0x218   : > { %1181 = vrot.lane.b32.xlu1 %v1152_v25, %s1935_s20  ;;  %v1103_v49 = vor.u32 %v1102_v46, %v1098_v47 }
 0x219   : > { %v1083_v35 = vsel %vm2259_vm8, 0, %v1060_v32  ;;  %v1158_v31 = vrot.slane %v1156_v30, 1 }
 0x21a   : > { %1219 = vrot.lane.b32.xlu0 %v1203_v34, %s1931_s21  ;;  %v2364_v36 = vsel %vm2263_vm9, %v1083_v35, 0  ;;  %1465 = vmatpush1.bf16.msra.mxu1 %v1898_v15 }
 0x21b   : > { %v1159_v40 = vor.u32 %v1158_v31, %v1154_v37  ;;  %v1163_v3 = vshll.u32 %v2364_v36, 16  ;;  %v1161_v43 = vshrl.u32 %v2364_v36, 16  ;;  %v1206_v4 = vrot.slane %v2364_v36, 1  ;;  %1466 = vmatprep.subr.bf16.mxu1 %v1936_v44 }
 0x21c   : > { %1221 = vrot.lane.b32.xlu1 %v1204_v39, %s1931_s21 }
 0x21d   : > { %v1165_v38 = vrot.slane %v1163_v3, 1 }
 0x21e   : > { %1183 = vrot.lane.b32.xlu0 %v1159_v40, %s1935_s20  ;;  %1467 = vmatpush1.bf16.msra.mxu1 %v1899_v48 }
 0x21f   : > { %v1166_v45 = vor.u32 %v1165_v38, %v1161_v43  ;;  %1468 = vmatprep.subr.bf16.mxu1 %v1936_v44 }
 0x221   : > { %1185 = vrot.lane.b32.xlu1 %v1166_v45, %s1935_s20 }
 0x222   : > { %1223 = vrot.lane.b32.xlu0 %v1205_v8, %s1931_s21  ;;  %1469 = vmatpush1.bf16.msra.mxu1 %v1900_v33 }
 0x223   : > { %1470 = vmatprep.subr.bf16.mxu1 %v1936_v44 }
 0x225   : > { %1225 = vrot.lane.b32.xlu1 %v1206_v4, %s1931_s21 }
 0x226   : > { %1167 = vrot.lane.b32.xlu0 %v1103_v49, %s1935_s20  ;;  %1471 = vmatpush1.bf16.msra.mxu1 %v1901_v52  ;;  %s2493_s20 = scalar_lea.vmem %s2523_s3, %s1748_s8 }
 0x227   : > { %1472 = vmatprep.subr.bf16.mxu1 %v1936_v44 }
 0x229   : > { %1207 = vrot.lane.b32.xlu1 %v1197_v50, %s1931_s21 }
 0x22a   : > { %1473 = vmatpush1.bf16.msra.mxu1 %v1902_v53 }
 0x22b   : > { %1474 = vmatprep.subr.bf16.mxu1 %v1936_v44 }
 0x22e   : > { %1475 = vmatpush1.bf16.msra.mxu1 %v1903_v56 }
 0x22f   : > { %1476 = vmatprep.subr.bf16.mxu1 %v1936_v44 }
 0x232   : > { %1477 = vmatpush1.bf16.msra.mxu1 %v1904_v57 }
 0x233   : > { %1478 = vmatprep.subr.bf16.mxu1 %v1936_v44 }
 0x236   : > { %1479 = vmatpush1.bf16.msra.mxu1 %v1905_v62 }
 0x26d   : > { %v1210_v59 = vpop.permute.xlu1 %1209 }
 0x272   : > { %v1170_v19 = vpop.permute.xlu0 %1169 }
 0x273   : > { %v1231_v60 = vsel %vm1227_vm10, %v2271_v26, %v1170_v19 }
 0x274   : > { %v1251_v61 = vsel %vm427_vm0, %v1231_v60, %v1210_v59 }
 0x275   : > { %1276 = vrot.lane.b32.xlu0 %v1251_v61, %s1937_s5 }
 0x276   : > { %v1212_v63 = vpop.permute.xlu0 %1211 }
 0x278   : > { %v1172_v1 = vpop.permute.xlu1 %1171 }
 0x279   : > { %v1233_v6 = vsel %vm1227_vm10, %v2286_v55, %v1172_v1 }
 0x27a   : > { %v2415_v12 = vsel %vm427_vm0, %v1233_v6, %v1212_v63 }
 0x27b   : > { %1293 = vrot.lane.b32.xlu0 %v2415_v12, %s1934_s10  ;;  %1278 = vrot.lane.b32.xlu1 %v2415_v12, %s1937_s5 }
 0x27c   : > { %v1174_v7 = vpop.permute.xlu0 %1173  ;;  %v1214_v13 = vpop.permute.xlu1 %1213 }
 0x27d   : > { %v1235_v26 = vsel %vm1227_vm10, %v2292_v0, %v1174_v7 }
 0x27e   : > { %v1255_v16 = vsel %vm427_vm0, %v1235_v26, %v1214_v13 }
 0x27f   : > { %1280 = vrot.lane.b32.xlu0 %v1255_v16, %s1937_s5  ;;  %1295 = vrot.lane.b32.xlu1 %v1255_v16, %s1934_s10 }
 0x280   : > { %v1176_v51 = vpop.permute.xlu0 %1175 }
 0x281   : > { %v1237_v10 = vsel %vm1227_vm10, %v2302_v29, %v1176_v51 }
 0x282   : > { %v1178_v55 = vpop.permute.xlu1 %1177 }
 0x283   : > { %v1239_v18 = vsel %vm1227_vm10, %v2311_v41, %v1178_v55 }
 0x284   : > { %v1216_v2 = vpop.permute.xlu0 %1215 }
 0x285   : > { %v2429_v0 = vsel %vm427_vm0, %v1237_v10, %v1216_v2 }
 0x286   : > { %1297 = vrot.lane.b32.xlu0 %v2429_v0, %s1934_s10  ;;  %1282 = vrot.lane.b32.xlu1 %v2429_v0, %s1937_s5  ;;  %v1218_v5 = vpop.permute.xlu1 %1217 }
 0x287   : > { %v1259_v21 = vsel %vm427_vm0, %v1239_v18, %v1218_v5 }
 0x288   : > { %v1180_v20 = vpop.permute.xlu0 %1179 }
 0x289   : > { %v1241_v23 = vsel %vm1227_vm10, %v2324_v58, %v1180_v20 }
 0x28a   : > { %1284 = vrot.lane.b32.xlu0 %v1259_v21, %s1937_s5  ;;  %1299 = vrot.lane.b32.xlu1 %v1259_v21, %s1934_s10  ;;  %v1182_v29 = vpop.permute.xlu1 %1181 }
 0x28b   : > { %v1243_v11 = vsel %vm1227_vm10, %v2334_v14, %v1182_v29 }
 0x28c   : > { %v1220_v22 = vpop.permute.xlu0 %1219 }
 0x28d   : > { %v2443_v9 = vsel %vm427_vm0, %v1241_v23, %v1220_v22 }
 0x28e   : > { %1301 = vrot.lane.b32.xlu0 %v2443_v9, %s1934_s10  ;;  %1286 = vrot.lane.b32.xlu1 %v2443_v9, %s1937_s5  ;;  %v1222_v41 = vpop.permute.xlu1 %1221 }
 0x28f   : > { %v1263_v27 = vsel %vm427_vm0, %v1243_v11, %v1222_v41 }
 0x290   : > { %v1184_v17 = vpop.permute.xlu0 %1183 }
 0x291   : > { %v1245_v25 = vsel %vm1227_vm10, %v2349_v28, %v1184_v17 }
 0x292   : > { %1288 = vrot.lane.b32.xlu0 %v1263_v27, %s1937_s5  ;;  %1303 = vrot.lane.b32.xlu1 %v1263_v27, %s1934_s10 }
 0x293   : > { %v1186_v58 = vpop.permute.xlu1 %1185 }
 0x294   : > { %v1224_v32 = vpop.permute.xlu0 %1223  ;;  %v1247_v14 = vsel %vm1227_vm10, %v2364_v36, %v1186_v58 }
 0x295   : > { %v1265_v30 = vsel %vm427_vm0, %v1245_v25, %v1224_v32 }
 0x296   : > { %1305 = vrot.lane.b32.xlu0 %v1265_v30, %s1934_s10  ;;  %1290 = vrot.lane.b32.xlu1 %v1265_v30, %s1937_s5 }
 0x297   : > { %v1226_v34 = vpop.permute.xlu1 %1225 }
 0x298   : > { %v1267_v35 = vsel %vm427_vm0, %v1247_v14, %v1226_v34  ;;  %v1168_v37 = vpop.permute.xlu0 %1167 }
 0x299   : > { %v1229_v3 = vsel %vm1227_vm10, %v2359_v24, %v1168_v37 }
 0x29a   : > { %1307 = vrot.lane.b32.xlu1 %v1267_v35, %s1934_s10 }
 0x29b   : > { %v1208_v31 = vpop.permute.xlu1 %1207 }
 0x29c   : > { %v1249_v54 = vsel %vm427_vm0, %v1229_v3, %v1208_v31 }
 0x2e7   : > { %v1277_v39 = vpop.permute.xlu0 %1276 }
 0x2e8   : > { %v1311_v42 = vsel %vm1309_vm11, %v1249_v54, %v1277_v39 }
 0x2ed   : > { %v1279_v40 = vpop.permute.xlu1 %1278  ;;  %v1294_v28 = vpop.permute.xlu0 %1293 }
 0x2ee   : > { %v1313_v36 = vsel %vm1309_vm11, %v1251_v61, %v1279_v40  ;;  %v1327_v38 = vsel %vm540_vm3, %v1311_v42, %v1294_v28 }
 0x2f1   : > { %v1296_v43 = vpop.permute.xlu1 %1295  ;;  %v1281_v45 = vpop.permute.xlu0 %1280 }
 0x2f2   : > { %v1329_v44 = vsel %vm540_vm3, %v1313_v36, %v1296_v43  ;;  %v1718_v15 = vcombine.low %v1294_v28, %v1296_v43  ;;  %v1315_v24 = vsel %vm1309_vm11, %v2415_v12, %v1281_v45 }
 0x2f3   : > { %v1717_v8 = vcombine.low %v1327_v38, %v1329_v44 }
 0x2f4   : > { %1734 = vmatprep.mubr.msk.bf16.mxu1 %vm1227_vm10, %v1718_v15 }
 0x2f5   : > { %1495 = vmatmul.mubr.bf16.vlgmr.msra.gmra.mrb[20].mxu1 %v1717_v8 }
 0x2f8   : > { %v1283_v46 = vpop.permute.xlu1 %1282  ;;  %v1298_v47 = vpop.permute.xlu0 %1297 }
 0x2f9   : > { %v1317_v48 = vsel %vm1309_vm11, %v1255_v16, %v1283_v46  ;;  %v1331_v33 = vsel %vm540_vm3, %v1315_v24, %v1298_v47 }
 0x2fc   : > { %v1300_v4 = vpop.permute.xlu1 %1299  ;;  %v1285_v49 = vpop.permute.xlu0 %1284 }
 0x2fd   : > { %v1333_v50 = vsel %vm540_vm3, %v1317_v48, %v1300_v4  ;;  %v1720_v52 = vcombine.low %v1298_v47, %v1300_v4  ;;  %v1319_v19 = vsel %vm1309_vm11, %v2429_v0, %v1285_v49 }
 0x2fe   : > { %v1719_v53 = vcombine.low %v1331_v33, %v1333_v50 }
 0x2ff   : > { %1735 = vmatprep.mubr.msk.bf16.mxu1 %vm1227_vm10, %v1720_v52 }
 0x300   : > { %v1287_v56 = vpop.permute.xlu1 %1286  ;;  %1503 = vmatmul.mubr.bf16.gmra.mrb[24].mxu1 %v1719_v53  ;;  %v1302_v57 = vpop.permute.xlu0 %1301 }
 0x301   : > { %v1321_v59 = vsel %vm1309_vm11, %v1259_v21, %v1287_v56  ;;  %v1335_v62 = vsel %vm540_vm3, %v1319_v19, %v1302_v57 }
 0x304   : > { %v1304_v60 = vpop.permute.xlu1 %1303  ;;  %v1289_v61 = vpop.permute.xlu0 %1288 }
 0x305   : > { %v1337_v63 = vsel %vm540_vm3, %v1321_v59, %v1304_v60  ;;  %v1722_v1 = vcombine.low %v1302_v57, %v1304_v60  ;;  %v1323_v26 = vsel %vm1309_vm11, %v2443_v9, %v1289_v61 }
 0x306   : > { %v1721_v6 = vcombine.low %v1335_v62, %v1337_v63 }
 0x307   : > { %1736 = vmatprep.mubr.msk.bf16.mxu1 %vm1227_vm10, %v1722_v1 }
 0x308   : > { %v1291_v7 = vpop.permute.xlu1 %1290  ;;  %1511 = vmatmul.mubr.bf16.gmra.mrb[28].mxu1 %v1721_v6  ;;  %v1306_v12 = vpop.permute.xlu0 %1305 }
 0x309   : > { %v1325_v13 = vsel %vm1309_vm11, %v1263_v27, %v1291_v7  ;;  %v1339_v51 = vsel %vm540_vm3, %v1323_v26, %v1306_v12 }
 0x30c   : > { %v1308_v16 = vpop.permute.xlu1 %1307 }
 0x30d   : > { %v1341_v55 = vsel %vm540_vm3, %v1325_v13, %v1308_v16  ;;  %v1724_v10 = vcombine.low %v1306_v12, %v1308_v16 }
 0x30e   : > { %v1723_v2 = vcombine.low %v1339_v51, %v1341_v55 }
 0x30f   : > { %1737 = vmatprep.mubr.msk.bf16.mxu1 %vm1227_vm10, %v1724_v10 }
 0x310   : > { %1519 = vmatmul.mubr.bf16.gmra.mrb[32].mxu1 %v1723_v2 }
 0x3c8   : > { %v1496_v0 = vpop.f32.mrb[20].mxu1 }
 0x3c9   : > { %v1527_v5 = vmax.f32 %v1496_v0, 0.0  ;;  %v1498_v18 = vpop.f32.mrb[21].mxu1 }
 0x3ca   : > { %v1499_v20 = vpop.f32.mrb[22].mxu1 }
 0x3cb   : > { %v1749_v21 = vpack.c.bf16 %v1527_v5, %v1527_v5  ;;  %v1528_v29 = vmax.f32 %v1499_v20, 0.0  ;;  %v1501_v23 = vpop.f32.mrb[23].mxu1 }
 0x3cd   : > { %1568 = vst.msk [vmem:[%s2493_s20] sm:$0xf] %vm1567_vm12, %v1749_v21  ;;  %v1750_v22 = vpack.c.bf16 %v1528_v29, %v1528_v29 }
 0x3cf   : > { %1569 = vst.msk [vmem:[%s2493_s20 + $0x4] sm:$0xf] %vm1567_vm12, %v1750_v22 }
 0x3d3   : > { %v1504_v9 = vpop.f32.mrb[24].mxu1 }
 0x3d4   : > { %v1529_v41 = vmax.f32 %v1504_v9, 0.0  ;;  %v1506_v11 = vpop.f32.mrb[25].mxu1 }
 0x3d5   : > { %v1507_v17 = vpop.f32.mrb[26].mxu1 }
 0x3d6   : > { %v1751_v27 = vpack.c.bf16 %v1529_v41, %v1529_v41  ;;  %v1530_v58 = vmax.f32 %v1507_v17, 0.0  ;;  %v1509_v25 = vpop.f32.mrb[27].mxu1 }
 0x3d8   : > { %1570 = vst.msk [vmem:[%s2493_s20 + $0x8] sm:$0xf] %vm1567_vm12, %v1751_v27  ;;  %v1752_v32 = vpack.c.bf16 %v1530_v58, %v1530_v58 }
 0x3da   : > { %1571 = vst.msk [vmem:[%s2493_s20 + $0xc] sm:$0xf] %vm1567_vm12, %v1752_v32 }
 0x3db   : > { %v1512_v30 = vpop.f32.mrb[28].mxu1 }
 0x3dc   : > { %v1531_v14 = vmax.f32 %v1512_v30, 0.0  ;;  %v1514_v34 = vpop.f32.mrb[29].mxu1 }
 0x3dd   : > { %v1515_v35 = vpop.f32.mrb[30].mxu1 }
 0x3de   : > { %v1753_v37 = vpack.c.bf16 %v1531_v14, %v1531_v14  ;;  %v1532_v31 = vmax.f32 %v1515_v35, 0.0  ;;  %v1517_v39 = vpop.f32.mrb[31].mxu1 }
 0x3e0   : > { %1572 = vst.msk [vmem:[%s2493_s20 + $0x10] sm:$0xf] %vm1567_vm12, %v1753_v37  ;;  %v1754_v40 = vpack.c.bf16 %v1532_v31, %v1532_v31 }
 0x3e2   : > { %1573 = vst.msk [vmem:[%s2493_s20 + $0x14] sm:$0xf] %vm1567_vm12, %v1754_v40 }
 0x3e3   : > { %v1520_v28 = vpop.f32.mrb[32].mxu1 }
 0x3e4   : > { %v1533_v3 = vmax.f32 %v1520_v28, 0.0  ;;  %v1522_v54 = vpop.f32.mrb[33].mxu1 }
 0x3e5   : > { %v1523_v42 = vpop.f32.mrb[34].mxu1 }
 0x3e6   : > { %v1755_v36 = vpack.c.bf16 %v1533_v3, %v1533_v3  ;;  %v1534_v43 = vmax.f32 %v1523_v42, 0.0  ;;  %v1525_v38 = vpop.f32.mrb[35].mxu1 }
 0x3e8   : > { %1574 = vst.msk [vmem:[%s2493_s20 + $0x18] sm:$0xf] %vm1567_vm12, %v1755_v36  ;;  %v1756_v44 = vpack.c.bf16 %v1534_v43, %v1534_v43 }
 0x3ea   : > { %1575 = vst.msk [vmem:[%s2493_s20 + $0x1c] sm:$0xf] %vm1567_vm12, %v1756_v44 }
 0x3eb PF: > { %s13_s14 = sadd.s32 1, %s1928_s14   ;;  %s2528_s12 = smov %s1924_s13 }
 0x3ec   : > { %p10_p5 = scmp.ge.s32.totalorder %s13_s14, 4   ;;  %s2529_s13 = smov %s2531_s15 }
 0x3ee   :  { %12 = sbr.rel (!%p10_p5) target bundleno = 2 (0x2), region = 63 }

// kernel: centernet_deconv.4
= control target key start
LH: loop header
LB: loop body
LE: loop exit
PB: predicated region body
PF: predicated region fallthrough
CT: control target
= control target key end

     0   :  { %s3074_s12 = smov 0   ;;  %s3076_s13 = smov 0   ;;  %s4159_s0 = inlined_call_operand.vmem [shape: bf16[2,20,18,16], index: 0, kind: input, shape index: {}]   ;;  %s4160_s1 = inlined_call_operand.vmem [shape: bf16[144,16], index: 1, kind: input, shape index: {}]   ;;  %s4161_s2 = inlined_call_operand.vmem [shape: bf16[144,64], index: 2, kind: input, shape index: {}]   ;;  %s4162_s3 = inlined_call_operand.vmem [shape: bf16[2,256,64], index: 3, kind: output, shape index: {}]  }
   0x1   :  { %s3078_s14 = smov 0  }
   0x2 LB: > { %s25_s15 = sadd.s32 1, %s3043_s13  ;;  %p2774_p0 = scmp.ge.s32.totalorder %s3047_s14, 1  ;;  %s3047_s14 = sphi %s3078_s14, %s13_s14   ;;  %s3043_s13 = sphi %s3076_s13, %s4166_s13   ;;  %s3039_s12 = sphi %s3074_s12, %s4165_s12  }
   0x3   : > { %p27_p1 = scmp.ge.s32.totalorder %s25_s15, 2  ;;  %p151_p2 = scmp.lt.s32.totalorder %s3047_s14, 3 }
   0x5   : > { %s4168_s15 = smov (%p27_p1, %s25_s15), 0  ;;  %p152_p3 = pnand %p2774_p0, %p151_p2 }
   0x6   : > { %p179_p4 = scmp.lt.s32.totalorder (!%p152_p3), %s3039_s12, 1  ;;  %vm419_vm0 = vsmask.f32 (!%p152_p3), 7424  ;;  %vm700_vm1 = vcmask (!%p152_p3), 1046528   ;;  %s3049_s20 = smov (!%p152_p3), 32   ;;  %vm801_vm2 = vcmask (!%p152_p3), 130048  }
   0x7   : > { %155 = sbr.rel (%p152_p3) target bundleno = 1197 (0x4ad), region = 32  ;;  %s3050_s21 = smov (!%p152_p3), 16   ;;  %vm842_vm3 = vcmask (!%p152_p3), 261120   ;;  %vm974_vm4 = vcmask (!%p152_p3), 392192   ;;  %vm1011_vm5 = vcmask (!%p152_p3), 785408   ;;  %vm1579_vm6 = vcmask (!%p152_p3), 1040384  }
   0x8   : > { %s3052_s17 = smov (!%p152_p3), 48   ;;  %s3053_s18 = smov (!%p152_p3), 96   ;;  %vm1580_vm7 = vsmask.f32 (!%p152_p3), 256  ;;  %vm2654_vm9 = vcmask (!%p152_p3), 519168  }
   0x9   : > { %vm3585_vm8 = vmand (!%p152_p3), %vm1579_vm6, %vm1580_vm7 }
   0xe   : > { %s4170_s12 = smov (!%p179_p4, %s3039_s12), 1 }
   0xf   : > { %s2937_s16 = smul.u32 240, %s4170_s12 }
  0x11   : > { %s3098_s19 = scalar_lea.vmem %s4159_s0, %s2937_s16 }
  0x12   : > { %v3101_v0 = vld [vmem:[%s3098_s19 + $0xc] sm:$0xff]   ;;  %v2968_v1 = vld [vmem:[%s3098_s19 + $0x14] ss:$0 sps:$4 sm:$0x11]   ;;  %v3105_v2 = vld [vmem:[%s3098_s19 + $0x18] sm:$0xff]  }
  0x13   : > { %v433_v3 = vshrl.u32 %v3101_v0, 16  ;;  %v435_v4 = vshll.u32 %v3101_v0, 16  ;;  %v440_v5 = vshll.u32 %v2968_v1, 16  ;;  %v704_v6 = vrot.slane %v3101_v0, 1  ;;  %v3115_v14 = vld [vmem:[%s3098_s19 + $0x24] sm:$0xff]   ;;  %v3119_v19 = vld [vmem:[%s3098_s19 + $0x30] sm:$0xff]  }
  0x14   : > { %v705_v7 = vrot.slane %v2968_v1, 1  ;;  %v2970_v8 = vld [vmem:[%s3098_s19 + $0x20] ss:$0 sps:$4 sm:$0x11]   ;;  %v445_v9 = vshrl.u32 %v3105_v2, 16  ;;  %v447_v10 = vshll.u32 %v3105_v2, 16 }
  0x15   : > { %v437_v11 = vrot.slane %v435_v4, 1  ;;  %v442_v12 = vrot.slane %v440_v5, 1  ;;  %v707_v13 = vrot.slane %v3105_v2, 1  ;;  %v452_v17 = vshll.u32 %v2970_v8, 16  ;;  %v3129_v32 = vld [vmem:[%s3098_s19 + $0x3c] sm:$0xff]   ;;  %v3140_v41 = vld [vmem:[%s3098_s19 + $0x48] sm:$0xff]  }
  0x16   : > { %v706_v15 = vsel %vm700_vm1, %v704_v6, %v705_v7  ;;  %v449_v16 = vrot.slane %v447_v10, 1  ;;  %v708_v18 = vrot.slane %v2970_v8, 1  ;;  %v2972_v21 = vld [vmem:[%s3098_s19 + $0x2c] ss:$0 sps:$4 sm:$0x11]   ;;  %v457_v22 = vshrl.u32 %v3115_v14, 16 }
  0x17   : > { %v438_v20 = vor.u32 %v437_v11, %v433_v3  ;;  %763 = vrot.lane.b32.xlu1 %v706_v15, %s3049_s20  ;;  %v459_v23 = vshll.u32 %v3115_v14, 16  ;;  %v710_v24 = vrot.slane %v3115_v14, 1  ;;  %v454_v26 = vrot.slane %v452_v17, 1  ;;  %v2974_v33 = vld [vmem:[%s3098_s19 + $0x38] ss:$0 sps:$4 sm:$0x11]  }
  0x18   : > { %v450_v25 = vor.u32 %v449_v16, %v445_v9  ;;  %v709_v27 = vsel %vm700_vm1, %v707_v13, %v708_v18  ;;  %v464_v30 = vshll.u32 %v2972_v21, 16  ;;  %v711_v31 = vrot.slane %v2972_v21, 1  ;;  %v2976_v46 = vld [vmem:[%s3098_s19 + $0x44] ss:$0 sps:$4 sm:$0x11]   ;;  %v3154_v60 = vld [vmem:[%s3098_s19 + $0x54] sm:$0xff]  }
  0x19   : > { %v443_v28 = vsel %vm419_vm0, %v438_v20, %v442_v12  ;;  %v461_v29 = vrot.slane %v459_v23, 1  ;;  %v469_v34 = vshrl.u32 %v3119_v19, 16  ;;  %v471_v35 = vshll.u32 %v3119_v19, 16  ;;  %v2978_v54 = vld [vmem:[%s3098_s19 + $0x50] ss:$0 sps:$4 sm:$0x11]  }
  0x1a   : > { %662 = vrot.lane.b32.xlu0 %v443_v28, %s3050_s21  ;;  %v713_v36 = vrot.slane %v3119_v19, 1  ;;  %v455_v37 = vsel %vm419_vm0, %v450_v25, %v454_v26  ;;  %v466_v39 = vrot.slane %v464_v30, 1  ;;  %v712_v40 = vsel %vm700_vm1, %v710_v24, %v711_v31  ;;  %v2980_v62 = vld [vmem:[%s3098_s19 + $0x5c] ss:$0 sps:$4 sm:$0x11]   ;;  %v3164_v9 = vld [vmem:[%s3098_s19 + $0x60] sm:$0xff]  }
  0x1b   : > { %765 = vrot.lane.b32.xlu1 %v709_v27, %s3049_s20  ;;  %v462_v38 = vor.u32 %v461_v29, %v457_v22  ;;  %v473_v42 = vrot.slane %v471_v35, 1  ;;  %v476_v43 = vshll.u32 %v2974_v33, 16  ;;  %v714_v44 = vrot.slane %v2974_v33, 1  ;;  %v2982_v12 = vld [vmem:[%s3098_s19 + $0x68] ss:$0 sps:$4 sm:$0x11]  }
  0x1c   : > { %v483_v45 = vshll.u32 %v3129_v32, 16  ;;  %v481_v48 = vshrl.u32 %v3129_v32, 16  ;;  %v716_v49 = vrot.slane %v3129_v32, 1  ;;  %v488_v53 = vshll.u32 %v2976_v46, 16  ;;  %v3173_v18 = vld [vmem:[%s3098_s19 + $0x6c] sm:$0xff]   ;;  %v3178_v24 = vld [vmem:[%s3098_s19] sm:$0xff]  }
  0x1d   : > { %v467_v47 = vsel %vm419_vm0, %v462_v38, %v466_v39  ;;  %v474_v50 = vor.u32 %v473_v42, %v469_v34  ;;  %v478_v51 = vrot.slane %v476_v43, 1  ;;  %v715_v55 = vsel %vm700_vm1, %v713_v36, %v714_v44  ;;  %v2984_v26 = vld [vmem:[%s3098_s19 + $0x74] ss:$0 sps:$4 sm:$0x11]  }
  0x1e   : > { %664 = vrot.lane.b32.xlu0 %v455_v37, %s3050_s21  ;;  %v485_v52 = vrot.slane %v483_v45, 1  ;;  %v717_v56 = vrot.slane %v2976_v46, 1  ;;  %v495_v57 = vshll.u32 %v3140_v41, 16  ;;  %v493_v58 = vshrl.u32 %v3140_v41, 16 }
  0x1f   : > { %767 = vrot.lane.b32.xlu1 %v712_v40, %s3049_s20  ;;  %v500_v59 = vshll.u32 %v2978_v54, 16  ;;  %v479_v63 = vsel %vm419_vm0, %v474_v50, %v478_v51  ;;  %v490_v3 = vrot.slane %v488_v53, 1  ;;  %v719_v4 = vrot.slane %v3140_v41, 1  ;;  %v2986_v34 = vld [vmem:[%s3098_s19 + $0x8] ss:$0 sps:$4 sm:$0x11]  }
  0x20   : > { %v497_v61 = vrot.slane %v495_v57, 1  ;;  %v486_v1 = vor.u32 %v485_v52, %v481_v48  ;;  %v718_v5 = vsel %vm700_vm1, %v716_v49, %v717_v56  ;;  %v720_v6 = vrot.slane %v2978_v54, 1 }
  0x21   : > { %v507_v7 = vshll.u32 %v3154_v60, 16  ;;  %v512_v8 = vshll.u32 %v2980_v62, 16  ;;  %v502_v11 = vrot.slane %v500_v59, 1  ;;  %v505_v15 = vshrl.u32 %v3154_v60, 16 }
  0x22   : > { %666 = vrot.lane.b32.xlu0 %v467_v47, %s3050_s21  ;;  %v498_v10 = vor.u32 %v497_v61, %v493_v58  ;;  %v491_v13 = vsel %vm419_vm0, %v486_v1, %v490_v3  ;;  %v519_v17 = vshll.u32 %v3164_v9, 16  ;;  %v721_v20 = vsel %vm700_vm1, %v719_v4, %v720_v6  ;;  %v3004_v3 = vld [vmem:[%s4160_s1 + $0x8] sm:$0xff]   ;;  %v3005_v4 = vld [vmem:[%s4160_s1 + $0x10] sm:$0xff]   ;;  %v3007_v6 = vld [vmem:[%s4160_s1 + $0x20] sm:$0xff]  }
  0x23   : > { %769 = vrot.lane.b32.xlu1 %v715_v55, %s3049_s20  ;;  %v509_v16 = vrot.slane %v507_v7, 1  ;;  %v514_v21 = vrot.slane %v512_v8, 1  ;;  %v722_v22 = vrot.slane %v3154_v60, 1  ;;  %v723_v23 = vrot.slane %v2980_v62, 1  ;;  %v3008_v7 = vld [vmem:[%s4160_s1 + $0x28] sm:$0xff]   ;;  %v3009_v8 = vld [vmem:[%s4160_s1 + $0x30] sm:$0xff]  }
  0x24   : > { %v517_v25 = vshrl.u32 %v3164_v9, 16  ;;  %v503_v27 = vsel %vm419_vm0, %v498_v10, %v502_v11  ;;  %v524_v28 = vshll.u32 %v2982_v12, 16  ;;  %v725_v29 = vrot.slane %v3164_v9, 1  ;;  %v3010_v10 = vld [vmem:[%s4160_s1 + $0x38] sm:$0xff]  }
  0x25   : > { %v510_v30 = vor.u32 %v509_v16, %v505_v15  ;;  %v521_v31 = vrot.slane %v519_v17, 1  ;;  %v531_v33 = vshll.u32 %v3173_v18, 16  ;;  %v423_v35 = vshll.u32 %v3178_v24, 16  ;;  %v3245_v11 = vld [vmem:[%s3098_s19 + $0x78] sm:$0xff]  }
  0x26   : > { %668 = vrot.lane.b32.xlu0 %v479_v63, %s3050_s21  ;;  %v724_v36 = vsel %vm700_vm1, %v722_v22, %v723_v23  ;;  %v726_v37 = vrot.slane %v2982_v12, 1  ;;  %v421_v38 = vshrl.u32 %v3178_v24, 16  ;;  %v428_v40 = vshll.u32 %v2986_v34, 16  ;;  %v3003_v63 = vld [vmem:[%s4160_s1] sm:$0xff]  }
  0x27   : > { %771 = vrot.lane.b32.xlu1 %v718_v5, %s3049_s20  ;;  %v425_v39 = vrot.slane %v423_v35, 1  ;;  %v526_v42 = vrot.slane %v524_v28, 1  ;;  %v529_v43 = vshrl.u32 %v3173_v18, 16  ;;  %v515_v44 = vsel %vm419_vm0, %v510_v30, %v514_v21  ;;  %v3006_v5 = vld [vmem:[%s4160_s1 + $0x18] sm:$0xff]   ;;  %v3011_v12 = vld [vmem:[%s4160_s1 + $0x40] sm:$0xff]  }
  0x28   : > { %v522_v45 = vor.u32 %v521_v31, %v517_v25  ;;  %v533_v46 = vrot.slane %v531_v33, 1  ;;  %v536_v47 = vshll.u32 %v2984_v26, 16  ;;  %v727_v48 = vsel %vm700_vm1, %v725_v29, %v726_v37  ;;  %v3254_v21 = vld [vmem:[%s3098_s19 + $0x84] sm:$0xff]  }
  0x29   : > { %v426_v49 = vor.u32 %v425_v39, %v421_v38  ;;  %v430_v50 = vrot.slane %v428_v40, 1  ;;  %v701_v55 = vrot.slane %v3178_v24, 1  ;;  %v702_v56 = vrot.slane %v2986_v34, 1 }
  0x2a   : > { %670 = vrot.lane.b32.xlu0 %v491_v13, %s3050_s21  ;;  %v527_v51 = vsel %vm419_vm0, %v522_v45, %v526_v42  ;;  %v534_v52 = vor.u32 %v533_v46, %v529_v43  ;;  %v538_v53 = vrot.slane %v536_v47, 1  ;;  %v728_v58 = vrot.slane %v3173_v18, 1  ;;  %v2988_v13 = vld [vmem:[%s3098_s19 + $0x80] ss:$0 sps:$4 sm:$0x11]  }
  0x2b   : > { %773 = vrot.lane.b32.xlu1 %v721_v20, %s3049_s20  ;;  %v431_v54 = vsel %vm419_vm0, %v426_v49, %v430_v50  ;;  %v729_v59 = vrot.slane %v2984_v26, 1  ;;  %v703_v61 = vsel %vm700_vm1, %v701_v55, %v702_v56  ;;  %v3051_v1 = vmov 0   ;;  %v2992_v47 = vld [vmem:[%s3098_s19 + $0x98] ss:$0 sps:$4 sm:$0x11]  }
  0x2c   : > { %v539_v57 = vsel %vm419_vm0, %v534_v52, %v538_v53  ;;  %1174 = vmatprep.subr.bf16.mxu0 %v3051_v1  ;;  %2333 = vmatprep.subr.bf16.mxu1 %v3051_v1  ;;  %v543_v15 = vshll.u32 %v3245_v11, 16  ;;  %v541_v16 = vshrl.u32 %v3245_v11, 16  ;;  %v548_v20 = vshll.u32 %v2988_v13, 16 }
  0x2d   : > { %v730_v62 = vsel %vm700_vm1, %v728_v58, %v729_v59  ;;  %1175 = vmatpush1.bf16.msra.mxu0 %v3003_v63  ;;  %v555_v28 = vshll.u32 %v3254_v21, 16  ;;  %v731_v33 = vrot.slane %v3245_v11, 1  ;;  %v732_v34 = vrot.slane %v2988_v13, 1 }
  0x2e   : > { %672 = vrot.lane.b32.xlu0 %v503_v27, %s3050_s21  ;;  %1176 = vmatprep.subr.bf16.mxu0 %v3051_v1  ;;  %v545_v17 = vrot.slane %v543_v15, 1  ;;  %v550_v26 = vrot.slane %v548_v20, 1  ;;  %v2990_v27 = vld [vmem:[%s3098_s19 + $0x8c] ss:$0 sps:$4 sm:$0x11]   ;;  %v553_v37 = vshrl.u32 %v3254_v21, 16 }
  0x2f   : > { %775 = vrot.lane.b32.xlu1 %v724_v36, %s3049_s20  ;;  %v557_v38 = vrot.slane %v555_v28, 1  ;;  %v560_v39 = vshll.u32 %v2990_v27, 16  ;;  %v733_v43 = vsel %vm700_vm1, %v731_v33, %v732_v34  ;;  %v734_v50 = vrot.slane %v3254_v21, 1 }
  0x30   : > { %v546_v25 = vor.u32 %v545_v17, %v541_v16  ;;  %v572_v56 = vshll.u32 %v2992_v47, 16 }
  0x31   : > { %1177 = vmatpush1.bf16.msra.mxu0 %v3004_v3  ;;  %v558_v45 = vor.u32 %v557_v38, %v553_v37  ;;  %v562_v46 = vrot.slane %v560_v39, 1 }
  0x32   : > { %674 = vrot.lane.b32.xlu0 %v515_v44, %s3050_s21  ;;  %1178 = vmatprep.subr.bf16.mxu0 %v3051_v1  ;;  %v551_v36 = vsel %vm419_vm0, %v546_v25, %v550_v26 }
  0x33   : > { %777 = vrot.lane.b32.xlu1 %v727_v48, %s3049_s20  ;;  %v563_v53 = vsel %vm419_vm0, %v558_v45, %v562_v46 }
  0x35   : > { %1179 = vmatpush1.bf16.msra.mxu0 %v3005_v4 }
  0x36   : > { %676 = vrot.lane.b32.xlu0 %v527_v51, %s3050_s21  ;;  %1180 = vmatprep.subr.bf16.mxu0 %v3051_v1  ;;  %v735_v51 = vrot.slane %v2990_v27, 1 }
  0x37   : > { %660 = vrot.lane.b32.xlu1 %v431_v54, %s3050_s21 }
  0x38   : > { %v736_v58 = vsel %vm700_vm1, %v734_v50, %v735_v51 }
  0x39   : > { %1181 = vmatpush1.bf16.msra.mxu0 %v3006_v5 }
  0x3a   : > { %678 = vrot.lane.b32.xlu0 %v539_v57, %s3050_s21  ;;  %1182 = vmatprep.subr.bf16.mxu0 %v3051_v1 }
  0x3b   : > { %761 = vrot.lane.b32.xlu1 %v703_v61, %s3049_s20  ;;  %v574_v61 = vrot.slane %v572_v56, 1 }
  0x3d   : > { %1183 = vmatpush1.bf16.msra.mxu0 %v3007_v6  ;;  %v738_v6 = vrot.slane %v2992_v47, 1 }
  0x3e   : > { %779 = vrot.lane.b32.xlu0 %v730_v62, %s3049_s20  ;;  %1184 = vmatprep.subr.bf16.mxu0 %v3051_v1  ;;  %v2994_v62 = vld [vmem:[%s3098_s19 + $0xa4] ss:$0 sps:$4 sm:$0x11]  }
  0x3f   : > { %v584_v13 = vshll.u32 %v2994_v62, 16  ;;  %v741_v28 = vrot.slane %v2994_v62, 1 }
  0x41   : > { %1185 = vmatpush1.bf16.msra.mxu0 %v3008_v7  ;;  %v586_v20 = vrot.slane %v584_v13, 1 }
  0x42   : > { %1186 = vmatprep.subr.bf16.mxu0 %v3051_v1 }
  0x45   : > { %1187 = vmatpush1.bf16.msra.mxu0 %v3009_v8 }
  0x46   : > { %1188 = vmatprep.subr.bf16.mxu0 %v3051_v1 }
  0x49   : > { %1189 = vmatpush1.bf16.msra.mxu0 %v3010_v10 }
  0x4a   : > { %1190 = vmatprep.subr.bf16.mxu0 %v3051_v1 }
  0x4d   : > { %1191 = vmatpush1.bf16.msra.mxu0 %v3011_v12 }
  0x89   : > { %v764_v22 = vpop.permute.xlu1 %763 }
  0x8c   : > { %v663_v23 = vpop.permute.xlu0 %662 }
  0x8d   : > { %v805_v29 = vsel %vm801_vm2, %v3101_v0, %v663_v23  ;;  %v766_v31 = vpop.permute.xlu1 %765  ;;  %v3269_v0 = vld [vmem:[%s3098_s19 + $0x90] sm:$0xff]  }
  0x8e   : > { %v3261_v30 = vsel %vm842_vm3, %v805_v29, %v764_v22  ;;  %v567_v48 = vshll.u32 %v3269_v0, 16  ;;  %v565_v52 = vshrl.u32 %v3269_v0, 16  ;;  %v737_v5 = vrot.slane %v3269_v0, 1  ;;  %v2996_v22 = vld [vmem:[%s3098_s19 + $0xb0] ss:$0 sps:$4 sm:$0x11]  }
  0x8f   : > { %901 = vrot.lane.b32.xlu0 %v3261_v30, %s3052_s17  ;;  %v744_v47 = vrot.slane %v2996_v22, 1 }
  0x90   : > { %v665_v35 = vpop.permute.xlu0 %664  ;;  %v569_v55 = vrot.slane %v567_v48, 1  ;;  %v739_v16 = vsel %vm700_vm1, %v737_v5, %v738_v6 }
  0x91   : > { %v807_v40 = vsel %vm801_vm2, %v3105_v2, %v665_v35  ;;  %v768_v49 = vpop.permute.xlu1 %767  ;;  %v596_v35 = vshll.u32 %v2996_v22, 16 }
  0x92   : > { %v3274_v42 = vsel %vm842_vm3, %v807_v40, %v766_v31  ;;  %v570_v59 = vor.u32 %v569_v55, %v565_v52  ;;  %v2998_v40 = vld [vmem:[%s3098_s19 + $0xbc] ss:$0 sps:$4 sm:$0x11]  }
  0x93   : > { %680 = vrot.lane.b32.xlu0 %v551_v36, %s3050_s21  ;;  %938 = vrot.lane.b32.xlu1 %v3274_v42, %s3053_s18  ;;  %v598_v39 = vrot.slane %v596_v35, 1  ;;  %v608_v51 = vshll.u32 %v2998_v40, 16 }
  0x94   : > { %v667_v44 = vpop.permute.xlu0 %666  ;;  %v575_v8 = vsel %vm419_vm0, %v570_v59, %v574_v61 }
  0x95   : > { %v809_v2 = vsel %vm801_vm2, %v3115_v14, %v667_v44  ;;  %v3294_v14 = vld [vmem:[%s3098_s19 + $0x9c] sm:$0xff]   ;;  %v770_v4 = vpop.permute.xlu1 %769  ;;  %v610_v56 = vrot.slane %v608_v51, 1 }
  0x96   : > { %v3291_v54 = vsel %vm842_vm3, %v809_v2, %v768_v49  ;;  %v579_v63 = vshll.u32 %v3294_v14, 16  ;;  %v577_v7 = vshrl.u32 %v3294_v14, 16  ;;  %v740_v27 = vrot.slane %v3294_v14, 1 }
  0x97   : > { %903 = vrot.lane.b32.xlu0 %v3274_v42, %s3052_s17  ;;  %781 = vrot.lane.b32.xlu1 %v733_v43, %s3049_s20 }
  0x98   : > { %v669_v57 = vpop.permute.xlu0 %668  ;;  %v581_v12 = vrot.slane %v579_v63, 1  ;;  %v742_v37 = vsel %vm700_vm1, %v740_v27, %v741_v28  ;;  %v747_v63 = vrot.slane %v2998_v40, 1 }
  0x99   : > { %v811_v3 = vsel %vm801_vm2, %v3119_v19, %v669_v57  ;;  %v3314_v19 = vld [vmem:[%s3098_s19 + $0xa8] sm:$0xff]   ;;  %v772_v26 = vpop.permute.xlu1 %771 }
  0x9a   : > { %v3311_v10 = vsel %vm842_vm3, %v811_v3, %v770_v4  ;;  %v582_v17 = vor.u32 %v581_v12, %v577_v7  ;;  %v591_v23 = vshll.u32 %v3314_v19, 16  ;;  %v589_v29 = vshrl.u32 %v3314_v19, 16  ;;  %v3000_v57 = vld [vmem:[%s3098_s19 + $0xc8] ss:$0 sps:$4 sm:$0x11]   ;;  %v3370_v4 = vld [vmem:[%s3098_s19 + $0xcc] sm:$0xff]  }
  0x9b   : > { %682 = vrot.lane.b32.xlu0 %v563_v53, %s3050_s21  ;;  %940 = vrot.lane.b32.xlu1 %v3291_v54, %s3053_s18  ;;  %v743_v46 = vrot.slane %v3314_v19, 1  ;;  %v3002_v12 = vld [vmem:[%s3098_s19 + $0xd4] ss:$0 sps:$4 sm:$0x11]   ;;  %v627_v13 = vshll.u32 %v3370_v4, 16 }
  0x9c   : > { %v671_v15 = vpop.permute.xlu0 %670  ;;  %v587_v31 = vsel %vm419_vm0, %v582_v17, %v586_v20  ;;  %v593_v34 = vrot.slane %v591_v23, 1  ;;  %v632_v27 = vshll.u32 %v3002_v12, 16 }
  0x9d   : > { %v813_v25 = vsel %vm801_vm2, %v3129_v32, %v671_v15  ;;  %v3334_v32 = vld [vmem:[%s3098_s19 + $0xb4] sm:$0xff]   ;;  %v774_v45 = vpop.permute.xlu1 %773  ;;  %v745_v53 = vsel %vm700_vm1, %v743_v46, %v744_v47  ;;  %v753_v46 = vrot.slane %v3002_v12, 1 }
  0x9e   : > { %v3331_v33 = vsel %vm842_vm3, %v813_v25, %v772_v26  ;;  %v594_v38 = vor.u32 %v593_v34, %v589_v29  ;;  %v603_v43 = vshll.u32 %v3334_v32, 16  ;;  %v601_v48 = vshrl.u32 %v3334_v32, 16  ;;  %v3394_v34 = vld [vmem:[%s3098_s19 + $0xd8] sm:$0xff]  }
  0x9f   : > { %905 = vrot.lane.b32.xlu0 %v3291_v54, %s3052_s17  ;;  %783 = vrot.lane.b32.xlu1 %v736_v58, %s3049_s20  ;;  %v746_v62 = vrot.slane %v3334_v32, 1  ;;  %v625_v25 = vshrl.u32 %v3370_v4, 16  ;;  %v629_v26 = vrot.slane %v627_v13, 1 }
  0xa0   : > { %v673_v36 = vpop.permute.xlu0 %672  ;;  %v599_v2 = vsel %vm419_vm0, %v594_v38, %v598_v39  ;;  %v605_v50 = vrot.slane %v603_v43, 1  ;;  %v3013_v38 = vld [vmem:[%s3098_s19 + $0xe0] ss:$0 sps:$4 sm:$0x11]   ;;  %v639_v39 = vshll.u32 %v3394_v34, 16 }
  0xa1   : > { %v815_v44 = vsel %vm801_vm2, %v3140_v41, %v673_v36  ;;  %v3354_v41 = vld [vmem:[%s3098_s19 + $0xc0] sm:$0xff]   ;;  %v776_v61 = vpop.permute.xlu1 %775  ;;  %v748_v15 = vsel %vm700_vm1, %v746_v62, %v747_v63  ;;  %v630_v35 = vor.u32 %v629_v26, %v625_v25  ;;  %v634_v36 = vrot.slane %v632_v27, 1 }
  0xa2   : > { %v3351_v49 = vsel %vm842_vm3, %v815_v44, %v774_v45  ;;  %v606_v55 = vor.u32 %v605_v50, %v601_v48  ;;  %v615_v58 = vshll.u32 %v3354_v41, 16  ;;  %v613_v3 = vshrl.u32 %v3354_v41, 16 }
  0xa3   : > { %684 = vrot.lane.b32.xlu0 %v575_v8, %s3050_s21  ;;  %942 = vrot.lane.b32.xlu1 %v3311_v10, %s3053_s18  ;;  %v635_v44 = vsel %vm419_vm0, %v630_v35, %v634_v36  ;;  %v752_v45 = vrot.slane %v3370_v4, 1  ;;  %v637_v48 = vshrl.u32 %v3394_v34, 16 }
  0xa4   : > { %v675_v52 = vpop.permute.xlu0 %674  ;;  %v611_v5 = vsel %vm419_vm0, %v606_v55, %v610_v56  ;;  %v617_v7 = vrot.slane %v615_v58, 1  ;;  %v3423_v56 = vld [vmem:[%s3098_s19 + $0xe4] sm:$0xff]  }
  0xa5   : > { %v817_v59 = vsel %vm801_vm2, %v3154_v60, %v675_v52  ;;  %v620_v60 = vshll.u32 %v3000_v57, 16  ;;  %v778_v22 = vpop.permute.xlu1 %777  ;;  %v754_v50 = vsel %vm700_vm1, %v752_v45, %v753_v46  ;;  %v651_v58 = vshll.u32 %v3423_v56, 16 }
  0xa6   : > { %v3374_v6 = vsel %vm842_vm3, %v817_v59, %v776_v61  ;;  %v758_v36 = vrot.slane %v3423_v56, 1 }
  0xa7   : > { %907 = vrot.lane.b32.xlu0 %v3311_v10, %s3052_s17  ;;  %785 = vrot.lane.b32.xlu1 %v739_v16, %s3049_s20  ;;  %v618_v16 = vor.u32 %v617_v7, %v613_v3  ;;  %v622_v17 = vrot.slane %v620_v60, 1  ;;  %v649_v3 = vshrl.u32 %v3423_v56, 16 }
  0xa8   : > { %v677_v8 = vpop.permute.xlu0 %676 }
  0xa9   : > { %v819_v20 = vsel %vm801_vm2, %v3164_v9, %v677_v8  ;;  %v623_v28 = vsel %vm419_vm0, %v618_v16, %v622_v17  ;;  %v750_v9 = vrot.slane %v3000_v57, 1  ;;  %v661_v55 = vpop.permute.xlu1 %660  ;;  %v3015_v57 = vld [vmem:[%s3098_s19 + $0xec] ss:$0 sps:$4 sm:$0x11]   ;;  %v755_v17 = vrot.slane %v3394_v34, 1 }
  0xaa   : > { %v3390_v29 = vsel %vm842_vm3, %v819_v20, %v778_v22  ;;  %v803_v59 = vsel %vm801_vm2, %v3178_v24, %v661_v55  ;;  %v656_v7 = vshll.u32 %v3015_v57, 16  ;;  %v756_v20 = vrot.slane %v3013_v38, 1 }
  0xab   : > { %686 = vrot.lane.b32.xlu0 %v587_v31, %s3050_s21  ;;  %944 = vrot.lane.b32.xlu1 %v3331_v33, %s3053_s18  ;;  %v749_v31 = vrot.slane %v3354_v41, 1 }
  0xac   : > { %v679_v23 = vpop.permute.xlu0 %678  ;;  %v658_v16 = vrot.slane %v656_v7, 1 }
  0xad   : > { %v821_v40 = vsel %vm801_vm2, %v3173_v18, %v679_v23  ;;  %v644_v18 = vshll.u32 %v3013_v38, 16  ;;  %v762_v61 = vpop.permute.xlu1 %761 }
  0xae   : > { %v844_v63 = vsel %vm842_vm3, %v803_v59, %v762_v61 }
  0xaf   : > { %909 = vrot.lane.b32.xlu0 %v3331_v33, %s3052_s17  ;;  %787 = vrot.lane.b32.xlu1 %v742_v37, %s3049_s20  ;;  %v751_v37 = vsel %vm700_vm1, %v749_v31, %v750_v9  ;;  %v646_v52 = vrot.slane %v644_v18, 1 }
  0xb0   : > { %v780_v43 = vpop.permute.xlu0 %779 }
  0xb1   : > { %v3410_v47 = vsel %vm842_vm3, %v821_v40, %v780_v43 }
  0xb3   : > { %688 = vrot.lane.b32.xlu0 %v599_v2, %s3050_s21  ;;  %946 = vrot.lane.b32.xlu1 %v3351_v49, %s3053_s18  ;;  %v641_v2 = vrot.slane %v639_v39, 1 }
  0xb5   : > { %v642_v51 = vor.u32 %v641_v2, %v637_v48 }
  0xb7   : > { %911 = vrot.lane.b32.xlu0 %v3351_v49, %s3052_s17  ;;  %789 = vrot.lane.b32.xlu1 %v745_v53, %s3049_s20  ;;  %v647_v53 = vsel %vm419_vm0, %v642_v51, %v646_v52 }
  0xbb   : > { %690 = vrot.lane.b32.xlu0 %v611_v5, %s3050_s21  ;;  %948 = vrot.lane.b32.xlu1 %v3374_v6, %s3053_s18  ;;  %v653_v5 = vrot.slane %v651_v58, 1 }
  0xbf   : > { %913 = vrot.lane.b32.xlu0 %v3374_v6, %s3052_s17  ;;  %791 = vrot.lane.b32.xlu1 %v748_v15, %s3049_s20  ;;  %v654_v15 = vor.u32 %v653_v5, %v649_v3 }
  0xc1   : > { %v659_v26 = vsel %vm419_vm0, %v654_v15, %v658_v16 }
  0xc3   : > { %692 = vrot.lane.b32.xlu0 %v623_v28, %s3050_s21  ;;  %950 = vrot.lane.b32.xlu1 %v3390_v29, %s3053_s18 }
  0xc7   : > { %915 = vrot.lane.b32.xlu0 %v3390_v29, %s3052_s17  ;;  %793 = vrot.lane.b32.xlu1 %v751_v37, %s3049_s20  ;;  %v759_v37 = vrot.slane %v3015_v57, 1 }
  0xcb   : > { %694 = vrot.lane.b32.xlu0 %v635_v44, %s3050_s21  ;;  %952 = vrot.lane.b32.xlu1 %v3410_v47, %s3053_s18 }
  0xcf   : > { %917 = vrot.lane.b32.xlu0 %v3410_v47, %s3052_s17  ;;  %795 = vrot.lane.b32.xlu1 %v754_v50, %s3049_s20 }
  0xd3   : > { %696 = vrot.lane.b32.xlu0 %v647_v53, %s3050_s21 }
 0x101   : > { %v902_v62 = vpop.permute.xlu0 %901 }
 0x102   : > { %v976_v60 = vsel %vm974_vm4, %v844_v63, %v902_v62 }
 0x105   : > { %v681_v8 = vpop.permute.xlu0 %680  ;;  %v939_v12 = vpop.permute.xlu1 %938 }
 0x106   : > { %2827 = vmatprep.mubr.msk.bf16.mxu0 %vm801_vm2, %v939_v12  ;;  %v1013_v13 = vsel %vm1011_vm5, %v976_v60, %v939_v12  ;;  %v823_v24 = vsel %vm801_vm2, %v3245_v11, %v681_v8  ;;  %v757_v11 = vsel %vm700_vm1, %v755_v17, %v756_v20 }
 0x107   : > { %1207 = vmatmul.mubr.bf16.vlgmr.msra.gmra.mrb[0].mxu0 %v1013_v13 }
 0x109   : > { %v904_v22 = vpop.permute.xlu0 %903  ;;  %v782_v23 = vpop.permute.xlu1 %781 }
 0x10a   : > { %v3438_v25 = vsel %vm842_vm3, %v823_v24, %v782_v23  ;;  %v978_v27 = vsel %vm974_vm4, %v3261_v30, %v904_v22 }
 0x10b   : > { %919 = vrot.lane.b32.xlu0 %v3438_v25, %s3052_s17  ;;  %954 = vrot.lane.b32.xlu1 %v3438_v25, %s3053_s18 }
 0x10d   : > { %v683_v28 = vpop.permute.xlu0 %682  ;;  %v941_v31 = vpop.permute.xlu1 %940 }
 0x10e   : > { %2828 = vmatprep.mubr.msk.bf16.mxu0 %vm801_vm2, %v941_v31  ;;  %v1016_v9 = vsel %vm1011_vm5, %v978_v27, %v941_v31  ;;  %v825_v35 = vsel %vm801_vm2, %v3254_v21, %v683_v28  ;;  %v760_v21 = vsel %vm700_vm1, %v758_v36, %v759_v37 }
 0x10f   : > { %698 = vrot.lane.b32.xlu0 %v659_v26, %s3050_s21  ;;  %797 = vrot.lane.b32.xlu1 %v757_v11, %s3049_s20 }
 0x110   : > { %1215 = vmatmul.mubr.bf16.gmra.mrb[4].mxu0 %v1016_v9 }
 0x111   : > { %v906_v38 = vpop.permute.xlu0 %905  ;;  %v784_v39 = vpop.permute.xlu1 %783 }
 0x112   : > { %v3456_v30 = vsel %vm842_vm3, %v825_v35, %v784_v39  ;;  %v980_v40 = vsel %vm974_vm4, %v3274_v42, %v906_v38 }
 0x113   : > { %921 = vrot.lane.b32.xlu0 %v3456_v30, %s3052_s17  ;;  %956 = vrot.lane.b32.xlu1 %v3456_v30, %s3053_s18 }
 0x115   : > { %v685_v43 = vpop.permute.xlu0 %684  ;;  %v943_v44 = vpop.permute.xlu1 %942 }
 0x116   : > { %2829 = vmatprep.mubr.msk.bf16.mxu0 %vm801_vm2, %v943_v44  ;;  %v1019_v45 = vsel %vm1011_vm5, %v980_v40, %v943_v44  ;;  %v827_v46 = vsel %vm801_vm2, %v3269_v0, %v685_v43 }
 0x117   : > { %799 = vrot.lane.b32.xlu1 %v760_v21, %s3049_s20 }
 0x118   : > { %1223 = vmatmul.mubr.bf16.gmra.mrb[8].mxu0 %v1019_v45 }
 0x119   : > { %v908_v48 = vpop.permute.xlu0 %907  ;;  %v786_v2 = vpop.permute.xlu1 %785 }
 0x11a   : > { %v3471_v18 = vsel %vm842_vm3, %v827_v46, %v786_v2  ;;  %v982_v42 = vsel %vm974_vm4, %v3291_v54, %v908_v48 }
 0x11b   : > { %923 = vrot.lane.b32.xlu0 %v3471_v18, %s3052_s17  ;;  %958 = vrot.lane.b32.xlu1 %v3471_v18, %s3053_s18 }
 0x11d   : > { %v687_v50 = vpop.permute.xlu0 %686  ;;  %v945_v51 = vpop.permute.xlu1 %944 }
 0x11e   : > { %2830 = vmatprep.mubr.msk.bf16.mxu0 %vm801_vm2, %v945_v51  ;;  %v1022_v0 = vsel %vm1011_vm5, %v982_v42, %v945_v51  ;;  %v829_v52 = vsel %vm801_vm2, %v3294_v14, %v687_v50 }
 0x120   : > { %1231 = vmatmul.mubr.bf16.gmra.mrb[12].mxu0 %v1022_v0 }
 0x121   : > { %v910_v53 = vpop.permute.xlu0 %909  ;;  %v788_v55 = vpop.permute.xlu1 %787 }
 0x122   : > { %v3484_v57 = vsel %vm842_vm3, %v829_v52, %v788_v55  ;;  %v984_v54 = vsel %vm974_vm4, %v3311_v10, %v910_v53 }
 0x123   : > { %925 = vrot.lane.b32.xlu0 %v3484_v57, %s3052_s17  ;;  %960 = vrot.lane.b32.xlu1 %v3484_v57, %s3053_s18 }
 0x125   : > { %v689_v58 = vpop.permute.xlu0 %688  ;;  %v947_v59 = vpop.permute.xlu1 %946 }
 0x126   : > { %2831 = vmatprep.mubr.msk.bf16.mxu0 %vm801_vm2, %v947_v59  ;;  %v1025_v14 = vsel %vm1011_vm5, %v984_v54, %v947_v59  ;;  %v831_v61 = vsel %vm801_vm2, %v3314_v19, %v689_v58 }
 0x128   : > { %1239 = vmatmul.mubr.bf16.gmra.mrb[16].mxu0 %v1025_v14 }
 0x129   : > { %v912_v62 = vpop.permute.xlu0 %911  ;;  %v790_v63 = vpop.permute.xlu1 %789 }
 0x12a   : > { %v3497_v3 = vsel %vm842_vm3, %v831_v61, %v790_v63  ;;  %v986_v10 = vsel %vm974_vm4, %v3331_v33, %v912_v62 }
 0x12b   : > { %927 = vrot.lane.b32.xlu0 %v3497_v3, %s3052_s17  ;;  %962 = vrot.lane.b32.xlu1 %v3497_v3, %s3053_s18 }
 0x12d   : > { %v691_v5 = vpop.permute.xlu0 %690  ;;  %v949_v7 = vpop.permute.xlu1 %948 }
 0x12e   : > { %2832 = vmatprep.mubr.msk.bf16.mxu0 %vm801_vm2, %v949_v7  ;;  %v1028_v19 = vsel %vm1011_vm5, %v986_v10, %v949_v7  ;;  %v833_v60 = vsel %vm801_vm2, %v3334_v32, %v691_v5 }
 0x130   : > { %1247 = vmatmul.mubr.bf16.gmra.mrb[20].mxu0 %v1028_v19 }
 0x131   : > { %v914_v8 = vpop.permute.xlu0 %913  ;;  %v792_v12 = vpop.permute.xlu1 %791 }
 0x132   : > { %v3510_v13 = vsel %vm842_vm3, %v833_v60, %v792_v12  ;;  %v988_v33 = vsel %vm974_vm4, %v3351_v49, %v914_v8 }
 0x133   : > { %929 = vrot.lane.b32.xlu0 %v3510_v13, %s3052_s17  ;;  %964 = vrot.lane.b32.xlu1 %v3510_v13, %s3053_s18 }
 0x135   : > { %v693_v24 = vpop.permute.xlu0 %692  ;;  %v951_v15 = vpop.permute.xlu1 %950 }
 0x136   : > { %2833 = vmatprep.mubr.msk.bf16.mxu0 %vm801_vm2, %v951_v15  ;;  %v1031_v32 = vsel %vm1011_vm5, %v988_v33, %v951_v15  ;;  %v835_v16 = vsel %vm801_vm2, %v3354_v41, %v693_v24 }
 0x138   : > { %1255 = vmatmul.mubr.bf16.gmra.mrb[24].mxu0 %v1031_v32 }
 0x139   : > { %v916_v17 = vpop.permute.xlu0 %915  ;;  %v794_v20 = vpop.permute.xlu1 %793 }
 0x13a   : > { %v3523_v22 = vsel %vm842_vm3, %v835_v16, %v794_v20  ;;  %v990_v49 = vsel %vm974_vm4, %v3374_v6, %v916_v17 }
 0x13b   : > { %931 = vrot.lane.b32.xlu0 %v3523_v22, %s3052_s17  ;;  %966 = vrot.lane.b32.xlu1 %v3523_v22, %s3053_s18 }
 0x13d   : > { %v953_v23 = vpop.permute.xlu1 %952  ;;  %v695_v26 = vpop.permute.xlu0 %694 }
 0x13e   : > { %2834 = vmatprep.mubr.msk.bf16.mxu0 %vm801_vm2, %v953_v23  ;;  %v1034_v41 = vsel %vm1011_vm5, %v990_v49, %v953_v23  ;;  %v837_v11 = vsel %vm801_vm2, %v3370_v4, %v695_v26 }
 0x140   : > { %1263 = vmatmul.mubr.bf16.gmra.mrb[28].mxu0 %v1034_v41 }
 0x141   : > { %v796_v27 = vpop.permute.xlu1 %795  ;;  %v918_v6 = vpop.permute.xlu0 %917 }
 0x142   : > { %v3536_v28 = vsel %vm842_vm3, %v837_v11, %v796_v27  ;;  %v992_v9 = vsel %vm974_vm4, %v3390_v29, %v918_v6 }
 0x143   : > { %933 = vrot.lane.b32.xlu0 %v3536_v28, %s3052_s17  ;;  %968 = vrot.lane.b32.xlu1 %v3536_v28, %s3053_s18 }
 0x145   : > { %v697_v31 = vpop.permute.xlu0 %696 }
 0x146   : > { %v839_v37 = vsel %vm801_vm2, %v3394_v34, %v697_v31 }
 0x17d   : > { %v955_v35 = vpop.permute.xlu1 %954  ;;  %v920_v36 = vpop.permute.xlu0 %919 }
 0x17e   : > { %2835 = vmatprep.mubr.msk.bf16.mxu0 %vm801_vm2, %v955_v35  ;;  %v1037_v4 = vsel %vm1011_vm5, %v992_v9, %v955_v35  ;;  %v994_v29 = vsel %vm974_vm4, %v3410_v47, %v920_v36 }
 0x17f   : > { %1271 = vmatmul.mubr.bf16.gmra.mrb[32].mxu0 %v1037_v4 }
 0x181   : > { %v798_v38 = vpop.permute.xlu1 %797  ;;  %v699_v21 = vpop.permute.xlu0 %698 }
 0x182   : > { %v880_v39 = vsel %vm842_vm3, %v839_v37, %v798_v38  ;;  %v841_v34 = vsel %vm801_vm2, %v3423_v56, %v699_v21 }
 0x183   : > { %935 = vrot.lane.b32.xlu0 %v880_v39, %s3052_s17  ;;  %970 = vrot.lane.b32.xlu1 %v880_v39, %s3053_s18 }
 0x185   : > { %v957_v40 = vpop.permute.xlu1 %956  ;;  %v922_v45 = vpop.permute.xlu0 %921 }
 0x186   : > { %2836 = vmatprep.mubr.msk.bf16.mxu0 %vm801_vm2, %v957_v40  ;;  %v1040_v43 = vsel %vm1011_vm5, %v994_v29, %v957_v40  ;;  %v996_v48 = vsel %vm974_vm4, %v3438_v25, %v922_v45 }
 0x187   : > { %1279 = vmatmul.mubr.bf16.gmra.mrb[36].mxu0 %v1040_v43 }
 0x189   : > { %v800_v44 = vpop.permute.xlu1 %799 }
 0x18a   : > { %v882_v46 = vsel %vm842_vm3, %v841_v34, %v800_v44 }
 0x18b   : > { %972 = vrot.lane.b32.xlu1 %v882_v46, %s3053_s18 }
 0x18d   : > { %v959_v2 = vpop.permute.xlu1 %958  ;;  %v924_v42 = vpop.permute.xlu0 %923 }
 0x18e   : > { %2837 = vmatprep.mubr.msk.bf16.mxu0 %vm801_vm2, %v959_v2  ;;  %v1043_v47 = vsel %vm1011_vm5, %v996_v48, %v959_v2  ;;  %v998_v56 = vsel %vm974_vm4, %v3456_v30, %v924_v42 }
 0x18f   : > { %1287 = vmatmul.mubr.bf16.gmra.mrb[40].mxu0 %v1043_v47 }
 0x195   : > { %v961_v50 = vpop.permute.xlu1 %960  ;;  %v926_v0 = vpop.permute.xlu0 %925 }
 0x196   : > { %2838 = vmatprep.mubr.msk.bf16.mxu0 %vm801_vm2, %v961_v50  ;;  %v1046_v51 = vsel %vm1011_vm5, %v998_v56, %v961_v50  ;;  %v1000_v25 = vsel %vm974_vm4, %v3471_v18, %v926_v0 }
 0x197   : > { %1295 = vmatmul.mubr.bf16.gmra.mrb[44].mxu0 %v1046_v51 }
 0x19d   : > { %v963_v52 = vpop.permute.xlu1 %962  ;;  %v928_v55 = vpop.permute.xlu0 %927 }
 0x19e   : > { %2839 = vmatprep.mubr.msk.bf16.mxu0 %vm801_vm2, %v963_v52  ;;  %v1049_v53 = vsel %vm1011_vm5, %v1000_v25, %v963_v52  ;;  %v1002_v30 = vsel %vm974_vm4, %v3484_v57, %v928_v55 }
 0x19f   : > { %1303 = vmatmul.mubr.bf16.gmra.mrb[48].mxu0 %v1049_v53 }
 0x1a5   : > { %v965_v54 = vpop.permute.xlu1 %964  ;;  %v930_v59 = vpop.permute.xlu0 %929 }
 0x1a6   : > { %2840 = vmatprep.mubr.msk.bf16.mxu0 %vm801_vm2, %v965_v54  ;;  %v1052_v58 = vsel %vm1011_vm5, %v1002_v30, %v965_v54  ;;  %v1004_v18 = vsel %vm974_vm4, %v3497_v3, %v930_v59 }
 0x1a7   : > { %1311 = vmatmul.mubr.bf16.gmra.mrb[52].mxu0 %v1052_v58 }
 0x1ad   : > { %v967_v14 = vpop.permute.xlu1 %966  ;;  %v932_v62 = vpop.permute.xlu0 %931 }
 0x1ae   : > { %2841 = vmatprep.mubr.msk.bf16.mxu0 %vm801_vm2, %v967_v14  ;;  %v1055_v61 = vsel %vm1011_vm5, %v1004_v18, %v967_v14  ;;  %v1006_v57 = vsel %vm974_vm4, %v3510_v13, %v932_v62 }
 0x1af   : > { %1319 = vmatmul.mubr.bf16.gmra.mrb[56].mxu0 %v1055_v61 }
 0x1b5   : > { %v969_v63 = vpop.permute.xlu1 %968  ;;  %v934_v40 = vpop.permute.xlu0 %933 }
 0x1b6   : > { %2842 = vmatprep.mubr.msk.bf16.mxu0 %vm801_vm2, %v969_v63  ;;  %v1058_v10 = vsel %vm1011_vm5, %v1006_v57, %v969_v63  ;;  %v1008_v47 = vsel %vm974_vm4, %v3523_v22, %v934_v40 }
 0x1b7   : > { %1327 = vmatmul.mubr.bf16.gmra.mrb[60].mxu0 %v1058_v10 }
 0x1da   : > { %v1208_v5 = vpop.f32.mrb[0].mxu0 }
 0x1db   : > { %v1351_v7 = vmax.f32 %v1208_v5, 0.0  ;;  %v1210_v19 = vpop.f32.mrb[1].mxu0 }
 0x1dc   : > { %v1211_v3 = vpop.f32.mrb[2].mxu0 }
 0x1dd   : > { %v1352_v60 = vmax.f32 %v1211_v3, 0.0  ;;  %v1213_v8 = vpop.f32.mrb[3].mxu0  ;;  %v1394_v12 = vmul.f32 0.0, %v1351_v7 }
 0x1df   : > { %v1395_v33 = vmul.f32 0.0, %v1352_v60 }
 0x1e1   : > { %v3583_v24 = vpack.c.bf16 %v1395_v33, %v1394_v12 }
 0x1e3   : > { %v1216_v15 = vpop.f32.mrb[4].mxu0 }
 0x1e4   : > { %v1218_v32 = vpop.f32.mrb[5].mxu0  ;;  %v1353_v13 = vmax.f32 %v1216_v15, 0.0 }
 0x1e5   : > { %v1219_v16 = vpop.f32.mrb[6].mxu0 }
 0x1e6   : > { %v1354_v17 = vmax.f32 %v1219_v16, 0.0  ;;  %v1221_v20 = vpop.f32.mrb[7].mxu0 }
 0x1e8   : > { %v1400_v49 = vpack.c.bf16 %v1354_v17, %v1353_v13 }
 0x1ea   : > { %v1425_v23 = vshrl.u32 %v1400_v49, 16  ;;  %v1428_v11 = vshll.u32 %v1400_v49, 16 }
 0x1eb   : > { %v1224_v26 = vpop.f32.mrb[8].mxu0 }
 0x1ec   : > { %v1427_v41 = vrot.slane %v1425_v23, 7  ;;  %v1226_v27 = vpop.f32.mrb[9].mxu0  ;;  %v1355_v36 = vmax.f32 %v1224_v26, 0.0 }
 0x1ed   : > { %v1227_v31 = vpop.f32.mrb[10].mxu0 }
 0x1ee   : > { %v1430_v9 = vor.u32 %v1428_v11, %v1427_v41  ;;  %v1601_v35 = vsel %vm3585_vm8, %v1427_v41, 0  ;;  %v1356_v4 = vmax.f32 %v1227_v31, 0.0  ;;  %v1229_v37 = vpop.f32.mrb[11].mxu0 }
 0x1ef   : > { %v1638_v29 = vshll.u32 %v1601_v35, 16  ;;  %v1910_v18 = vrot.slane %v1601_v35, 1 }
 0x1f0   : > { %v3593_v38 = vsel %vm3585_vm8, 0, %v1430_v9  ;;  %v1401_v39 = vpack.c.bf16 %v1356_v4, %v1355_v36 }
 0x1f1   : > { %v1633_v21 = vshll.u32 %v3593_v38, 16  ;;  %v1631_v44 = vshrl.u32 %v3593_v38, 16  ;;  %v1640_v50 = vrot.slane %v1638_v29, 1  ;;  %v1909_v58 = vrot.slane %v3593_v38, 1 }
 0x1f2   : > { %v1432_v43 = vshrl.u32 %v1401_v39, 16  ;;  %v1435_v48 = vshll.u32 %v1401_v39, 16 }
 0x1f3   : > { %v1232_v34 = vpop.f32.mrb[12].mxu0  ;;  %v1635_v45 = vrot.slane %v1633_v21, 1  ;;  %v1911_v10 = vsel %vm700_vm1, %v1909_v58, %v1910_v18 }
 0x1f4   : > { %v1434_v46 = vrot.slane %v1432_v43, 7  ;;  %v1234_v2 = vpop.f32.mrb[13].mxu0  ;;  %v1357_v25 = vmax.f32 %v1232_v34, 0.0 }
 0x1f5   : > { %v1235_v42 = vpop.f32.mrb[14].mxu0  ;;  %v1636_v56 = vor.u32 %v1635_v45, %v1631_v44  ;;  %v971_v55 = vpop.permute.xlu1 %970 }
 0x1f6   : > { %v1437_v51 = vor.u32 %v1435_v48, %v1434_v46  ;;  %v1602_v0 = vsel %vm3585_vm8, %v1434_v46, 0  ;;  %v1358_v52 = vmax.f32 %v1235_v42, 0.0  ;;  %v1237_v53 = vpop.f32.mrb[15].mxu0  ;;  %2843 = vmatprep.mubr.msk.bf16.mxu0 %vm801_vm2, %v971_v55  ;;  %v1061_v54 = vsel %vm1011_vm5, %v1008_v47, %v971_v55  ;;  %v936_v57 = vpop.permute.xlu0 %935 }
 0x1f7   : > { %v1641_v30 = vsel %vm419_vm0, %v1636_v56, %v1640_v50  ;;  %1335 = vmatmul.mubr.bf16.gmra.mrb[64].mxu0 %v1061_v54  ;;  %v1650_v61 = vshll.u32 %v1602_v0, 16  ;;  %v1010_v8 = vsel %vm974_vm4, %v3536_v28, %v936_v57  ;;  %v1913_v27 = vrot.slane %v1602_v0, 1 }
 0x1f8   : > { %v3607_v22 = vsel %vm3585_vm8, 0, %v1437_v51  ;;  %v1402_v59 = vpack.c.bf16 %v1358_v52, %v1357_v25  ;;  %1836 = vrot.lane.b32.xlu0 %v1641_v30, %s3050_s21 }
 0x1f9   : > { %v1645_v14 = vshll.u32 %v3607_v22, 16  ;;  %v1643_v5 = vshrl.u32 %v3607_v22, 16  ;;  %v1652_v16 = vrot.slane %v1650_v61, 1  ;;  %v1912_v41 = vrot.slane %v3607_v22, 1 }
 0x1fa   : > { %v1439_v62 = vshrl.u32 %v1402_v59, 16  ;;  %v1442_v3 = vshll.u32 %v1402_v59, 16 }
 0x1fb   : > { %v1240_v63 = vpop.f32.mrb[16].mxu0  ;;  %v1647_v7 = vrot.slane %v1645_v14, 1  ;;  %v1914_v4 = vsel %vm700_vm1, %v1912_v41, %v1913_v27 }
 0x1fc   : > { %v1441_v19 = vrot.slane %v1439_v62, 7  ;;  %v1242_v60 = vpop.f32.mrb[17].mxu0  ;;  %1962 = vrot.lane.b32.xlu0 %v1911_v10, %s3049_s20  ;;  %v1359_v12 = vmax.f32 %v1240_v63, 0.0 }
 0x1fd   : > { %v1243_v33 = vpop.f32.mrb[18].mxu0  ;;  %v973_v15 = vpop.permute.xlu1 %972  ;;  %v1648_v32 = vor.u32 %v1647_v7, %v1643_v5 }
 0x1fe   : > { %v1444_v13 = vor.u32 %v1442_v3, %v1441_v19  ;;  %v1603_v17 = vsel %vm3585_vm8, %v1441_v19, 0  ;;  %v1360_v20 = vmax.f32 %v1243_v33, 0.0  ;;  %v1245_v49 = vpop.f32.mrb[19].mxu0  ;;  %2844 = vmatprep.mubr.msk.bf16.mxu0 %vm801_vm2, %v973_v15  ;;  %v1064_v23 = vsel %vm1011_vm5, %v1010_v8, %v973_v15 }
 0x1ff   : > { %v1653_v26 = vsel %vm419_vm0, %v1648_v32, %v1652_v16  ;;  %1343 = vmatmul.mubr.bf16.gmra.mrb[68].mxu0 %v1064_v23  ;;  %v1662_v9 = vshll.u32 %v1603_v17, 16  ;;  %v1916_v46 = vrot.slane %v1603_v17, 1 }
 0x200   : > { %v3624_v28 = vsel %vm3585_vm8, 0, %v1444_v13  ;;  %v1403_v11 = vpack.c.bf16 %v1360_v20, %v1359_v12  ;;  %1838 = vrot.lane.b32.xlu1 %v1653_v26, %s3050_s21 }
 0x201   : > { %v1657_v31 = vshll.u32 %v3624_v28, 16  ;;  %v1655_v37 = vshrl.u32 %v3624_v28, 16  ;;  %v1915_v21 = vrot.slane %v3624_v28, 1  ;;  %v1664_v45 = vrot.slane %v1662_v9, 1 }
 0x202   : > { %v1446_v35 = vshrl.u32 %v1403_v11, 16  ;;  %v1449_v40 = vshll.u32 %v1403_v11, 16 }
 0x203   : > { %v1248_v36 = vpop.f32.mrb[20].mxu0  ;;  %v1659_v39 = vrot.slane %v1657_v31, 1  ;;  %v1917_v51 = vsel %vm700_vm1, %v1915_v21, %v1916_v46 }
 0x204   : > { %v1448_v29 = vrot.slane %v1446_v35, 7  ;;  %v1250_v43 = vpop.f32.mrb[21].mxu0  ;;  %1964 = vrot.lane.b32.xlu1 %v1914_v4, %s3049_s20  ;;  %v1361_v47 = vmax.f32 %v1248_v36, 0.0 }
 0x205   : > { %v1251_v34 = vpop.f32.mrb[22].mxu0  ;;  %v1660_v44 = vor.u32 %v1659_v39, %v1655_v37 }
 0x206   : > { %v1451_v48 = vor.u32 %v1449_v40, %v1448_v29  ;;  %v1604_v2 = vsel %vm3585_vm8, %v1448_v29, 0  ;;  %v1362_v42 = vmax.f32 %v1251_v34, 0.0  ;;  %v1253_v56 = vpop.f32.mrb[23].mxu0 }
 0x207   : > { %v1665_v50 = vsel %vm419_vm0, %v1660_v44, %v1664_v45  ;;  %v1919_v53 = vrot.slane %v1604_v2, 1  ;;  %v1674_v30 = vshll.u32 %v1604_v2, 16 }
 0x208   : > { %v3638_v0 = vsel %vm3585_vm8, 0, %v1451_v48  ;;  %v1404_v25 = vpack.c.bf16 %v1362_v42, %v1361_v47  ;;  %1840 = vrot.lane.b32.xlu0 %v1665_v50, %s3050_s21  ;;  %1966 = vrot.lane.b32.xlu1 %v1917_v51, %s3049_s20 }
 0x209   : > { %v1918_v52 = vrot.slane %v3638_v0, 1  ;;  %v1669_v55 = vshll.u32 %v3638_v0, 16  ;;  %v1667_v18 = vshrl.u32 %v3638_v0, 16  ;;  %v1676_v5 = vrot.slane %v1674_v30, 1 }
 0x20a   : > { %v1453_v54 = vshrl.u32 %v1404_v25, 16  ;;  %v1456_v62 = vshll.u32 %v1404_v25, 16 }
 0x20b   : > { %v1256_v58 = vpop.f32.mrb[24].mxu0  ;;  %v1920_v59 = vsel %vm700_vm1, %v1918_v52, %v1919_v53  ;;  %v1671_v14 = vrot.slane %v1669_v55, 1 }
 0x20c   : > { %v1455_v61 = vrot.slane %v1453_v54, 7  ;;  %v1258_v57 = vpop.f32.mrb[25].mxu0  ;;  %1968 = vrot.lane.b32.xlu1 %v1920_v59, %s3049_s20  ;;  %v1363_v3 = vmax.f32 %v1256_v58, 0.0 }
 0x20d   : > { %v1259_v63 = vpop.f32.mrb[26].mxu0  ;;  %v1672_v10 = vor.u32 %v1671_v14, %v1667_v18 }
 0x20e   : > { %v1458_v7 = vor.u32 %v1456_v62, %v1455_v61  ;;  %v1605_v19 = vsel %vm3585_vm8, %v1455_v61, 0  ;;  %v1364_v60 = vmax.f32 %v1259_v63, 0.0  ;;  %v1261_v8 = vpop.f32.mrb[27].mxu0  ;;  %v3016_v63 = vld [vmem:[%s4161_s2] sm:$0xff]  }
 0x20f   : > { %v1677_v12 = vsel %vm419_vm0, %v1672_v10, %v1676_v5  ;;  %v1922_v16 = vrot.slane %v1605_v19, 1  ;;  %v1686_v17 = vshll.u32 %v1605_v19, 16  ;;  %2334 = vmatpush1.bf16.msra.mxu1 %v3016_v63  ;;  %v1418_v19 = vshrl.u32 %v3583_v24, 16  ;;  %v3018_v8 = vld [vmem:[%s4161_s2 + $0x10] sm:$0xff]  }
 0x210   : > { %v3652_v33 = vsel %vm3585_vm8, 0, %v1458_v7  ;;  %v1405_v15 = vpack.c.bf16 %v1364_v60, %v1363_v3  ;;  %1842 = vrot.lane.b32.xlu0 %v1677_v12, %s3050_s21  ;;  %2335 = vmatprep.subr.bf16.mxu1 %v3051_v1  ;;  %v3017_v3 = vld [vmem:[%s4161_s2 + $0x8] sm:$0xff]   ;;  %v1421_v12 = vshll.u32 %v3583_v24, 16 }
 0x211   : > { %v1921_v32 = vrot.slane %v3652_v33, 1  ;;  %v1681_v13 = vshll.u32 %v3652_v33, 16  ;;  %v1679_v26 = vshrl.u32 %v3652_v33, 16  ;;  %v1688_v36 = vrot.slane %v1686_v17, 1  ;;  %v3019_v17 = vld [vmem:[%s4161_s2 + $0x18] sm:$0xff]  }
 0x212   : > { %v1460_v20 = vshrl.u32 %v1405_v15, 16  ;;  %v1463_v27 = vshll.u32 %v1405_v15, 16  ;;  %v1420_v60 = vrot.slane %v1418_v19, 7 }
 0x213   : > { %v1264_v49 = vpop.f32.mrb[28].mxu0  ;;  %v1923_v23 = vsel %vm700_vm1, %v1921_v32, %v1922_v16  ;;  %v1683_v41 = vrot.slane %v1681_v13, 1  ;;  %2336 = vmatpush1.bf16.msra.mxu1 %v3017_v3 }
 0x214   : > { %v1462_v11 = vrot.slane %v1460_v20, 7  ;;  %v1266_v31 = vpop.f32.mrb[29].mxu0  ;;  %1970 = vrot.lane.b32.xlu1 %v1923_v23, %s3049_s20  ;;  %v1365_v39 = vmax.f32 %v1264_v49, 0.0  ;;  %2337 = vmatprep.subr.bf16.mxu1 %v3051_v1  ;;  %v1423_v32 = vor.u32 %v1421_v12, %v1420_v60 }
 0x215   : > { %v1267_v9 = vpop.f32.mrb[30].mxu0  ;;  %v1684_v35 = vor.u32 %v1683_v41, %v1679_v26  ;;  %v3020_v41 = vld [vmem:[%s4161_s2 + $0x20] sm:$0xff]  }
 0x216   : > { %v1465_v4 = vor.u32 %v1463_v27, %v1462_v11  ;;  %v1606_v37 = vsel %vm3585_vm8, %v1462_v11, 0  ;;  %v1366_v21 = vmax.f32 %v1267_v9, 0.0  ;;  %v1269_v29 = vpop.f32.mrb[31].mxu0  ;;  %v3707_v26 = vsel %vm3585_vm8, 0, %v1423_v32 }
 0x217   : > { %v1689_v40 = vsel %vm419_vm0, %v1684_v35, %v1688_v36  ;;  %v1925_v45 = vrot.slane %v1606_v37, 1  ;;  %v1698_v48 = vshll.u32 %v1606_v37, 16  ;;  %2338 = vmatpush1.bf16.msra.mxu1 %v3018_v8  ;;  %v1621_v31 = vshll.u32 %v3707_v26, 16 }
 0x218   : > { %v3665_v43 = vsel %vm3585_vm8, 0, %v1465_v4  ;;  %v1406_v34 = vpack.c.bf16 %v1366_v21, %v1365_v39  ;;  %1844 = vrot.lane.b32.xlu0 %v1689_v40, %s3050_s21  ;;  %2339 = vmatprep.subr.bf16.mxu1 %v3051_v1  ;;  %v3717_v4 = vsel %vm3585_vm8, %v1420_v60, 0  ;;  %v3021_v39 = vld [vmem:[%s4161_s2 + $0x28] sm:$0xff]   ;;  %v1906_v32 = vrot.slane %v3707_v26, 1 }
 0x219   : > { %v1924_v44 = vrot.slane %v3665_v43, 1  ;;  %v1693_v46 = vshll.u32 %v3665_v43, 16  ;;  %v1691_v42 = vshrl.u32 %v3665_v43, 16  ;;  %v1700_v52 = vrot.slane %v1698_v48, 1 }
 0x21a   : > { %v1467_v2 = vshrl.u32 %v1406_v34, 16  ;;  %v1470_v51 = vshll.u32 %v1406_v34, 16 }
 0x21b   : > { %v1926_v47 = vsel %vm700_vm1, %v1924_v44, %v1925_v45  ;;  %v1695_v56 = vrot.slane %v1693_v46, 1  ;;  %2340 = vmatpush1.bf16.msra.mxu1 %v3019_v17  ;;  %v1623_v45 = vrot.slane %v1621_v31, 1 }
 0x21c   : > { %v1469_v50 = vrot.slane %v1467_v2, 7  ;;  %1972 = vrot.lane.b32.xlu1 %v1926_v47, %s3049_s20  ;;  %2341 = vmatprep.subr.bf16.mxu1 %v3051_v1  ;;  %v1619_v2 = vshrl.u32 %v3707_v26, 16  ;;  %v1626_v47 = vshll.u32 %v3717_v4, 16 }
 0x21d   : > { %v1696_v25 = vor.u32 %v1695_v56, %v1691_v42 }
 0x21e   : > { %v1472_v53 = vor.u32 %v1470_v51, %v1469_v50  ;;  %v1607_v55 = vsel %vm3585_vm8, %v1469_v50, 0 }
 0x21f   : > { %v1701_v30 = vsel %vm419_vm0, %v1696_v25, %v1700_v52  ;;  %v1928_v59 = vrot.slane %v1607_v55, 1  ;;  %v1710_v14 = vshll.u32 %v1607_v55, 16  ;;  %2342 = vmatpush1.bf16.msra.mxu1 %v3020_v41  ;;  %v3022_v25 = vld [vmem:[%s4161_s2 + $0x30] sm:$0xff]  }
 0x220   : > { %v3678_v54 = vsel %vm3585_vm8, 0, %v1472_v53  ;;  %1846 = vrot.lane.b32.xlu0 %v1701_v30, %s3050_s21  ;;  %2343 = vmatprep.subr.bf16.mxu1 %v3051_v1 }
 0x221   : > { %v1927_v58 = vrot.slane %v3678_v54, 1  ;;  %v1705_v18 = vshll.u32 %v3678_v54, 16  ;;  %v1703_v62 = vshrl.u32 %v3678_v54, 16  ;;  %v1712_v5 = vrot.slane %v1710_v14, 1 }
 0x223   : > { %v1929_v61 = vsel %vm700_vm1, %v1927_v58, %v1928_v59  ;;  %v1707_v57 = vrot.slane %v1705_v18, 1  ;;  %2344 = vmatpush1.bf16.msra.mxu1 %v3021_v39  ;;  %v1624_v59 = vor.u32 %v1623_v45, %v1619_v2 }
 0x224   : > { %1974 = vrot.lane.b32.xlu1 %v1929_v61, %s3049_s20  ;;  %2345 = vmatprep.subr.bf16.mxu1 %v3051_v1 }
 0x225   : > { %v1708_v10 = vor.u32 %v1707_v57, %v1703_v62 }
 0x227   : > { %v1713_v7 = vsel %vm419_vm0, %v1708_v10, %v1712_v5  ;;  %2346 = vmatpush1.bf16.msra.mxu1 %v3022_v25  ;;  %v1628_v10 = vrot.slane %v1626_v47, 1  ;;  %v3023_v5 = vld [vmem:[%s4161_s2 + $0x38] sm:$0xff]  }
 0x228   : > { %1848 = vrot.lane.b32.xlu0 %v1713_v7, %s3050_s21  ;;  %2347 = vmatprep.subr.bf16.mxu1 %v3051_v1 }
 0x22b   : > { %2348 = vmatpush1.bf16.msra.mxu1 %v3023_v5 }
 0x22c   : > { %2349 = vmatprep.subr.bf16.mxu1 %v3051_v1 }
 0x252   : > { %v1272_v15 = vpop.f32.mrb[32].mxu0 }
 0x253   : > { %v1274_v16 = vpop.f32.mrb[33].mxu0  ;;  %v1367_v20 = vmax.f32 %v1272_v15, 0.0  ;;  %v1629_v15 = vsel %vm419_vm0, %v1624_v59, %v1628_v10 }
 0x254   : > { %v1275_v13 = vpop.f32.mrb[34].mxu0  ;;  %v3024_v16 = vld [vmem:[%s4161_s2 + $0x40] sm:$0xff]  }
 0x255   : > { %v1368_v49 = vmax.f32 %v1275_v13, 0.0  ;;  %v1277_v23 = vpop.f32.mrb[35].mxu0  ;;  %2350 = vmatpush1.bf16.msra.mxu1 %v3024_v16 }
 0x257   : > { %v1407_v24 = vpack.c.bf16 %v1368_v49, %v1367_v20  ;;  %v1907_v20 = vrot.slane %v3717_v4, 1 }
 0x259   : > { %v1474_v11 = vshrl.u32 %v1407_v24, 16  ;;  %v1477_v35 = vshll.u32 %v1407_v24, 16 }
 0x25a   : > { %v1280_v27 = vpop.f32.mrb[36].mxu0 }
 0x25b   : > { %v1476_v9 = vrot.slane %v1474_v11, 7  ;;  %v1282_v36 = vpop.f32.mrb[37].mxu0  ;;  %v1369_v40 = vmax.f32 %v1280_v27, 0.0 }
 0x25c   : > { %v1283_v37 = vpop.f32.mrb[38].mxu0 }
 0x25d   : > { %v1479_v21 = vor.u32 %v1477_v35, %v1476_v9  ;;  %v1608_v29 = vsel %vm3585_vm8, %v1476_v9, 0  ;;  %v1370_v34 = vmax.f32 %v1283_v37, 0.0  ;;  %v1285_v44 = vpop.f32.mrb[39].mxu0  ;;  %v1908_v35 = vsel %vm700_vm1, %v1906_v32, %v1907_v20 }
 0x25e   : > { %v1931_v56 = vrot.slane %v1608_v29, 1  ;;  %v1722_v51 = vshll.u32 %v1608_v29, 16 }
 0x25f   : > { %v3726_v46 = vsel %vm3585_vm8, 0, %v1479_v21  ;;  %v1408_v48 = vpack.c.bf16 %v1370_v34, %v1369_v40 }
 0x260   : > { %v1930_v42 = vrot.slane %v3726_v46, 1  ;;  %v1717_v50 = vshll.u32 %v3726_v46, 16  ;;  %v1715_v30 = vshrl.u32 %v3726_v46, 16  ;;  %v1724_v63 = vrot.slane %v1722_v51, 1 }
 0x261   : > { %v1481_v52 = vshrl.u32 %v1408_v48, 16  ;;  %v1484_v14 = vshll.u32 %v1408_v48, 16 }
 0x262   : > { %v1288_v53 = vpop.f32.mrb[40].mxu0  ;;  %v1932_v55 = vsel %vm700_vm1, %v1930_v42, %v1931_v56  ;;  %v1719_v58 = vrot.slane %v1717_v50, 1 }
 0x263   : > { %v1483_v18 = vrot.slane %v1481_v52, 7  ;;  %1976 = vrot.lane.b32.xlu1 %v1932_v55, %s3049_s20  ;;  %v1290_v61 = vpop.f32.mrb[41].mxu0  ;;  %v1371_v3 = vmax.f32 %v1288_v53, 0.0 }
 0x264   : > { %v1291_v62 = vpop.f32.mrb[42].mxu0  ;;  %v1720_v57 = vor.u32 %v1719_v58, %v1715_v30 }
 0x265   : > { %v1486_v7 = vor.u32 %v1484_v14, %v1483_v18  ;;  %v1609_v19 = vsel %vm3585_vm8, %v1483_v18, 0  ;;  %v1372_v60 = vmax.f32 %v1291_v62, 0.0  ;;  %v1293_v8 = vpop.f32.mrb[43].mxu0 }
 0x266   : > { %v1725_v12 = vsel %vm419_vm0, %v1720_v57, %v1724_v63  ;;  %v1934_v23 = vrot.slane %v1609_v19, 1  ;;  %v1734_v41 = vshll.u32 %v1609_v19, 16 }
 0x267   : > { %v3753_v13 = vsel %vm3585_vm8, 0, %v1486_v7  ;;  %v1409_v17 = vpack.c.bf16 %v1372_v60, %v1371_v3  ;;  %1850 = vrot.lane.b32.xlu0 %v1725_v12, %s3050_s21  ;;  %1834 = vrot.lane.b32.xlu1 %v1629_v15, %s3050_s21 }
 0x268   : > { %v1933_v49 = vrot.slane %v3753_v13, 1  ;;  %v1729_v24 = vshll.u32 %v3753_v13, 16  ;;  %v1727_v36 = vshrl.u32 %v3753_v13, 16  ;;  %v1736_v40 = vrot.slane %v1734_v41, 1 }
 0x269   : > { %v1488_v11 = vshrl.u32 %v1409_v17, 16  ;;  %v1491_v39 = vshll.u32 %v1409_v17, 16 }
 0x26a   : > { %v1837_v27 = vpop.permute.xlu0 %1836  ;;  %v1296_v31 = vpop.f32.mrb[44].mxu0  ;;  %v1935_v9 = vsel %vm700_vm1, %v1933_v49, %v1934_v23  ;;  %v1731_v37 = vrot.slane %v1729_v24, 1 }
 0x26b   : > { %v1490_v4 = vrot.slane %v1488_v11, 7  ;;  %1978 = vrot.lane.b32.xlu0 %v1935_v9, %s3049_s20  ;;  %1960 = vrot.lane.b32.xlu1 %v1908_v35, %s3049_s20  ;;  %v1298_v21 = vpop.f32.mrb[45].mxu0  ;;  %v1373_v45 = vmax.f32 %v1296_v31, 0.0  ;;  %v1999_v52 = vsel %vm801_vm2, %v3593_v38, %v1837_v27 }
 0x26c   : > { %v1299_v29 = vpop.f32.mrb[46].mxu0  ;;  %v1732_v1 = vor.u32 %v1731_v37, %v1727_v36 }
 0x26d   : > { %v1493_v34 = vor.u32 %v1491_v39, %v1490_v4  ;;  %v1610_v44 = vsel %vm3585_vm8, %v1490_v4, 0  ;;  %v1374_v48 = vmax.f32 %v1299_v29, 0.0  ;;  %v1301_v2 = vpop.f32.mrb[47].mxu0 }
 0x26e   : > { %v1737_v47 = vsel %vm419_vm0, %v1732_v1, %v1736_v40  ;;  %v1963_v50 = vpop.permute.xlu0 %1962  ;;  %v1746_v51 = vshll.u32 %v1610_v44, 16  ;;  %v1937_v23 = vrot.slane %v1610_v44, 1 }
 0x26f   : > { %v3771_v42 = vsel %vm3585_vm8, 0, %v1493_v34  ;;  %v1410_v56 = vpack.c.bf16 %v1374_v48, %v1373_v45  ;;  %1852 = vrot.lane.b32.xlu0 %v1737_v47, %s3050_s21  ;;  %v3778_v58 = vsel %vm842_vm3, %v1999_v52, %v1963_v50 }
 0x270   : > { %v1741_v25 = vshll.u32 %v3771_v42, 16  ;;  %v1739_v59 = vshrl.u32 %v3771_v42, 16  ;;  %v1748_v10 = vrot.slane %v1746_v51, 1  ;;  %v1936_v17 = vrot.slane %v3771_v42, 1 }
 0x271   : > { %v1495_v53 = vshrl.u32 %v1410_v56, 16  ;;  %v1498_v61 = vshll.u32 %v1410_v56, 16 }
 0x272   : > { %v1839_v55 = vpop.permute.xlu1 %1838  ;;  %v1304_v30 = vpop.f32.mrb[48].mxu0  ;;  %v1743_v18 = vrot.slane %v1741_v25, 1  ;;  %v1938_v35 = vsel %vm700_vm1, %v1936_v17, %v1937_v23 }
 0x273   : > { %v1497_v14 = vrot.slane %v1495_v53, 7  ;;  %2084 = vrot.lane.b32.xlu0 %v3778_v58, %s3052_s17  ;;  %v1306_v62 = vpop.f32.mrb[49].mxu0  ;;  %v1375_v7 = vmax.f32 %v1304_v30, 0.0  ;;  %v2001_v60 = vsel %vm801_vm2, %v3607_v22, %v1839_v55 }
 0x274   : > { %v1307_v57 = vpop.f32.mrb[50].mxu0  ;;  %v1744_v63 = vor.u32 %v1743_v18, %v1739_v59 }
 0x275   : > { %v1500_v5 = vor.u32 %v1498_v61, %v1497_v14  ;;  %v1611_v38 = vsel %vm3585_vm8, %v1497_v14, 0  ;;  %v1376_v19 = vmax.f32 %v1307_v57, 0.0  ;;  %v1309_v3 = vpop.f32.mrb[51].mxu0 }
 0x276   : > { %v1965_v8 = vpop.permute.xlu1 %1964  ;;  %v1749_v12 = vsel %vm419_vm0, %v1744_v63, %v1748_v10  ;;  %v1758_v20 = vshll.u32 %v1611_v38, 16  ;;  %v1940_v25 = vrot.slane %v1611_v38, 1 }
 0x277   : > { %v3790_v15 = vsel %vm3585_vm8, 0, %v1500_v5  ;;  %v1411_v32 = vpack.c.bf16 %v1376_v19, %v1375_v7  ;;  %1854 = vrot.lane.b32.xlu0 %v1749_v12, %s3050_s21  ;;  %v3794_v16 = vsel %vm842_vm3, %v2001_v60, %v1965_v8 }
 0x278   : > { %2117 = vrot.lane.b32.xlu1 %v3794_v16, %s3053_s18  ;;  %v1753_v22 = vshll.u32 %v3790_v15, 16  ;;  %v1751_v41 = vshrl.u32 %v3790_v15, 16  ;;  %v1760_v21 = vrot.slane %v1758_v20, 1  ;;  %v1939_v56 = vrot.slane %v3790_v15, 1 }
 0x279   : > { %v1502_v49 = vshrl.u32 %v1411_v32, 16  ;;  %v1505_v31 = vshll.u32 %v1411_v32, 16 }
 0x27a   : > { %v1841_v24 = vpop.permute.xlu0 %1840  ;;  %v1755_v11 = vrot.slane %v1753_v22, 1  ;;  %v1312_v9 = vpop.f32.mrb[52].mxu0  ;;  %v1941_v14 = vsel %vm700_vm1, %v1939_v56, %v1940_v25 }
 0x27b   : > { %v1504_v27 = vrot.slane %v1502_v49, 7  ;;  %2086 = vrot.lane.b32.xlu0 %v3794_v16, %s3052_s17  ;;  %v2003_v36 = vsel %vm801_vm2, %v3624_v28, %v1841_v24  ;;  %v1967_v37 = vpop.permute.xlu1 %1966  ;;  %v1314_v4 = vpop.f32.mrb[53].mxu0  ;;  %v1377_v34 = vmax.f32 %v1312_v9, 0.0 }
 0x27c   : > { %1980 = vrot.lane.b32.xlu1 %v1938_v35, %s3049_s20  ;;  %v1756_v39 = vor.u32 %v1755_v11, %v1751_v41  ;;  %v1315_v40 = vpop.f32.mrb[54].mxu0  ;;  %v3815_v47 = vsel %vm842_vm3, %v2003_v36, %v1967_v37 }
 0x27d   : > { %v1507_v29 = vor.u32 %v1505_v31, %v1504_v27  ;;  %v1612_v1 = vsel %vm3585_vm8, %v1504_v27, 0  ;;  %v1378_v44 = vmax.f32 %v1315_v40, 0.0  ;;  %v1317_v45 = vpop.f32.mrb[55].mxu0 }
 0x27e   : > { %v1761_v48 = vsel %vm419_vm0, %v1756_v39, %v1760_v21  ;;  %v1770_v28 = vshll.u32 %v1612_v1, 16  ;;  %v1943_v49 = vrot.slane %v1612_v1, 1 }
 0x27f   : > { %v3812_v2 = vsel %vm3585_vm8, 0, %v1507_v29  ;;  %1856 = vrot.lane.b32.xlu0 %v1761_v48, %s3050_s21  ;;  %v1412_v50 = vpack.c.bf16 %v1378_v44, %v1377_v34  ;;  %v1969_v8 = vpop.permute.xlu1 %1968 }
 0x280   : > { %2119 = vrot.lane.b32.xlu1 %v3815_v47, %s3053_s18  ;;  %v1765_v51 = vshll.u32 %v3812_v2, 16  ;;  %v1763_v30 = vshrl.u32 %v3812_v2, 16  ;;  %v1772_v61 = vrot.slane %v1770_v28, 1  ;;  %v1942_v32 = vrot.slane %v3812_v2, 1 }
 0x281   : > { %v1509_v52 = vshrl.u32 %v1412_v50, 16  ;;  %v1512_v57 = vshll.u32 %v1412_v50, 16 }
 0x282   : > { %v1843_v53 = vpop.permute.xlu0 %1842  ;;  %v1320_v55 = vpop.f32.mrb[56].mxu0  ;;  %v1767_v59 = vrot.slane %v1765_v51, 1  ;;  %v1944_v27 = vsel %vm700_vm1, %v1942_v32, %v1943_v49 }
 0x283   : > { %v1322_v18 = vpop.f32.mrb[57].mxu0  ;;  %2088 = vrot.lane.b32.xlu0 %v3815_v47, %s3052_s17  ;;  %v1511_v62 = vrot.slane %v1509_v52, 7  ;;  %v2005_v63 = vsel %vm801_vm2, %v3638_v0, %v1843_v53  ;;  %v1379_v38 = vmax.f32 %v1320_v55, 0.0 }
 0x284   : > { %1982 = vrot.lane.b32.xlu1 %v1941_v14, %s3049_s20  ;;  %v1323_v10 = vpop.f32.mrb[58].mxu0  ;;  %v1768_v5 = vor.u32 %v1767_v59, %v1763_v30  ;;  %v3835_v0 = vsel %vm842_vm3, %v2005_v63, %v1969_v8 }
 0x285   : > { %v1380_v7 = vmax.f32 %v1323_v10, 0.0  ;;  %v1325_v19 = vpop.f32.mrb[59].mxu0  ;;  %v1514_v3 = vor.u32 %v1512_v57, %v1511_v62  ;;  %v1613_v60 = vsel %vm3585_vm8, %v1511_v62, 0 }
 0x286   : > { %v1773_v12 = vsel %vm419_vm0, %v1768_v5, %v1772_v61  ;;  %v1782_v22 = vshll.u32 %v1613_v60, 16  ;;  %v1971_v48 = vpop.permute.xlu1 %1970  ;;  %v1946_v55 = vrot.slane %v1613_v60, 1 }
 0x287   : > { %v1413_v17 = vpack.c.bf16 %v1380_v7, %v1379_v38  ;;  %1858 = vrot.lane.b32.xlu0 %v1773_v12, %s3050_s21  ;;  %v3839_v20 = vsel %vm3585_vm8, 0, %v1514_v3 }
 0x288   : > { %2121 = vrot.lane.b32.xlu1 %v3835_v0, %s3053_s18  ;;  %v1777_v24 = vshll.u32 %v3839_v20, 16  ;;  %v1775_v36 = vshrl.u32 %v3839_v20, 16  ;;  %v1784_v29 = vrot.slane %v1782_v22, 1  ;;  %v1945_v28 = vrot.slane %v3839_v20, 1 }
 0x289   : > { %v1516_v23 = vshrl.u32 %v1413_v17, 16  ;;  %v1519_v9 = vshll.u32 %v1413_v17, 16 }
 0x28a   : > { %v1845_v41 = vpop.permute.xlu0 %1844  ;;  %v1328_v11 = vpop.f32.mrb[60].mxu0  ;;  %v1779_v37 = vrot.slane %v1777_v24, 1  ;;  %v1947_v62 = vsel %vm700_vm1, %v1945_v28, %v1946_v55 }
 0x28b   : > { %v1518_v31 = vrot.slane %v1516_v23, 7  ;;  %v1330_v35 = vpop.f32.mrb[61].mxu0  ;;  %2090 = vrot.lane.b32.xlu0 %v3835_v0, %s3052_s17  ;;  %v2007_v4 = vsel %vm801_vm2, %v3652_v33, %v1845_v41  ;;  %v1381_v39 = vmax.f32 %v1328_v11, 0.0 }
 0x28c   : > { %1984 = vrot.lane.b32.xlu1 %v1944_v27, %s3049_s20  ;;  %v1331_v21 = vpop.f32.mrb[62].mxu0  ;;  %v1780_v45 = vor.u32 %v1779_v37, %v1775_v36  ;;  %v3860_v51 = vsel %vm842_vm3, %v2007_v4, %v1971_v48 }
 0x28d   : > { %v1521_v1 = vor.u32 %v1519_v9, %v1518_v31  ;;  %v1614_v40 = vsel %vm3585_vm8, %v1518_v31, 0  ;;  %v1382_v34 = vmax.f32 %v1331_v21, 0.0  ;;  %v1333_v44 = vpop.f32.mrb[63].mxu0 }
 0x28e   : > { %v1785_v50 = vsel %vm419_vm0, %v1780_v45, %v1784_v29  ;;  %v1794_v25 = vshll.u32 %v1614_v40, 16  ;;  %v1973_v7 = vpop.permute.xlu1 %1972  ;;  %v1949_v32 = vrot.slane %v1614_v40, 1 }
 0x28f   : > { %v3856_v56 = vsel %vm3585_vm8, 0, %v1521_v1  ;;  %v1414_v33 = vpack.c.bf16 %v1382_v34, %v1381_v39  ;;  %1860 = vrot.lane.b32.xlu0 %v1785_v50, %s3050_s21 }
 0x290   : > { %2123 = vrot.lane.b32.xlu1 %v3860_v51, %s3053_s18  ;;  %v1789_v52 = vshll.u32 %v3856_v56, 16  ;;  %v1787_v59 = vshrl.u32 %v3856_v56, 16  ;;  %v1796_v10 = vrot.slane %v1794_v25, 1  ;;  %v1948_v60 = vrot.slane %v3856_v56, 1 }
 0x291   : > { %v1523_v53 = vshrl.u32 %v1414_v33, 16  ;;  %v1526_v61 = vshll.u32 %v1414_v33, 16 }
 0x292   : > { %v1847_v30 = vpop.permute.xlu0 %1846  ;;  %v1791_v18 = vrot.slane %v1789_v52, 1  ;;  %v1950_v23 = vsel %vm700_vm1, %v1948_v60, %v1949_v32 }
 0x293   : > { %v1525_v14 = vrot.slane %v1523_v53, 7  ;;  %v2009_v57 = vsel %vm801_vm2, %v3665_v43, %v1847_v30  ;;  %2092 = vrot.lane.b32.xlu0 %v3860_v51, %s3052_s17 }
 0x294   : > { %1986 = vrot.lane.b32.xlu1 %v1947_v62, %s3049_s20  ;;  %v1792_v63 = vor.u32 %v1791_v18, %v1787_v59  ;;  %v3881_v43 = vsel %vm842_vm3, %v2009_v57, %v1973_v7 }
 0x295   : > { %v1528_v5 = vor.u32 %v1526_v61, %v1525_v14  ;;  %v1615_v38 = vsel %vm3585_vm8, %v1525_v14, 0 }
 0x296   : > { %v1797_v19 = vsel %vm419_vm0, %v1792_v63, %v1796_v10  ;;  %v1806_v8 = vshll.u32 %v1615_v38, 16  ;;  %v1975_v27 = vpop.permute.xlu1 %1974 }
 0x297   : > { %v3878_v3 = vsel %vm3585_vm8, 0, %v1528_v5  ;;  %1862 = vrot.lane.b32.xlu0 %v1797_v19, %s3050_s21 }
 0x298   : > { %2125 = vrot.lane.b32.xlu1 %v3881_v43, %s3053_s18  ;;  %v1801_v12 = vshll.u32 %v3878_v3, 16  ;;  %v1799_v22 = vshrl.u32 %v3878_v3, 16  ;;  %v1808_v11 = vrot.slane %v1806_v8, 1  ;;  %v1951_v35 = vrot.slane %v3878_v3, 1 }
 0x29a   : > { %v1849_v17 = vpop.permute.xlu0 %1848  ;;  %v1803_v49 = vrot.slane %v1801_v12, 1 }
 0x29b   : > { %v2011_v24 = vsel %vm801_vm2, %v3678_v54, %v1849_v17  ;;  %2094 = vrot.lane.b32.xlu0 %v3881_v43, %s3052_s17  ;;  %v1952_v54 = vrot.slane %v1615_v38, 1 }
 0x29c   : > { %1988 = vrot.lane.b32.xlu1 %v1950_v23, %s3049_s20  ;;  %v1804_v41 = vor.u32 %v1803_v49, %v1799_v22  ;;  %v3897_v9 = vsel %vm842_vm3, %v2011_v24, %v1975_v27 }
 0x29d   : > { %v1953_v36 = vsel %vm700_vm1, %v1951_v35, %v1952_v54 }
 0x29e   : > { %v1809_v31 = vsel %vm419_vm0, %v1804_v41, %v1808_v11 }
 0x29f   : > { %1864 = vrot.lane.b32.xlu0 %v1809_v31, %s3050_s21 }
 0x2a0   : > { %2127 = vrot.lane.b32.xlu1 %v3897_v9, %s3053_s18 }
 0x2a3   : > { %2096 = vrot.lane.b32.xlu0 %v3897_v9, %s3052_s17 }
 0x2a4   : > { %1990 = vrot.lane.b32.xlu1 %v1953_v36, %s3049_s20 }
 0x2ca   : > { %v1336_v37 = vpop.f32.mrb[64].mxu0 }
 0x2cb   : > { %v1338_v4 = vpop.f32.mrb[65].mxu0  ;;  %v1383_v21 = vmax.f32 %v1336_v37, 0.0 }
 0x2cc   : > { %v1339_v39 = vpop.f32.mrb[66].mxu0 }
 0x2cd   : > { %v1384_v29 = vmax.f32 %v1339_v39, 0.0  ;;  %v1341_v1 = vpop.f32.mrb[67].mxu0 }
 0x2cf   : > { %v1415_v40 = vpack.c.bf16 %v1384_v29, %v1383_v21 }
 0x2d1   : > { %v1530_v34 = vshrl.u32 %v1415_v40, 16  ;;  %v1533_v48 = vshll.u32 %v1415_v40, 16 }
 0x2d2   : > { %v1344_v44 = vpop.f32.mrb[68].mxu0 }
 0x2d3   : > { %v1532_v45 = vrot.slane %v1530_v34, 7  ;;  %v1385_v28 = vmax.f32 %v1344_v44, 0.0  ;;  %v1346_v33 = vpop.f32.mrb[69].mxu0 }
 0x2d4   : > { %v1347_v50 = vpop.f32.mrb[70].mxu0 }
 0x2d5   : > { %v1535_v25 = vor.u32 %v1533_v48, %v1532_v45  ;;  %v1616_v52 = vsel %vm3585_vm8, %v1532_v45, 0  ;;  %v1386_v53 = vmax.f32 %v1347_v50, 0.0  ;;  %v1349_v55 = vpop.f32.mrb[71].mxu0  ;;  %v1397_v59 = vmul.f32 0.0, %v1385_v28  ;;  %v1977_v63 = vpop.permute.xlu1 %1976 }
 0x2d6   : > { %v1818_v14 = vshll.u32 %v1616_v52, 16  ;;  %v1955_v17 = vrot.slane %v1616_v52, 1 }
 0x2d7   : > { %v3911_v30 = vsel %vm3585_vm8, 0, %v1535_v25  ;;  %v1398_v18 = vmul.f32 0.0, %v1386_v53 }
 0x2d8   : > { %v1813_v62 = vshll.u32 %v3911_v30, 16  ;;  %v1811_v38 = vshrl.u32 %v3911_v30, 16  ;;  %v1954_v19 = vrot.slane %v3911_v30, 1  ;;  %v1820_v32 = vrot.slane %v1818_v14, 1 }
 0x2d9   : > { %v1851_v61 = vpop.permute.xlu0 %1850  ;;  %v1416_v57 = vpack.c.bf16 %v1398_v18, %v1397_v59  ;;  %v1835_v11 = vpop.permute.xlu1 %1834 }
 0x2da   : > { %v2013_v10 = vsel %vm801_vm2, %v3726_v46, %v1851_v61  ;;  %v1815_v7 = vrot.slane %v1813_v62, 1  ;;  %v1956_v23 = vsel %vm700_vm1, %v1954_v19, %v1955_v17  ;;  %v1997_v44 = vsel %vm801_vm2, %v3707_v26, %v1835_v11 }
 0x2db   : > { %v3917_v5 = vsel %vm842_vm3, %v2013_v10, %v1977_v63  ;;  %v1537_v60 = vshrl.u32 %v1416_v57, 16  ;;  %v1540_v49 = vshll.u32 %v1416_v57, 16 }
 0x2dc   : > { %2129 = vrot.lane.b32.xlu1 %v3917_v5, %s3053_s18  ;;  %v1816_v12 = vor.u32 %v1815_v7, %v1811_v38 }
 0x2dd   : > { %v1979_v8 = vpop.permute.xlu0 %1978  ;;  %v1539_v22 = vrot.slane %v1537_v60, 7 }
 0x2de   : > { %v1821_v46 = vsel %vm419_vm0, %v1816_v12, %v1820_v32 }
 0x2df   : > { %v1542_v24 = vor.u32 %v1540_v49, %v1539_v22  ;;  %v1617_v41 = vsel %vm3585_vm8, %v1539_v22, 0  ;;  %1866 = vrot.lane.b32.xlu0 %v1821_v46, %s3050_s21 }
 0x2e0   : > { %1992 = vrot.lane.b32.xlu1 %v1956_v23, %s3049_s20  ;;  %v1830_v4 = vshll.u32 %v1617_v41, 16  ;;  %v1958_v39 = vrot.slane %v1617_v41, 1 }
 0x2e1   : > { %v1853_v27 = vpop.permute.xlu0 %1852  ;;  %v3931_v31 = vsel %vm3585_vm8, 0, %v1542_v24 }
 0x2e2   : > { %v2015_v35 = vsel %vm801_vm2, %v3753_v13, %v1853_v27  ;;  %v1957_v36 = vrot.slane %v3931_v31, 1  ;;  %v1825_v37 = vshll.u32 %v3931_v31, 16  ;;  %v1823_v21 = vshrl.u32 %v3931_v31, 16  ;;  %v1961_v13 = vpop.permute.xlu1 %1960 }
 0x2e3   : > { %v3936_v54 = vsel %vm842_vm3, %v2015_v35, %v1979_v8  ;;  %2098 = vrot.lane.b32.xlu0 %v3917_v5, %s3052_s17  ;;  %v1832_v34 = vrot.slane %v1830_v4, 1  ;;  %v2033_v45 = vsel %vm842_vm3, %v1997_v44, %v1961_v13 }
 0x2e4   : > { %2131 = vrot.lane.b32.xlu1 %v3936_v54, %s3053_s18  ;;  %v1827_v29 = vrot.slane %v1825_v37, 1  ;;  %v1959_v1 = vsel %vm700_vm1, %v1957_v36, %v1958_v39 }
 0x2e5   : > { %v2085_v6 = vpop.permute.xlu0 %2084 }
 0x2e6   : > { %v1828_v40 = vor.u32 %v1827_v29, %v1823_v21  ;;  %v2150_v33 = vsel %vm974_vm4, %v2033_v45, %v2085_v6 }
 0x2e8   : > { %1994 = vrot.lane.b32.xlu1 %v1959_v1, %s3049_s20  ;;  %v1833_v28 = vsel %vm419_vm0, %v1828_v40, %v1832_v34  ;;  %s2904_s20 = sshll.u32 %s4170_s12, 7 }
 0x2e9   : > { %v1855_v48 = vpop.permute.xlu0 %1854  ;;  %1868 = vrot.lane.b32.xlu0 %v1833_v28, %s3050_s21 }
 0x2ea   : > { %v2118_v50 = vpop.permute.xlu1 %2117  ;;  %v2017_v26 = vsel %vm801_vm2, %v3771_v42, %v1855_v48 }
 0x2eb   : > { %2854 = vmatprep.mubr.msk.bf16.mxu1 %vm801_vm2, %v2118_v50  ;;  %v2182_v25 = vsel %vm1011_vm5, %v2150_v33, %v2118_v50 }
 0x2ec   : > { %2366 = vmatmul.mubr.bf16.vlgmr.msra.gmra.mrb[0].mxu1 %v2182_v25 }
 0x2ed   : > { %v2087_v52 = vpop.permute.xlu0 %2086  ;;  %2100 = vrot.lane.b32.xlu0 %v3936_v54, %s3052_s17 }
 0x2ee   : > { %v1981_v53 = vpop.permute.xlu1 %1980  ;;  %v2152_v18 = vsel %vm974_vm4, %v3778_v58, %v2087_v52 }
 0x2ef   : > { %v3960_v55 = vsel %vm842_vm3, %v2017_v26, %v1981_v53 }
 0x2f0   : > { %2133 = vrot.lane.b32.xlu1 %v3960_v55, %s3053_s18 }
 0x2f1   : > { %v1857_v59 = vpop.permute.xlu0 %1856  ;;  %2102 = vrot.lane.b32.xlu0 %v3960_v55, %s3052_s17 }
 0x2f2   : > { %v2120_v14 = vpop.permute.xlu1 %2119  ;;  %v2019_v62 = vsel %vm801_vm2, %v3790_v15, %v1857_v59 }
 0x2f3   : > { %2855 = vmatprep.mubr.msk.bf16.mxu1 %vm801_vm2, %v2120_v14  ;;  %v2185_v42 = vsel %vm1011_vm5, %v2152_v18, %v2120_v14 }
 0x2f4   : > { %2374 = vmatmul.mubr.bf16.gmra.mrb[4].mxu1 %v2185_v42 }
 0x2f5   : > { %v2089_v61 = vpop.permute.xlu0 %2088 }
 0x2f6   : > { %v1983_v57 = vpop.permute.xlu1 %1982  ;;  %v2154_v10 = vsel %vm974_vm4, %v3794_v16, %v2089_v61 }
 0x2f7   : > { %v3973_v63 = vsel %vm842_vm3, %v2019_v62, %v1983_v57 }
 0x2f8   : > { %2104 = vrot.lane.b32.xlu0 %v3973_v63, %s3052_s17  ;;  %2135 = vrot.lane.b32.xlu1 %v3973_v63, %s3053_s18 }
 0x2f9   : > { %v1859_v58 = vpop.permute.xlu0 %1858 }
 0x2fa   : > { %v2122_v38 = vpop.permute.xlu1 %2121  ;;  %v2021_v19 = vsel %vm801_vm2, %v3812_v2, %v1859_v58 }
 0x2fb   : > { %2856 = vmatprep.mubr.msk.bf16.mxu1 %vm801_vm2, %v2122_v38  ;;  %v2188_v7 = vsel %vm1011_vm5, %v2154_v10, %v2122_v38 }
 0x2fc   : > { %2382 = vmatmul.mubr.bf16.gmra.mrb[8].mxu1 %v2188_v7 }
 0x2fd   : > { %v2091_v15 = vpop.permute.xlu0 %2090 }
 0x2fe   : > { %v1985_v60 = vpop.permute.xlu1 %1984  ;;  %v2156_v16 = vsel %vm974_vm4, %v3815_v47, %v2091_v15 }
 0x2ff   : > { %v3986_v8 = vsel %vm842_vm3, %v2021_v19, %v1985_v60 }
 0x300   : > { %2106 = vrot.lane.b32.xlu0 %v3986_v8, %s3052_s17  ;;  %2137 = vrot.lane.b32.xlu1 %v3986_v8, %s3053_s18 }
 0x301   : > { %v1861_v12 = vpop.permute.xlu0 %1860 }
 0x302   : > { %v2124_v32 = vpop.permute.xlu1 %2123  ;;  %v2023_v2 = vsel %vm801_vm2, %v3839_v20, %v1861_v12 }
 0x303   : > { %2857 = vmatprep.mubr.msk.bf16.mxu1 %vm801_vm2, %v2124_v32  ;;  %v2191_v17 = vsel %vm1011_vm5, %v2156_v16, %v2124_v32 }
 0x304   : > { %2390 = vmatmul.mubr.bf16.gmra.mrb[12].mxu1 %v2191_v17 }
 0x305   : > { %v2093_v22 = vpop.permute.xlu0 %2092 }
 0x306   : > { %v1987_v49 = vpop.permute.xlu1 %1986  ;;  %v2158_v47 = vsel %vm974_vm4, %v3835_v0, %v2093_v22 }
 0x307   : > { %v3999_v46 = vsel %vm842_vm3, %v2023_v2, %v1987_v49 }
 0x308   : > { %2108 = vrot.lane.b32.xlu0 %v3999_v46, %s3052_s17  ;;  %2139 = vrot.lane.b32.xlu1 %v3999_v46, %s3053_s18 }
 0x309   : > { %v1863_v23 = vpop.permute.xlu0 %1862 }
 0x30a   : > { %v2126_v24 = vpop.permute.xlu1 %2125  ;;  %v2025_v41 = vsel %vm801_vm2, %v3856_v56, %v1863_v23 }
 0x30b   : > { %2858 = vmatprep.mubr.msk.bf16.mxu1 %vm801_vm2, %v2126_v24  ;;  %v2194_v20 = vsel %vm1011_vm5, %v2158_v47, %v2126_v24 }
 0x30c   : > { %2398 = vmatmul.mubr.bf16.gmra.mrb[16].mxu1 %v2194_v20 }
 0x30d   : > { %v2095_v11 = vpop.permute.xlu0 %2094 }
 0x30e   : > { %v1989_v27 = vpop.permute.xlu1 %1988  ;;  %v2160_v0 = vsel %vm974_vm4, %v3860_v51, %v2095_v11 }
 0x30f   : > { %v4012_v35 = vsel %vm842_vm3, %v2025_v41, %v1989_v27 }
 0x310   : > { %2110 = vrot.lane.b32.xlu0 %v4012_v35, %s3052_s17  ;;  %2141 = vrot.lane.b32.xlu1 %v4012_v35, %s3053_s18 }
 0x311   : > { %v1865_v37 = vpop.permute.xlu0 %1864 }
 0x312   : > { %v2128_v36 = vpop.permute.xlu1 %2127  ;;  %v2027_v4 = vsel %vm801_vm2, %v3878_v3, %v1865_v37 }
 0x313   : > { %2859 = vmatprep.mubr.msk.bf16.mxu1 %vm801_vm2, %v2128_v36  ;;  %v2197_v56 = vsel %vm1011_vm5, %v2160_v0, %v2128_v36 }
 0x314   : > { %2406 = vmatmul.mubr.bf16.gmra.mrb[20].mxu1 %v2197_v56 }
 0x315   : > { %v2097_v51 = vpop.permute.xlu0 %2096 }
 0x316   : > { %v1991_v6 = vpop.permute.xlu1 %1990  ;;  %v2162_v21 = vsel %vm974_vm4, %v3881_v43, %v2097_v51 }
 0x317   : > { %v4025_v39 = vsel %vm842_vm3, %v2027_v4, %v1991_v6 }
 0x318   : > { %2112 = vrot.lane.b32.xlu0 %v4025_v39, %s3052_s17  ;;  %2143 = vrot.lane.b32.xlu1 %v4025_v39, %s3053_s18 }
 0x34e   : > { %v2130_v29 = vpop.permute.xlu1 %2129 }
 0x34f   : > { %2860 = vmatprep.mubr.msk.bf16.mxu1 %vm801_vm2, %v2130_v29  ;;  %v2200_v13 = vsel %vm1011_vm5, %v2162_v21, %v2130_v29 }
 0x350   : > { %2414 = vmatmul.mubr.bf16.gmra.mrb[24].mxu1 %v2200_v13 }
 0x351   : > { %v1867_v3 = vpop.permute.xlu0 %1866 }
 0x352   : > { %v1993_v1 = vpop.permute.xlu1 %1992  ;;  %v2029_v40 = vsel %vm801_vm2, %v3911_v30, %v1867_v3 }
 0x353   : > { %v2065_v34 = vsel %vm842_vm3, %v2029_v40, %v1993_v1 }
 0x354   : > { %2114 = vrot.lane.b32.xlu0 %v2065_v34, %s3052_s17  ;;  %2145 = vrot.lane.b32.xlu1 %v2065_v34, %s3053_s18  ;;  %s4076_s17 = scalar_lea.vmem %s4162_s3, %s2904_s20 }
 0x355   : > { %v2099_v44 = vpop.permute.xlu0 %2098 }
 0x356   : > { %v2132_v45 = vpop.permute.xlu1 %2131  ;;  %v2164_v43 = vsel %vm974_vm4, %v3897_v9, %v2099_v44 }
 0x357   : > { %2861 = vmatprep.mubr.msk.bf16.mxu1 %vm801_vm2, %v2132_v45  ;;  %v2203_v48 = vsel %vm1011_vm5, %v2164_v43, %v2132_v45 }
 0x358   : > { %2422 = vmatmul.mubr.bf16.gmra.mrb[28].mxu1 %v2203_v48 }
 0x35a   : > { %v1995_v33 = vpop.permute.xlu1 %1994 }
 0x35b   : > { %v1869_v28 = vpop.permute.xlu0 %1868 }
 0x35c   : > { %v2031_v30 = vsel %vm801_vm2, %v3931_v31, %v1869_v28 }
 0x35d   : > { %v2067_v50 = vsel %vm842_vm3, %v2031_v30, %v1995_v33 }
 0x35e   : > { %2147 = vrot.lane.b32.xlu1 %v2067_v50, %s3053_s18 }
 0x35f   : > { %v2101_v25 = vpop.permute.xlu0 %2100 }
 0x360   : > { %v2166_v52 = vsel %vm974_vm4, %v3917_v5, %v2101_v25 }
 0x362   : > { %v2134_v26 = vpop.permute.xlu1 %2133 }
 0x363   : > { %2862 = vmatprep.mubr.msk.bf16.mxu1 %vm801_vm2, %v2134_v26  ;;  %v2206_v9 = vsel %vm1011_vm5, %v2166_v52, %v2134_v26  ;;  %v2103_v53 = vpop.permute.xlu0 %2102 }
 0x364   : > { %2430 = vmatmul.mubr.bf16.gmra.mrb[32].mxu1 %v2206_v9  ;;  %v2168_v59 = vsel %vm974_vm4, %v3936_v54, %v2103_v53 }
 0x36a   : > { %v2136_v18 = vpop.permute.xlu1 %2135  ;;  %v2105_v14 = vpop.permute.xlu0 %2104 }
 0x36b   : > { %2863 = vmatprep.mubr.msk.bf16.mxu1 %vm801_vm2, %v2136_v18  ;;  %v2209_v31 = vsel %vm1011_vm5, %v2168_v59, %v2136_v18  ;;  %v2170_v5 = vsel %vm974_vm4, %v3960_v55, %v2105_v14 }
 0x36c   : > { %2438 = vmatmul.mubr.bf16.gmra.mrb[36].mxu1 %v2209_v31 }
 0x372   : > { %v2138_v42 = vpop.permute.xlu1 %2137  ;;  %v2107_v62 = vpop.permute.xlu0 %2106 }
 0x373   : > { %2864 = vmatprep.mubr.msk.bf16.mxu1 %vm801_vm2, %v2138_v42  ;;  %v2212_v61 = vsel %vm1011_vm5, %v2170_v5, %v2138_v42  ;;  %v2172_v54 = vsel %vm974_vm4, %v3973_v63, %v2107_v62 }
 0x374   : > { %2446 = vmatmul.mubr.bf16.gmra.mrb[40].mxu1 %v2212_v61 }
 0x37a   : > { %v2140_v57 = vpop.permute.xlu1 %2139  ;;  %v2109_v10 = vpop.permute.xlu0 %2108 }
 0x37b   : > { %2865 = vmatprep.mubr.msk.bf16.mxu1 %vm801_vm2, %v2140_v57  ;;  %v2215_v58 = vsel %vm1011_vm5, %v2172_v54, %v2140_v57  ;;  %v2174_v55 = vsel %vm974_vm4, %v3986_v8, %v2109_v10 }
 0x37c   : > { %2454 = vmatmul.mubr.bf16.gmra.mrb[44].mxu1 %v2215_v58 }
 0x382   : > { %v2142_v38 = vpop.permute.xlu1 %2141  ;;  %v2111_v15 = vpop.permute.xlu0 %2110 }
 0x383   : > { %2866 = vmatprep.mubr.msk.bf16.mxu1 %vm801_vm2, %v2142_v38  ;;  %v2218_v7 = vsel %vm1011_vm5, %v2174_v55, %v2142_v38  ;;  %v2176_v63 = vsel %vm974_vm4, %v3999_v46, %v2111_v15 }
 0x384   : > { %2462 = vmatmul.mubr.bf16.gmra.mrb[48].mxu1 %v2218_v7 }
 0x38a   : > { %v2144_v19 = vpop.permute.xlu1 %2143  ;;  %v2113_v46 = vpop.permute.xlu0 %2112 }
 0x38b   : > { %2867 = vmatprep.mubr.msk.bf16.mxu1 %vm801_vm2, %v2144_v19  ;;  %v2221_v60 = vsel %vm1011_vm5, %v2176_v63, %v2144_v19  ;;  %v2178_v23 = vsel %vm974_vm4, %v4012_v35, %v2113_v46 }
 0x38c   : > { %2470 = vmatmul.mubr.bf16.gmra.mrb[52].mxu1 %v2221_v60 }
 0x3bf   : > { %v2367_v16 = vpop.f32.mrb[0].mxu1 }
 0x3c0   : > { %v2494_v12 = vmax.f32 %v2367_v16, 0.0  ;;  %v2369_v8 = vpop.f32.mrb[1].mxu1 }
 0x3c1   : > { %v2370_v32 = vpop.f32.mrb[2].mxu1 }
 0x3c2   : > { %v2905_v17 = vpack.c.bf16 %v2494_v12, %v2494_v12  ;;  %v2495_v2 = vmax.f32 %v2370_v32, 0.0  ;;  %v2372_v22 = vpop.f32.mrb[3].mxu1 }
 0x3c4   : > { %2655 = vst.msk [vmem:[%s4076_s17] sm:$0xf] %vm2654_vm9, %v2905_v17  ;;  %v2906_v49 = vpack.c.bf16 %v2495_v2, %v2495_v2 }
 0x3c6   : > { %2656 = vst.msk [vmem:[%s4076_s17 + $0x4] sm:$0xf] %vm2654_vm9, %v2906_v49  ;;  %v2146_v20 = vpop.permute.xlu1 %2145  ;;  %v2115_v4 = vpop.permute.xlu0 %2114 }
 0x3c7   : > { %v2375_v47 = vpop.f32.mrb[4].mxu1  ;;  %2868 = vmatprep.mubr.msk.bf16.mxu1 %vm801_vm2, %v2146_v20  ;;  %v2224_v27 = vsel %vm1011_vm5, %v2178_v23, %v2146_v20  ;;  %v2180_v21 = vsel %vm974_vm4, %v4025_v39, %v2115_v4 }
 0x3c8   : > { %v2496_v24 = vmax.f32 %v2375_v47, 0.0  ;;  %v2377_v41 = vpop.f32.mrb[5].mxu1  ;;  %2478 = vmatmul.mubr.bf16.gmra.mrb[56].mxu1 %v2224_v27 }
 0x3c9   : > { %v2378_v11 = vpop.f32.mrb[6].mxu1 }
 0x3ca   : > { %v2907_v0 = vpack.c.bf16 %v2496_v24, %v2496_v24  ;;  %v2497_v36 = vmax.f32 %v2378_v11, 0.0  ;;  %v2380_v37 = vpop.f32.mrb[7].mxu1 }
 0x3cc   : > { %2657 = vst.msk [vmem:[%s4076_s17 + $0x8] sm:$0xf] %vm2654_vm9, %v2907_v0  ;;  %v2908_v56 = vpack.c.bf16 %v2497_v36, %v2497_v36 }
 0x3ce   : > { %2658 = vst.msk [vmem:[%s4076_s17 + $0xc] sm:$0xf] %vm2654_vm9, %v2908_v56 }
 0x3cf   : > { %v2383_v35 = vpop.f32.mrb[8].mxu1 }
 0x3d0   : > { %v2498_v6 = vmax.f32 %v2383_v35, 0.0  ;;  %v2385_v51 = vpop.f32.mrb[9].mxu1  ;;  %v2148_v13 = vpop.permute.xlu1 %2147 }
 0x3d1   : > { %v2386_v29 = vpop.f32.mrb[10].mxu1  ;;  %2869 = vmatprep.mubr.msk.bf16.mxu1 %vm801_vm2, %v2148_v13  ;;  %v2227_v34 = vsel %vm1011_vm5, %v2180_v21, %v2148_v13 }
 0x3d2   : > { %v2909_v3 = vpack.c.bf16 %v2498_v6, %v2498_v6  ;;  %v2499_v1 = vmax.f32 %v2386_v29, 0.0  ;;  %v2388_v40 = vpop.f32.mrb[11].mxu1  ;;  %2486 = vmatmul.mubr.bf16.gmra.mrb[60].mxu1 %v2227_v34 }
 0x3d4   : > { %2659 = vst.msk [vmem:[%s4076_s17 + $0x10] sm:$0xf] %vm2654_vm9, %v2909_v3  ;;  %v2910_v44 = vpack.c.bf16 %v2499_v1, %v2499_v1 }
 0x3d6   : > { %2660 = vst.msk [vmem:[%s4076_s17 + $0x14] sm:$0xf] %vm2654_vm9, %v2910_v44 }
 0x3d7   : > { %v2391_v45 = vpop.f32.mrb[12].mxu1 }
 0x3d8   : > { %v2500_v43 = vmax.f32 %v2391_v45, 0.0  ;;  %v2393_v39 = vpop.f32.mrb[13].mxu1 }
 0x3d9   : > { %v2394_v48 = vpop.f32.mrb[14].mxu1 }
 0x3da   : > { %v2911_v28 = vpack.c.bf16 %v2500_v43, %v2500_v43  ;;  %v2501_v33 = vmax.f32 %v2394_v48, 0.0  ;;  %v2396_v30 = vpop.f32.mrb[15].mxu1 }
 0x3dc   : > { %2661 = vst.msk [vmem:[%s4076_s17 + $0x18] sm:$0xf] %vm2654_vm9, %v2911_v28  ;;  %v2912_v50 = vpack.c.bf16 %v2501_v33, %v2501_v33 }
 0x3de   : > { %2662 = vst.msk [vmem:[%s4076_s17 + $0x1c] sm:$0xf] %vm2654_vm9, %v2912_v50 }
 0x3df   : > { %v2399_v25 = vpop.f32.mrb[16].mxu1 }
 0x3e0   : > { %v2502_v52 = vmax.f32 %v2399_v25, 0.0  ;;  %v2401_v26 = vpop.f32.mrb[17].mxu1 }
 0x3e1   : > { %v2402_v9 = vpop.f32.mrb[18].mxu1 }
 0x3e2   : > { %v2913_v53 = vpack.c.bf16 %v2502_v52, %v2502_v52  ;;  %v2503_v59 = vmax.f32 %v2402_v9, 0.0  ;;  %v2404_v18 = vpop.f32.mrb[19].mxu1 }
 0x3e4   : > { %2663 = vst.msk [vmem:[%s4076_s17 + $0x20] sm:$0xf] %vm2654_vm9, %v2913_v53  ;;  %v2914_v31 = vpack.c.bf16 %v2503_v59, %v2503_v59 }
 0x3e6   : > { %2664 = vst.msk [vmem:[%s4076_s17 + $0x24] sm:$0xf] %vm2654_vm9, %v2914_v31 }
 0x3e7   : > { %v2407_v14 = vpop.f32.mrb[20].mxu1 }
 0x3e8   : > { %v2504_v5 = vmax.f32 %v2407_v14, 0.0  ;;  %v2409_v42 = vpop.f32.mrb[21].mxu1 }
 0x3e9   : > { %v2410_v61 = vpop.f32.mrb[22].mxu1 }
 0x3ea   : > { %v2915_v62 = vpack.c.bf16 %v2504_v5, %v2504_v5  ;;  %v2505_v54 = vmax.f32 %v2410_v61, 0.0  ;;  %v2412_v57 = vpop.f32.mrb[23].mxu1 }
 0x3ec   : > { %2665 = vst.msk [vmem:[%s4076_s17 + $0x28] sm:$0xf] %vm2654_vm9, %v2915_v62  ;;  %v2916_v58 = vpack.c.bf16 %v2505_v54, %v2505_v54 }
 0x3ee   : > { %2666 = vst.msk [vmem:[%s4076_s17 + $0x2c] sm:$0xf] %vm2654_vm9, %v2916_v58 }
 0x423   : > { %v2415_v10 = vpop.f32.mrb[24].mxu1 }
 0x424   : > { %v2506_v55 = vmax.f32 %v2415_v10, 0.0  ;;  %v2417_v38 = vpop.f32.mrb[25].mxu1 }
 0x425   : > { %v2418_v7 = vpop.f32.mrb[26].mxu1 }
 0x426   : > { %v2917_v15 = vpack.c.bf16 %v2506_v55, %v2506_v55  ;;  %v2507_v63 = vmax.f32 %v2418_v7, 0.0  ;;  %v2420_v19 = vpop.f32.mrb[27].mxu1 }
 0x428   : > { %2667 = vst.msk [vmem:[%s4076_s17 + $0x30] sm:$0xf] %vm2654_vm9, %v2917_v15  ;;  %v2918_v60 = vpack.c.bf16 %v2507_v63, %v2507_v63 }
 0x42a   : > { %2668 = vst.msk [vmem:[%s4076_s17 + $0x34] sm:$0xf] %vm2654_vm9, %v2918_v60 }
 0x42b   : > { %v2423_v16 = vpop.f32.mrb[28].mxu1 }
 0x42c   : > { %v2508_v12 = vmax.f32 %v2423_v16, 0.0  ;;  %v2425_v8 = vpop.f32.mrb[29].mxu1 }
 0x42d   : > { %v2426_v32 = vpop.f32.mrb[30].mxu1 }
 0x42e   : > { %v2919_v17 = vpack.c.bf16 %v2508_v12, %v2508_v12  ;;  %v2509_v2 = vmax.f32 %v2426_v32, 0.0  ;;  %v2428_v22 = vpop.f32.mrb[31].mxu1 }
 0x430   : > { %2669 = vst.msk [vmem:[%s4076_s17 + $0x38] sm:$0xf] %vm2654_vm9, %v2919_v17  ;;  %v2920_v49 = vpack.c.bf16 %v2509_v2, %v2509_v2 }
 0x432   : > { %2670 = vst.msk [vmem:[%s4076_s17 + $0x3c] sm:$0xf] %vm2654_vm9, %v2920_v49 }
 0x437   : > { %v2431_v46 = vpop.f32.mrb[32].mxu1 }
 0x438   : > { %v2510_v47 = vmax.f32 %v2431_v46, 0.0  ;;  %v2433_v23 = vpop.f32.mrb[33].mxu1 }
 0x439   : > { %v2434_v24 = vpop.f32.mrb[34].mxu1 }
 0x43a   : > { %v2921_v20 = vpack.c.bf16 %v2510_v47, %v2510_v47  ;;  %v2511_v41 = vmax.f32 %v2434_v24, 0.0  ;;  %v2436_v11 = vpop.f32.mrb[35].mxu1 }
 0x43c   : > { %2671 = vst.msk [vmem:[%s4076_s17 + $0x40] sm:$0xf] %vm2654_vm9, %v2921_v20  ;;  %v2922_v27 = vpack.c.bf16 %v2511_v41, %v2511_v41 }
 0x43e   : > { %2672 = vst.msk [vmem:[%s4076_s17 + $0x44] sm:$0xf] %vm2654_vm9, %v2922_v27 }
 0x43f   : > { %v2439_v0 = vpop.f32.mrb[36].mxu1 }
 0x440   : > { %v2512_v36 = vmax.f32 %v2439_v0, 0.0  ;;  %v2441_v37 = vpop.f32.mrb[37].mxu1 }
 0x441   : > { %v2442_v56 = vpop.f32.mrb[38].mxu1 }
 0x442   : > { %v2923_v4 = vpack.c.bf16 %v2512_v36, %v2512_v36  ;;  %v2513_v35 = vmax.f32 %v2442_v56, 0.0  ;;  %v2444_v6 = vpop.f32.mrb[39].mxu1 }
 0x444   : > { %2673 = vst.msk [vmem:[%s4076_s17 + $0x48] sm:$0xf] %vm2654_vm9, %v2923_v4  ;;  %v2924_v51 = vpack.c.bf16 %v2513_v35, %v2513_v35 }
 0x446   : > { %2674 = vst.msk [vmem:[%s4076_s17 + $0x4c] sm:$0xf] %vm2654_vm9, %v2924_v51 }
 0x447   : > { %v2447_v21 = vpop.f32.mrb[40].mxu1 }
 0x448   : > { %v2514_v29 = vmax.f32 %v2447_v21, 0.0  ;;  %v2449_v13 = vpop.f32.mrb[41].mxu1 }
 0x449   : > { %v2450_v3 = vpop.f32.mrb[42].mxu1 }
 0x44a   : > { %v2925_v1 = vpack.c.bf16 %v2514_v29, %v2514_v29  ;;  %v2515_v40 = vmax.f32 %v2450_v3, 0.0  ;;  %v2452_v34 = vpop.f32.mrb[43].mxu1 }
 0x44c   : > { %2675 = vst.msk [vmem:[%s4076_s17 + $0x50] sm:$0xf] %vm2654_vm9, %v2925_v1  ;;  %v2926_v44 = vpack.c.bf16 %v2515_v40, %v2515_v40 }
 0x44e   : > { %2676 = vst.msk [vmem:[%s4076_s17 + $0x54] sm:$0xf] %vm2654_vm9, %v2926_v44 }
 0x44f   : > { %v2455_v45 = vpop.f32.mrb[44].mxu1 }
 0x450   : > { %v2516_v43 = vmax.f32 %v2455_v45, 0.0  ;;  %v2457_v39 = vpop.f32.mrb[45].mxu1 }
 0x451   : > { %v2458_v48 = vpop.f32.mrb[46].mxu1 }
 0x452   : > { %v2927_v28 = vpack.c.bf16 %v2516_v43, %v2516_v43  ;;  %v2517_v33 = vmax.f32 %v2458_v48, 0.0  ;;  %v2460_v30 = vpop.f32.mrb[47].mxu1 }
 0x454   : > { %2677 = vst.msk [vmem:[%s4076_s17 + $0x58] sm:$0xf] %vm2654_vm9, %v2927_v28  ;;  %v2928_v50 = vpack.c.bf16 %v2517_v33, %v2517_v33 }
 0x456   : > { %2678 = vst.msk [vmem:[%s4076_s17 + $0x5c] sm:$0xf] %vm2654_vm9, %v2928_v50 }
 0x457   : > { %v2463_v25 = vpop.f32.mrb[48].mxu1 }
 0x458   : > { %v2518_v52 = vmax.f32 %v2463_v25, 0.0  ;;  %v2465_v26 = vpop.f32.mrb[49].mxu1 }
 0x459   : > { %v2466_v9 = vpop.f32.mrb[50].mxu1 }
 0x45a   : > { %v2929_v53 = vpack.c.bf16 %v2518_v52, %v2518_v52  ;;  %v2519_v59 = vmax.f32 %v2466_v9, 0.0  ;;  %v2468_v18 = vpop.f32.mrb[51].mxu1 }
 0x45c   : > { %2679 = vst.msk [vmem:[%s4076_s17 + $0x60] sm:$0xf] %vm2654_vm9, %v2929_v53  ;;  %v2930_v31 = vpack.c.bf16 %v2519_v59, %v2519_v59 }
 0x45e   : > { %2680 = vst.msk [vmem:[%s4076_s17 + $0x64] sm:$0xf] %vm2654_vm9, %v2930_v31 }
 0x45f   : > { %v2471_v14 = vpop.f32.mrb[52].mxu1 }
 0x460   : > { %v2520_v5 = vmax.f32 %v2471_v14, 0.0  ;;  %v2473_v42 = vpop.f32.mrb[53].mxu1 }
 0x461   : > { %v2474_v61 = vpop.f32.mrb[54].mxu1 }
 0x462   : > { %v2931_v62 = vpack.c.bf16 %v2520_v5, %v2520_v5  ;;  %v2521_v54 = vmax.f32 %v2474_v61, 0.0  ;;  %v2476_v57 = vpop.f32.mrb[55].mxu1 }
 0x464   : > { %2681 = vst.msk [vmem:[%s4076_s17 + $0x68] sm:$0xf] %vm2654_vm9, %v2931_v62  ;;  %v2932_v58 = vpack.c.bf16 %v2521_v54, %v2521_v54 }
 0x466   : > { %2682 = vst.msk [vmem:[%s4076_s17 + $0x6c] sm:$0xf] %vm2654_vm9, %v2932_v58 }
 0x49b   : > { %v2479_v10 = vpop.f32.mrb[56].mxu1 }
 0x49c   : > { %v2522_v55 = vmax.f32 %v2479_v10, 0.0  ;;  %v2481_v38 = vpop.f32.mrb[57].mxu1 }
 0x49d   : > { %v2482_v7 = vpop.f32.mrb[58].mxu1 }
 0x49e   : > { %v2933_v15 = vpack.c.bf16 %v2522_v55, %v2522_v55  ;;  %v2523_v63 = vmax.f32 %v2482_v7, 0.0  ;;  %v2484_v19 = vpop.f32.mrb[59].mxu1 }
 0x4a0   : > { %2683 = vst.msk [vmem:[%s4076_s17 + $0x70] sm:$0xf] %vm2654_vm9, %v2933_v15  ;;  %v2934_v60 = vpack.c.bf16 %v2523_v63, %v2523_v63 }
 0x4a2   : > { %2684 = vst.msk [vmem:[%s4076_s17 + $0x74] sm:$0xf] %vm2654_vm9, %v2934_v60 }
 0x4a5   : > { %v2487_v16 = vpop.f32.mrb[60].mxu1 }
 0x4a6   : > { %v2524_v12 = vmax.f32 %v2487_v16, 0.0  ;;  %v2489_v8 = vpop.f32.mrb[61].mxu1 }
 0x4a7   : > { %v2490_v32 = vpop.f32.mrb[62].mxu1 }
 0x4a8   : > { %v2935_v17 = vpack.c.bf16 %v2524_v12, %v2524_v12  ;;  %v2525_v2 = vmax.f32 %v2490_v32, 0.0  ;;  %v2492_v22 = vpop.f32.mrb[63].mxu1 }
 0x4aa   : > { %2685 = vst.msk [vmem:[%s4076_s17 + $0x78] sm:$0xf] %vm2654_vm9, %v2935_v17  ;;  %v2936_v49 = vpack.c.bf16 %v2525_v2, %v2525_v2 }
 0x4ac   : > { %2686 = vst.msk [vmem:[%s4076_s17 + $0x7c] sm:$0xf] %vm2654_vm9, %v2936_v49 }
 0x4ad PF: > { %s13_s14 = sadd.s32 1, %s3047_s14   ;;  %s4165_s12 = smov %s3043_s13 }
 0x4ae   : > { %p10_p5 = scmp.ge.s32.totalorder %s13_s14, 4   ;;  %s4166_s13 = smov %s4168_s15 }
 0x4b0   :  { %12 = sbr.rel (!%p10_p5) target bundleno = 2 (0x2), region = 63 }

// kernel: centernet_deconv.5
= control target key start
LH: loop header
LB: loop body
LE: loop exit
PB: predicated region body
PF: predicated region fallthrough
CT: control target
= control target key end

     0   :  { %s5151_s12 = smov 0   ;;  %s5153_s13 = smov 0   ;;  %s7485_s0 = inlined_call_operand.vmem [shape: bf16[2,36,34,16], index: 0, kind: input, shape index: {}]   ;;  %s7486_s1 = inlined_call_operand.vmem [shape: bf16[144,16], index: 1, kind: input, shape index: {}]   ;;  %s7487_s2 = inlined_call_operand.vmem [shape: bf16[144,64], index: 2, kind: input, shape index: {}]   ;;  %s7488_s3 = inlined_call_operand.vmem [shape: bf16[2,1024,64], index: 3, kind: output, shape index: {}]  }
   0x1   :  { %s5155_s14 = smov 0   ;;  %s5157_s15 = smov 0  }
   0x2   :  { %s5159_s16 = smov 0  }
   0x3 LB: > { %s22_s17 = sadd.s32 1, %s5116_s14  ;;  %s25_s18 = sadd.s32 1, %s5120_s15  ;;  %s5124_s16 = sphi %s5159_s16, %s13_s16   ;;  %s5120_s15 = sphi %s5157_s15, %s7494_s15   ;;  %s5116_s14 = sphi %s5155_s14, %s7493_s14   ;;  %s5112_s13 = sphi %s5153_s13, %s7492_s13   ;;  %s5108_s12 = sphi %s5151_s12, %s7491_s12  }
   0x4   : > { %p23_p0 = scmp.ge.s32.totalorder %s22_s17, 2  ;;  %p4677_p1 = scmp.ge.s32.totalorder %s5124_s16, 1 }
   0x5   : > { %p151_p2 = scmp.lt.s32.totalorder %s5124_s16, 5 }
   0x6   : > { %s7496_s17 = smov (%p23_p0, %s22_s17), 0  ;;  %s7498_s18 = smov (!%p23_p0, %s25_s18), %s5120_s15 }
   0x7   : > { %p152_p3 = pnand %p4677_p1, %p151_p2  ;;  %p27_p4 = scmp.ge.s32.totalorder %s7498_s18, 2 }
   0x8   : > { %p179_p5 = scmp.lt.s32.totalorder (!%p152_p3), %s5112_s13, 1  ;;  %s4897_s19 = smul.u32 (!%p152_p3), 320, %s5108_s12  ;;  %vm1040_vm0 = vcmask (!%p152_p3), 1046528   ;;  %vm559_vm1 = vsmask.f32 (!%p152_p3), 7424  ;;  %vm1221_vm2 = vcmask (!%p152_p3), 130048  }
   0x9   : > { %s7500_s18 = smov (%p27_p4, %s7498_s18), 0  ;;  %155 = sbr.rel (%p152_p3) target bundleno = 1533 (0x5fd), region = 32 }
   0xa   : > { %s5126_s25 = smov (!%p152_p3), 32   ;;  %s5127_s26 = smov (!%p152_p3), 16   ;;  %vm1302_vm3 = vcmask (!%p152_p3), 261120   ;;  %vm1565_vm4 = vcmask (!%p152_p3), 392192   ;;  %vm1638_vm5 = vcmask (!%p152_p3), 785408   ;;  %vm2643_vm7 = vcmask (!%p152_p3), 1040384  }
   0xb   : > { %s5129_s28 = smov (!%p152_p3), 48   ;;  %s5130_s29 = smov (!%p152_p3), 96   ;;  %vm2336_vm6 = vsmask.f32 (!%p152_p3), 256  ;;  %vm4522_vm9 = vcmask (!%p152_p3), 519168  }
   0xc   : > { %p2284_p6 = scmp.gt.s32.totalorder (!%p152_p3), %s5108_s12, 0  ;;  %vm5983_vm8 = vmand (!%p152_p3), %vm2643_vm7, %vm2336_vm6  ;;  %p2287_p7 = scmp.lt.s32.totalorder (!%p152_p3), %s5108_s12, 1 }
  0x10   : > { %s7502_s13 = smov (!%p179_p5, %s5112_s13), 1 }
  0x11   : > { %s4962_s20 = smul.u32 720, %s7502_s13  ;;  %s4680_s8 = sshll.u32 %s7502_s13, 7 }
  0x12   : > { %s2285_s30 = scalar_select %p2284_p6, 1, 0 }
  0x13   : > { %s183_s23 = scalar_lea.vmem %s7485_s0, %s4962_s20 }
  0x14   : > { %s5190_s24 = scalar_lea.vmem %s183_s23, %s4897_s19  ;;  %s2286_s4 = scvt.s32.f32 %s2285_s30 }
  0x15   : > { %v5193_v0 = vld [vmem:[%s5190_s24 + $0x14] sm:$0xff]   ;;  %v5196_v1 = vld [vmem:[%s5190_s24 + $0x1c] sm:$0xff]   ;;  %v5204_v7 = vld [vmem:[%s5190_s24 + $0x28] sm:$0xff]   ;;  %s2288_s6 = scalar_select %p2287_p7, 1, 0 }
  0x16   : > { %v1046_v2 = vrot.slane %v5193_v0, 1  ;;  %v1047_v3 = vrot.slane %v5196_v1, 1  ;;  %v581_v4 = vshrl.u32 %v5193_v0, 16  ;;  %v583_v5 = vshll.u32 %v5193_v0, 16  ;;  %v5207_v8 = vld [vmem:[%s5190_s24 + $0x30] sm:$0xff]   ;;  %v5223_v28 = vld [vmem:[%s5190_s24 + $0x3c] sm:$0xff]  }
  0x17   : > { %v588_v6 = vshll.u32 %v5196_v1, 16  ;;  %v592_v9 = vshrl.u32 %v5196_v1, 16  ;;  %v5012_v12 = vld [vmem:[%s5190_s24 + $0x38] ss:$0 sps:$4 sm:$0x11]   ;;  %v1051_v14 = vrot.slane %v5204_v7, 1  ;;  %s2289_s7 = scvt.s32.f32 %s2288_s6 }
  0x18   : > { %v1048_v10 = vsel %vm1040_vm0, %v1046_v2, %v1047_v3  ;;  %v585_v11 = vrot.slane %v583_v5, 1  ;;  %v1052_v15 = vrot.slane %v5207_v8, 1  ;;  %v601_v16 = vshrl.u32 %v5204_v7, 16  ;;  %v5013_v21 = vld [vmem:[%s5190_s24 + $0x24] ss:$0 sps:$4 sm:$0x11]  }
  0x19   : > { %1145 = vrot.lane.b32.xlu1 %v1048_v10, %s5126_s25  ;;  %v590_v13 = vrot.slane %v588_v6, 1  ;;  %v603_v18 = vshll.u32 %v5204_v7, 16  ;;  %v608_v19 = vshll.u32 %v5207_v8, 16  ;;  %v612_v20 = vshrl.u32 %v5207_v8, 16  ;;  %v5228_v31 = vld [vmem:[%s5190_s24 + $0x44] sm:$0xff]   ;;  %v5243_v48 = vld [vmem:[%s5190_s24 + $0x50] sm:$0xff]  }
  0x1a   : > { %v586_v17 = vor.u32 %v585_v11, %v581_v4  ;;  %v1053_v22 = vsel %vm1040_vm0, %v1051_v14, %v1052_v15  ;;  %v616_v23 = vshll.u32 %v5012_v12, 16  ;;  %v596_v27 = vshll.u32 %v5013_v21, 16  ;;  %v5016_v43 = vld [vmem:[%s5190_s24 + $0x4c] ss:$0 sps:$4 sm:$0x11]   ;;  %v5247_v50 = vld [vmem:[%s5190_s24 + $0x58] sm:$0xff]  }
  0x1b   : > { %v605_v25 = vrot.slane %v603_v18, 1  ;;  %v610_v26 = vrot.slane %v608_v19, 1  ;;  %v1054_v30 = vrot.slane %v5012_v12, 1  ;;  %v594_v34 = vor.u32 %v592_v9, %v590_v13  ;;  %v5019_v58 = vld [vmem:[%s5190_s24 + $0x60] ss:$0 sps:$4 sm:$0x11]  }
  0x1c   : > { %v591_v24 = vsel %vm559_vm1, %v586_v17, %v590_v13  ;;  %v618_v29 = vrot.slane %v616_v23, 1  ;;  %v598_v35 = vrot.slane %v596_v27, 1  ;;  %v623_v36 = vshll.u32 %v5223_v28, 16  ;;  %v5257_v60 = vld [vmem:[%s5190_s24 + $0x64] sm:$0xff]   ;;  %v5270_v11 = vld [vmem:[%s5190_s24 + $0x6c] sm:$0xff]  }
  0x1d   : > { %964 = vrot.lane.b32.xlu0 %v591_v24, %s5127_s26  ;;  %1149 = vrot.lane.b32.xlu1 %v1053_v22, %s5126_s25  ;;  %v606_v32 = vor.u32 %v605_v25, %v601_v16  ;;  %v614_v33 = vor.u32 %v612_v20, %v610_v26  ;;  %v1049_v39 = vrot.slane %v5013_v21, 1  ;;  %v621_v40 = vshrl.u32 %v5223_v28, 16  ;;  %v5022_v24 = vld [vmem:[%s5190_s24 + $0x74] ss:$0 sps:$4 sm:$0x11]  }
  0x1e   : > { %v1055_v41 = vsel %vm1040_vm0, %v1052_v15, %v1054_v30  ;;  %v628_v42 = vshll.u32 %v5228_v31, 16  ;;  %v599_v44 = vsel %vm559_vm1, %v594_v34, %v598_v35  ;;  %v625_v45 = vrot.slane %v623_v36, 1  ;;  %v5277_v15 = vld [vmem:[%s5190_s24 + $0x8] sm:$0xff]   ;;  %v5027_v25 = vld [vmem:[%s5190_s24 + $0x10] ss:$0 sps:$4 sm:$0x11]  }
  0x1f   : > { %v611_v37 = vsel %vm559_vm1, %v606_v32, %v610_v26  ;;  %v619_v38 = vsel %vm559_vm1, %v614_v33, %v618_v29  ;;  %v1056_v46 = vrot.slane %v5223_v28, 1  ;;  %v1057_v47 = vrot.slane %v5228_v31, 1 }
  0x20   : > { %v632_v49 = vshrl.u32 %v5228_v31, 16  ;;  %v1050_v51 = vsel %vm1040_vm0, %v1047_v3, %v1049_v39  ;;  %v636_v52 = vshll.u32 %v5016_v43, 16  ;;  %v1059_v53 = vrot.slane %v5016_v43, 1  ;;  %v5264_v3 = vld [vmem:[%s5190_s24] sm:$0xff]  }
  0x21   : > { %968 = vrot.lane.b32.xlu0 %v611_v37, %s5127_s26  ;;  %970 = vrot.lane.b32.xlu1 %v619_v38, %s5127_s26  ;;  %v626_v54 = vor.u32 %v625_v45, %v621_v40  ;;  %v630_v55 = vrot.slane %v628_v42, 1  ;;  %v1058_v56 = vsel %vm1040_vm0, %v1056_v46, %v1057_v47  ;;  %v643_v57 = vshll.u32 %v5243_v48, 16 }
  0x22   : > { %v641_v59 = vshrl.u32 %v5243_v48, 16  ;;  %v638_v62 = vrot.slane %v636_v52, 1  ;;  %v1060_v63 = vsel %vm1040_vm0, %v1057_v47, %v1059_v53  ;;  %v648_v2 = vshll.u32 %v5247_v50, 16 }
  0x23   : > { %v634_v61 = vor.u32 %v632_v49, %v630_v55  ;;  %v631_v4 = vsel %vm559_vm1, %v626_v54, %v630_v55  ;;  %v645_v5 = vrot.slane %v643_v57, 1  ;;  %v1061_v6 = vrot.slane %v5243_v48, 1  ;;  %v5304_v49 = vld [vmem:[%s5190_s24 + $0x78] sm:$0xff]   ;;  %v5311_v55 = vld [vmem:[%s5190_s24 + $0x80] sm:$0xff]  }
  0x24   : > { %v1062_v9 = vrot.slane %v5247_v50, 1  ;;  %v656_v10 = vshll.u32 %v5019_v58, 16  ;;  %v663_v12 = vshll.u32 %v5257_v60, 16  ;;  %v650_v14 = vrot.slane %v648_v2, 1 }
  0x25   : > { %966 = vrot.lane.b32.xlu0 %v599_v44, %s5127_s26  ;;  %1151 = vrot.lane.b32.xlu1 %v1055_v41, %s5126_s25  ;;  %v639_v13 = vsel %vm559_vm1, %v634_v61, %v638_v62  ;;  %v563_v16 = vshll.u32 %v5264_v3, 16  ;;  %v646_v17 = vor.u32 %v645_v5, %v641_v59  ;;  %v652_v19 = vshrl.u32 %v5247_v50, 16 }
  0x26   : > { %v1063_v18 = vsel %vm1040_vm0, %v1061_v6, %v1062_v9  ;;  %v1064_v20 = vrot.slane %v5019_v58, 1  ;;  %v658_v21 = vrot.slane %v656_v10, 1  ;;  %v661_v22 = vshrl.u32 %v5257_v60, 16 }
  0x27   : > { %v668_v23 = vshll.u32 %v5270_v11, 16  ;;  %v665_v26 = vrot.slane %v663_v12, 1  ;;  %v1066_v27 = vrot.slane %v5257_v60, 1  ;;  %v1067_v29 = vrot.slane %v5270_v11, 1 }
  0x28   : > { %v561_v30 = vshrl.u32 %v5264_v3, 16  ;;  %v565_v32 = vrot.slane %v563_v16, 1  ;;  %v568_v33 = vshll.u32 %v5277_v15, 16  ;;  %v1042_v34 = vrot.slane %v5277_v15, 1 }
  0x29   : > { %1147 = vrot.lane.b32.xlu0 %v1050_v51, %s5126_s25  ;;  %1153 = vrot.lane.b32.xlu1 %v1058_v56, %s5126_s25  ;;  %v1044_v35 = vrot.slane %v5027_v25, 1  ;;  %v651_v36 = vsel %vm559_vm1, %v646_v17, %v650_v14  ;;  %v654_v37 = vor.u32 %v652_v19, %v650_v14  ;;  %v1065_v38 = vsel %vm1040_vm0, %v1062_v9, %v1064_v20  ;;  %v5040_v17 = vld [vmem:[%s7486_s1] sm:$0xff]   ;;  %v5041_v19 = vld [vmem:[%s7486_s1 + $0x8] sm:$0xff]  }
  0x2a   : > { %v666_v40 = vor.u32 %v665_v26, %v661_v22  ;;  %v670_v41 = vrot.slane %v668_v23, 1  ;;  %v672_v42 = vshrl.u32 %v5270_v11, 16  ;;  %v676_v43 = vshll.u32 %v5022_v24, 16  ;;  %v5042_v20 = vld [vmem:[%s7486_s1 + $0x10] sm:$0xff]   ;;  %v5044_v22 = vld [vmem:[%s7486_s1 + $0x20] sm:$0xff]   ;;  %v5045_v23 = vld [vmem:[%s7486_s1 + $0x28] sm:$0xff]  }
  0x2b   : > { %v5296_v39 = vsel %vm1040_vm0, %v1042_v34, %v1044_v35  ;;  %v659_v44 = vsel %vm559_vm1, %v654_v37, %v658_v21  ;;  %v1068_v45 = vsel %vm1040_vm0, %v1066_v27, %v1067_v29  ;;  %v566_v46 = vor.u32 %v565_v32, %v561_v30  ;;  %v5043_v21 = vld [vmem:[%s7486_s1 + $0x18] sm:$0xff]   ;;  %v5049_v26 = vld [vmem:[%s7486_s1 + $0x40] sm:$0xff]  }
  0x2c   : > { %v570_v47 = vrot.slane %v568_v33, 1  ;;  %v671_v51 = vsel %vm559_vm1, %v666_v40, %v670_v41  ;;  %v674_v52 = vor.u32 %v672_v42, %v670_v41  ;;  %v678_v53 = vrot.slane %v676_v43, 1 }
  0x2d   : > { %972 = vrot.lane.b32.xlu0 %v631_v4, %s5127_s26  ;;  %1155 = vrot.lane.b32.xlu1 %v1060_v63, %s5126_s25  ;;  %v1041_v54 = vrot.slane %v5264_v3, 1  ;;  %v683_v57 = vshll.u32 %v5304_v49, 16  ;;  %v572_v58 = vshrl.u32 %v5277_v15, 16  ;;  %v576_v59 = vshll.u32 %v5027_v25, 16  ;;  %v5047_v25 = vld [vmem:[%s7486_s1 + $0x38] sm:$0xff]  }
  0x2e   : > { %v571_v56 = vsel %vm559_vm1, %v566_v46, %v570_v47  ;;  %v1069_v61 = vrot.slane %v5022_v24, 1  ;;  %v679_v62 = vsel %vm559_vm1, %v674_v52, %v678_v53  ;;  %v681_v63 = vshrl.u32 %v5304_v49, 16  ;;  %v5046_v24 = vld [vmem:[%s7486_s1 + $0x30] sm:$0xff]  }
  0x2f   : > { %v688_v2 = vshll.u32 %v5311_v55, 16  ;;  %v1043_v4 = vsel %vm1040_vm0, %v1041_v54, %v1042_v34  ;;  %v685_v5 = vrot.slane %v683_v57, 1  ;;  %v574_v6 = vor.u32 %v572_v58, %v570_v47  ;;  %v5395_v52 = vld [vmem:[%s5190_s24 + $0x94] sm:$0xff]  }
  0x30   : > { %v578_v9 = vrot.slane %v576_v59, 1  ;;  %v1070_v10 = vsel %vm1040_vm0, %v1067_v29, %v1069_v61  ;;  %v1071_v32 = vrot.slane %v5304_v49, 1  ;;  %v1072_v33 = vrot.slane %v5311_v55, 1 }
  0x31   : > { %974 = vrot.lane.b32.xlu0 %v639_v13, %s5127_s26  ;;  %1157 = vrot.lane.b32.xlu1 %v1063_v18, %s5126_s25  ;;  %v686_v12 = vor.u32 %v685_v5, %v681_v63  ;;  %v690_v13 = vrot.slane %v688_v2, 1  ;;  %v5128_v18 = vmov 0   ;;  %v708_v61 = vshll.u32 %v5395_v52, 16 }
  0x32   : > { %v579_v14 = vsel %vm559_vm1, %v574_v6, %v578_v9  ;;  %1891 = vmatprep.subr.bf16.mxu0 %v5128_v18  ;;  %3913 = vmatprep.subr.bf16.mxu1 %v5128_v18  ;;  %v5031_v9 = vld [vmem:[%s5190_s24 + $0x9c] ss:$0 sps:$4 sm:$0x11]  }
  0x33   : > { %v691_v16 = vsel %vm559_vm1, %v686_v12, %v690_v13  ;;  %1892 = vmatpush1.bf16.msra.mxu0 %v5040_v17  ;;  %v710_v6 = vrot.slane %v708_v61, 1  ;;  %v716_v17 = vshll.u32 %v5031_v9, 16 }
  0x34   : > { %1893 = vmatprep.subr.bf16.mxu0 %v5128_v18 }
  0x35   : > { %976 = vrot.lane.b32.xlu0 %v651_v36, %s5127_s26  ;;  %1159 = vrot.lane.b32.xlu1 %v1065_v38, %s5126_s25  ;;  %v5028_v36 = vld [vmem:[%s5190_s24 + $0x88] ss:$0 sps:$4 sm:$0x11]   ;;  %v1073_v38 = vsel %vm1040_vm0, %v1071_v32, %v1072_v33 }
  0x36   : > { %v696_v43 = vshll.u32 %v5028_v36, 16  ;;  %v1074_v57 = vrot.slane %v5028_v36, 1 }
  0x37   : > { %1894 = vmatpush1.bf16.msra.mxu0 %v5041_v19  ;;  %v5431_v19 = vld [vmem:[%s5190_s24 + $0xa0] sm:$0xff]  }
  0x38   : > { %1895 = vmatprep.subr.bf16.mxu0 %v5128_v18  ;;  %v721_v32 = vshrl.u32 %v5431_v19, 16 }
  0x39   : > { %978 = vrot.lane.b32.xlu0 %v659_v44, %s5127_s26  ;;  %1161 = vrot.lane.b32.xlu1 %v1068_v45, %s5126_s25  ;;  %v5388_v44 = vld [vmem:[%s5190_s24 + $0x8c] sm:$0xff]  }
  0x3a   : > { %v703_v53 = vshll.u32 %v5388_v44, 16  ;;  %v701_v59 = vshrl.u32 %v5388_v44, 16  ;;  %v1076_v12 = vrot.slane %v5388_v44, 1 }
  0x3b   : > { %1896 = vmatpush1.bf16.msra.mxu0 %v5042_v20 }
  0x3c   : > { %1897 = vmatprep.subr.bf16.mxu0 %v5128_v18 }
  0x3d   : > { %980 = vrot.lane.b32.xlu0 %v671_v51, %s5127_s26  ;;  %960 = vrot.lane.b32.xlu1 %v571_v56, %s5127_s26  ;;  %v698_v51 = vrot.slane %v696_v43, 1 }
  0x3f   : > { %1898 = vmatpush1.bf16.msra.mxu0 %v5043_v21 }
  0x40   : > { %1899 = vmatprep.subr.bf16.mxu0 %v5128_v18 }
  0x41   : > { %982 = vrot.lane.b32.xlu0 %v679_v62, %s5127_s26  ;;  %1141 = vrot.lane.b32.xlu1 %v1043_v4, %s5126_s25  ;;  %v1075_v62 = vsel %vm1040_vm0, %v1072_v33, %v1074_v57 }
  0x43   : > { %1900 = vmatpush1.bf16.msra.mxu0 %v5044_v22 }
  0x44   : > { %1901 = vmatprep.subr.bf16.mxu0 %v5128_v18 }
  0x45   : > { %1163 = vrot.lane.b32.xlu0 %v1070_v10, %s5126_s25  ;;  %962 = vrot.lane.b32.xlu1 %v579_v14, %s5127_s26 }
  0x47   : > { %1902 = vmatpush1.bf16.msra.mxu0 %v5045_v23 }
  0x48   : > { %1903 = vmatprep.subr.bf16.mxu0 %v5128_v18 }
  0x49   : > { %984 = vrot.lane.b32.xlu0 %v691_v16, %s5127_s26  ;;  %v712_v16 = vshrl.u32 %v5395_v52, 16 }
  0x4b   : > { %1904 = vmatpush1.bf16.msra.mxu0 %v5046_v24  ;;  %v714_v23 = vor.u32 %v712_v16, %v710_v6  ;;  %v718_v24 = vrot.slane %v716_v17, 1  ;;  %v5037_v17 = vld [vmem:[%s5190_s24 + $0xc4] ss:$0 sps:$4 sm:$0x11]  }
  0x4c   : > { %1905 = vmatprep.subr.bf16.mxu0 %v5128_v18 }
  0x4f   : > { %1906 = vmatpush1.bf16.msra.mxu0 %v5047_v25  ;;  %v5439_v25 = vld [vmem:[%s5190_s24 + $0xa8] sm:$0xff]  }
  0x50   : > { %1907 = vmatprep.subr.bf16.mxu0 %v5128_v18 }
  0x53   : > { %1908 = vmatpush1.bf16.msra.mxu0 %v5049_v26  ;;  %v723_v26 = vshll.u32 %v5431_v19, 16 }
  0x55   : > { %v725_v33 = vrot.slane %v723_v26, 1  ;;  %v5509_v26 = vld [vmem:[%s5190_s24 + $0xc8] sm:$0xff]  }
  0x8b   : > { %v1146_v27 = vpop.permute.xlu1 %1145 }
  0x8f   : > { %v965_v29 = vpop.permute.xlu0 %964  ;;  %v1150_v30 = vpop.permute.xlu1 %1149 }
  0x90   : > { %v1227_v34 = vsel %vm1221_vm2, %v5193_v0, %v965_v29  ;;  %v692_v0 = vshrl.u32 %v5311_v55, 16  ;;  %v1079_v29 = vrot.slane %v5031_v9, 1 }
  0x91   : > { %v5372_v35 = vsel %vm1302_vm3, %v1227_v34, %v1146_v27  ;;  %v728_v34 = vshll.u32 %v5439_v25, 16 }
  0x92   : > { %1419 = vrot.lane.b32.xlu0 %v5372_v35, %s5129_s28  ;;  %v694_v47 = vor.u32 %v692_v0, %v690_v13  ;;  %v1077_v13 = vrot.slane %v5395_v52, 1  ;;  %v5034_v0 = vld [vmem:[%s5190_s24 + $0xb0] ss:$0 sps:$4 sm:$0x11]  }
  0x93   : > { %v969_v37 = vpop.permute.xlu0 %968  ;;  %v971_v41 = vpop.permute.xlu1 %970 }
  0x94   : > { %v1231_v40 = vsel %vm1221_vm2, %v5204_v7, %v969_v37  ;;  %v1233_v46 = vsel %vm1221_vm2, %v5207_v8, %v971_v41  ;;  %v1078_v20 = vsel %vm1040_vm0, %v1076_v12, %v1077_v13  ;;  %v1080_v36 = vsel %vm1040_vm0, %v1077_v13, %v1079_v29 }
  0x95   : > { %v5381_v42 = vsel %vm1302_vm3, %v1231_v40, %v1150_v30  ;;  %v719_v30 = vsel %vm559_vm1, %v714_v23, %v718_v24  ;;  %v726_v40 = vor.u32 %v725_v33, %v721_v32  ;;  %v730_v41 = vrot.slane %v728_v34, 1  ;;  %v5517_v34 = vld [vmem:[%s5190_s24 + $0xd0] sm:$0xff]  }
  0x96   : > { %1165 = vrot.lane.b32.xlu0 %v1073_v38, %s5126_s25  ;;  %1493 = vrot.lane.b32.xlu1 %v5381_v42, %s5130_s29  ;;  %v756_v24 = vshll.u32 %v5037_v17, 16 }
  0x97   : > { %v967_v45 = vpop.permute.xlu0 %966  ;;  %v1152_v7 = vpop.permute.xlu1 %1151 }
  0x98   : > { %v1229_v54 = vsel %vm1221_vm2, %v5196_v1, %v967_v45  ;;  %v5406_v8 = vsel %vm1302_vm3, %v1233_v46, %v1152_v7  ;;  %v705_v1 = vrot.slane %v703_v53, 1  ;;  %v1081_v45 = vrot.slane %v5431_v19, 1  ;;  %v5470_v53 = vld [vmem:[%s5190_s24 + $0xb4] sm:$0xff]  }
  0x99   : > { %v1082_v46 = vrot.slane %v5439_v25, 1  ;;  %v731_v7 = vsel %vm559_vm1, %v726_v40, %v730_v41  ;;  %v743_v61 = vshll.u32 %v5470_v53, 16  ;;  %v758_v33 = vrot.slane %v756_v24, 1 }
  0x9a   : > { %1143 = vrot.lane.b32.xlu1 %v5296_v39, %s5126_s25  ;;  %v699_v39 = vsel %vm559_vm1, %v694_v47, %v698_v51  ;;  %v706_v5 = vor.u32 %v705_v1, %v701_v59  ;;  %v732_v47 = vshrl.u32 %v5439_v25, 16  ;;  %v736_v51 = vshll.u32 %v5034_v0, 16  ;;  %v5478_v1 = vld [vmem:[%s5190_s24 + $0xbc] sm:$0xff]  }
  0x9b   : > { %v1148_v56 = vpop.permute.xlu0 %1147  ;;  %v1154_v4 = vpop.permute.xlu1 %1153  ;;  %v752_v23 = vshrl.u32 %v5478_v1, 16  ;;  %v761_v40 = vshrl.u32 %v5509_v26, 16 }
  0x9c   : > { %v5401_v58 = vsel %vm1302_vm3, %v1229_v54, %v1148_v56  ;;  %v711_v14 = vsel %vm559_vm1, %v706_v5, %v710_v6  ;;  %v1083_v54 = vsel %vm1040_vm0, %v1081_v45, %v1082_v46  ;;  %v738_v59 = vrot.slane %v736_v51, 1 }
  0x9d   : > { %1421 = vrot.lane.b32.xlu0 %v5401_v58, %s5129_s28  ;;  %v745_v5 = vrot.slane %v743_v61, 1  ;;  %v748_v6 = vshll.u32 %v5478_v1, 16  ;;  %v772_v51 = vshrl.u32 %v5517_v34, 16  ;;  %v5547_v61 = vld [vmem:[%s5190_s24 + $0xdc] sm:$0xff]  }
  0x9e   : > { %1495 = vrot.lane.b32.xlu1 %v5406_v8, %s5130_s29 }
  0x9f   : > { %v973_v63 = vpop.permute.xlu0 %972  ;;  %v1156_v22 = vpop.permute.xlu1 %1155  ;;  %v750_v16 = vrot.slane %v748_v6, 1  ;;  %v781_v6 = vshrl.u32 %v5547_v61, 16 }
  0xa0   : > { %v1235_v2 = vsel %vm1221_vm2, %v5223_v28, %v973_v63  ;;  %v1084_v63 = vrot.slane %v5034_v0, 1  ;;  %v768_v0 = vshll.u32 %v5517_v34, 16 }
  0xa1   : > { %986 = vrot.lane.b32.xlu0 %v699_v39, %s5127_s26  ;;  %v5420_v10 = vsel %vm1302_vm3, %v1235_v2, %v1154_v4  ;;  %v734_v39 = vor.u32 %v732_v47, %v730_v41  ;;  %v741_v4 = vshrl.u32 %v5470_v53, 16  ;;  %v754_v32 = vor.u32 %v752_v23, %v750_v16 }
  0xa2   : > { %1167 = vrot.lane.b32.xlu1 %v1075_v62, %s5126_s25  ;;  %v1085_v9 = vsel %vm1040_vm0, %v1082_v46, %v1084_v63 }
  0xa3   : > { %v975_v28 = vpop.permute.xlu0 %974  ;;  %v1158_v38 = vpop.permute.xlu1 %1157 }
  0xa4   : > { %v1237_v21 = vsel %vm1221_vm2, %v5228_v31, %v975_v28 }
  0xa5   : > { %1423 = vrot.lane.b32.xlu0 %v5381_v42, %s5129_s28  ;;  %v5443_v27 = vsel %vm1302_vm3, %v1237_v21, %v1156_v22  ;;  %v1086_v21 = vrot.slane %v5470_v53, 1  ;;  %v1087_v22 = vrot.slane %v5478_v1, 1 }
  0xa6   : > { %1497 = vrot.lane.b32.xlu1 %v5420_v10, %s5130_s29 }
  0xa7   : > { %v977_v31 = vpop.permute.xlu0 %976  ;;  %v1160_v57 = vpop.permute.xlu1 %1159  ;;  %v1088_v29 = vsel %vm1040_vm0, %v1086_v21, %v1087_v22 }
  0xa8   : > { %v1239_v37 = vsel %vm1221_vm2, %v5243_v48, %v977_v31 }
  0xa9   : > { %988 = vrot.lane.b32.xlu0 %v711_v14, %s5127_s26  ;;  %v5459_v43 = vsel %vm1302_vm3, %v1239_v37, %v1158_v38  ;;  %v746_v14 = vor.u32 %v745_v5, %v741_v4  ;;  %v1089_v38 = vrot.slane %v5037_v17, 1  ;;  %v783_v4 = vshll.u32 %v5547_v61, 16 }
  0xaa   : > { %1169 = vrot.lane.b32.xlu1 %v1078_v20, %s5126_s25  ;;  %v1092_v17 = vrot.slane %v5517_v34, 1 }
  0xab   : > { %v979_v48 = vpop.permute.xlu0 %978  ;;  %v1162_v13 = vpop.permute.xlu1 %1161  ;;  %v1090_v45 = vsel %vm1040_vm0, %v1087_v22, %v1089_v38 }
  0xac   : > { %v1241_v56 = vsel %vm1221_vm2, %v5247_v50, %v979_v48  ;;  %v739_v50 = vsel %vm559_vm1, %v734_v39, %v738_v59  ;;  %v770_v48 = vrot.slane %v768_v0, 1  ;;  %v5585_v0 = vld [vmem:[%s5190_s24 + $0xf0] sm:$0xff]  }
  0xad   : > { %1425 = vrot.lane.b32.xlu0 %v5406_v8, %s5129_s28  ;;  %v5482_v62 = vsel %vm1302_vm3, %v1241_v56, %v1160_v57 }
  0xae   : > { %1499 = vrot.lane.b32.xlu1 %v5443_v27, %s5130_s29  ;;  %v774_v56 = vor.u32 %v772_v51, %v770_v48 }
  0xaf   : > { %v981_v2 = vpop.permute.xlu0 %980  ;;  %v961_v59 = vpop.permute.xlu1 %960 }
  0xb0   : > { %v1243_v12 = vsel %vm1221_vm2, %v5257_v60, %v981_v2  ;;  %v751_v60 = vsel %vm559_vm1, %v746_v14, %v750_v16  ;;  %v1091_v14 = vrot.slane %v5509_v26, 1 }
  0xb1   : > { %990 = vrot.lane.b32.xlu0 %v719_v30, %s5127_s26  ;;  %v5498_v20 = vsel %vm1302_vm3, %v1243_v12, %v1162_v13  ;;  %v1223_v13 = vsel %vm1221_vm2, %v5264_v3, %v961_v59 }
  0xb2   : > { %1171 = vrot.lane.b32.xlu1 %v1080_v36, %s5126_s25  ;;  %v763_v36 = vshll.u32 %v5509_v26, 16 }
  0xb3   : > { %v983_v28 = vpop.permute.xlu0 %982  ;;  %v1142_v63 = vpop.permute.xlu1 %1141 }
  0xb4   : > { %v1245_v31 = vsel %vm1221_vm2, %v5270_v11, %v983_v28  ;;  %v759_v11 = vsel %vm559_vm1, %v754_v32, %v758_v33  ;;  %v765_v41 = vrot.slane %v763_v36, 1  ;;  %v1304_v16 = vsel %vm1302_vm3, %v1223_v13, %v1142_v63 }
  0xb5   : > { %1427 = vrot.lane.b32.xlu0 %v5420_v10, %s5129_s28 }
  0xb6   : > { %1501 = vrot.lane.b32.xlu1 %v5459_v43, %s5130_s29  ;;  %v766_v46 = vor.u32 %v765_v41, %v761_v40 }
  0xb7   : > { %v1164_v30 = vpop.permute.xlu0 %1163  ;;  %v963_v5 = vpop.permute.xlu1 %962 }
  0xb8   : > { %v5521_v37 = vsel %vm1302_vm3, %v1245_v31, %v1164_v30  ;;  %v771_v47 = vsel %vm559_vm1, %v766_v46, %v770_v48  ;;  %v5573_v30 = vld [vmem:[%s5190_s24 + $0xec] ss:$0 sps:$4 sm:$0x11]   ;;  %v1225_v36 = vsel %vm1221_vm2, %v5277_v15, %v963_v5  ;;  %v801_v5 = vshrl.u32 %v5585_v0, 16 }
  0xb9   : > { %992 = vrot.lane.b32.xlu0 %v731_v7, %s5127_s26  ;;  %v5534_v7 = vld [vmem:[%s5190_s24 + $0xd8] ss:$0 sps:$4 sm:$0x11]  }
  0xba   : > { %1173 = vrot.lane.b32.xlu1 %v1083_v54, %s5126_s25  ;;  %v776_v54 = vshll.u32 %v5534_v7, 16 }
  0xbb   : > { %v985_v2 = vpop.permute.xlu0 %984 }
  0xbc   : > { %v778_v57 = vrot.slane %v776_v54, 1  ;;  %v1094_v54 = vrot.slane %v5534_v7, 1 }
  0xbd   : > { %1429 = vrot.lane.b32.xlu0 %v5443_v27, %s5129_s28 }
  0xbe   : > { %1503 = vrot.lane.b32.xlu1 %v5482_v62, %s5130_s29  ;;  %v779_v39 = vsel %vm559_vm1, %v774_v56, %v778_v57  ;;  %v5592_v56 = vld [vmem:[%s5190_s24 + $0xf8] sm:$0xff]   ;;  %v803_v57 = vshll.u32 %v5585_v0, 16 }
  0xc1   : > { %994 = vrot.lane.b32.xlu0 %v739_v50, %s5127_s26  ;;  %v5550_v50 = vld [vmem:[%s5190_s24 + $0xe4] sm:$0xff]  }
  0xc2   : > { %1175 = vrot.lane.b32.xlu1 %v1085_v9, %s5126_s25  ;;  %v785_v9 = vrot.slane %v783_v4, 1  ;;  %v788_v12 = vshll.u32 %v5550_v50, 16  ;;  %v792_v38 = vshrl.u32 %v5550_v50, 16  ;;  %v1095_v4 = vsel %vm1040_vm0, %v1092_v17, %v1094_v54 }
  0xc4   : > { %v786_v21 = vor.u32 %v785_v9, %v781_v6  ;;  %v790_v22 = vrot.slane %v788_v12, 1  ;;  %v805_v6 = vrot.slane %v803_v57, 1 }
  0xc5   : > { %1431 = vrot.lane.b32.xlu0 %v5459_v43, %s5129_s28 }
  0xc6   : > { %1505 = vrot.lane.b32.xlu1 %v5498_v20, %s5130_s29  ;;  %v791_v32 = vsel %vm559_vm1, %v786_v21, %v790_v22  ;;  %v794_v48 = vor.u32 %v792_v38, %v790_v22  ;;  %v1096_v21 = vrot.slane %v5547_v61, 1 }
  0xc9   : > { %996 = vrot.lane.b32.xlu0 %v751_v60, %s5127_s26  ;;  %v1247_v60 = vsel %vm1221_vm2, %v5304_v49, %v985_v2  ;;  %v1093_v49 = vsel %vm1040_vm0, %v1091_v14, %v1092_v17 }
  0xca   : > { %1177 = vrot.lane.b32.xlu1 %v1088_v29, %s5126_s25 }
  0xcd   : > { %1433 = vrot.lane.b32.xlu0 %v5482_v62, %s5129_s28 }
  0xce   : > { %1507 = vrot.lane.b32.xlu1 %v5521_v37, %s5130_s29 }
  0xd1   : > { %998 = vrot.lane.b32.xlu0 %v759_v11, %s5127_s26  ;;  %v796_v11 = vshll.u32 %v5573_v30, 16 }
  0xd2   : > { %1179 = vrot.lane.b32.xlu1 %v1090_v45, %s5126_s25 }
  0xd5   : > { %1435 = vrot.lane.b32.xlu0 %v5498_v20, %s5129_s28 }
  0xd9   : > { %1000 = vrot.lane.b32.xlu0 %v771_v47, %s5127_s26  ;;  %v798_v47 = vrot.slane %v796_v11, 1 }
  0xdb   : > { %v799_v7 = vsel %vm559_vm1, %v794_v48, %v798_v47 }
  0xdd   : > { %1437 = vrot.lane.b32.xlu0 %v5521_v37, %s5129_s28 }
  0xe1   : > { %1002 = vrot.lane.b32.xlu0 %v779_v39, %s5127_s26 }
 0x104   : > { %v1420_v28 = vpop.permute.xlu0 %1419 }
 0x105   : > { %v1567_v23 = vsel %vm1565_vm4, %v1304_v16, %v1420_v28  ;;  %v5615_v28 = vld [vmem:[%s5190_s24 + $0x100] ss:$0 sps:$4 sm:$0x11]   ;;  %v806_v16 = vor.u32 %v805_v6, %v801_v5 }
 0x108   : > { %v1166_v24 = vpop.permute.xlu0 %1165  ;;  %v1494_v29 = vpop.permute.xlu1 %1493 }
 0x109   : > { %4754 = vmatprep.mubr.msk.bf16.mxu0 %vm1221_vm2, %v1494_v29  ;;  %v5565_v3 = vsel %vm1302_vm3, %v1247_v60, %v1166_v24  ;;  %v1640_v31 = vsel %vm1638_vm5, %v1567_v23, %v1494_v29  ;;  %v812_v24 = vshrl.u32 %v5592_v56, 16  ;;  %v816_v29 = vshll.u32 %v5615_v28, 16 }
 0x10a   : > { %1439 = vrot.lane.b32.xlu0 %v5565_v3, %s5129_s28  ;;  %1509 = vrot.lane.b32.xlu1 %v5565_v3, %s5130_s29 }
 0x10b   : > { %1924 = vmatmul.mubr.bf16.vlgmr.msra.gmra.mrb[0].mxu0 %v1640_v31 }
 0x10c   : > { %v1144_v33 = vpop.permute.xlu1 %1143 }
 0x10d   : > { %v1306_v40 = vsel %vm1302_vm3, %v1225_v36, %v1144_v33 }
 0x10e   : > { %1181 = vrot.lane.b32.xlu1 %v1093_v49, %s5126_s25  ;;  %1004 = vrot.lane.b32.xlu0 %v791_v32, %s5127_s26  ;;  %v5633_v32 = vld [vmem:[%s5190_s24 + $0x104] sm:$0xff]  }
 0x10f   : > { %v1422_v41 = vpop.permute.xlu0 %1421  ;;  %v821_v57 = vshrl.u32 %v5633_v32, 16 }
 0x110   : > { %v1569_v45 = vsel %vm1565_vm4, %v1306_v40, %v1422_v41  ;;  %v1496_v46 = vpop.permute.xlu1 %1495  ;;  %v818_v40 = vrot.slane %v816_v29, 1 }
 0x111   : > { %4755 = vmatprep.mubr.msk.bf16.mxu0 %vm1221_vm2, %v1496_v46  ;;  %v1643_v15 = vsel %vm1638_vm5, %v1569_v45, %v1496_v46  ;;  %v1099_v45 = vrot.slane %v5573_v30, 1  ;;  %v5643_v46 = vld [vmem:[%s5190_s24 + $0x10c] sm:$0xff]  }
 0x113   : > { %1932 = vmatmul.mubr.bf16.gmra.mrb[4].mxu0 %v1643_v15  ;;  %v987_v51 = vpop.permute.xlu0 %986  ;;  %v823_v15 = vshll.u32 %v5633_v32, 16 }
 0x114   : > { %v1249_v39 = vsel %vm1221_vm2, %v5311_v55, %v987_v51  ;;  %v1168_v59 = vpop.permute.xlu1 %1167  ;;  %v808_v55 = vshll.u32 %v5592_v56, 16 }
 0x115   : > { %v5598_v63 = vsel %vm1302_vm3, %v1249_v39, %v1168_v59  ;;  %v825_v39 = vrot.slane %v823_v15, 1 }
 0x116   : > { %1441 = vrot.lane.b32.xlu0 %v5598_v63, %s5129_s28  ;;  %1511 = vrot.lane.b32.xlu1 %v5598_v63, %s5130_s29  ;;  %v810_v17 = vrot.slane %v808_v55, 1 }
 0x117   : > { %v1424_v2 = vpop.permute.xlu0 %1423  ;;  %v826_v6 = vor.u32 %v825_v39, %v821_v57 }
 0x118   : > { %v1571_v9 = vsel %vm1565_vm4, %v5372_v35, %v1424_v2  ;;  %v1498_v12 = vpop.permute.xlu1 %1497  ;;  %v1097_v35 = vrot.slane %v5550_v50, 1  ;;  %v811_v49 = vsel %vm559_vm1, %v806_v16, %v810_v17  ;;  %v814_v11 = vor.u32 %v812_v24, %v810_v17 }
 0x119   : > { %4756 = vmatprep.mubr.msk.bf16.mxu0 %vm1221_vm2, %v1498_v12  ;;  %v1646_v13 = vsel %vm1638_vm5, %v1571_v9, %v1498_v12  ;;  %v1101_v9 = vrot.slane %v5585_v0, 1  ;;  %v832_v16 = vshrl.u32 %v5643_v46, 16 }
 0x11a   : > { %1006 = vrot.lane.b32.xlu0 %v799_v7, %s5127_s26  ;;  %1183 = vrot.lane.b32.xlu1 %v1095_v4, %s5126_s25  ;;  %v819_v30 = vsel %vm559_vm1, %v814_v11, %v818_v40  ;;  %v1100_v54 = vsel %vm1040_vm0, %v1097_v35, %v1099_v45  ;;  %v5666_v4 = vld [vmem:[%s5190_s24 + $0x114] ss:$0 sps:$4 sm:$0x11]  }
 0x11b   : > { %1940 = vmatmul.mubr.bf16.gmra.mrb[8].mxu0 %v1646_v13  ;;  %v989_v14 = vpop.permute.xlu0 %988  ;;  %v836_v17 = vshll.u32 %v5666_v4, 16 }
 0x11c   : > { %v1251_v22 = vsel %vm1221_vm2, %v5388_v44, %v989_v14  ;;  %v1170_v60 = vpop.permute.xlu1 %1169  ;;  %v1098_v44 = vsel %vm1040_vm0, %v1096_v21, %v1097_v35 }
 0x11d   : > { %v5622_v23 = vsel %vm1302_vm3, %v1251_v22, %v1170_v60  ;;  %v5684_v22 = vld [vmem:[%s5190_s24 + $0x118] sm:$0xff]  }
 0x11e   : > { %1443 = vrot.lane.b32.xlu0 %v5622_v23, %s5129_s28  ;;  %1513 = vrot.lane.b32.xlu1 %v5622_v23, %s5130_s29  ;;  %v841_v15 = vshrl.u32 %v5684_v22, 16 }
 0x11f   : > { %v1426_v31 = vpop.permute.xlu0 %1425 }
 0x120   : > { %v1573_v33 = vsel %vm1565_vm4, %v5401_v58, %v1426_v31  ;;  %v1500_v36 = vpop.permute.xlu1 %1499 }
 0x121   : > { %4757 = vmatprep.mubr.msk.bf16.mxu0 %vm1221_vm2, %v1500_v36  ;;  %v1649_v38 = vsel %vm1638_vm5, %v1573_v33, %v1500_v36  ;;  %v1104_v33 = vrot.slane %v5615_v28, 1  ;;  %v5694_v36 = vld [vmem:[%s5190_s24 + $0x120] sm:$0xff]  }
 0x122   : > { %1008 = vrot.lane.b32.xlu0 %v811_v49, %s5127_s26  ;;  %1185 = vrot.lane.b32.xlu1 %v1098_v44, %s5126_s25  ;;  %v838_v49 = vrot.slane %v836_v17, 1 }
 0x123   : > { %1948 = vmatmul.mubr.bf16.gmra.mrb[12].mxu0 %v1649_v38  ;;  %v991_v41 = vpop.permute.xlu0 %990  ;;  %v843_v38 = vshll.u32 %v5684_v22, 16 }
 0x124   : > { %v1253_v58 = vsel %vm1221_vm2, %v5395_v52, %v991_v41  ;;  %v1172_v48 = vpop.permute.xlu1 %1171  ;;  %v828_v52 = vshll.u32 %v5643_v46, 16 }
 0x125   : > { %v5649_v47 = vsel %vm1302_vm3, %v1253_v58, %v1172_v48  ;;  %v845_v58 = vrot.slane %v843_v38, 1 }
 0x126   : > { %1445 = vrot.lane.b32.xlu0 %v5649_v47, %s5129_s28  ;;  %1515 = vrot.lane.b32.xlu1 %v5649_v47, %s5130_s29  ;;  %v830_v55 = vrot.slane %v828_v52, 1  ;;  %v1106_v52 = vrot.slane %v5633_v32, 1 }
 0x127   : > { %v1428_v51 = vpop.permute.xlu0 %1427  ;;  %v846_v57 = vor.u32 %v845_v58, %v841_v15 }
 0x128   : > { %v1575_v59 = vsel %vm1565_vm4, %v5381_v42, %v1428_v51  ;;  %v1502_v7 = vpop.permute.xlu1 %1501  ;;  %v1102_v42 = vrot.slane %v5592_v56, 1  ;;  %v831_v35 = vsel %vm559_vm1, %v826_v6, %v830_v55  ;;  %v834_v31 = vor.u32 %v832_v16, %v830_v55 }
 0x129   : > { %4758 = vmatprep.mubr.msk.bf16.mxu0 %vm1221_vm2, %v1502_v7  ;;  %v1652_v2 = vsel %vm1638_vm5, %v1575_v59, %v1502_v7  ;;  %v1107_v59 = vrot.slane %v5643_v46, 1  ;;  %v5719_v7 = vld [vmem:[%s5190_s24 + $0x128] ss:$0 sps:$4 sm:$0x11]  }
 0x12a   : > { %1010 = vrot.lane.b32.xlu0 %v819_v30, %s5127_s26  ;;  %1187 = vrot.lane.b32.xlu1 %v1100_v54, %s5126_s25  ;;  %v839_v41 = vsel %vm559_vm1, %v834_v31, %v838_v49  ;;  %v1105_v45 = vsel %vm1040_vm0, %v1102_v42, %v1104_v33  ;;  %v5755_v49 = vld [vmem:[%s5190_s24 + $0x12c] sm:$0xff]   ;;  %v5758_v33 = vld [vmem:[%s5190_s24 + $0x134] sm:$0xff]  }
 0x12b   : > { %1956 = vmatmul.mubr.bf16.gmra.mrb[16].mxu0 %v1652_v2  ;;  %v993_v5 = vpop.permute.xlu0 %992  ;;  %v863_v38 = vshll.u32 %v5755_v49, 16 }
 0x12c   : > { %v1255_v12 = vsel %vm1221_vm2, %v5431_v19, %v993_v5  ;;  %v1174_v13 = vpop.permute.xlu1 %1173  ;;  %v1103_v19 = vsel %vm1040_vm0, %v1101_v9, %v1102_v42  ;;  %v1108_v9 = vsel %vm1040_vm0, %v1106_v52, %v1107_v59  ;;  %v852_v42 = vshrl.u32 %v5694_v36, 16  ;;  %v5779_v52 = vld [vmem:[%s5190_s24 + $0x13c] ss:$0 sps:$4 sm:$0x11]  }
 0x12d   : > { %v5673_v14 = vsel %vm1302_vm3, %v1255_v12, %v1174_v13  ;;  %v856_v12 = vshll.u32 %v5719_v7, 16 }
 0x12e   : > { %1447 = vrot.lane.b32.xlu0 %v5673_v14, %s5129_s28  ;;  %1517 = vrot.lane.b32.xlu1 %v5673_v14, %s5130_s29 }
 0x12f   : > { %v1430_v21 = vpop.permute.xlu0 %1429 }
 0x130   : > { %v1577_v60 = vsel %vm1565_vm4, %v5406_v8, %v1430_v21  ;;  %v1504_v24 = vpop.permute.xlu1 %1503  ;;  %v1109_v21 = vrot.slane %v5666_v4, 1 }
 0x131   : > { %4759 = vmatprep.mubr.msk.bf16.mxu0 %vm1221_vm2, %v1504_v24  ;;  %v1655_v29 = vsel %vm1638_vm5, %v1577_v60, %v1504_v24 }
 0x132   : > { %1012 = vrot.lane.b32.xlu0 %v831_v35, %s5127_s26  ;;  %1189 = vrot.lane.b32.xlu1 %v1103_v19, %s5126_s25  ;;  %v858_v19 = vrot.slane %v856_v12, 1 }
 0x133   : > { %1964 = vmatmul.mubr.bf16.gmra.mrb[20].mxu0 %v1655_v29  ;;  %v995_v44 = vpop.permute.xlu0 %994  ;;  %v1110_v29 = vsel %vm1040_vm0, %v1107_v59, %v1109_v21  ;;  %v1114_v21 = vrot.slane %v5719_v7, 1 }
 0x134   : > { %v1257_v8 = vsel %vm1221_vm2, %v5439_v25, %v995_v44  ;;  %v1176_v11 = vpop.permute.xlu1 %1175  ;;  %v848_v25 = vshll.u32 %v5694_v36, 16 }
 0x135   : > { %v5700_v40 = vsel %vm1302_vm3, %v1257_v8, %v1176_v11  ;;  %v861_v11 = vshrl.u32 %v5755_v49, 16 }
 0x136   : > { %1449 = vrot.lane.b32.xlu0 %v5700_v40, %s5129_s28  ;;  %1519 = vrot.lane.b32.xlu1 %v5700_v40, %s5130_s29  ;;  %v850_v39 = vrot.slane %v848_v25, 1 }
 0x137   : > { %v1432_v28 = vpop.permute.xlu0 %1431 }
 0x138   : > { %v1579_v48 = vsel %vm1565_vm4, %v5420_v10, %v1432_v28  ;;  %v1506_v30 = vpop.permute.xlu1 %1505  ;;  %v851_v55 = vsel %vm559_vm1, %v846_v57, %v850_v39  ;;  %v854_v35 = vor.u32 %v852_v42, %v850_v39  ;;  %v868_v28 = vshll.u32 %v5758_v33, 16 }
 0x139   : > { %4760 = vmatprep.mubr.msk.bf16.mxu0 %vm1221_vm2, %v1506_v30  ;;  %v1658_v51 = vsel %vm1638_vm5, %v1579_v48, %v1506_v30  ;;  %v1111_v30 = vrot.slane %v5684_v22, 1 }
 0x13a   : > { %1014 = vrot.lane.b32.xlu0 %v839_v41, %s5127_s26  ;;  %1191 = vrot.lane.b32.xlu1 %v1105_v45, %s5126_s25  ;;  %v859_v4 = vsel %vm559_vm1, %v854_v35, %v858_v19  ;;  %v865_v41 = vrot.slane %v863_v38, 1  ;;  %v870_v57 = vrot.slane %v868_v28, 1  ;;  %v5798_v35 = vld [vmem:[%s5190_s24 + $0x148] sm:$0xff]  }
 0x13b   : > { %1972 = vmatmul.mubr.bf16.gmra.mrb[24].mxu0 %v1658_v51  ;;  %v997_v54 = vpop.permute.xlu0 %996  ;;  %v1112_v51 = vrot.slane %v5694_v36, 1 }
 0x13c   : > { %v1259_v10 = vsel %vm1221_vm2, %v5470_v53, %v997_v54  ;;  %v1178_v2 = vpop.permute.xlu1 %1177  ;;  %v866_v54 = vor.u32 %v865_v41, %v861_v11  ;;  %v5821_v41 = vld [vmem:[%s5190_s24 + $0x150] ss:$0 sps:$4 sm:$0x11]  }
 0x13d   : > { %v5724_v5 = vsel %vm1302_vm3, %v1259_v10, %v1178_v2  ;;  %v1113_v59 = vsel %vm1040_vm0, %v1111_v30, %v1112_v51  ;;  %v872_v2 = vshrl.u32 %v5758_v33, 16  ;;  %v1115_v7 = vsel %vm1040_vm0, %v1112_v51, %v1114_v21 }
 0x13e   : > { %1451 = vrot.lane.b32.xlu0 %v5724_v5, %s5129_s28  ;;  %1521 = vrot.lane.b32.xlu1 %v5724_v5, %s5130_s29  ;;  %v871_v10 = vsel %vm559_vm1, %v866_v54, %v870_v57  ;;  %v896_v30 = vshll.u32 %v5821_v41, 16 }
 0x13f   : > { %v1434_v6 = vpop.permute.xlu0 %1433 }
 0x140   : > { %v1581_v53 = vsel %vm1565_vm4, %v5443_v27, %v1434_v6  ;;  %v1508_v13 = vpop.permute.xlu1 %1507  ;;  %v876_v6 = vshll.u32 %v5779_v52, 16 }
 0x141   : > { %4761 = vmatprep.mubr.msk.bf16.mxu0 %vm1221_vm2, %v1508_v13  ;;  %v1661_v16 = vsel %vm1638_vm5, %v1581_v53, %v1508_v13 }
 0x142   : > { %1016 = vrot.lane.b32.xlu0 %v851_v55, %s5127_s26  ;;  %1193 = vrot.lane.b32.xlu1 %v1108_v9, %s5126_s25  ;;  %v5788_v55 = vld [vmem:[%s5190_s24 + $0x140] sm:$0xff]  }
 0x143   : > { %1980 = vmatmul.mubr.bf16.gmra.mrb[28].mxu0 %v1661_v16  ;;  %v999_v17 = vpop.permute.xlu0 %998  ;;  %v874_v16 = vor.u32 %v872_v2, %v870_v57  ;;  %v883_v19 = vshll.u32 %v5788_v55, 16  ;;  %v5837_v57 = vld [vmem:[%s5190_s24 + $0x154] sm:$0xff]  }
 0x144   : > { %v1261_v27 = vsel %vm1221_vm2, %v5478_v1, %v999_v17  ;;  %v1180_v60 = vpop.permute.xlu1 %1179  ;;  %v878_v17 = vrot.slane %v876_v6, 1  ;;  %v898_v6 = vrot.slane %v896_v30, 1 }
 0x145   : > { %v5744_v24 = vsel %vm1302_vm3, %v1261_v27, %v1180_v60 }
 0x146   : > { %1453 = vrot.lane.b32.xlu0 %v5744_v24, %s5129_s28  ;;  %1523 = vrot.lane.b32.xlu1 %v5744_v24, %s5130_s29 }
 0x147   : > { %v1436_v31 = vpop.permute.xlu0 %1435 }
 0x148   : > { %v1583_v45 = vsel %vm1565_vm4, %v5459_v43, %v1436_v31  ;;  %v888_v31 = vshll.u32 %v5798_v35, 16 }
 0x14a   : > { %1195 = vrot.lane.b32.xlu1 %v1110_v29, %s5126_s25  ;;  %1018 = vrot.lane.b32.xlu0 %v859_v4, %s5127_s26  ;;  %v881_v29 = vshrl.u32 %v5788_v55, 16  ;;  %v885_v4 = vrot.slane %v883_v19, 1 }
 0x14b   : > { %v1001_v1 = vpop.permute.xlu0 %1000 }
 0x14c   : > { %v1263_v25 = vsel %vm1221_vm2, %v5509_v26, %v1001_v1  ;;  %v886_v28 = vor.u32 %v885_v4, %v881_v29  ;;  %v5872_v29 = vld [vmem:[%s5190_s24 + $0x164] ss:$0 sps:$4 sm:$0x11]  }
 0x14f   : > { %v1438_v44 = vpop.permute.xlu0 %1437 }
 0x150   : > { %v1585_v9 = vsel %vm1565_vm4, %v5482_v62, %v1438_v44 }
 0x153   : > { %v1003_v8 = vpop.permute.xlu0 %1002 }
 0x154   : > { %v1265_v13 = vsel %vm1221_vm2, %v5517_v34, %v1003_v8  ;;  %v879_v34 = vsel %vm559_vm1, %v874_v16, %v878_v17 }
 0x17c   : > { %v1510_v15 = vpop.permute.xlu1 %1509  ;;  %v1440_v48 = vpop.permute.xlu0 %1439 }
 0x17d   : > { %4762 = vmatprep.mubr.msk.bf16.mxu0 %vm1221_vm2, %v1510_v15  ;;  %v1664_v58 = vsel %vm1638_vm5, %v1583_v45, %v1510_v15  ;;  %v1587_v1 = vsel %vm1565_vm4, %v5498_v20, %v1440_v48  ;;  %v890_v45 = vrot.slane %v888_v31, 1  ;;  %v1116_v20 = vrot.slane %v5755_v49, 1 }
 0x17e   : > { %1988 = vmatmul.mubr.bf16.gmra.mrb[32].mxu0 %v1664_v58  ;;  %v1117_v15 = vrot.slane %v5758_v33, 1 }
 0x17f   : > { %v891_v51 = vsel %vm559_vm1, %v886_v28, %v890_v45 }
 0x180   : > { %v1182_v39 = vpop.permute.xlu1 %1181  ;;  %v1005_v26 = vpop.permute.xlu0 %1004  ;;  %v1118_v54 = vsel %vm1040_vm0, %v1116_v20, %v1117_v15  ;;  %v5888_v20 = vld [vmem:[%s5190_s24 + $0x168] sm:$0xff]  }
 0x181   : > { %v5772_v43 = vsel %vm1302_vm3, %v1263_v25, %v1182_v39  ;;  %v1267_v11 = vsel %vm1221_vm2, %v5547_v61, %v1005_v26  ;;  %v892_v61 = vshrl.u32 %v5798_v35, 16 }
 0x182   : > { %1455 = vrot.lane.b32.xlu0 %v5772_v43, %s5129_s28  ;;  %1525 = vrot.lane.b32.xlu1 %v5772_v43, %s5130_s29 }
 0x183   : > { %v894_v2 = vor.u32 %v892_v61, %v890_v45 }
 0x186   : > { %1197 = vrot.lane.b32.xlu1 %v1113_v59, %s5126_s25  ;;  %1020 = vrot.lane.b32.xlu0 %v871_v10, %s5127_s26 }
 0x188   : > { %v1442_v42 = vpop.permute.xlu0 %1441  ;;  %v1512_v12 = vpop.permute.xlu1 %1511 }
 0x189   : > { %4763 = vmatprep.mubr.msk.bf16.mxu0 %vm1221_vm2, %v1512_v12  ;;  %v1667_v53 = vsel %vm1638_vm5, %v1585_v9, %v1512_v12  ;;  %v1589_v39 = vsel %vm1565_vm4, %v5521_v37, %v1442_v42  ;;  %v1119_v12 = vrot.slane %v5779_v52, 1  ;;  %v903_v37 = vshll.u32 %v5837_v57, 16 }
 0x18a   : > { %1996 = vmatmul.mubr.bf16.gmra.mrb[36].mxu0 %v1667_v53  ;;  %v5849_v53 = vld [vmem:[%s5190_s24 + $0x15c] sm:$0xff]   ;;  %v901_v52 = vshrl.u32 %v5837_v57, 16 }
 0x18b   : > { %v1120_v16 = vsel %vm1040_vm0, %v1117_v15, %v1119_v12  ;;  %v905_v17 = vrot.slane %v903_v37, 1  ;;  %v908_v21 = vshll.u32 %v5849_v53, 16 }
 0x18c   : > { %v1007_v27 = vpop.permute.xlu0 %1006  ;;  %v1184_v62 = vpop.permute.xlu1 %1183 }
 0x18d   : > { %v5802_v60 = vsel %vm1302_vm3, %v1265_v13, %v1184_v62  ;;  %v1269_v10 = vsel %vm1221_vm2, %v5550_v50, %v1007_v27  ;;  %v899_v50 = vsel %vm559_vm1, %v894_v2, %v898_v6  ;;  %v906_v4 = vor.u32 %v905_v17, %v901_v52 }
 0x18e   : > { %1457 = vrot.lane.b32.xlu0 %v5802_v60, %s5129_s28  ;;  %1527 = vrot.lane.b32.xlu1 %v5802_v60, %s5130_s29  ;;  %v910_v31 = vrot.slane %v908_v21, 1  ;;  %v1126_v21 = vrot.slane %v5837_v57, 1 }
 0x190   : > { %v1444_v44 = vpop.permute.xlu0 %1443  ;;  %v1514_v38 = vpop.permute.xlu1 %1513  ;;  %v911_v28 = vsel %vm559_vm1, %v906_v4, %v910_v31 }
 0x191   : > { %4764 = vmatprep.mubr.msk.bf16.mxu0 %vm1221_vm2, %v1514_v38  ;;  %v1670_v8 = vsel %vm1638_vm5, %v1587_v1, %v1514_v38  ;;  %v1591_v19 = vsel %vm1565_vm4, %v5565_v3, %v1444_v44  ;;  %v1121_v3 = vrot.slane %v5788_v55, 1  ;;  %v1122_v1 = vrot.slane %v5798_v35, 1 }
 0x192   : > { %1022 = vrot.lane.b32.xlu0 %v879_v34, %s5127_s26  ;;  %1199 = vrot.lane.b32.xlu1 %v1115_v7, %s5126_s25 }
 0x193   : > { %2004 = vmatmul.mubr.bf16.gmra.mrb[40].mxu0 %v1670_v8  ;;  %v916_v8 = vshll.u32 %v5872_v29, 16  ;;  %v1123_v45 = vsel %vm1040_vm0, %v1121_v3, %v1122_v1 }
 0x194   : > { %v1186_v58 = vpop.permute.xlu1 %1185  ;;  %v1009_v25 = vpop.permute.xlu0 %1008 }
 0x195   : > { %v5826_v48 = vsel %vm1302_vm3, %v1267_v11, %v1186_v58  ;;  %v1271_v7 = vsel %vm1221_vm2, %v5585_v0, %v1009_v25  ;;  %v912_v0 = vshrl.u32 %v5849_v53, 16 }
 0x196   : > { %1459 = vrot.lane.b32.xlu0 %v5826_v48, %s5129_s28  ;;  %1529 = vrot.lane.b32.xlu1 %v5826_v48, %s5130_s29 }
 0x197   : > { %v914_v30 = vor.u32 %v912_v0, %v910_v31 }
 0x198   : > { %v1516_v26 = vpop.permute.xlu1 %1515  ;;  %v1446_v9 = vpop.permute.xlu0 %1445 }
 0x199   : > { %4765 = vmatprep.mubr.msk.bf16.mxu0 %vm1221_vm2, %v1516_v26  ;;  %v1673_v59 = vsel %vm1638_vm5, %v1589_v39, %v1516_v26  ;;  %v1593_v15 = vsel %vm1565_vm4, %v5598_v63, %v1446_v9  ;;  %v5900_v39 = vld [vmem:[%s5190_s24 + $0x170] sm:$0xff]   ;;  %v923_v63 = vshll.u32 %v5888_v20, 16 }
 0x19a   : > { %1024 = vrot.lane.b32.xlu0 %v891_v51, %s5127_s26  ;;  %1201 = vrot.lane.b32.xlu1 %v1118_v54, %s5126_s25  ;;  %v918_v51 = vrot.slane %v916_v8, 1  ;;  %v1124_v54 = vrot.slane %v5821_v41, 1  ;;  %v921_v41 = vshrl.u32 %v5888_v20, 16  ;;  %v928_v9 = vshll.u32 %v5900_v39, 16 }
 0x19b   : > { %2012 = vmatmul.mubr.bf16.gmra.mrb[44].mxu0 %v1673_v59  ;;  %v925_v6 = vrot.slane %v923_v63, 1  ;;  %v1129_v8 = vrot.slane %v5872_v29, 1 }
 0x19c   : > { %v1188_v42 = vpop.permute.xlu1 %1187  ;;  %v1011_v62 = vpop.permute.xlu0 %1010  ;;  %v1125_v2 = vsel %vm1040_vm0, %v1122_v1, %v1124_v54  ;;  %v930_v17 = vrot.slane %v928_v9, 1 }
 0x19d   : > { %v5853_v13 = vsel %vm1302_vm3, %v1269_v10, %v1188_v42  ;;  %v1273_v61 = vsel %vm1221_vm2, %v5592_v56, %v1011_v62  ;;  %v919_v56 = vsel %vm559_vm1, %v914_v30, %v918_v51  ;;  %v926_v52 = vor.u32 %v925_v6, %v921_v41 }
 0x19e   : > { %1461 = vrot.lane.b32.xlu0 %v5853_v13, %s5129_s28  ;;  %1531 = vrot.lane.b32.xlu1 %v5853_v13, %s5130_s29  ;;  %v2290_v30 = vstv %s2286_s4 }
 0x1a0   : > { %v1518_v27 = vpop.permute.xlu1 %1517  ;;  %v1448_v11 = vpop.permute.xlu0 %1447 }
 0x1a1   : > { %4766 = vmatprep.mubr.msk.bf16.mxu0 %vm1221_vm2, %v1518_v27  ;;  %v1676_v34 = vsel %vm1638_vm5, %v1591_v19, %v1518_v27  ;;  %v1595_v12 = vsel %vm1565_vm4, %v5622_v23, %v1448_v11  ;;  %v1127_v23 = vrot.slane %v5849_v53, 1  ;;  %v5925_v19 = vld [vmem:[%s5190_s24 + $0x178] ss:$0 sps:$4 sm:$0x11]  }
 0x1a2   : > { %1026 = vrot.lane.b32.xlu0 %v899_v50, %s5127_s26  ;;  %1203 = vrot.lane.b32.xlu1 %v1120_v16, %s5126_s25  ;;  %v936_v4 = vshll.u32 %v5925_v19, 16 }
 0x1a3   : > { %2020 = vmatmul.mubr.bf16.gmra.mrb[48].mxu0 %v1676_v34  ;;  %v1128_v34 = vsel %vm1040_vm0, %v1126_v21, %v1127_v23 }
 0x1a4   : > { %v1190_v44 = vpop.permute.xlu1 %1189  ;;  %v1013_v59 = vpop.permute.xlu0 %1012 }
 0x1a5   : > { %v5877_v38 = vsel %vm1302_vm3, %v1271_v7, %v1190_v44  ;;  %v1275_v50 = vsel %vm1221_vm2, %v5633_v32, %v1013_v59  ;;  %v931_v32 = vsel %vm559_vm1, %v926_v52, %v930_v17  ;;  %v932_v7 = vshrl.u32 %v5900_v39, 16  ;;  %v5962_v52 = vld [vmem:[%s5190_s24 + $0x17c] sm:$0xff]  }
 0x1a6   : > { %1463 = vrot.lane.b32.xlu0 %v5877_v38, %s5129_s28  ;;  %1533 = vrot.lane.b32.xlu1 %v5877_v38, %s5130_s29 }
 0x1a7   : > { %v934_v11 = vor.u32 %v932_v7, %v930_v17  ;;  %v943_v7 = vshll.u32 %v5962_v52, 16 }
 0x1a8   : > { %v1520_v58 = vpop.permute.xlu1 %1519  ;;  %v1450_v16 = vpop.permute.xlu0 %1449 }
 0x1a9   : > { %4767 = vmatprep.mubr.msk.bf16.mxu0 %vm1221_vm2, %v1520_v58  ;;  %v1679_v25 = vsel %vm1638_vm5, %v1593_v15, %v1520_v58  ;;  %v1597_v31 = vsel %vm1565_vm4, %v5649_v47, %v1450_v16 }
 0x1aa   : > { %1028 = vrot.lane.b32.xlu0 %v911_v28, %s5127_s26  ;;  %1205 = vrot.lane.b32.xlu1 %v1123_v45, %s5126_s25  ;;  %v938_v28 = vrot.slane %v936_v4, 1 }
 0x1ab   : > { %2028 = vmatmul.mubr.bf16.gmra.mrb[52].mxu0 %v1679_v25 }
 0x1ac   : > { %v1192_v26 = vpop.permute.xlu1 %1191  ;;  %v1015_v1 = vpop.permute.xlu0 %1014  ;;  %v939_v15 = vsel %vm559_vm1, %v934_v11, %v938_v28  ;;  %v941_v28 = vshrl.u32 %v5962_v52, 16 }
 0x1ad   : > { %v5904_v10 = vsel %vm1302_vm3, %v1273_v61, %v1192_v26  ;;  %v1277_v0 = vsel %vm1221_vm2, %v5643_v46, %v1015_v1  ;;  %v1130_v46 = vsel %vm1040_vm0, %v1127_v23, %v1129_v8 }
 0x1ae   : > { %1465 = vrot.lane.b32.xlu0 %v5904_v10, %s5129_s28  ;;  %1535 = vrot.lane.b32.xlu1 %v5904_v10, %s5130_s29 }
 0x1b0   : > { %v1522_v37 = vpop.permute.xlu1 %1521  ;;  %v1452_v61 = vpop.permute.xlu0 %1451 }
 0x1b1   : > { %4768 = vmatprep.mubr.msk.bf16.mxu0 %vm1221_vm2, %v1522_v37  ;;  %v1682_v42 = vsel %vm1638_vm5, %v1595_v12, %v1522_v37 }
 0x1b2   : > { %1030 = vrot.lane.b32.xlu0 %v919_v56, %s5127_s26  ;;  %1207 = vrot.lane.b32.xlu1 %v1125_v2, %s5126_s25 }
 0x1b3   : > { %2036 = vmatmul.mubr.bf16.gmra.mrb[56].mxu0 %v1682_v42 }
 0x1b4   : > { %v1194_v27 = vpop.permute.xlu1 %1193  ;;  %v1017_v2 = vpop.permute.xlu0 %1016 }
 0x1b5   : > { %v5928_v62 = vsel %vm1302_vm3, %v1275_v50, %v1194_v27 }
 0x1b6   : > { %1467 = vrot.lane.b32.xlu0 %v5928_v62, %s5129_s28  ;;  %1537 = vrot.lane.b32.xlu1 %v5928_v62, %s5130_s29 }
 0x1b8   : > { %v1524_v3 = vpop.permute.xlu1 %1523  ;;  %v5964_v17 = vpop.permute.xlu0 %1453 }
 0x1b9   : > { %4769 = vmatprep.mubr.msk.bf16.mxu0 %vm1221_vm2, %v1524_v3  ;;  %v1685_v44 = vsel %vm1638_vm5, %v1597_v31, %v1524_v3 }
 0x1ba   : > { %1032 = vrot.lane.b32.xlu0 %v931_v32, %s5127_s26  ;;  %1209 = vrot.lane.b32.xlu1 %v1128_v34, %s5126_s25  ;;  %v5967_v34 = vld [vmem:[%s5190_s24 + $0x184] sm:$0xff]  }
 0x1bb   : > { %2044 = vmatmul.mubr.bf16.gmra.mrb[60].mxu0 %v1685_v44 }
 0x1bc   : > { %v1196_v47 = vpop.permute.xlu1 %1195  ;;  %v5971_v3 = vpop.permute.xlu0 %1018 }
 0x1bd   : > { %v5948_v45 = vsel %vm1302_vm3, %v1277_v0, %v1196_v47 }
 0x1be   : > { %1469 = vrot.lane.b32.xlu0 %v5948_v45, %s5129_s28  ;;  %1539 = vrot.lane.b32.xlu1 %v5948_v45, %s5130_s29 }
 0x1c2   : > { %1211 = vrot.lane.b32.xlu1 %v1130_v46, %s5126_s25  ;;  %1034 = vrot.lane.b32.xlu0 %v939_v15, %s5127_s26  ;;  %v945_v15 = vrot.slane %v943_v7, 1 }
 0x1de   : > { %v1925_v29 = vpop.f32.mrb[0].mxu0 }
 0x1df   : > { %v2212_v58 = vmax.f32 %v1925_v29, 0.0  ;;  %v1927_v25 = vpop.f32.mrb[1].mxu0  ;;  %v948_v29 = vshll.u32 %v5967_v34, 16 }
 0x1e0   : > { %v1928_v51 = vpop.f32.mrb[2].mxu0 }
 0x1e1   : > { %v2213_v54 = vmax.f32 %v1928_v51, 0.0  ;;  %v1930_v63 = vpop.f32.mrb[3].mxu0  ;;  %v2291_v26 = vmul.f32 %v2290_v30, %v2212_v58  ;;  %v1599_v58 = vsel %vm1565_vm4, %v5673_v14, %v1452_v61  ;;  %v1279_v14 = vsel %vm1221_vm2, %v5684_v22, %v1017_v2 }
 0x1e3   : > { %v2292_v59 = vmul.f32 %v2290_v30, %v2213_v54 }
 0x1e5   : > { %v5959_v56 = vpack.c.bf16 %v2292_v59, %v2291_v26  ;;  %v1131_v59 = vrot.slane %v5888_v20, 1 }
 0x1e6   : > { %v1933_v41 = vpop.f32.mrb[4].mxu0 }
 0x1e7   : > { %v2214_v6 = vmax.f32 %v1933_v41, 0.0  ;;  %v1935_v9 = vpop.f32.mrb[5].mxu0  ;;  %v2338_v4 = vshrl.u32 %v5959_v56, 16 }
 0x1e8   : > { %v1936_v12 = vpop.f32.mrb[6].mxu0  ;;  %v1132_v9 = vrot.slane %v5900_v39, 1 }
 0x1e9   : > { %v2215_v37 = vmax.f32 %v1936_v12, 0.0  ;;  %v1938_v42 = vpop.f32.mrb[7].mxu0  ;;  %v2293_v50 = vmul.f32 %v2290_v30, %v2214_v6  ;;  %v5979_v25 = vrot.slane %v2338_v4, 7  ;;  %v946_v12 = vor.u32 %v945_v15, %v941_v28 }
 0x1eb   : > { %v2294_v16 = vmul.f32 %v2290_v30, %v2215_v37  ;;  %v950_v37 = vrot.slane %v948_v29, 1  ;;  %v1601_v29 = vsel %vm1565_vm4, %v5700_v40, %v5964_v17  ;;  %v1281_v40 = vsel %vm1221_vm2, %v5694_v36, %v5971_v3 }
 0x1ed   : > { %v2301_v21 = vpack.c.bf16 %v2294_v16, %v2293_v50 }
 0x1ee   : > { %v1941_v23 = vpop.f32.mrb[8].mxu0 }
 0x1ef   : > { %v2345_v27 = vshrl.u32 %v2301_v21, 16  ;;  %v1943_v32 = vpop.f32.mrb[9].mxu0  ;;  %v2348_v44 = vshll.u32 %v2301_v21, 16  ;;  %v2216_v0 = vmax.f32 %v1941_v23, 0.0 }
 0x1f0   : > { %v1944_v31 = vpop.f32.mrb[10].mxu0 }
 0x1f1   : > { %v2347_v1 = vrot.slane %v2345_v27, 7  ;;  %v2217_v8 = vmax.f32 %v1944_v31, 0.0  ;;  %v1946_v11 = vpop.f32.mrb[11].mxu0  ;;  %v1133_v31 = vsel %vm1040_vm0, %v1131_v59, %v1132_v9 }
 0x1f3   : > { %v2350_v47 = vor.u32 %v2348_v44, %v2347_v1  ;;  %v5974_v46 = vpack.c.bf16 %v2217_v8, %v2216_v0  ;;  %v5989_v54 = vsel %vm5983_vm8, %v2347_v1, 0  ;;  %v951_v1 = vsel %vm559_vm1, %v946_v12, %v950_v37  ;;  %v6020_v44 = vld [vmem:[%s5190_s24 + $0x18c] ss:$0 sps:$4 sm:$0x11]  }
 0x1f4   : > { %v1526_v51 = vpop.permute.xlu1 %1525  ;;  %v5995_v61 = vpop.permute.xlu0 %1455  ;;  %v3152_v2 = vrot.slane %v5989_v54, 1 }
 0x1f5   : > { %4770 = vmatprep.mubr.msk.bf16.mxu0 %vm1221_vm2, %v1526_v51  ;;  %v1688_v63 = vsel %vm1638_vm5, %v1599_v58, %v1526_v51  ;;  %v6000_v41 = vsel %vm2336_vm6, %v5979_v25, %v2350_v47  ;;  %v2353_v0 = vshrl.u32 %v5974_v46, 16 }
 0x1f6   : > { %v1949_v26 = vpop.f32.mrb[12].mxu0  ;;  %2052 = vmatmul.mubr.bf16.gmra.mrb[64].mxu0 %v1688_v63  ;;  %v3150_v42 = vrot.slane %v6000_v41, 1  ;;  %v952_v63 = vshrl.u32 %v5967_v34, 16 }
 0x1f7   : > { %v1951_v6 = vpop.f32.mrb[13].mxu0  ;;  %v2218_v16 = vmax.f32 %v1949_v26, 0.0  ;;  %v6032_v26 = vrot.slane %v2353_v0, 7 }
 0x1f8   : > { %v1952_v50 = vpop.f32.mrb[14].mxu0  ;;  %v1198_v22 = vpop.permute.xlu1 %1197  ;;  %v6015_v7 = vsel %vm1040_vm0, %v3150_v42, %v3152_v2 }
 0x1f9   : > { %v2219_v21 = vmax.f32 %v1952_v50, 0.0  ;;  %v1954_v23 = vpop.f32.mrb[15].mxu0  ;;  %v6006_v27 = vsel %vm1302_vm3, %v1279_v14, %v1198_v22  ;;  %v1021_v32 = vpop.permute.xlu0 %1020  ;;  %v956_v14 = vshll.u32 %v6020_v44, 16 }
 0x1fa   : > { %1471 = vrot.lane.b32.xlu0 %v6006_v27, %s5129_s28  ;;  %1541 = vrot.lane.b32.xlu1 %v6006_v27, %s5130_s29  ;;  %v954_v23 = vor.u32 %v952_v63, %v950_v37 }
 0x1fb   : > { %v2303_v4 = vpack.c.bf16 %v2219_v21, %v2218_v16 }
 0x1fd   : > { %v2360_v8 = vshrl.u32 %v2303_v4, 16  ;;  %v2363_v47 = vshll.u32 %v2303_v4, 16  ;;  %v958_v4 = vrot.slane %v956_v14, 1 }
 0x1fe   : > { %v1957_v11 = vpop.f32.mrb[16].mxu0  ;;  %1213 = vrot.lane.b32.xlu1 %v1133_v31, %s5126_s25  ;;  %1036 = vrot.lane.b32.xlu0 %v951_v1, %s5127_s26  ;;  %v1134_v31 = vrot.slane %v5925_v19, 1  ;;  %v1603_v19 = vsel %vm1565_vm4, %v5724_v5, %v5995_v61  ;;  %v1137_v5 = vrot.slane %v5967_v34, 1 }
 0x1ff   : > { %v6025_v28 = vrot.slane %v2360_v8, 7  ;;  %v1959_v15 = vpop.f32.mrb[17].mxu0  ;;  %v2220_v6 = vmax.f32 %v1957_v11, 0.0 }
 0x200   : > { %v1960_v58 = vpop.f32.mrb[18].mxu0  ;;  %v1458_v51 = vpop.permute.xlu0 %1457  ;;  %v1135_v37 = vsel %vm1040_vm0, %v1132_v9, %v1134_v31  ;;  %v1136_v9 = vrot.slane %v5962_v52, 1 }
 0x201   : > { %v2365_v59 = vor.u32 %v2363_v47, %v6025_v28  ;;  %v2221_v12 = vmax.f32 %v1960_v58, 0.0  ;;  %v1962_v50 = vpop.f32.mrb[19].mxu0  ;;  %v1528_v22 = vpop.permute.xlu1 %1527  ;;  %v959_v47 = vsel %vm559_vm1, %v954_v23, %v958_v4  ;;  %v1605_v4 = vsel %vm1565_vm4, %v5744_v24, %v1458_v51 }
 0x202   : > { %4771 = vmatprep.mubr.msk.bf16.mxu0 %vm1221_vm2, %v1528_v22  ;;  %v1691_v2 = vsel %vm1638_vm5, %v1601_v29, %v1528_v22 }
 0x203   : > { %v6042_v17 = vsel %vm2336_vm6, %v6032_v26, %v2365_v59  ;;  %v6044_v16 = vpack.c.bf16 %v2221_v12, %v2220_v6  ;;  %2060 = vmatmul.mubr.bf16.gmra.mrb[68].mxu0 %v1691_v2  ;;  %v1283_v59 = vsel %vm1221_vm2, %v5755_v49, %v1021_v32 }
 0x204   : > { %v1023_v21 = vpop.permute.xlu0 %1022 }
 0x205   : > { %v1200_v1 = vpop.permute.xlu1 %1199  ;;  %v2368_v61 = vshrl.u32 %v6044_v16, 16 }
 0x206   : > { %v6048_v0 = vsel %vm1302_vm3, %v1281_v40, %v1200_v1  ;;  %v1965_v8 = vpop.f32.mrb[20].mxu0  ;;  %v1138_v1 = vsel %vm1040_vm0, %v1136_v9, %v1137_v5 }
 0x207   : > { %v1967_v11 = vpop.f32.mrb[21].mxu0  ;;  %1473 = vrot.lane.b32.xlu0 %v6048_v0, %s5129_s28  ;;  %1543 = vrot.lane.b32.xlu1 %v6048_v0, %s5130_s29  ;;  %v2222_v15 = vmax.f32 %v1965_v8, 0.0  ;;  %v6080_v8 = vrot.slane %v2368_v61, 7 }
 0x208   : > { %v1968_v36 = vpop.f32.mrb[22].mxu0  ;;  %v1460_v3 = vpop.permute.xlu0 %1459 }
 0x209   : > { %v2223_v29 = vmax.f32 %v1968_v36, 0.0  ;;  %v1970_v58 = vpop.f32.mrb[23].mxu0  ;;  %v1530_v63 = vpop.permute.xlu1 %1529  ;;  %v1607_v61 = vsel %vm1565_vm4, %v5772_v43, %v1460_v3 }
 0x20a   : > { %4772 = vmatprep.mubr.msk.bf16.mxu0 %vm1221_vm2, %v1530_v63  ;;  %v1694_v14 = vsel %vm1638_vm5, %v1603_v19, %v1530_v63  ;;  %v1139_v63 = vrot.slane %v6020_v44, 1 }
 0x20b   : > { %v2305_v6 = vpack.c.bf16 %v2223_v29, %v2222_v15  ;;  %1038 = vrot.lane.b32.xlu0 %v959_v47, %s5127_s26  ;;  %1215 = vrot.lane.b32.xlu1 %v1135_v37, %s5126_s25  ;;  %v1285_v29 = vsel %vm1221_vm2, %v5758_v33, %v1023_v21 }
 0x20c   : > { %2068 = vmatmul.mubr.bf16.gmra.mrb[72].mxu0 %v1694_v14  ;;  %v1025_v22 = vpop.permute.xlu0 %1024  ;;  %v1140_v21 = vsel %vm1040_vm0, %v1137_v5, %v1139_v63 }
 0x20d   : > { %v2375_v12 = vshrl.u32 %v2305_v6, 16  ;;  %v1202_v50 = vpop.permute.xlu1 %1201  ;;  %v2378_v32 = vshll.u32 %v2305_v6, 16 }
 0x20e   : > { %v6069_v2 = vsel %vm1302_vm3, %v1283_v59, %v1202_v50  ;;  %v1973_v40 = vpop.f32.mrb[24].mxu0 }
 0x20f   : > { %v6071_v49 = vrot.slane %v2375_v12, 7  ;;  %v1975_v23 = vpop.f32.mrb[25].mxu0  ;;  %1475 = vrot.lane.b32.xlu0 %v6069_v2, %s5129_s28  ;;  %1545 = vrot.lane.b32.xlu1 %v6069_v2, %s5130_s29  ;;  %v2224_v36 = vmax.f32 %v1973_v40, 0.0 }
 0x210   : > { %v1976_v31 = vpop.f32.mrb[26].mxu0  ;;  %v1462_v58 = vpop.permute.xlu0 %1461 }
 0x211   : > { %v2380_v11 = vor.u32 %v2378_v32, %v6071_v49  ;;  %v2225_v47 = vmax.f32 %v1976_v31, 0.0  ;;  %v1978_v37 = vpop.f32.mrb[27].mxu0  ;;  %v1532_v19 = vpop.permute.xlu1 %1531 }
 0x212   : > { %4773 = vmatprep.mubr.msk.bf16.mxu0 %vm1221_vm2, %v1532_v19  ;;  %v1697_v15 = vsel %vm1638_vm5, %v1605_v4, %v1532_v19  ;;  %v1287_v4 = vsel %vm1221_vm2, %v5788_v55, %v1025_v22 }
 0x213   : > { %v6089_v24 = vsel %vm2336_vm6, %v6080_v8, %v2380_v11  ;;  %v6091_v51 = vpack.c.bf16 %v2225_v47, %v2224_v36  ;;  %1217 = vrot.lane.b32.xlu1 %v1138_v1, %s5126_s25  ;;  %v1609_v47 = vsel %vm1565_vm4, %v5802_v60, %v1462_v58 }
 0x214   : > { %2076 = vmatmul.mubr.bf16.gmra.mrb[76].mxu0 %v1697_v15  ;;  %v1027_v32 = vpop.permute.xlu0 %1026 }
 0x215   : > { %v1204_v14 = vpop.permute.xlu1 %1203  ;;  %v2383_v5 = vshrl.u32 %v6091_v51, 16 }
 0x216   : > { %v6096_v59 = vsel %vm1302_vm3, %v1285_v29, %v1204_v14  ;;  %v1981_v6 = vpop.f32.mrb[28].mxu0  ;;  %v1289_v29 = vsel %vm1221_vm2, %v5798_v35, %v1027_v32 }
 0x217   : > { %v1983_v9 = vpop.f32.mrb[29].mxu0  ;;  %1477 = vrot.lane.b32.xlu0 %v6096_v59, %s5129_s28  ;;  %1547 = vrot.lane.b32.xlu1 %v6096_v59, %s5130_s29  ;;  %v2226_v12 = vmax.f32 %v1981_v6, 0.0  ;;  %v6120_v22 = vrot.slane %v2383_v5, 7 }
 0x218   : > { %v1984_v33 = vpop.f32.mrb[30].mxu0  ;;  %v1464_v55 = vpop.permute.xlu0 %1463 }
 0x219   : > { %v2227_v44 = vmax.f32 %v1984_v33, 0.0  ;;  %v1986_v50 = vpop.f32.mrb[31].mxu0  ;;  %v1534_v40 = vpop.permute.xlu1 %1533  ;;  %v1611_v60 = vsel %vm1565_vm4, %v5826_v48, %v1464_v55 }
 0x21a   : > { %4774 = vmatprep.mubr.msk.bf16.mxu0 %vm1221_vm2, %v1534_v40  ;;  %v1700_v23 = vsel %vm1638_vm5, %v1607_v61, %v1534_v40 }
 0x21b   : > { %v2307_v31 = vpack.c.bf16 %v2227_v44, %v2226_v12  ;;  %1219 = vrot.lane.b32.xlu1 %v1140_v21, %s5126_s25 }
 0x21c   : > { %2084 = vmatmul.mubr.bf16.gmra.mrb[80].mxu0 %v1700_v23  ;;  %v1029_v6 = vpop.permute.xlu0 %1028 }
 0x21d   : > { %v2390_v1 = vshrl.u32 %v2307_v31, 16  ;;  %v1206_v43 = vpop.permute.xlu1 %1205  ;;  %v2393_v36 = vshll.u32 %v2307_v31, 16  ;;  %v1291_v33 = vsel %vm1221_vm2, %v5837_v57, %v1029_v6 }
 0x21e   : > { %v6112_v3 = vsel %vm1302_vm3, %v1287_v4, %v1206_v43 }
 0x21f   : > { %v6114_v11 = vrot.slane %v2390_v1, 7  ;;  %1479 = vrot.lane.b32.xlu0 %v6112_v3, %s5129_s28  ;;  %1549 = vrot.lane.b32.xlu1 %v6112_v3, %s5130_s29 }
 0x220   : > { %v1466_v21 = vpop.permute.xlu0 %1465 }
 0x221   : > { %v2395_v37 = vor.u32 %v2393_v36, %v6114_v11  ;;  %v1536_v19 = vpop.permute.xlu1 %1535  ;;  %v1613_v48 = vsel %vm1565_vm4, %v5853_v13, %v1466_v21 }
 0x222   : > { %4775 = vmatprep.mubr.msk.bf16.mxu0 %vm1221_vm2, %v1536_v19  ;;  %v1703_v15 = vsel %vm1638_vm5, %v1609_v47, %v1536_v19 }
 0x223   : > { %v6131_v63 = vsel %vm2336_vm6, %v6120_v22, %v2395_v37 }
 0x224   : > { %2092 = vmatmul.mubr.bf16.gmra.mrb[84].mxu0 %v1703_v15  ;;  %v1031_v50 = vpop.permute.xlu0 %1030 }
 0x225   : > { %v1208_v14 = vpop.permute.xlu1 %1207  ;;  %v1293_v40 = vsel %vm1221_vm2, %v5849_v53, %v1031_v50 }
 0x226   : > { %v6134_v9 = vsel %vm1302_vm3, %v1289_v29, %v1208_v14 }
 0x227   : > { %1481 = vrot.lane.b32.xlu0 %v6134_v9, %s5129_s28  ;;  %1551 = vrot.lane.b32.xlu1 %v6134_v9, %s5130_s29 }
 0x228   : > { %v1468_v14 = vpop.permute.xlu0 %1467 }
 0x229   : > { %v1538_v35 = vpop.permute.xlu1 %1537 }
 0x22a   : > { %4776 = vmatprep.mubr.msk.bf16.mxu0 %vm1221_vm2, %v1538_v35  ;;  %v1706_v58 = vsel %vm1638_vm5, %v1611_v60, %v1538_v35 }
 0x22c   : > { %2100 = vmatmul.mubr.bf16.gmra.mrb[88].mxu0 %v1706_v58  ;;  %v1033_v50 = vpop.permute.xlu0 %1032 }
 0x22d   : > { %v1210_v61 = vpop.permute.xlu1 %1209 }
 0x22e   : > { %v6147_v12 = vsel %vm1302_vm3, %v1291_v33, %v1210_v61 }
 0x22f   : > { %1483 = vrot.lane.b32.xlu0 %v6147_v12, %s5129_s28  ;;  %1553 = vrot.lane.b32.xlu1 %v6147_v12, %s5130_s29 }
 0x231   : > { %v1540_v44 = vpop.permute.xlu1 %1539 }
 0x232   : > { %4777 = vmatprep.mubr.msk.bf16.mxu0 %vm1221_vm2, %v1540_v44  ;;  %v1709_v57 = vsel %vm1638_vm5, %v1613_v48, %v1540_v44 }
 0x234   : > { %2108 = vmatmul.mubr.bf16.gmra.mrb[92].mxu0 %v1709_v57 }
 0x235   : > { %v1212_v32 = vpop.permute.xlu1 %1211 }
 0x236   : > { %v6160_v23 = vsel %vm1302_vm3, %v1293_v40, %v1212_v32 }
 0x237   : > { %1485 = vrot.lane.b32.xlu0 %v6160_v23, %s5129_s28  ;;  %1555 = vrot.lane.b32.xlu1 %v6160_v23, %s5130_s29 }
 0x251   : > { %v1989_v13 = vpop.f32.mrb[32].mxu0 }
 0x252   : > { %v1991_v4 = vpop.f32.mrb[33].mxu0  ;;  %v2228_v5 = vmax.f32 %v1989_v13, 0.0 }
 0x253   : > { %v1992_v31 = vpop.f32.mrb[34].mxu0 }
 0x254   : > { %v2229_v1 = vmax.f32 %v1992_v31, 0.0  ;;  %v1994_v43 = vpop.f32.mrb[35].mxu0  ;;  %v1615_v31 = vsel %vm1565_vm4, %v5877_v38, %v1468_v14 }
 0x255   : > { %v1295_v43 = vsel %vm1221_vm2, %v5888_v20, %v1033_v50 }
 0x256   : > { %v6166_v36 = vpack.c.bf16 %v2229_v1, %v2228_v5 }
 0x258   : > { %v2398_v6 = vshrl.u32 %v6166_v36, 16 }
 0x25a   : > { %v6171_v61 = vrot.slane %v2398_v6, 7 }
 0x25d   : > { %v1997_v53 = vpop.f32.mrb[36].mxu0 }
 0x25e   : > { %v1999_v55 = vpop.f32.mrb[37].mxu0  ;;  %v2230_v37 = vmax.f32 %v1997_v53, 0.0 }
 0x25f   : > { %v2000_v47 = vpop.f32.mrb[38].mxu0  ;;  %v2356_v55 = vshll.u32 %v5974_v46, 16 }
 0x260   : > { %v2231_v19 = vmax.f32 %v2000_v47, 0.0  ;;  %v2002_v15 = vpop.f32.mrb[39].mxu0  ;;  %v1470_v47 = vpop.permute.xlu0 %1469 }
 0x262   : > { %v2309_v29 = vpack.c.bf16 %v2231_v19, %v2230_v37 }
 0x264   : > { %v2405_v60 = vshrl.u32 %v2309_v29, 16  ;;  %v2408_v58 = vshll.u32 %v2309_v29, 16  ;;  %v2358_v29 = vor.u32 %v2356_v55, %v6032_v26  ;;  %v1035_v20 = vpop.permute.xlu0 %1034  ;;  %v1617_v55 = vsel %vm1565_vm4, %v5904_v10, %v1470_v47 }
 0x265   : > { %v2664_v10 = vsel %vm5983_vm8, %v6025_v28, 0  ;;  %v2371_v47 = vshll.u32 %v6044_v16, 16 }
 0x266   : > { %v6169_v35 = vrot.slane %v2405_v60, 7  ;;  %v2005_v33 = vpop.f32.mrb[40].mxu0  ;;  %v6193_v46 = vsel %vm5983_vm8, 0, %v2358_v29 }
 0x267   : > { %v2007_v21 = vpop.f32.mrb[41].mxu0  ;;  %v2232_v57 = vmax.f32 %v2005_v33, 0.0 }
 0x268   : > { %v2410_v48 = vor.u32 %v2408_v58, %v6169_v35  ;;  %v2008_v44 = vpop.f32.mrb[42].mxu0 }
 0x269   : > { %v2233_v40 = vmax.f32 %v2008_v44, 0.0  ;;  %v2010_v32 = vpop.f32.mrb[43].mxu0 }
 0x26a   : > { %v6176_v13 = vsel %vm2336_vm6, %v6171_v61, %v2410_v48 }
 0x26b   : > { %v6178_v4 = vpack.c.bf16 %v2233_v40, %v2232_v57  ;;  %v2704_v40 = vshll.u32 %v6193_v46, 16 }
 0x26c   : > { %v1542_v5 = vpop.permute.xlu1 %1541 }
 0x26d   : > { %4778 = vmatprep.mubr.msk.bf16.mxu0 %vm1221_vm2, %v1542_v5  ;;  %v1712_v1 = vsel %vm1638_vm5, %v1615_v31, %v1542_v5  ;;  %v2413_v33 = vshrl.u32 %v6178_v4, 16  ;;  %v1472_v31 = vpop.permute.xlu0 %1471 }
 0x26e   : > { %v2013_v53 = vpop.f32.mrb[44].mxu0  ;;  %2116 = vmatmul.mubr.bf16.gmra.mrb[96].mxu0 %v1712_v1 }
 0x26f   : > { %v2015_v37 = vpop.f32.mrb[45].mxu0  ;;  %v2234_v6 = vmax.f32 %v2013_v53, 0.0  ;;  %v6199_v32 = vrot.slane %v2413_v33, 7 }
 0x270   : > { %v2016_v19 = vpop.f32.mrb[46].mxu0  ;;  %v1214_v15 = vpop.permute.xlu1 %1213 }
 0x271   : > { %v2235_v38 = vmax.f32 %v2016_v19, 0.0  ;;  %v2018_v14 = vpop.f32.mrb[47].mxu0  ;;  %v1376_v60 = vsel %vm1302_vm3, %v1295_v43, %v1214_v15 }
 0x272   : > { %1487 = vrot.lane.b32.xlu0 %v1376_v60, %s5129_s28  ;;  %1557 = vrot.lane.b32.xlu1 %v1376_v60, %s5130_s29  ;;  %v2706_v14 = vrot.slane %v2704_v40, 1  ;;  %v1037_v60 = vpop.permute.xlu0 %1036  ;;  %v2717_v40 = vshll.u32 %v2664_v10, 16 }
 0x273   : > { %v2311_v58 = vpack.c.bf16 %v2235_v38, %v2234_v6  ;;  %v2709_v6 = vshll.u32 %v6042_v17, 16  ;;  %v1297_v38 = vsel %vm1221_vm2, %v5900_v39, %v1035_v20  ;;  %v2373_v39 = vor.u32 %v2371_v47, %v6080_v8 }
 0x274   : > { %v3155_v8 = vrot.slane %v6042_v17, 1  ;;  %v2713_v47 = vshrl.u32 %v6042_v17, 16 }
 0x275   : > { %v2420_v21 = vshrl.u32 %v2311_v58, 16  ;;  %v2423_v44 = vshll.u32 %v2311_v58, 16 }
 0x276   : > { %v2021_v48 = vpop.f32.mrb[48].mxu0 }
 0x277   : > { %v6196_v26 = vrot.slane %v2420_v21, 7  ;;  %v2023_v50 = vpop.f32.mrb[49].mxu0  ;;  %v2236_v1 = vmax.f32 %v2021_v48, 0.0  ;;  %v2702_v21 = vshrl.u32 %v6193_v46, 16  ;;  %v2386_v48 = vshll.u32 %v6091_v51, 16 }
 0x278   : > { %v2024_v57 = vpop.f32.mrb[50].mxu0  ;;  %v1619_v51 = vsel %vm1565_vm4, %v5928_v62, %v1472_v31  ;;  %v1299_v62 = vsel %vm1221_vm2, %v5962_v52, %v1037_v60 }
 0x279   : > { %v2425_v5 = vor.u32 %v2423_v44, %v6196_v26  ;;  %v2237_v43 = vmax.f32 %v2024_v57, 0.0  ;;  %v2026_v53 = vpop.f32.mrb[51].mxu0  ;;  %v1544_v37 = vpop.permute.xlu1 %1543  ;;  %v2711_v57 = vrot.slane %v2709_v6, 1  ;;  %v2707_v28 = vor.u32 %v2706_v14, %v2702_v21 }
 0x27a   : > { %4779 = vmatprep.mubr.msk.bf16.mxu0 %vm1221_vm2, %v1544_v37  ;;  %v1715_v29 = vsel %vm1638_vm5, %v1617_v55, %v1544_v37  ;;  %v2388_v16 = vor.u32 %v2386_v48, %v6120_v22  ;;  %v3154_v55 = vrot.slane %v6193_v46, 1  ;;  %v1474_v37 = vpop.permute.xlu0 %1473  ;;  %v3157_v22 = vrot.slane %v2664_v10, 1 }
 0x27b   : > { %v6206_v19 = vsel %vm2336_vm6, %v6199_v32, %v2425_v5  ;;  %v6208_v15 = vpack.c.bf16 %v2237_v43, %v2236_v1  ;;  %2124 = vmatmul.mubr.bf16.gmra.mrb[100].mxu0 %v1715_v29  ;;  %v2712_v6 = vsel %vm559_vm1, %v2707_v28, %v2711_v57  ;;  %v6235_v14 = vsel %vm5983_vm8, 0, %v2373_v39 }
 0x27c   : > { %v2719_v10 = vrot.slane %v2717_v40, 1  ;;  %v2401_v21 = vshll.u32 %v6166_v36, 16  ;;  %v2715_v52 = vor.u32 %v2713_v47, %v2711_v57  ;;  %v3158_v60 = vsel %vm1040_vm0, %v3155_v8, %v3157_v22 }
 0x27d   : > { %v1216_v58 = vpop.permute.xlu1 %1215  ;;  %v2428_v31 = vshrl.u32 %v6208_v15, 16  ;;  %v2729_v40 = vshll.u32 %v6089_v24, 16 }
 0x27e   : > { %v2029_v33 = vpop.f32.mrb[52].mxu0  ;;  %v1378_v44 = vsel %vm1302_vm3, %v1297_v38, %v1216_v58  ;;  %v6244_v58 = vsel %vm5983_vm8, 0, %v2388_v16  ;;  %v2403_v16 = vor.u32 %v2401_v21, %v6171_v61  ;;  %v2720_v22 = vsel %vm559_vm1, %v2715_v52, %v2719_v10 }
 0x27f   : > { %v2031_v50 = vpop.f32.mrb[53].mxu0  ;;  %1489 = vrot.lane.b32.xlu0 %v1378_v44, %s5129_s28  ;;  %1559 = vrot.lane.b32.xlu1 %v1378_v44, %s5130_s29  ;;  %v2238_v5 = vmax.f32 %v2029_v33, 0.0  ;;  %v2744_v57 = vshll.u32 %v6244_v58, 16  ;;  %v2742_v52 = vshrl.u32 %v6244_v58, 16 }
 0x280   : > { %v2032_v20 = vpop.f32.mrb[54].mxu0  ;;  %v3156_v50 = vsel %vm1040_vm0, %v3154_v55, %v3155_v8 }
 0x281   : > { %v2239_v1 = vmax.f32 %v2032_v20, 0.0  ;;  %v2034_v43 = vpop.f32.mrb[55].mxu0  ;;  %v1546_v53 = vpop.permute.xlu1 %1545  ;;  %v2746_v10 = vrot.slane %v2744_v57, 1 }
 0x282   : > { %4780 = vmatprep.mubr.msk.bf16.mxu0 %vm1221_vm2, %v1546_v53  ;;  %v1718_v38 = vsel %vm1638_vm5, %v1619_v51, %v1546_v53  ;;  %v6252_v43 = vrot.slane %v2428_v31, 7  ;;  %v1039_v51 = vpop.permute.xlu0 %1038  ;;  %v2722_v31 = vshrl.u32 %v6235_v14, 16 }
 0x283   : > { %v2313_v29 = vpack.c.bf16 %v2239_v1, %v2238_v5  ;;  %3045 = vrot.lane.b32.xlu0 %v2712_v6, %s5127_s26  ;;  %2132 = vmatmul.mubr.bf16.gmra.mrb[104].mxu0 %v1718_v38  ;;  %v2724_v1 = vshll.u32 %v6235_v14, 16  ;;  %v1621_v6 = vsel %vm1565_vm4, %v5948_v45, %v1474_v37  ;;  %v1301_v45 = vsel %vm1221_vm2, %v5967_v34, %v1039_v51 }
 0x284   : > { %v6289_v34 = vsel %vm5983_vm8, %v6114_v11, 0  ;;  %v3160_v11 = vrot.slane %v6089_v24, 1 }
 0x285   : > { %v2435_v33 = vshrl.u32 %v2313_v29, 16  ;;  %v1218_v48 = vpop.permute.xlu1 %1217  ;;  %v2438_v20 = vshll.u32 %v2313_v29, 16 }
 0x286   : > { %v2037_v44 = vpop.f32.mrb[56].mxu0  ;;  %v1380_v28 = vsel %vm1302_vm3, %v1299_v62, %v1218_v48  ;;  %v2749_v62 = vshll.u32 %v6131_v63, 16  ;;  %v2726_v48 = vrot.slane %v2724_v1, 1 }
 0x287   : > { %v2437_v39 = vrot.slane %v2435_v33, 7  ;;  %v2039_v5 = vpop.f32.mrb[57].mxu0  ;;  %3243 = vrot.lane.b32.xlu0 %v3156_v50, %s5126_s25  ;;  %1561 = vrot.lane.b32.xlu1 %v1380_v28, %s5130_s29  ;;  %v2240_v8 = vmax.f32 %v2037_v44, 0.0  ;;  %v6282_v50 = vsel %vm5983_vm8, 0, %v2403_v16  ;;  %v6297_v16 = vsel %vm5983_vm8, %v6071_v49, 0 }
 0x288   : > { %v2040_v36 = vpop.f32.mrb[58].mxu0  ;;  %v2751_v1 = vrot.slane %v2749_v62, 1  ;;  %v2757_v49 = vshll.u32 %v6289_v34, 16 }
 0x289   : > { %v2440_v53 = vor.u32 %v2438_v20, %v2437_v39  ;;  %v6260_v55 = vsel %vm5983_vm8, %v2437_v39, 0  ;;  %v2241_v29 = vmax.f32 %v2040_v36, 0.0  ;;  %v2042_v61 = vpop.f32.mrb[59].mxu0  ;;  %v1548_v38 = vpop.permute.xlu1 %1547  ;;  %v2731_v39 = vrot.slane %v2729_v40, 1 }
 0x28a   : > { %4781 = vmatprep.mubr.msk.bf16.mxu0 %vm1221_vm2, %v1548_v38  ;;  %v1721_v21 = vsel %vm1638_vm5, %v1621_v6, %v1548_v38  ;;  %v2817_v37 = vshll.u32 %v6260_v55, 16  ;;  %v3159_v20 = vrot.slane %v6235_v14, 1  ;;  %v1476_v40 = vpop.permute.xlu0 %1475  ;;  %v2747_v61 = vor.u32 %v2746_v10, %v2742_v52 }
 0x28b   : > { %v6269_v47 = vsel %vm2336_vm6, %v6252_v43, %v2440_v53  ;;  %v6271_v33 = vpack.c.bf16 %v2241_v29, %v2240_v8  ;;  %3047 = vrot.lane.b32.xlu0 %v2720_v22, %s5127_s26  ;;  %2140 = vmatmul.mubr.bf16.gmra.mrb[108].mxu0 %v1721_v21  ;;  %v2727_v8 = vor.u32 %v2726_v48, %v2722_v31  ;;  %v2764_v6 = vshll.u32 %v6282_v50, 16 }
 0x28c   : > { %v2809_v44 = vshll.u32 %v6269_v47, 16  ;;  %v2813_v57 = vshrl.u32 %v6269_v47, 16  ;;  %v2819_v22 = vrot.slane %v2817_v37, 1  ;;  %v2753_v31 = vshrl.u32 %v6131_v63, 16 }
 0x28d   : > { %v1220_v28 = vpop.permute.xlu1 %1219  ;;  %v1623_v48 = vsel %vm1565_vm4, %v6006_v27, %v1476_v40  ;;  %v2732_v10 = vsel %vm559_vm1, %v2727_v8, %v2731_v39  ;;  %v2416_v27 = vshll.u32 %v6178_v4, 16  ;;  %v2766_v40 = vrot.slane %v2764_v6, 1 }
 0x28e   : > { %v2045_v5 = vpop.f32.mrb[60].mxu0  ;;  %v6291_v36 = vrot.slane %v2809_v44, 1  ;;  %v1382_v51 = vsel %vm1302_vm3, %v1301_v45, %v1220_v28  ;;  %v2752_v44 = vsel %vm559_vm1, %v2747_v61, %v2751_v1  ;;  %v6325_v8 = vsel %vm5983_vm8, %v6169_v35, 0  ;;  %v1478_v4 = vpop.permute.xlu0 %1477 }
 0x28f   : > { %v2047_v53 = vpop.f32.mrb[61].mxu0  ;;  %3245 = vrot.lane.b32.xlu0 %v3158_v60, %s5126_s25  ;;  %1563 = vrot.lane.b32.xlu1 %v1382_v51, %s5130_s29  ;;  %v2242_v62 = vmax.f32 %v2045_v5, 0.0  ;;  %v2755_v5 = vor.u32 %v2753_v31, %v2751_v1  ;;  %v2737_v51 = vshll.u32 %v6297_v16, 16  ;;  %v2443_v1 = vshrl.u32 %v6271_v33, 16 }
 0x290   : > { %v2048_v29 = vpop.f32.mrb[62].mxu0  ;;  %v2815_v38 = vor.u32 %v2813_v57, %v6291_v36  ;;  %v2769_v57 = vshll.u32 %v6176_v13, 16  ;;  %v2733_v53 = vshrl.u32 %v6089_v24, 16  ;;  %v2759_v61 = vrot.slane %v2757_v49, 1 }
 0x291   : > { %v2243_v21 = vmax.f32 %v2048_v29, 0.0  ;;  %v2050_v45 = vpop.f32.mrb[63].mxu0  ;;  %v1550_v60 = vpop.permute.xlu1 %1549  ;;  %v2762_v6 = vshrl.u32 %v6282_v50, 16  ;;  %v2739_v49 = vrot.slane %v2737_v51, 1 }
 0x292   : > { %v6312_v52 = vsel %vm559_vm1, %v2815_v38, %v2819_v22  ;;  %4782 = vmatprep.mubr.msk.bf16.mxu0 %vm1221_vm2, %v1550_v60  ;;  %v1724_v37 = vsel %vm1638_vm5, %v1623_v48, %v1550_v60  ;;  %v2418_v38 = vor.u32 %v2416_v27, %v6199_v32  ;;  %v3161_v22 = vsel %vm1040_vm0, %v3159_v20, %v3160_v11 }
 0x293   : > { %v2315_v28 = vpack.c.bf16 %v2243_v21, %v2242_v62  ;;  %3053 = vrot.lane.b32.xlu0 %v2752_v44, %s5127_s26  ;;  %3049 = vrot.lane.b32.xlu1 %v2732_v10, %s5127_s26  ;;  %v2735_v62 = vor.u32 %v2733_v53, %v2731_v39  ;;  %v2760_v35 = vsel %vm559_vm1, %v2755_v5, %v2759_v61  ;;  %v2771_v31 = vrot.slane %v2769_v57, 1 }
 0x294   : > { %2148 = vmatmul.mubr.bf16.gmra.mrb[112].mxu0 %v1724_v37  ;;  %v2777_v48 = vshll.u32 %v6325_v8, 16  ;;  %v2767_v32 = vor.u32 %v2766_v40, %v2762_v6  ;;  %v6339_v60 = vrot.slane %v2443_v1, 7  ;;  %v1625_v20 = vsel %vm1565_vm4, %v6048_v0, %v1478_v4  ;;  %v1480_v4 = vpop.permute.xlu0 %1479 }
 0x295   : > { %v2450_v29 = vshrl.u32 %v2315_v28, 16  ;;  %v2453_v45 = vshll.u32 %v2315_v28, 16  ;;  %v2773_v10 = vshrl.u32 %v6176_v13, 16  ;;  %v6347_v28 = vsel %vm5983_vm8, 0, %v2418_v38 }
 0x296   : > { %v2772_v57 = vsel %vm559_vm1, %v2767_v32, %v2771_v31  ;;  %v2740_v0 = vsel %vm559_vm1, %v2735_v62, %v2739_v49  ;;  %v2431_v27 = vshll.u32 %v6208_v15, 16  ;;  %v3162_v40 = vrot.slane %v6297_v16, 1 }
 0x297   : > { %v6333_v21 = vrot.slane %v2450_v29, 7  ;;  %3055 = vrot.lane.b32.xlu0 %v2760_v35, %s5127_s26  ;;  %3247 = vrot.lane.b32.xlu1 %v3161_v22, %s5126_s25  ;;  %v2775_v51 = vor.u32 %v2773_v10, %v2771_v31  ;;  %v2779_v53 = vrot.slane %v2777_v48, 1  ;;  %v2784_v1 = vshll.u32 %v6347_v28, 16 }
 0x298   : > { %v2341_v29 = vshll.u32 %v5959_v56, 16  ;;  %v2668_v61 = vsel %vm5983_vm8, %v6196_v26, 0  ;;  %v2433_v38 = vor.u32 %v2431_v27, %v6252_v43  ;;  %v3163_v15 = vsel %vm1040_vm0, %v3160_v11, %v3162_v40 }
 0x299   : > { %v2455_v39 = vor.u32 %v2453_v45, %v6333_v21  ;;  %v1552_v44 = vpop.permute.xlu1 %1551  ;;  %v2780_v22 = vsel %vm559_vm1, %v2775_v51, %v2779_v53  ;;  %v3175_v16 = vrot.slane %v6206_v19, 1  ;;  %v3165_v6 = vrot.slane %v6131_v63, 1 }
 0x29a   : > { %4783 = vmatprep.mubr.msk.bf16.mxu0 %vm1221_vm2, %v1552_v44  ;;  %v1727_v37 = vsel %vm1638_vm5, %v1625_v20, %v1552_v44  ;;  %v2789_v62 = vshll.u32 %v6206_v19, 16  ;;  %v2343_v56 = vor.u32 %v2341_v29, %v5979_v25  ;;  %v1627_v26 = vsel %vm1565_vm4, %v6069_v2, %v1480_v4 }
 0x29b   : > { %v6353_v5 = vsel %vm2336_vm6, %v6339_v60, %v2455_v39  ;;  %3057 = vrot.lane.b32.xlu0 %v2772_v57, %s5127_s26  ;;  %3051 = vrot.lane.b32.xlu1 %v2740_v0, %s5127_s26  ;;  %v3177_v45 = vrot.slane %v2668_v61, 1  ;;  %v3164_v11 = vrot.slane %v6244_v58, 1  ;;  %v2786_v35 = vrot.slane %v2784_v1, 1  ;;  %v1482_v0 = vpop.permute.xlu0 %1481 }
 0x29c   : > { %2156 = vmatmul.mubr.bf16.gmra.mrb[116].mxu0 %v1727_v37  ;;  %v6382_v31 = vsel %vm5983_vm8, 0, %v2433_v38  ;;  %v2782_v2 = vshrl.u32 %v6347_v28, 16  ;;  %v2791_v49 = vrot.slane %v2789_v62, 1  ;;  %v6393_v20 = vsel %vm5983_vm8, 0, %v2343_v56 }
 0x29d   : > { %v3178_v48 = vsel %vm1040_vm0, %v3175_v16, %v3177_v45  ;;  %v3166_v32 = vsel %vm1040_vm0, %v3164_v11, %v3165_v6  ;;  %v3167_v39 = vrot.slane %v6289_v34, 1  ;;  %v2797_v44 = vshll.u32 %v2668_v61, 16 }
 0x29e   : > { %v2787_v10 = vor.u32 %v2786_v35, %v2782_v2  ;;  %v2793_v37 = vshrl.u32 %v6206_v19, 16  ;;  %v2804_v57 = vshll.u32 %v6382_v31, 16  ;;  %v3170_v53 = vrot.slane %v6176_v13, 1 }
 0x29f   : > { %3059 = vrot.lane.b32.xlu0 %v2780_v22, %s5127_s26  ;;  %3249 = vrot.lane.b32.xlu1 %v3163_v15, %s5126_s25  ;;  %v3168_v27 = vsel %vm1040_vm0, %v3165_v6, %v3167_v39  ;;  %v2684_v34 = vshll.u32 %v6393_v20, 16  ;;  %v1629_v1 = vsel %vm1565_vm4, %v6096_v59, %v1482_v0  ;;  %v2799_v61 = vrot.slane %v2797_v44, 1 }
 0x2a0   : > { %v2792_v51 = vsel %vm559_vm1, %v2787_v10, %v2791_v49  ;;  %v2795_v40 = vor.u32 %v2793_v37, %v2791_v49  ;;  %v3169_v38 = vrot.slane %v6282_v50, 1  ;;  %v2806_v4 = vrot.slane %v2804_v57, 1 }
 0x2a1   : > { %v1554_v43 = vpop.permute.xlu1 %1553  ;;  %v2802_v62 = vshrl.u32 %v6382_v31, 16  ;;  %v2689_v56 = vshll.u32 %v6000_v41, 16  ;;  %v2682_v35 = vshrl.u32 %v6393_v20, 16  ;;  %v3149_v2 = vrot.slane %v6393_v20, 1 }
 0x2a2   : > { %4784 = vmatprep.mubr.msk.bf16.mxu0 %vm1221_vm2, %v1554_v43  ;;  %v1730_v25 = vsel %vm1638_vm5, %v1627_v26, %v1554_v43  ;;  %v2800_v22 = vsel %vm559_vm1, %v2795_v40, %v2799_v61  ;;  %v3171_v6 = vsel %vm1040_vm0, %v3169_v38, %v3170_v53  ;;  %v3172_v26 = vrot.slane %v6325_v8, 1 }
 0x2a3   : > { %3261 = vrot.lane.b32.xlu0 %v3178_v48, %s5126_s25  ;;  %3251 = vrot.lane.b32.xlu1 %v3166_v32, %s5126_s25  ;;  %v2807_v59 = vor.u32 %v2806_v4, %v2802_v62  ;;  %v2686_v43 = vrot.slane %v2684_v34, 1  ;;  %v3174_v8 = vrot.slane %v6347_v28, 1  ;;  %v2693_v49 = vshrl.u32 %v6000_v41, 16 }
 0x2a4   : > { %2164 = vmatmul.mubr.bf16.gmra.mrb[120].mxu0 %v1730_v25  ;;  %v3173_v11 = vsel %vm1040_vm0, %v3170_v53, %v3172_v26  ;;  %v2691_v25 = vrot.slane %v2689_v56, 1  ;;  %v2697_v39 = vshll.u32 %v5989_v54, 16  ;;  %v3151_v44 = vsel %vm1040_vm0, %v3149_v2, %v3150_v42 }
 0x2a5   : > { %v2812_v45 = vsel %vm559_vm1, %v2807_v59, %v6291_v36  ;;  %v2687_v48 = vor.u32 %v2686_v43, %v2682_v35  ;;  %v3176_v36 = vsel %vm1040_vm0, %v3174_v8, %v3175_v16  ;;  %v5078_v43 = vld [vmem:[%s7487_s2 + $0x8] sm:$0xff]  }
 0x2a6   : > { %v2695_v10 = vor.u32 %v2693_v49, %v2691_v25  ;;  %v2699_v37 = vrot.slane %v2697_v39, 1 }
 0x2a7   : > { %3061 = vrot.lane.b32.xlu0 %v2792_v51, %s5127_s26  ;;  %3253 = vrot.lane.b32.xlu1 %v3168_v27, %s5126_s25  ;;  %v2692_v32 = vsel %vm559_vm1, %v2687_v48, %v2691_v25 }
 0x2a8   : > { %v2700_v57 = vsel %vm559_vm1, %v2695_v10, %v2699_v37 }
 0x2a9   : > { %v1556_v29 = vpop.permute.xlu1 %1555 }
 0x2aa   : > { %4785 = vmatprep.mubr.msk.bf16.mxu0 %vm1221_vm2, %v1556_v29  ;;  %v1733_v15 = vsel %vm1638_vm5, %v1629_v1, %v1556_v29 }
 0x2ab   : > { %3063 = vrot.lane.b32.xlu0 %v2800_v22, %s5127_s26  ;;  %3255 = vrot.lane.b32.xlu1 %v3171_v6, %s5126_s25 }
 0x2ac   : > { %2172 = vmatmul.mubr.bf16.gmra.mrb[124].mxu0 %v1733_v15  ;;  %v5077_v15 = vld [vmem:[%s7487_s2] sm:$0xff]  }
 0x2ad   : > { %3914 = vmatpush1.bf16.msra.mxu1 %v5077_v15 }
 0x2ae   : > { %3915 = vmatprep.subr.bf16.mxu1 %v5128_v18 }
 0x2af   : > { %3065 = vrot.lane.b32.xlu0 %v2812_v45, %s5127_s26  ;;  %3257 = vrot.lane.b32.xlu1 %v3173_v11, %s5126_s25  ;;  %v1484_v45 = vpop.permute.xlu0 %1483 }
 0x2b0   : > { %v1631_v2 = vsel %vm1565_vm4, %v6112_v3, %v1484_v45  ;;  %v5080_v3 = vld [vmem:[%s7487_s2 + $0x18] sm:$0xff]  }
 0x2b1   : > { %3916 = vmatpush1.bf16.msra.mxu1 %v5078_v43 }
 0x2b2   : > { %3917 = vmatprep.subr.bf16.mxu1 %v5128_v18 }
 0x2b3   : > { %3041 = vrot.lane.b32.xlu1 %v2692_v32, %s5127_s26 }
 0x2b7   : > { %3259 = vrot.lane.b32.xlu1 %v3176_v36, %s5126_s25 }
 0x2bb   : > { %3239 = vrot.lane.b32.xlu1 %v3151_v44, %s5126_s25  ;;  %v5079_v44 = vld [vmem:[%s7487_s2 + $0x10] sm:$0xff]  }
 0x2bc   : > { %3918 = vmatpush1.bf16.msra.mxu1 %v5079_v44 }
 0x2bd   : > { %3919 = vmatprep.subr.bf16.mxu1 %v5128_v18 }
 0x2bf   : > { %3043 = vrot.lane.b32.xlu1 %v2700_v57, %s5127_s26 }
 0x2c0   : > { %3920 = vmatpush1.bf16.msra.mxu1 %v5080_v3 }
 0x2c1   : > { %3921 = vmatprep.subr.bf16.mxu1 %v5128_v18 }
 0x2c9   : > { %v2053_v16 = vpop.f32.mrb[64].mxu0 }
 0x2ca   : > { %v2055_v0 = vpop.f32.mrb[65].mxu0  ;;  %v2244_v27 = vmax.f32 %v2053_v16, 0.0 }
 0x2cb   : > { %v2056_v51 = vpop.f32.mrb[66].mxu0  ;;  %v1486_v0 = vpop.permute.xlu0 %1485 }
 0x2cc   : > { %v2245_v40 = vmax.f32 %v2056_v51, 0.0  ;;  %v2058_v53 = vpop.f32.mrb[67].mxu0 }
 0x2ce   : > { %v6440_v34 = vpack.c.bf16 %v2245_v40, %v2244_v27 }
 0x2d0   : > { %v2458_v22 = vshrl.u32 %v6440_v34, 16 }
 0x2d2   : > { %v6452_v11 = vrot.slane %v2458_v22, 7  ;;  %v5082_v22 = vld [vmem:[%s7487_s2 + $0x28] sm:$0xff]  }
 0x2d6   : > { %v2061_v54 = vpop.f32.mrb[68].mxu0 }
 0x2d7   : > { %v2063_v1 = vpop.f32.mrb[69].mxu0  ;;  %v2246_v42 = vmax.f32 %v2061_v54, 0.0  ;;  %v5081_v54 = vld [vmem:[%s7487_s2 + $0x20] sm:$0xff]  }
 0x2d8   : > { %v2064_v29 = vpop.f32.mrb[70].mxu0  ;;  %3922 = vmatpush1.bf16.msra.mxu1 %v5081_v54 }
 0x2d9   : > { %v2247_v61 = vmax.f32 %v2064_v29, 0.0  ;;  %v2066_v38 = vpop.f32.mrb[71].mxu0  ;;  %3923 = vmatprep.subr.bf16.mxu1 %v5128_v18 }
 0x2db   : > { %v2317_v4 = vpack.c.bf16 %v2247_v61, %v2246_v42 }
 0x2dc   : > { %3924 = vmatpush1.bf16.msra.mxu1 %v5082_v22 }
 0x2dd   : > { %v2465_v6 = vshrl.u32 %v2317_v4, 16  ;;  %v2468_v56 = vshll.u32 %v2317_v4, 16  ;;  %3925 = vmatprep.subr.bf16.mxu1 %v5128_v18 }
 0x2df   : > { %v6446_v62 = vrot.slane %v2465_v6, 7  ;;  %v2069_v59 = vpop.f32.mrb[72].mxu0 }
 0x2e0   : > { %v2071_v26 = vpop.f32.mrb[73].mxu0  ;;  %v2248_v48 = vmax.f32 %v2069_v59, 0.0 }
 0x2e1   : > { %v2470_v35 = vor.u32 %v2468_v56, %v6446_v62  ;;  %v2072_v25 = vpop.f32.mrb[74].mxu0 }
 0x2e2   : > { %v2249_v32 = vmax.f32 %v2072_v25, 0.0  ;;  %v2074_v8 = vpop.f32.mrb[75].mxu0  ;;  %v1633_v25 = vsel %vm1565_vm4, %v6134_v9, %v1486_v0 }
 0x2e3   : > { %v6457_v36 = vsel %vm2336_vm6, %v6452_v11, %v2470_v35 }
 0x2e4   : > { %v6462_v49 = vpack.c.bf16 %v2249_v32, %v2248_v48  ;;  %v1558_v39 = vpop.permute.xlu1 %1557  ;;  %v1488_v29 = vpop.permute.xlu0 %1487 }
 0x2e5   : > { %4786 = vmatprep.mubr.msk.bf16.mxu0 %vm1221_vm2, %v1558_v39  ;;  %v1736_v10 = vsel %vm1638_vm5, %v1631_v2, %v1558_v39  ;;  %v5083_v39 = vld [vmem:[%s7487_s2 + $0x30] sm:$0xff]  }
 0x2e6   : > { %2180 = vmatmul.mubr.bf16.gmra.mrb[128].mxu0 %v1736_v10  ;;  %v2473_v1 = vshrl.u32 %v6462_v49, 16  ;;  %3926 = vmatpush1.bf16.msra.mxu1 %v5083_v39 }
 0x2e7   : > { %v2077_v37 = vpop.f32.mrb[76].mxu0  ;;  %3927 = vmatprep.subr.bf16.mxu1 %v5128_v18 }
 0x2e8   : > { %v2079_v57 = vpop.f32.mrb[77].mxu0  ;;  %v2250_v51 = vmax.f32 %v2077_v37, 0.0  ;;  %v6484_v56 = vrot.slane %v2473_v1, 7  ;;  %v5084_v37 = vld [vmem:[%s7487_s2 + $0x38] sm:$0xff]   ;;  %v3180_v1 = vrot.slane %v6269_v47, 1 }
 0x2e9   : > { %v2080_v16 = vpop.f32.mrb[78].mxu0 }
 0x2ea   : > { %v2251_v27 = vmax.f32 %v2080_v16, 0.0  ;;  %v2082_v40 = vpop.f32.mrb[79].mxu0  ;;  %3928 = vmatpush1.bf16.msra.mxu1 %v5084_v37 }
 0x2eb   : > { %v1635_v40 = vsel %vm1565_vm4, %v6147_v12, %v1488_v29  ;;  %3929 = vmatprep.subr.bf16.mxu1 %v5128_v18  ;;  %v5085_v12 = vld [vmem:[%s7487_s2 + $0x40] sm:$0xff]   ;;  %v2446_v29 = vshll.u32 %v6271_v33, 16 }
 0x2ec   : > { %v2319_v53 = vpack.c.bf16 %v2251_v27, %v2250_v51 }
 0x2ed   : > { %v2448_v22 = vor.u32 %v2446_v29, %v6339_v60 }
 0x2ee   : > { %v2480_v42 = vshrl.u32 %v2319_v53, 16  ;;  %v2483_v4 = vshll.u32 %v2319_v53, 16  ;;  %3930 = vmatpush1.bf16.msra.mxu1 %v5085_v12 }
 0x2ef   : > { %v2085_v61 = vpop.f32.mrb[80].mxu0 }
 0x2f0   : > { %v6479_v38 = vrot.slane %v2480_v42, 7  ;;  %v2087_v15 = vpop.f32.mrb[81].mxu0  ;;  %v2252_v26 = vmax.f32 %v2085_v61, 0.0 }
 0x2f1   : > { %v2088_v6 = vpop.f32.mrb[82].mxu0  ;;  %v1490_v35 = vpop.permute.xlu0 %1489 }
 0x2f2   : > { %v2485_v59 = vor.u32 %v2483_v4, %v6479_v38  ;;  %v2253_v43 = vmax.f32 %v2088_v6, 0.0  ;;  %v2090_v45 = vpop.f32.mrb[83].mxu0  ;;  %v1560_v48 = vpop.permute.xlu1 %1559  ;;  %v3179_v4 = vrot.slane %v6382_v31, 1  ;;  %v1637_v37 = vsel %vm1565_vm4, %v6160_v23, %v1490_v35 }
 0x2f3   : > { %4787 = vmatprep.mubr.msk.bf16.mxu0 %vm1221_vm2, %v1560_v48  ;;  %v1739_v2 = vsel %vm1638_vm5, %v1633_v25, %v1560_v48 }
 0x2f4   : > { %v6492_v32 = vsel %vm2336_vm6, %v6484_v56, %v2485_v59  ;;  %v6494_v8 = vpack.c.bf16 %v2253_v43, %v2252_v26  ;;  %2188 = vmatmul.mubr.bf16.gmra.mrb[132].mxu0 %v1739_v2  ;;  %v3181_v59 = vsel %vm1040_vm0, %v3179_v4, %v3180_v1 }
 0x2f5   : > { %v3046_v44 = vpop.permute.xlu0 %3045 }
 0x2f6   : > { %v3316_v3 = vsel %vm1221_vm2, %v6193_v46, %v3046_v44  ;;  %v2488_v61 = vshrl.u32 %v6494_v8, 16 }
 0x2f7   : > { %v2093_v9 = vpop.f32.mrb[84].mxu0 }
 0x2f8   : > { %v2095_v10 = vpop.f32.mrb[85].mxu0  ;;  %v2254_v16 = vmax.f32 %v2093_v9, 0.0  ;;  %v6531_v33 = vrot.slane %v2488_v61, 7 }
 0x2f9   : > { %v2096_v57 = vpop.f32.mrb[86].mxu0  ;;  %v3244_v27 = vpop.permute.xlu0 %3243  ;;  %v6538_v10 = vsel %vm5983_vm8, 0, %v2448_v22 }
 0x2fa   : > { %v2255_v0 = vmax.f32 %v2096_v57, 0.0  ;;  %v2098_v51 = vpop.f32.mrb[87].mxu0  ;;  %v6510_v53 = vsel %vm1302_vm3, %v3316_v3, %v3244_v27  ;;  %v1562_v54 = vpop.permute.xlu1 %1561  ;;  %v2824_v23 = vshll.u32 %v6538_v10, 16  ;;  %v2822_v22 = vshrl.u32 %v6538_v10, 16 }
 0x2fb   : > { %4788 = vmatprep.mubr.msk.bf16.mxu0 %vm1221_vm2, %v1562_v54  ;;  %3487 = vrot.lane.b32.xlu0 %v6510_v53, %s5129_s28  ;;  %v1742_v46 = vsel %vm1638_vm5, %v1635_v40, %v1562_v54  ;;  %v2829_v40 = vshll.u32 %v6353_v5, 16 }
 0x2fc   : > { %v2321_v42 = vpack.c.bf16 %v2255_v0, %v2254_v16  ;;  %2196 = vmatmul.mubr.bf16.gmra.mrb[136].mxu0 %v1742_v46  ;;  %v2826_v29 = vrot.slane %v2824_v23, 1 }
 0x2fd   : > { %v3048_v15 = vpop.permute.xlu0 %3047 }
 0x2fe   : > { %v2495_v18 = vshrl.u32 %v2321_v42, 16  ;;  %v2498_v43 = vshll.u32 %v2321_v42, 16  ;;  %v3318_v2 = vsel %vm1221_vm2, %v6042_v17, %v3048_v15 }
 0x2ff   : > { %v2101_v6 = vpop.f32.mrb[88].mxu0  ;;  %3263 = vrot.lane.b32.xlu0 %v3181_v59, %s5126_s25 }
 0x300   : > { %v6528_v26 = vrot.slane %v2495_v18, 7  ;;  %v2103_v45 = vpop.f32.mrb[89].mxu0  ;;  %v2256_v60 = vmax.f32 %v2101_v6, 0.0  ;;  %v2831_v6 = vrot.slane %v2829_v40, 1 }
 0x301   : > { %v2104_v25 = vpop.f32.mrb[90].mxu0  ;;  %v3246_v9 = vpop.permute.xlu0 %3245  ;;  %v6574_v45 = vsel %vm5983_vm8, %v6333_v21, 0 }
 0x302   : > { %v2500_v48 = vor.u32 %v2498_v43, %v6528_v26  ;;  %v2257_v39 = vmax.f32 %v2104_v25, 0.0  ;;  %v2106_v44 = vpop.f32.mrb[91].mxu0  ;;  %v6543_v57 = vsel %vm1302_vm3, %v3318_v2, %v3246_v9  ;;  %v1564_v3 = vpop.permute.xlu1 %1563  ;;  %v2833_v9 = vshrl.u32 %v6353_v5, 16 }
 0x303   : > { %4789 = vmatprep.mubr.msk.bf16.mxu0 %vm1221_vm2, %v1564_v3  ;;  %3489 = vrot.lane.b32.xlu0 %v6543_v57, %s5129_s28  ;;  %v1745_v0 = vsel %vm1638_vm5, %v1637_v37, %v1564_v3 }
 0x304   : > { %v6547_v16 = vsel %vm2336_vm6, %v6531_v33, %v2500_v48  ;;  %v6549_v17 = vpack.c.bf16 %v2257_v39, %v2256_v60  ;;  %2204 = vmatmul.mubr.bf16.gmra.mrb[140].mxu0 %v1745_v0  ;;  %v2837_v39 = vshll.u32 %v6574_v45, 16  ;;  %v2835_v23 = vor.u32 %v2833_v9, %v2831_v6 }
 0x305   : > { %v3187_v9 = vrot.slane %v6574_v45, 1 }
 0x306   : > { %v3050_v35 = vpop.permute.xlu1 %3049  ;;  %v2503_v59 = vshrl.u32 %v6549_v17, 16 }
 0x307   : > { %v2109_v51 = vpop.f32.mrb[92].mxu0  ;;  %3067 = vrot.lane.b32.xlu0 %v6312_v52, %s5127_s26  ;;  %v3320_v61 = vsel %vm1221_vm2, %v6235_v14, %v3050_v35  ;;  %v2461_v52 = vshll.u32 %v6440_v34, 16  ;;  %v2827_v14 = vor.u32 %v2826_v29, %v2822_v22  ;;  %v2839_v35 = vrot.slane %v2837_v39, 1 }
 0x308   : > { %v2111_v27 = vpop.f32.mrb[93].mxu0  ;;  %v2258_v42 = vmax.f32 %v2109_v51, 0.0  ;;  %v6584_v44 = vrot.slane %v2503_v59, 7  ;;  %v3182_v51 = vrot.slane %v6260_v55, 1 }
 0x309   : > { %v2112_v54 = vpop.f32.mrb[94].mxu0  ;;  %v2463_v25 = vor.u32 %v2461_v52, %v6452_v11  ;;  %v2832_v60 = vsel %vm559_vm1, %v2827_v14, %v2831_v6  ;;  %v3054_v27 = vpop.permute.xlu0 %3053  ;;  %v2840_v40 = vsel %vm559_vm1, %v2835_v23, %v2839_v35  ;;  %v3184_v6 = vrot.slane %v6538_v10, 1 }
 0x30a   : > { %v2259_v46 = vmax.f32 %v2112_v54, 0.0  ;;  %v2114_v12 = vpop.f32.mrb[95].mxu0  ;;  %v3248_v4 = vpop.permute.xlu1 %3247  ;;  %v3183_v54 = vsel %vm1040_vm0, %v3180_v1, %v3182_v51  ;;  %v3324_v55 = vsel %vm1221_vm2, %v6244_v58, %v3054_v27  ;;  %v2476_v1 = vshll.u32 %v6462_v49, 16 }
 0x30b   : > { %v6562_v15 = vsel %vm1302_vm3, %v3320_v61, %v3248_v4  ;;  %v6590_v11 = vsel %vm5983_vm8, 0, %v2463_v25  ;;  %v2671_v58 = vsel %vm5983_vm8, %v6446_v62, 0  ;;  %v2869_v35 = vshll.u32 %v6492_v32, 16 }
 0x30c   : > { %v2323_v18 = vpack.c.bf16 %v2259_v46, %v2258_v42  ;;  %3491 = vrot.lane.b32.xlu0 %v6562_v15, %s5129_s28  ;;  %3553 = vrot.lane.b32.xlu1 %v6562_v15, %s5130_s29  ;;  %v2849_v42 = vshll.u32 %v6457_v36, 16  ;;  %v2842_v61 = vshrl.u32 %v6590_v11, 16  ;;  %v2478_v52 = vor.u32 %v2476_v1, %v6484_v56 }
 0x30d   : > { %v3056_v59 = vpop.permute.xlu0 %3055  ;;  %v2857_v25 = vshll.u32 %v2671_v58, 16 }
 0x30e   : > { %v2510_v43 = vshrl.u32 %v2323_v18, 16  ;;  %v3052_v48 = vpop.permute.xlu1 %3051  ;;  %v2513_v34 = vshll.u32 %v2323_v18, 16  ;;  %v2851_v4 = vrot.slane %v2849_v42, 1  ;;  %v3185_v18 = vrot.slane %v6353_v5, 1 }
 0x30f   : > { %v3322_v37 = vsel %vm1221_vm2, %v6089_v24, %v3052_v48  ;;  %v2844_v24 = vshll.u32 %v6590_v11, 16  ;;  %v2853_v48 = vshrl.u32 %v6457_v36, 16  ;;  %v3326_v62 = vsel %vm1221_vm2, %v6131_v63, %v3056_v59 }
 0x310   : > { %v6577_v2 = vrot.slane %v2510_v43, 7  ;;  %3069 = vrot.lane.b32.xlu0 %v2832_v60, %s5127_s26  ;;  %3241 = vrot.lane.b32.xlu1 %v6015_v7, %s5126_s25  ;;  %v3186_v49 = vsel %vm1040_vm0, %v3184_v6, %v3185_v18  ;;  %v3188_v63 = vsel %vm1040_vm0, %v3185_v18, %v3187_v9  ;;  %v3190_v42 = vrot.slane %v6457_v36, 1 }
 0x311   : > { %v2846_v12 = vrot.slane %v2844_v24, 1  ;;  %v2855_v60 = vor.u32 %v2853_v48, %v2851_v4  ;;  %v3058_v39 = vpop.permute.xlu0 %3057  ;;  %v2873_v6 = vshrl.u32 %v6492_v32, 16 }
 0x312   : > { %v2515_v21 = vor.u32 %v2513_v34, %v6577_v2  ;;  %v3250_v3 = vpop.permute.xlu1 %3249  ;;  %v6638_v34 = vsel %vm5983_vm8, 0, %v2478_v52  ;;  %v3328_v24 = vsel %vm1221_vm2, %v6282_v50, %v3058_v39  ;;  %v3189_v50 = vrot.slane %v6590_v11, 1 }
 0x313   : > { %v6599_v7 = vsel %vm1302_vm3, %v3322_v37, %v3250_v3  ;;  %v2847_v22 = vor.u32 %v2846_v12, %v2842_v61  ;;  %v2864_v37 = vshll.u32 %v6638_v34, 16  ;;  %v2672_v61 = vsel %vm5983_vm8, %v6479_v38, 0 }
 0x314   : > { %v6596_v0 = vsel %vm2336_vm6, %v6584_v44, %v2515_v21  ;;  %3493 = vrot.lane.b32.xlu0 %v6599_v7, %s5129_s28  ;;  %3555 = vrot.lane.b32.xlu1 %v6599_v7, %s5130_s29  ;;  %v2859_v21 = vrot.slane %v2857_v25, 1  ;;  %v2877_v1 = vshll.u32 %v2672_v61, 16 }
 0x315   : > { %v2852_v43 = vsel %vm559_vm1, %v2847_v22, %v2851_v4  ;;  %v2866_v51 = vrot.slane %v2864_v37, 1  ;;  %v3060_v27 = vpop.permute.xlu0 %3059 }
 0x316   : > { %v3252_v46 = vpop.permute.xlu1 %3251  ;;  %v2860_v23 = vsel %vm559_vm1, %v2855_v60, %v2859_v21  ;;  %v3330_v38 = vsel %vm1221_vm2, %v6176_v13, %v3060_v27  ;;  %v2889_v60 = vshll.u32 %v6547_v16, 16 }
 0x317   : > { %v6617_v29 = vsel %vm1302_vm3, %v3324_v55, %v3252_v46  ;;  %v2491_v46 = vshll.u32 %v6494_v8, 16  ;;  %v3191_v8 = vsel %vm1040_vm0, %v3189_v50, %v3190_v42 }
 0x318   : > { %3071 = vrot.lane.b32.xlu0 %v2840_v40, %s5127_s26  ;;  %3265 = vrot.lane.b32.xlu1 %v3183_v54, %s5126_s25  ;;  %v2862_v40 = vshrl.u32 %v6638_v34, 16  ;;  %v2871_v54 = vrot.slane %v2869_v35, 1 }
 0x319   : > { %v2493_v4 = vor.u32 %v2491_v46, %v6531_v33  ;;  %v3262_v22 = vpop.permute.xlu0 %3261 }
 0x31a   : > { %v3254_v14 = vpop.permute.xlu1 %3253  ;;  %v2867_v55 = vor.u32 %v2866_v51, %v2862_v40  ;;  %v3194_v51 = vrot.slane %v6638_v34, 1 }
 0x31b   : > { %v6643_v56 = vsel %vm1302_vm3, %v3326_v62, %v3254_v14  ;;  %v6680_v52 = vsel %vm5983_vm8, 0, %v2493_v4  ;;  %v3192_v14 = vrot.slane %v2671_v58, 1 }
 0x31c   : > { %3495 = vrot.lane.b32.xlu0 %v6617_v29, %s5129_s28  ;;  %3557 = vrot.lane.b32.xlu1 %v6617_v29, %s5130_s29  ;;  %v2872_v18 = vsel %vm559_vm1, %v2867_v55, %v2871_v54  ;;  %v2884_v25 = vshll.u32 %v6680_v52, 16  ;;  %v2882_v37 = vshrl.u32 %v6680_v52, 16 }
 0x31d   : > { %v3062_v48 = vpop.permute.xlu0 %3061  ;;  %v3193_v13 = vsel %vm1040_vm0, %v3190_v42, %v3192_v14 }
 0x31e   : > { %v3256_v3 = vpop.permute.xlu1 %3255  ;;  %v2886_v21 = vrot.slane %v2884_v25, 1  ;;  %v3332_v9 = vsel %vm1221_vm2, %v6347_v28, %v3062_v48  ;;  %v6714_v28 = vsel %vm5983_vm8, %v6528_v26, 0 }
 0x31f   : > { %v6659_v45 = vsel %vm1302_vm3, %v3328_v24, %v3256_v3  ;;  %v2891_v3 = vrot.slane %v2889_v60, 1  ;;  %v2897_v42 = vshll.u32 %v6714_v28, 16 }
 0x320   : > { %3073 = vrot.lane.b32.xlu0 %v2852_v43, %s5127_s26  ;;  %3267 = vrot.lane.b32.xlu1 %v3186_v49, %s5126_s25  ;;  %v2875_v43 = vor.u32 %v2873_v6, %v2871_v54  ;;  %v2879_v49 = vrot.slane %v2877_v1, 1  ;;  %v2887_v35 = vor.u32 %v2886_v21, %v2882_v37  ;;  %v3197_v6 = vrot.slane %v2672_v61, 1 }
 0x321   : > { %v2899_v1 = vrot.slane %v2897_v42, 1 }
 0x322   : > { %v3258_v12 = vpop.permute.xlu1 %3257  ;;  %v2880_v62 = vsel %vm559_vm1, %v2875_v43, %v2879_v49  ;;  %v2892_v24 = vsel %vm559_vm1, %v2887_v35, %v2891_v3 }
 0x323   : > { %v6687_v59 = vsel %vm1302_vm3, %v3330_v38, %v3258_v12  ;;  %v2893_v12 = vshrl.u32 %v6547_v16, 16 }
 0x324   : > { %3497 = vrot.lane.b32.xlu0 %v6643_v56, %s5129_s28  ;;  %3559 = vrot.lane.b32.xlu1 %v6643_v56, %s5130_s29 }
 0x326   : > { %v6684_v33 = vpop.permute.xlu1 %3041 }
 0x328   : > { %3075 = vrot.lane.b32.xlu0 %v2860_v23, %s5127_s26  ;;  %3269 = vrot.lane.b32.xlu1 %v3188_v63, %s5126_s25  ;;  %v3195_v23 = vrot.slane %v6492_v32, 1  ;;  %v3064_v63 = vpop.permute.xlu0 %3063 }
 0x329   : > { %v3334_v40 = vsel %vm1221_vm2, %v6206_v19, %v3064_v63 }
 0x32a   : > { %v3260_v39 = vpop.permute.xlu1 %3259  ;;  %v3196_v27 = vsel %vm1040_vm0, %v3194_v51, %v3195_v23  ;;  %v6725_v50 = vsel %vm1302_vm3, %v3334_v40, %v3262_v22  ;;  %v3198_v43 = vsel %vm1040_vm0, %v3195_v23, %v3197_v6 }
 0x32b   : > { %v6702_v58 = vsel %vm1302_vm3, %v3332_v9, %v3260_v39 }
 0x32c   : > { %3499 = vrot.lane.b32.xlu0 %v6659_v45, %s5129_s28  ;;  %3561 = vrot.lane.b32.xlu1 %v6659_v45, %s5130_s29 }
 0x330   : > { %3077 = vrot.lane.b32.xlu0 %v2872_v18, %s5127_s26  ;;  %3271 = vrot.lane.b32.xlu1 %v3191_v8, %s5126_s25  ;;  %v2895_v8 = vor.u32 %v2893_v12, %v2891_v3 }
 0x332   : > { %v2900_v38 = vsel %vm559_vm1, %v2895_v8, %v2899_v1 }
 0x334   : > { %3501 = vrot.lane.b32.xlu0 %v6687_v59, %s5129_s28  ;;  %3563 = vrot.lane.b32.xlu1 %v6687_v59, %s5130_s29 }
 0x338   : > { %3079 = vrot.lane.b32.xlu0 %v2880_v62, %s5127_s26  ;;  %3273 = vrot.lane.b32.xlu1 %v3193_v13, %s5126_s25 }
 0x33c   : > { %3503 = vrot.lane.b32.xlu0 %v6702_v58, %s5129_s28  ;;  %3565 = vrot.lane.b32.xlu1 %v6702_v58, %s5130_s29 }
 0x340   : > { %3081 = vrot.lane.b32.xlu0 %v2892_v24, %s5127_s26  ;;  %3275 = vrot.lane.b32.xlu1 %v3196_v27, %s5126_s25 }
 0x341   : > { %v2117_v54 = vpop.f32.mrb[96].mxu0 }
 0x342   : > { %v2119_v46 = vpop.f32.mrb[97].mxu0  ;;  %v2260_v26 = vmax.f32 %v2117_v54, 0.0 }
 0x343   : > { %v2120_v55 = vpop.f32.mrb[98].mxu0 }
 0x344   : > { %v2261_v4 = vmax.f32 %v2120_v55, 0.0  ;;  %v2122_v18 = vpop.f32.mrb[99].mxu0  ;;  %3505 = vrot.lane.b32.xlu0 %v6725_v50, %s5129_s28  ;;  %3567 = vrot.lane.b32.xlu1 %v6725_v50, %s5130_s29 }
 0x346   : > { %v6731_v19 = vpack.c.bf16 %v2261_v4, %v2260_v26  ;;  %v2506_v4 = vshll.u32 %v6549_v17, 16 }
 0x348   : > { %3083 = vrot.lane.b32.xlu0 %v2900_v38, %s5127_s26  ;;  %3277 = vrot.lane.b32.xlu1 %v3198_v43, %s5126_s25  ;;  %v2518_v60 = vshrl.u32 %v6731_v19, 16  ;;  %v2508_v8 = vor.u32 %v2506_v4, %v6584_v44 }
 0x34a   : > { %v6740_v23 = vrot.slane %v2518_v60, 7 }
 0x34e   : > { %v2125_v22 = vpop.f32.mrb[100].mxu0 }
 0x34f   : > { %v2127_v49 = vpop.f32.mrb[101].mxu0  ;;  %v2262_v25 = vmax.f32 %v2125_v22, 0.0 }
 0x350   : > { %v2128_v14 = vpop.f32.mrb[102].mxu0 }
 0x351   : > { %v2263_v48 = vmax.f32 %v2128_v14, 0.0  ;;  %v2130_v62 = vpop.f32.mrb[103].mxu0  ;;  %v6756_v14 = vsel %vm5983_vm8, 0, %v2508_v8 }
 0x353   : > { %v2325_v13 = vpack.c.bf16 %v2263_v48, %v2262_v25  ;;  %v3066_v25 = vpop.permute.xlu0 %3065 }
 0x355   : > { %v2525_v39 = vshrl.u32 %v2325_v13, 16  ;;  %v2528_v9 = vshll.u32 %v2325_v13, 16 }
 0x356   : > { %v2133_v21 = vpop.f32.mrb[104].mxu0 }
 0x357   : > { %v6738_v61 = vrot.slane %v2525_v39, 7  ;;  %v2135_v37 = vpop.f32.mrb[105].mxu0  ;;  %v2264_v35 = vmax.f32 %v2133_v21, 0.0 }
 0x358   : > { %v2136_v3 = vpop.f32.mrb[106].mxu0 }
 0x359   : > { %v2530_v63 = vor.u32 %v2528_v9, %v6738_v61  ;;  %v2265_v51 = vmax.f32 %v2136_v3, 0.0  ;;  %v2138_v24 = vpop.f32.mrb[107].mxu0  ;;  %v2904_v9 = vshll.u32 %v6756_v14, 16  ;;  %v2909_v3 = vshll.u32 %v6596_v0, 16 }
 0x35a   : > { %v3336_v24 = vsel %vm1221_vm2, %v6382_v31, %v3066_v25  ;;  %v3240_v31 = vpop.permute.xlu1 %3239 }
 0x35b   : > { %v6745_v27 = vsel %vm2336_vm6, %v6740_v23, %v2530_v63  ;;  %v6747_v40 = vpack.c.bf16 %v2265_v51, %v2264_v35  ;;  %v2906_v51 = vrot.slane %v2904_v9, 1  ;;  %v6776_v8 = vrot.slane %v2909_v3, 1 }
 0x35d   : > { %v2533_v1 = vshrl.u32 %v6747_v40, 16 }
 0x35e   : > { %v2141_v54 = vpop.f32.mrb[108].mxu0 }
 0x35f   : > { %v2143_v42 = vpop.f32.mrb[109].mxu0  ;;  %v2266_v12 = vmax.f32 %v2141_v54, 0.0  ;;  %v6758_v48 = vrot.slane %v2533_v1, 7 }
 0x360   : > { %v2144_v46 = vpop.f32.mrb[110].mxu0 }
 0x361   : > { %v2267_v55 = vmax.f32 %v2144_v46, 0.0  ;;  %v2146_v26 = vpop.f32.mrb[111].mxu0  ;;  %v2902_v46 = vshrl.u32 %v6756_v14, 16 }
 0x363   : > { %v2327_v18 = vpack.c.bf16 %v2267_v55, %v2266_v12  ;;  %v3200_v12 = vrot.slane %v6547_v16, 1 }
 0x365   : > { %v2540_v6 = vshrl.u32 %v2327_v18, 16  ;;  %v2543_v43 = vshll.u32 %v2327_v18, 16 }
 0x367   : > { %v6752_v38 = vrot.slane %v2540_v6, 7  ;;  %v2149_v22 = vpop.f32.mrb[112].mxu0  ;;  %v2907_v6 = vor.u32 %v2906_v51, %v2902_v46 }
 0x368   : > { %v2151_v49 = vpop.f32.mrb[113].mxu0  ;;  %v2268_v13 = vmax.f32 %v2149_v22, 0.0 }
 0x369   : > { %v2545_v17 = vor.u32 %v2543_v43, %v6752_v38  ;;  %v2152_v62 = vpop.f32.mrb[114].mxu0  ;;  %v3199_v43 = vrot.slane %v6680_v52, 1 }
 0x36a   : > { %v2269_v44 = vmax.f32 %v2152_v62, 0.0  ;;  %v2154_v60 = vpop.f32.mrb[115].mxu0 }
 0x36b   : > { %v6763_v39 = vsel %vm2336_vm6, %v6758_v48, %v2545_v17  ;;  %v2912_v17 = vsel %vm559_vm1, %v2907_v6, %v6776_v8  ;;  %v3201_v62 = vsel %vm1040_vm0, %v3199_v43, %v3200_v12 }
 0x36c   : > { %v6765_v21 = vpack.c.bf16 %v2269_v44, %v2268_v13 }
 0x36d   : > { %v3488_v37 = vpop.permute.xlu0 %3487 }
 0x36e   : > { %v2548_v49 = vshrl.u32 %v6765_v21, 16 }
 0x36f   : > { %v2157_v63 = vpop.f32.mrb[116].mxu0 }
 0x370   : > { %v2159_v35 = vpop.f32.mrb[117].mxu0  ;;  %v2270_v55 = vmax.f32 %v2157_v63, 0.0  ;;  %v6793_v51 = vrot.slane %v2548_v49, 7 }
 0x371   : > { %v2160_v54 = vpop.f32.mrb[118].mxu0  ;;  %v3264_v42 = vpop.permute.xlu0 %3263 }
 0x372   : > { %v2271_v26 = vmax.f32 %v2160_v54, 0.0  ;;  %v6774_v4 = vsel %vm1302_vm3, %v3336_v24, %v3264_v42  ;;  %v2162_v18 = vpop.f32.mrb[119].mxu0  ;;  %v3044_v35 = vpop.permute.xlu1 %3043 }
 0x373   : > { %3507 = vrot.lane.b32.xlu0 %v6774_v4, %s5129_s28  ;;  %3569 = vrot.lane.b32.xlu1 %v6774_v4, %s5130_s29 }
 0x374   : > { %v2329_v1 = vpack.c.bf16 %v2271_v26, %v2270_v55  ;;  %v3312_v55 = vsel %vm1221_vm2, %v6393_v20, %v6684_v33 }
 0x375   : > { %v3490_v22 = vpop.permute.xlu0 %3489 }
 0x376   : > { %v2555_v25 = vshrl.u32 %v2329_v1, 16  ;;  %v2558_v60 = vshll.u32 %v2329_v1, 16  ;;  %v3384_v1 = vsel %vm1302_vm3, %v3312_v55, %v3240_v31 }
 0x377   : > { %v2165_v13 = vpop.f32.mrb[120].mxu0  ;;  %3085 = vrot.lane.b32.xlu0 %v2912_v17, %s5127_s26  ;;  %3279 = vrot.lane.b32.xlu1 %v3201_v62, %s5126_s25  ;;  %v3618_v6 = vsel %vm1565_vm4, %v3384_v1, %v3488_v37  ;;  %v6817_v1 = vsel %vm5983_vm8, %v6577_v2, 0 }
 0x378   : > { %v6791_v44 = vrot.slane %v2555_v25, 7  ;;  %v2167_v9 = vpop.f32.mrb[121].mxu0  ;;  %v2272_v54 = vmax.f32 %v2165_v13, 0.0 }
 0x379   : > { %v2168_v3 = vpop.f32.mrb[122].mxu0  ;;  %v3068_v63 = vpop.permute.xlu0 %3067 }
 0x37a   : > { %v2560_v24 = vor.u32 %v2558_v60, %v6791_v44  ;;  %v2273_v42 = vmax.f32 %v2168_v3, 0.0  ;;  %v2170_v46 = vpop.f32.mrb[123].mxu0  ;;  %v3314_v3 = vsel %vm1221_vm2, %v6000_v41, %v3044_v35 }
 0x37c   : > { %v6801_v26 = vsel %vm2336_vm6, %v6793_v51, %v2560_v24  ;;  %v6803_v18 = vpack.c.bf16 %v2273_v42, %v2272_v54  ;;  %v2521_v54 = vshll.u32 %v6731_v19, 16 }
 0x37e   : > { %v3492_v43 = vpop.permute.xlu0 %3491  ;;  %v3554_v49 = vpop.permute.xlu1 %3553  ;;  %v2563_v42 = vshrl.u32 %v6803_v18, 16 }
 0x37f   : > { %v2173_v25 = vpop.f32.mrb[124].mxu0  ;;  %4799 = vmatprep.mubr.msk.bf16.mxu1 %vm1221_vm2, %v3554_v49  ;;  %v3682_v17 = vsel %vm1638_vm5, %v3618_v6, %v3554_v49  ;;  %v2523_v6 = vor.u32 %v2521_v54, %v6740_v23  ;;  %v2913_v23 = vshrl.u32 %v6596_v0, 16  ;;  %v3622_v54 = vsel %vm1565_vm4, %v6510_v53, %v3492_v43 }
 0x380   : > { %v2175_v62 = vpop.f32.mrb[125].mxu0  ;;  %3946 = vmatmul.mubr.bf16.vlgmr.msra.gmra.mrb[0].mxu1 %v3682_v17  ;;  %v2274_v33 = vmax.f32 %v2173_v25, 0.0  ;;  %v2917_v17 = vshll.u32 %v6817_v1, 16 }
 0x381   : > { %v2176_v20 = vpop.f32.mrb[126].mxu0  ;;  %v6826_v62 = vrot.slane %v2563_v42, 7 }
 0x382   : > { %v2275_v13 = vmax.f32 %v2176_v20, 0.0  ;;  %v2178_v60 = vpop.f32.mrb[127].mxu0  ;;  %v3070_v9 = vpop.permute.xlu0 %3069 }
 0x383   : > { %v3242_v31 = vpop.permute.xlu1 %3241  ;;  %v3340_v53 = vsel %vm1221_vm2, %v6538_v10, %v3070_v9  ;;  %v3204_v10 = vrot.slane %v6756_v14, 1  ;;  %v6877_v9 = vsel %vm5983_vm8, %v6738_v61, 0 }
 0x384   : > { %v2331_v24 = vpack.c.bf16 %v2275_v13, %v2274_v33  ;;  %v3386_v37 = vsel %vm1302_vm3, %v3314_v3, %v3242_v31  ;;  %v3338_v33 = vsel %vm1221_vm2, %v6269_v47, %v3068_v63  ;;  %v2915_v31 = vor.u32 %v2913_v23, %v6776_v8 }
 0x385   : > { %v3620_v41 = vsel %vm1565_vm4, %v3386_v37, %v3490_v22  ;;  %v6832_v22 = vsel %vm5983_vm8, 0, %v2523_v6  ;;  %v2919_v37 = vrot.slane %v2917_v17, 1  ;;  %v3202_v47 = vrot.slane %v6714_v28, 1 }
 0x386   : > { %v2570_v46 = vshrl.u32 %v2331_v24, 16  ;;  %v3494_v55 = vpop.permute.xlu0 %3493  ;;  %v2573_v25 = vshll.u32 %v2331_v24, 16  ;;  %v2924_v63 = vshll.u32 %v6832_v22, 16  ;;  %v3205_v17 = vrot.slane %v6596_v0, 1 }
 0x387   : > { %v3556_v49 = vpop.permute.xlu1 %3555  ;;  %v2920_v8 = vsel %vm559_vm1, %v2915_v31, %v2919_v37  ;;  %v2937_v61 = vshll.u32 %v6877_v9, 16 }
 0x388   : > { %v6821_v35 = vrot.slane %v2570_v46, 7  ;;  %4800 = vmatprep.mubr.msk.bf16.mxu1 %vm1221_vm2, %v3556_v49  ;;  %v3685_v19 = vsel %vm1638_vm5, %v3620_v41, %v3556_v49  ;;  %v3203_v46 = vsel %vm1040_vm0, %v3200_v12, %v3202_v47  ;;  %v2929_v49 = vshll.u32 %v6745_v27, 16 }
 0x389   : > { %3954 = vmatmul.mubr.bf16.gmra.mrb[4].mxu1 %v3685_v19  ;;  %v2926_v28 = vrot.slane %v2924_v63, 1  ;;  %v2922_v12 = vshrl.u32 %v6832_v22, 16  ;;  %v3206_v37 = vsel %vm1040_vm0, %v3204_v10, %v3205_v17  ;;  %v3210_v10 = vrot.slane %v6745_v27, 1 }
 0x38a   : > { %v2575_v2 = vor.u32 %v2573_v25, %v6821_v35  ;;  %v3072_v20 = vpop.permute.xlu0 %3071  ;;  %v2931_v19 = vrot.slane %v2929_v49, 1 }
 0x38b   : > { %v3266_v13 = vpop.permute.xlu1 %3265  ;;  %v2927_v23 = vor.u32 %v2926_v28, %v2922_v12 }
 0x38c   : > { %v6838_v60 = vsel %vm2336_vm6, %v6826_v62, %v2575_v2  ;;  %v6841_v3 = vsel %vm1302_vm3, %v3338_v33, %v3266_v13  ;;  %v2536_v2 = vshll.u32 %v6747_v40, 16  ;;  %v3624_v13 = vsel %vm1565_vm4, %v6543_v57, %v3494_v55 }
 0x38d   : > { %3509 = vrot.lane.b32.xlu0 %v6841_v3, %s5129_s28  ;;  %3571 = vrot.lane.b32.xlu1 %v6841_v3, %s5130_s29  ;;  %v2932_v31 = vsel %vm559_vm1, %v2927_v23, %v2931_v19  ;;  %v3342_v55 = vsel %vm1221_vm2, %v6353_v5, %v3072_v20 }
 0x38e   : > { %v3496_v24 = vpop.permute.xlu0 %3495  ;;  %v2538_v33 = vor.u32 %v2536_v2, %v6758_v48  ;;  %v2933_v48 = vshrl.u32 %v6745_v27, 16 }
 0x38f   : > { %v3558_v42 = vpop.permute.xlu1 %3557  ;;  %v3626_v28 = vsel %vm1565_vm4, %v6562_v15, %v3496_v24 }
 0x390   : > { %4801 = vmatprep.mubr.msk.bf16.mxu1 %vm1221_vm2, %v3558_v42  ;;  %v3688_v6 = vsel %vm1638_vm5, %v3622_v54, %v3558_v42  ;;  %v6892_v57 = vsel %vm5983_vm8, 0, %v2538_v33  ;;  %v2551_v33 = vshll.u32 %v6765_v21, 16 }
 0x391   : > { %3087 = vrot.lane.b32.xlu0 %v2920_v8, %s5127_s26  ;;  %3281 = vrot.lane.b32.xlu1 %v3203_v46, %s5126_s25  ;;  %v2935_v8 = vor.u32 %v2933_v48, %v2931_v19  ;;  %v2939_v46 = vrot.slane %v2937_v61, 1  ;;  %v2944_v49 = vshll.u32 %v6892_v57, 16  ;;  %v2949_v19 = vshll.u32 %v6763_v39, 16 }
 0x392   : > { %3962 = vmatmul.mubr.bf16.gmra.mrb[8].mxu1 %v3688_v6  ;;  %v3074_v41 = vpop.permute.xlu0 %3073  ;;  %v3207_v6 = vrot.slane %v6817_v1, 1  ;;  %v2942_v23 = vshrl.u32 %v6892_v57, 16 }
 0x393   : > { %v3268_v43 = vpop.permute.xlu1 %3267  ;;  %v2946_v1 = vrot.slane %v2944_v49, 1  ;;  %v3344_v15 = vsel %vm1221_vm2, %v6590_v11, %v3074_v41  ;;  %v3209_v11 = vrot.slane %v6832_v22, 1  ;;  %v6930_v41 = vsel %vm5983_vm8, %v6752_v38, 0 }
 0x394   : > { %v6864_v25 = vsel %vm1302_vm3, %v3340_v53, %v3268_v43  ;;  %v2940_v53 = vsel %vm559_vm1, %v2935_v8, %v2939_v46  ;;  %v3208_v43 = vsel %vm1040_vm0, %v3205_v17, %v3207_v6  ;;  %v2951_v17 = vrot.slane %v2949_v19, 1 }
 0x395   : > { %3511 = vrot.lane.b32.xlu0 %v6864_v25, %s5129_s28  ;;  %3573 = vrot.lane.b32.xlu1 %v6864_v25, %s5130_s29  ;;  %v3211_v61 = vsel %vm1040_vm0, %v3209_v11, %v3210_v10  ;;  %v2957_v38 = vshll.u32 %v6930_v41, 16  ;;  %v3212_v49 = vrot.slane %v6877_v9, 1 }
 0x396   : > { %v3498_v63 = vpop.permute.xlu0 %3497 }
 0x397   : > { %v3560_v40 = vpop.permute.xlu1 %3559  ;;  %v3628_v21 = vsel %vm1565_vm4, %v6599_v7, %v3498_v63  ;;  %v2959_v6 = vrot.slane %v2957_v38, 1 }
 0x398   : > { %4802 = vmatprep.mubr.msk.bf16.mxu1 %vm1221_vm2, %v3560_v40  ;;  %v3691_v47 = vsel %vm1638_vm5, %v3624_v13, %v3560_v40  ;;  %v2947_v40 = vor.u32 %v2946_v1, %v2942_v23 }
 0x399   : > { %3089 = vrot.lane.b32.xlu0 %v2932_v31, %s5127_s26  ;;  %3283 = vrot.lane.b32.xlu1 %v3206_v37, %s5126_s25  ;;  %v2553_v31 = vor.u32 %v2551_v33, %v6793_v51  ;;  %v2953_v51 = vshrl.u32 %v6763_v39, 16  ;;  %v3214_v33 = vrot.slane %v6892_v57, 1 }
 0x39a   : > { %3970 = vmatmul.mubr.bf16.gmra.mrb[12].mxu1 %v3691_v47  ;;  %v3076_v20 = vpop.permute.xlu0 %3075  ;;  %v2952_v47 = vsel %vm559_vm1, %v2947_v40, %v2951_v17 }
 0x39b   : > { %v3270_v54 = vpop.permute.xlu1 %3269  ;;  %v6945_v7 = vsel %vm5983_vm8, 0, %v2553_v31  ;;  %v3346_v63 = vsel %vm1221_vm2, %v6457_v36, %v3076_v20  ;;  %v2955_v46 = vor.u32 %v2953_v51, %v2951_v17  ;;  %v3215_v17 = vrot.slane %v6763_v39, 1 }
 0x39c   : > { %v6897_v42 = vsel %vm1302_vm3, %v3342_v55, %v3270_v54 }
 0x39d   : > { %3513 = vrot.lane.b32.xlu0 %v6897_v42, %s5129_s28  ;;  %3575 = vrot.lane.b32.xlu1 %v6897_v42, %s5130_s29  ;;  %v2960_v20 = vsel %vm559_vm1, %v2955_v46, %v2959_v6 }
 0x39e   : > { %v3500_v13 = vpop.permute.xlu0 %3499 }
 0x39f   : > { %v3562_v5 = vpop.permute.xlu1 %3561  ;;  %v3630_v36 = vsel %vm1565_vm4, %v6617_v29, %v3500_v13 }
 0x3a0   : > { %4803 = vmatprep.mubr.msk.bf16.mxu1 %vm1221_vm2, %v3562_v5  ;;  %v3694_v12 = vsel %vm1638_vm5, %v3626_v28, %v3562_v5  ;;  %v2964_v28 = vshll.u32 %v6945_v7, 16 }
 0x3a1   : > { %3091 = vrot.lane.b32.xlu0 %v2940_v53, %s5127_s26  ;;  %3285 = vrot.lane.b32.xlu1 %v3208_v43, %s5126_s25  ;;  %v3213_v53 = vsel %vm1040_vm0, %v3210_v10, %v3212_v49 }
 0x3a2   : > { %3978 = vmatmul.mubr.bf16.gmra.mrb[16].mxu1 %v3694_v12  ;;  %v3078_v54 = vpop.permute.xlu0 %3077  ;;  %v2969_v12 = vshll.u32 %v6801_v26, 16  ;;  %v2966_v19 = vrot.slane %v2964_v28, 1 }
 0x3a3   : > { %v3272_v24 = vpop.permute.xlu1 %3271  ;;  %v3348_v29 = vsel %vm1221_vm2, %v6638_v34, %v3078_v54  ;;  %v6982_v34 = vsel %vm5983_vm8, %v6791_v44, 0 }
 0x3a4   : > { %v6917_v2 = vsel %vm1302_vm3, %v3344_v15, %v3272_v24  ;;  %v2962_v24 = vshrl.u32 %v6945_v7, 16  ;;  %v2971_v23 = vrot.slane %v2969_v12, 1 }
 0x3a5   : > { %3515 = vrot.lane.b32.xlu0 %v6917_v2, %s5129_s28  ;;  %3577 = vrot.lane.b32.xlu1 %v6917_v2, %s5130_s29 }
 0x3a6   : > { %v3502_v9 = vpop.permute.xlu0 %3501  ;;  %v2967_v10 = vor.u32 %v2966_v19, %v2962_v24 }
 0x3a7   : > { %v3564_v37 = vpop.permute.xlu1 %3563  ;;  %v3632_v13 = vsel %vm1565_vm4, %v6643_v56, %v3502_v9 }
 0x3a8   : > { %4804 = vmatprep.mubr.msk.bf16.mxu1 %vm1221_vm2, %v3564_v37  ;;  %v3697_v48 = vsel %vm1638_vm5, %v3628_v21, %v3564_v37  ;;  %v2972_v31 = vsel %vm559_vm1, %v2967_v10, %v2971_v23  ;;  %v3216_v21 = vsel %vm1040_vm0, %v3214_v33, %v3215_v17 }
 0x3a9   : > { %3093 = vrot.lane.b32.xlu0 %v2952_v47, %s5127_s26  ;;  %3287 = vrot.lane.b32.xlu1 %v3211_v61, %s5126_s25  ;;  %v2977_v61 = vshll.u32 %v6982_v34, 16 }
 0x3aa   : > { %3986 = vmatmul.mubr.bf16.gmra.mrb[20].mxu1 %v3697_v48  ;;  %v3080_v11 = vpop.permute.xlu0 %3079  ;;  %v2973_v48 = vshrl.u32 %v6801_v26, 16 }
 0x3ab   : > { %v3274_v55 = vpop.permute.xlu1 %3273  ;;  %v3350_v38 = vsel %vm1221_vm2, %v6492_v32, %v3080_v11  ;;  %v2979_v28 = vrot.slane %v2977_v61, 1  ;;  %v3217_v32 = vrot.slane %v6930_v41, 1 }
 0x3ac   : > { %v6950_v8 = vsel %vm1302_vm3, %v3346_v63, %v3274_v55  ;;  %v2975_v6 = vor.u32 %v2973_v48, %v2971_v23 }
 0x3ad   : > { %3517 = vrot.lane.b32.xlu0 %v6950_v8, %s5129_s28  ;;  %3579 = vrot.lane.b32.xlu1 %v6950_v8, %s5130_s29 }
 0x3af   : > { %v3566_v5 = vpop.permute.xlu1 %3565 }
 0x3b0   : > { %4805 = vmatprep.mubr.msk.bf16.mxu1 %vm1221_vm2, %v3566_v5  ;;  %v3700_v43 = vsel %vm1638_vm5, %v3630_v36, %v3566_v5  ;;  %v2980_v36 = vsel %vm559_vm1, %v2975_v6, %v2979_v28  ;;  %v3218_v5 = vsel %vm1040_vm0, %v3215_v17, %v3217_v32  ;;  %v2566_v6 = vshll.u32 %v6803_v18, 16 }
 0x3b1   : > { %3095 = vrot.lane.b32.xlu0 %v2960_v20, %s5127_s26  ;;  %3289 = vrot.lane.b32.xlu1 %v3213_v53, %s5126_s25 }
 0x3b2   : > { %3994 = vmatmul.mubr.bf16.gmra.mrb[24].mxu1 %v3700_v43 }
 0x3b3   : > { %v3276_v1 = vpop.permute.xlu1 %3275 }
 0x3b4   : > { %v6970_v15 = vsel %vm1302_vm3, %v3348_v29, %v3276_v1 }
 0x3b5   : > { %3519 = vrot.lane.b32.xlu0 %v6970_v15, %s5129_s28  ;;  %3581 = vrot.lane.b32.xlu1 %v6970_v15, %s5130_s29 }
 0x3b7   : > { %v3568_v40 = vpop.permute.xlu1 %3567 }
 0x3b8   : > { %4806 = vmatprep.mubr.msk.bf16.mxu1 %vm1221_vm2, %v3568_v40  ;;  %v3703_v37 = vsel %vm1638_vm5, %v3632_v13, %v3568_v40  ;;  %v2295_v13 = vstv %s2289_s7 }
 0x3b9   : > { %v2181_v47 = vpop.f32.mrb[128].mxu0  ;;  %3097 = vrot.lane.b32.xlu0 %v2972_v31, %s5127_s26  ;;  %3291 = vrot.lane.b32.xlu1 %v3216_v21, %s5126_s25 }
 0x3ba   : > { %v2183_v44 = vpop.f32.mrb[129].mxu0  ;;  %4002 = vmatmul.mubr.bf16.gmra.mrb[28].mxu1 %v3703_v37  ;;  %v2276_v63 = vmax.f32 %v2181_v47, 0.0 }
 0x3bb   : > { %v2184_v56 = vpop.f32.mrb[130].mxu0  ;;  %v3278_v51 = vpop.permute.xlu1 %3277 }
 0x3bc   : > { %v2277_v55 = vmax.f32 %v2184_v56, 0.0  ;;  %v2186_v54 = vpop.f32.mrb[131].mxu0  ;;  %v6997_v46 = vsel %vm1302_vm3, %v3350_v38, %v3278_v51 }
 0x3bd   : > { %3521 = vrot.lane.b32.xlu0 %v6997_v46, %s5129_s28  ;;  %3583 = vrot.lane.b32.xlu1 %v6997_v46, %s5130_s29 }
 0x3be   : > { %v7003_v49 = vpack.c.bf16 %v2277_v55, %v2276_v63 }
 0x3c0   : > { %v2578_v41 = vshrl.u32 %v7003_v49, 16 }
 0x3c1   : > { %3099 = vrot.lane.b32.xlu0 %v2980_v36, %s5127_s26  ;;  %3293 = vrot.lane.b32.xlu1 %v3218_v5, %s5126_s25  ;;  %v2568_v36 = vor.u32 %v2566_v6, %v6826_v62  ;;  %v2581_v6 = vshll.u32 %v7003_v49, 16  ;;  %v2993_v49 = vshrl.u32 %v6838_v60, 16 }
 0x3c2   : > { %v2580_v11 = vrot.slane %v2578_v41, 7 }
 0x3c7   : > { %v2189_v20 = vpop.f32.mrb[132].mxu0 }
 0x3c8   : > { %v2191_v53 = vpop.f32.mrb[133].mxu0  ;;  %v2278_v12 = vmax.f32 %v2189_v20, 0.0  ;;  %v3504_v20 = vpop.permute.xlu0 %3503 }
 0x3c9   : > { %v2192_v43 = vpop.f32.mrb[134].mxu0  ;;  %v3634_v62 = vsel %vm1565_vm4, %v6659_v45, %v3504_v20 }
 0x3ca   : > { %v2279_v9 = vmax.f32 %v2192_v43, 0.0  ;;  %v2194_v19 = vpop.f32.mrb[135].mxu0 }
 0x3cc   : > { %v2333_v29 = vpack.c.bf16 %v2279_v9, %v2278_v12  ;;  %v7025_v12 = vsel %vm5983_vm8, 0, %v2568_v36  ;;  %v2583_v36 = vor.u32 %v2581_v6, %v2580_v11 }
 0x3cd   : > { %v2984_v41 = vshll.u32 %v7025_v12, 16 }
 0x3ce   : > { %v2585_v1 = vshrl.u32 %v2333_v29, 16  ;;  %v2588_v17 = vshll.u32 %v2333_v29, 16 }
 0x3cf   : > { %v2197_v24 = vpop.f32.mrb[136].mxu0 }
 0x3d0   : > { %v7012_v23 = vrot.slane %v2585_v1, 7  ;;  %v2280_v10 = vmax.f32 %v2197_v24, 0.0  ;;  %v2199_v33 = vpop.f32.mrb[137].mxu0  ;;  %v3082_v1 = vpop.permute.xlu0 %3081 }
 0x3d1   : > { %v2200_v40 = vpop.f32.mrb[138].mxu0 }
 0x3d2   : > { %v2590_v31 = vor.u32 %v2588_v17, %v7012_v23  ;;  %v2281_v21 = vmax.f32 %v2200_v40, 0.0  ;;  %v2202_v37 = vpop.f32.mrb[139].mxu0  ;;  %v2296_v44 = vmul.f32 %v2295_v13, %v2280_v10  ;;  %v2989_v10 = vshll.u32 %v6838_v60, 16 }
 0x3d3   : > { %v3352_v40 = vsel %vm1221_vm2, %v6680_v52, %v3082_v1  ;;  %v3222_v1 = vrot.slane %v6982_v34, 1 }
 0x3d4   : > { %v7016_v47 = vsel %vm2336_vm6, %v2580_v11, %v2590_v31  ;;  %v2297_v61 = vmul.f32 %v2295_v13, %v2281_v21  ;;  %v2982_v21 = vshrl.u32 %v7025_v12, 16  ;;  %v2991_v37 = vrot.slane %v2989_v10, 1 }
 0x3d6   : > { %v7018_v56 = vpack.c.bf16 %v2297_v61, %v2296_v44  ;;  %v3220_v44 = vrot.slane %v6801_v26, 1  ;;  %v3506_v61 = vpop.permute.xlu0 %3505 }
 0x3d7   : > { %v2205_v48 = vpop.f32.mrb[140].mxu0 }
 0x3d8   : > { %v2282_v38 = vmax.f32 %v2205_v48, 0.0  ;;  %v2207_v51 = vpop.f32.mrb[141].mxu0  ;;  %v2593_v53 = vshrl.u32 %v7018_v56, 16 }
 0x3d9   : > { %v2208_v63 = vpop.f32.mrb[142].mxu0 }
 0x3da   : > { %v2283_v55 = vmax.f32 %v2208_v63, 0.0  ;;  %v2210_v54 = vpop.f32.mrb[143].mxu0  ;;  %v2298_v28 = vmul.f32 %v2295_v13, %v2282_v38  ;;  %v7029_v29 = vrot.slane %v2593_v53, 7  ;;  %v3219_v38 = vrot.slane %v6945_v7, 1  ;;  %v3084_v63 = vpop.permute.xlu0 %3083 }
 0x3dc   : > { %v2299_v32 = vmul.f32 %v2295_v13, %v2283_v55  ;;  %v2986_v13 = vrot.slane %v2984_v41, 1  ;;  %v3221_v51 = vsel %vm1040_vm0, %v3219_v38, %v3220_v44  ;;  %v2995_v41 = vor.u32 %v2993_v49, %v2991_v37 }
 0x3de   : > { %v2335_v5 = vpack.c.bf16 %v2299_v32, %v2298_v28  ;;  %v2987_v48 = vor.u32 %v2986_v13, %v2982_v21  ;;  %v7062_v28 = vsel %vm5983_vm8, %v6821_v35, 0  ;;  %v3636_v32 = vsel %vm1565_vm4, %v6687_v59, %v3506_v61 }
 0x3df   : > { %v7074_v35 = vsel %vm5983_vm8, 0, %v2583_v36  ;;  %v3009_v21 = vshll.u32 %v7016_v47, 16 }
 0x3e0   : > { %v2600_v43 = vshrl.u32 %v2335_v5, 16  ;;  %v2603_v19 = vshll.u32 %v2335_v5, 16  ;;  %v2992_v52 = vsel %vm559_vm1, %v2987_v48, %v2991_v37 }
 0x3e1   : > { %v3011_v38 = vrot.slane %v3009_v21, 1 }
 0x3e2   : > { %v7027_v9 = vrot.slane %v2600_v43, 7  ;;  %v2997_v43 = vshll.u32 %v7062_v28, 16 }
 0x3e4   : > { %v2605_v18 = vor.u32 %v2603_v19, %v7027_v9  ;;  %v3354_v19 = vsel %vm1221_vm2, %v6547_v16, %v3084_v63  ;;  %v3004_v16 = vshll.u32 %v7074_v35, 16 }
 0x3e5   : > { %v3570_v24 = vpop.permute.xlu1 %3569  ;;  %v3508_v55 = vpop.permute.xlu0 %3507 }
 0x3e6   : > { %4807 = vmatprep.mubr.msk.bf16.mxu1 %vm1221_vm2, %v3570_v24  ;;  %v3706_v17 = vsel %vm1638_vm5, %v3634_v62, %v3570_v24  ;;  %v7040_v33 = vsel %vm2336_vm6, %v7029_v29, %v2605_v18  ;;  %v2999_v62 = vrot.slane %v2997_v43, 1  ;;  %v3638_v24 = vsel %vm1565_vm4, %v6702_v58, %v3508_v55 }
 0x3e7   : > { %4010 = vmatmul.mubr.bf16.gmra.mrb[32].mxu1 %v3706_v17  ;;  %v3006_v34 = vrot.slane %v3004_v16, 1  ;;  %v7110_v55 = vsel %vm5983_vm8, %v7012_v23, 0  ;;  %v3033_v30 = vshrl.u32 %v7040_v33, 16 }
 0x3e8   : > { %v3000_v13 = vsel %vm559_vm1, %v2995_v41, %v2999_v62  ;;  %v3017_v23 = vshll.u32 %v7110_v55, 16  ;;  %v3227_v41 = vrot.slane %v7062_v28, 1 }
 0x3e9   : > { %v3280_v31 = vpop.permute.xlu1 %3279  ;;  %v3086_v54 = vpop.permute.xlu0 %3085 }
 0x3ea   : > { %v7045_v45 = vsel %vm1302_vm3, %v3352_v40, %v3280_v31  ;;  %v3223_v40 = vsel %vm1040_vm0, %v3220_v44, %v3222_v1  ;;  %v3356_v58 = vsel %vm1221_vm2, %v6756_v14, %v3086_v54  ;;  %v3002_v44 = vshrl.u32 %v7074_v35, 16 }
 0x3eb   : > { %3523 = vrot.lane.b32.xlu0 %v7045_v45, %s5129_s28  ;;  %3585 = vrot.lane.b32.xlu1 %v7045_v45, %s5130_s29  ;;  %v3224_v14 = vrot.slane %v7025_v12, 1 }
 0x3ec   : > { %v3007_v63 = vor.u32 %v3006_v34, %v3002_v44  ;;  %v3230_v34 = vrot.slane %v7016_v47, 1  ;;  %v3229_v44 = vrot.slane %v7074_v35, 1 }
 0x3ef   : > { %3101 = vrot.lane.b32.xlu0 %v2992_v52, %s5127_s26  ;;  %3295 = vrot.lane.b32.xlu1 %v3221_v51, %s5126_s25  ;;  %v3225_v52 = vrot.slane %v6838_v60, 1  ;;  %v2596_v51 = vshll.u32 %v7018_v56, 16 }
 0x3f1   : > { %v2598_v54 = vor.u32 %v2596_v51, %v7029_v29  ;;  %v3226_v36 = vsel %vm1040_vm0, %v3224_v14, %v3225_v52  ;;  %v3013_v29 = vshrl.u32 %v7016_v47, 16  ;;  %v3231_v51 = vsel %vm1040_vm0, %v3229_v44, %v3230_v34 }
 0x3ff   : > { %v3510_v5 = vpop.permute.xlu0 %3509  ;;  %v3572_v20 = vpop.permute.xlu1 %3571 }
 0x400   : > { %4808 = vmatprep.mubr.msk.bf16.mxu1 %vm1221_vm2, %v3572_v20  ;;  %v3709_v53 = vsel %vm1638_vm5, %v3636_v32, %v3572_v20  ;;  %v3640_v6 = vsel %vm1565_vm4, %v6725_v50, %v3510_v5  ;;  %v3012_v32 = vsel %vm559_vm1, %v3007_v63, %v3011_v38  ;;  %v7125_v50 = vsel %vm5983_vm8, 0, %v2598_v54 }
 0x401   : > { %4018 = vmatmul.mubr.bf16.gmra.mrb[36].mxu1 %v3709_v53  ;;  %v3024_v62 = vshll.u32 %v7125_v50, 16 }
 0x403   : > { %v3088_v59 = vpop.permute.xlu0 %3087  ;;  %v3282_v11 = vpop.permute.xlu1 %3281  ;;  %v3026_v28 = vrot.slane %v3024_v62, 1 }
 0x404   : > { %v7077_v18 = vsel %vm1302_vm3, %v3354_v19, %v3282_v11  ;;  %v3358_v5 = vsel %vm1221_vm2, %v6596_v0, %v3088_v59  ;;  %v3015_v19 = vor.u32 %v3013_v29, %v3011_v38  ;;  %v3019_v11 = vrot.slane %v3017_v23, 1 }
 0x405   : > { %3525 = vrot.lane.b32.xlu0 %v7077_v18, %s5129_s28  ;;  %3587 = vrot.lane.b32.xlu1 %v7077_v18, %s5130_s29 }
 0x406   : > { %v3020_v16 = vsel %vm559_vm1, %v3015_v19, %v3019_v11  ;;  %v3235_v19 = vrot.slane %v7040_v33, 1  ;;  %v3234_v11 = vrot.slane %v7125_v50, 1 }
 0x407   : > { %v3512_v17 = vpop.permute.xlu0 %3511  ;;  %v3574_v10 = vpop.permute.xlu1 %3573 }
 0x408   : > { %4809 = vmatprep.mubr.msk.bf16.mxu1 %vm1221_vm2, %v3574_v10  ;;  %v3712_v31 = vsel %vm1638_vm5, %v3638_v24, %v3574_v10  ;;  %v3642_v1 = vsel %vm1565_vm4, %v6774_v4, %v3512_v17  ;;  %v3228_v24 = vsel %vm1040_vm0, %v3225_v52, %v3227_v41 }
 0x409   : > { %3103 = vrot.lane.b32.xlu0 %v3000_v13, %s5127_s26  ;;  %3297 = vrot.lane.b32.xlu1 %v3223_v40, %s5126_s25  ;;  %v3029_v13 = vshll.u32 %v7040_v33, 16 }
 0x40a   : > { %4026 = vmatmul.mubr.bf16.gmra.mrb[40].mxu1 %v3712_v31  ;;  %v3022_v31 = vshrl.u32 %v7125_v50, 16 }
 0x40b   : > { %v3284_v37 = vpop.permute.xlu1 %3283  ;;  %v3090_v61 = vpop.permute.xlu0 %3089  ;;  %v3031_v21 = vrot.slane %v3029_v13, 1 }
 0x40c   : > { %v7097_v48 = vsel %vm1302_vm3, %v3356_v58, %v3284_v37  ;;  %v3360_v4 = vsel %vm1221_vm2, %v6832_v22, %v3090_v61  ;;  %v3027_v37 = vor.u32 %v3026_v28, %v3022_v31  ;;  %v2680_v22 = vsel %vm5983_vm8, %v7027_v9, 0 }
 0x40d   : > { %3527 = vrot.lane.b32.xlu0 %v7097_v48, %s5129_s28  ;;  %3589 = vrot.lane.b32.xlu1 %v7097_v48, %s5130_s29  ;;  %v3037_v9 = vshll.u32 %v2680_v22, 16 }
 0x40e   : > { %v3032_v52 = vsel %vm559_vm1, %v3027_v37, %v3031_v21 }
 0x40f   : > { %v3576_v56 = vpop.permute.xlu1 %3575  ;;  %v3514_v53 = vpop.permute.xlu0 %3513 }
 0x410   : > { %4810 = vmatprep.mubr.msk.bf16.mxu1 %vm1221_vm2, %v3576_v56  ;;  %v3715_v20 = vsel %vm1638_vm5, %v3640_v6, %v3576_v56  ;;  %v3644_v61 = vsel %vm1565_vm4, %v6841_v3, %v3514_v53  ;;  %v3035_v56 = vor.u32 %v3033_v30, %v3031_v21 }
 0x411   : > { %3105 = vrot.lane.b32.xlu0 %v3012_v32, %s5127_s26  ;;  %3299 = vrot.lane.b32.xlu1 %v3226_v36, %s5126_s25  ;;  %v3039_v32 = vrot.slane %v3037_v9, 1  ;;  %v3232_v36 = vrot.slane %v7110_v55, 1 }
 0x412   : > { %4034 = vmatmul.mubr.bf16.gmra.mrb[44].mxu1 %v3715_v20 }
 0x413   : > { %v3286_v43 = vpop.permute.xlu1 %3285  ;;  %v3092_v59 = vpop.permute.xlu0 %3091  ;;  %v3233_v53 = vsel %vm1040_vm0, %v3230_v34, %v3232_v36 }
 0x414   : > { %v7130_v49 = vsel %vm1302_vm3, %v3358_v5, %v3286_v43  ;;  %v3362_v3 = vsel %vm1221_vm2, %v6745_v27, %v3092_v59  ;;  %v3040_v27 = vsel %vm559_vm1, %v3035_v56, %v3039_v32 }
 0x415   : > { %3529 = vrot.lane.b32.xlu0 %v7130_v49, %s5129_s28  ;;  %3591 = vrot.lane.b32.xlu1 %v7130_v49, %s5130_s29 }
 0x417   : > { %v3578_v0 = vpop.permute.xlu1 %3577  ;;  %v3516_v58 = vpop.permute.xlu0 %3515 }
 0x418   : > { %4811 = vmatprep.mubr.msk.bf16.mxu1 %vm1221_vm2, %v3578_v0  ;;  %v3718_v10 = vsel %vm1638_vm5, %v3642_v1, %v3578_v0  ;;  %v3646_v20 = vsel %vm1565_vm4, %v6864_v25, %v3516_v58  ;;  %v3236_v1 = vsel %vm1040_vm0, %v3234_v11, %v3235_v19 }
 0x419   : > { %3107 = vrot.lane.b32.xlu0 %v3020_v16, %s5127_s26  ;;  %3301 = vrot.lane.b32.xlu1 %v3228_v24, %s5126_s25 }
 0x41a   : > { %4042 = vmatmul.mubr.bf16.gmra.mrb[48].mxu1 %v3718_v10 }
 0x41b   : > { %v3288_v17 = vpop.permute.xlu1 %3287  ;;  %v3094_v54 = vpop.permute.xlu0 %3093 }
 0x41c   : > { %v7150_v40 = vsel %vm1302_vm3, %v3360_v4, %v3288_v17  ;;  %v3364_v55 = vsel %vm1221_vm2, %v6892_v57, %v3094_v54 }
 0x41d   : > { %3531 = vrot.lane.b32.xlu0 %v7150_v40, %s5129_s28  ;;  %3593 = vrot.lane.b32.xlu1 %v7150_v40, %s5130_s29 }
 0x41f   : > { %v3580_v38 = vpop.permute.xlu1 %3579  ;;  %v3518_v5 = vpop.permute.xlu0 %3517 }
 0x420   : > { %4812 = vmatprep.mubr.msk.bf16.mxu1 %vm1221_vm2, %v3580_v38  ;;  %v3721_v63 = vsel %vm1638_vm5, %v3644_v61, %v3580_v38  ;;  %v3648_v41 = vsel %vm1565_vm4, %v6897_v42, %v3518_v5  ;;  %v3237_v42 = vrot.slane %v2680_v22, 1 }
 0x421   : > { %3109 = vrot.lane.b32.xlu0 %v3032_v52, %s5127_s26  ;;  %3303 = vrot.lane.b32.xlu1 %v3231_v51, %s5126_s25 }
 0x422   : > { %4050 = vmatmul.mubr.bf16.gmra.mrb[52].mxu1 %v3721_v63  ;;  %v3238_v10 = vsel %vm1040_vm0, %v3235_v19, %v3237_v42 }
 0x423   : > { %v3290_v14 = vpop.permute.xlu1 %3289  ;;  %v3096_v57 = vpop.permute.xlu0 %3095 }
 0x424   : > { %v7174_v6 = vsel %vm1302_vm3, %v3362_v3, %v3290_v14  ;;  %v3366_v59 = vsel %vm1221_vm2, %v6763_v39, %v3096_v57 }
 0x425   : > { %3533 = vrot.lane.b32.xlu0 %v7174_v6, %s5129_s28  ;;  %3595 = vrot.lane.b32.xlu1 %v7174_v6, %s5130_s29 }
 0x427   : > { %v3582_v23 = vpop.permute.xlu1 %3581  ;;  %v3520_v34 = vpop.permute.xlu0 %3519 }
 0x428   : > { %4813 = vmatprep.mubr.msk.bf16.mxu1 %vm1221_vm2, %v3582_v23  ;;  %v3724_v29 = vsel %vm1638_vm5, %v3646_v20, %v3582_v23  ;;  %v3650_v38 = vsel %vm1565_vm4, %v6917_v2, %v3520_v34 }
 0x429   : > { %3111 = vrot.lane.b32.xlu0 %v3040_v27, %s5127_s26  ;;  %3305 = vrot.lane.b32.xlu1 %v3233_v53, %s5126_s25  ;;  %s4679_s26 = sshll.u32 %s5108_s12, 6 }
 0x42a   : > { %4058 = vmatmul.mubr.bf16.gmra.mrb[56].mxu1 %v3724_v29  ;;  %p187_p8 = scmp.lt.s32.totalorder %s4679_s26, 127 }
 0x42b   : > { %v3292_v43 = vpop.permute.xlu1 %3291  ;;  %v3098_v44 = vpop.permute.xlu0 %3097 }
 0x42c   : > { %v7192_v25 = vsel %vm1302_vm3, %v3364_v55, %v3292_v43  ;;  %s7504_s26 = smov (!%p187_p8, %s4679_s26), 127  ;;  %v3368_v54 = vsel %vm1221_vm2, %v6945_v7, %v3098_v44 }
 0x42d   : > { %3535 = vrot.lane.b32.xlu0 %v7192_v25, %s5129_s28  ;;  %3597 = vrot.lane.b32.xlu1 %v7192_v25, %s5130_s29  ;;  %s190_s9 = sadd.s32 %s4680_s8, %s7504_s26 }
 0x42e   : > { %s4681_s10 = sshll.u32 %s190_s9, 2 }
 0x42f   : > { %v3584_v62 = vpop.permute.xlu1 %3583  ;;  %s7222_s20 = scalar_lea.vmem %s7488_s3, %s4681_s10  ;;  %v3522_v2 = vpop.permute.xlu0 %3521 }
 0x430   : > { %4814 = vmatprep.mubr.msk.bf16.mxu1 %vm1221_vm2, %v3584_v62  ;;  %v3727_v0 = vsel %vm1638_vm5, %v3648_v41, %v3584_v62 }
 0x431   : > { %3307 = vrot.lane.b32.xlu1 %v3236_v1, %s5126_s25 }
 0x432   : > { %4066 = vmatmul.mubr.bf16.gmra.mrb[60].mxu1 %v3727_v0 }
 0x433   : > { %v3294_v16 = vpop.permute.xlu1 %3293  ;;  %v3100_v5 = vpop.permute.xlu0 %3099 }
 0x434   : > { %v7209_v24 = vsel %vm1302_vm3, %v3366_v59, %v3294_v16 }
 0x435   : > { %3537 = vrot.lane.b32.xlu0 %v7209_v24, %s5129_s28  ;;  %3599 = vrot.lane.b32.xlu1 %v7209_v24, %s5130_s29 }
 0x439   : > { %3309 = vrot.lane.b32.xlu1 %v3238_v10, %s5126_s25 }
 0x453   : > { %v3947_v39 = vpop.f32.mrb[0].mxu1 }
 0x454   : > { %v4202_v13 = vmax.f32 %v3947_v39, 0.0  ;;  %v3949_v28 = vpop.f32.mrb[1].mxu1 }
 0x455   : > { %v3950_v4 = vpop.f32.mrb[2].mxu1 }
 0x456   : > { %v4898_v17 = vpack.c.bf16 %v4202_v13, %v4202_v13  ;;  %v4203_v31 = vmax.f32 %v3950_v4, 0.0  ;;  %v3952_v21 = vpop.f32.mrb[3].mxu1  ;;  %v3652_v4 = vsel %vm1565_vm4, %v6950_v8, %v3522_v2 }
 0x458   : > { %4523 = vst.msk [vmem:[%s7222_s20] sm:$0xf] %vm4522_vm9, %v4898_v17  ;;  %v4899_v58 = vpack.c.bf16 %v4203_v31, %v4203_v31 }
 0x45a   : > { %4524 = vst.msk [vmem:[%s7222_s20 + $0x4] sm:$0xf] %vm4522_vm9, %v4899_v58 }
 0x45c   : > { %v3955_v37 = vpop.f32.mrb[4].mxu1 }
 0x45d   : > { %v4204_v22 = vmax.f32 %v3955_v37, 0.0  ;;  %v3957_v61 = vpop.f32.mrb[5].mxu1  ;;  %v3586_v51 = vpop.permute.xlu1 %3585 }
 0x45e   : > { %v3958_v52 = vpop.f32.mrb[6].mxu1  ;;  %4815 = vmatprep.mubr.msk.bf16.mxu1 %vm1221_vm2, %v3586_v51  ;;  %v3730_v3 = vsel %vm1638_vm5, %v3650_v38, %v3586_v51  ;;  %v3524_v43 = vpop.permute.xlu0 %3523 }
 0x45f   : > { %v4900_v63 = vpack.c.bf16 %v4204_v22, %v4204_v22  ;;  %v4205_v30 = vmax.f32 %v3958_v52, 0.0  ;;  %v3960_v9 = vpop.f32.mrb[7].mxu1  ;;  %4074 = vmatmul.mubr.bf16.gmra.mrb[64].mxu1 %v3730_v3  ;;  %v3370_v22 = vsel %vm1221_vm2, %v6801_v26, %v3100_v5  ;;  %v3654_v26 = vsel %vm1565_vm4, %v6970_v15, %v3524_v43 }
 0x461   : > { %4525 = vst.msk [vmem:[%s7222_s20 + $0x8] sm:$0xf] %vm4522_vm9, %v4900_v63  ;;  %v4901_v14 = vpack.c.bf16 %v4205_v30, %v4205_v30  ;;  %v3296_v56 = vpop.permute.xlu1 %3295 }
 0x462   : > { %v7239_v32 = vsel %vm1302_vm3, %v3368_v54, %v3296_v56  ;;  %v3102_v16 = vpop.permute.xlu0 %3101 }
 0x463   : > { %4526 = vst.msk [vmem:[%s7222_s20 + $0xc] sm:$0xf] %vm4522_vm9, %v4901_v14  ;;  %3539 = vrot.lane.b32.xlu0 %v7239_v32, %s5129_s28  ;;  %3601 = vrot.lane.b32.xlu1 %v7239_v32, %s5130_s29 }
 0x465   : > { %v3963_v36 = vpop.f32.mrb[8].mxu1 }
 0x466   : > { %v4206_v20 = vmax.f32 %v3963_v36, 0.0  ;;  %v3965_v23 = vpop.f32.mrb[9].mxu1  ;;  %v3372_v36 = vsel %vm1221_vm2, %v7025_v12, %v3102_v16 }
 0x467   : > { %v3966_v27 = vpop.f32.mrb[10].mxu1 }
 0x468   : > { %v4902_v7 = vpack.c.bf16 %v4206_v20, %v4206_v20  ;;  %v4207_v53 = vmax.f32 %v3966_v27, 0.0  ;;  %v3968_v29 = vpop.f32.mrb[11].mxu1 }
 0x46a   : > { %4527 = vst.msk [vmem:[%s7222_s20 + $0x10] sm:$0xf] %vm4522_vm9, %v4902_v7  ;;  %v4903_v55 = vpack.c.bf16 %v4207_v53, %v4207_v53 }
 0x46c   : > { %4528 = vst.msk [vmem:[%s7222_s20 + $0x14] sm:$0xf] %vm4522_vm9, %v4903_v55 }
 0x46d   : > { %v3971_v19 = vpop.f32.mrb[12].mxu1 }
 0x46e   : > { %v4208_v11 = vmax.f32 %v3971_v19, 0.0  ;;  %v3973_v41 = vpop.f32.mrb[13].mxu1 }
 0x46f   : > { %v3974_v62 = vpop.f32.mrb[14].mxu1 }
 0x470   : > { %v4904_v57 = vpack.c.bf16 %v4208_v11, %v4208_v11  ;;  %v4209_v1 = vmax.f32 %v3974_v62, 0.0  ;;  %v3976_v0 = vpop.f32.mrb[15].mxu1 }
 0x472   : > { %4529 = vst.msk [vmem:[%s7222_s20 + $0x18] sm:$0xf] %vm4522_vm9, %v4904_v57  ;;  %v4905_v59 = vpack.c.bf16 %v4209_v1, %v4209_v1 }
 0x474   : > { %4530 = vst.msk [vmem:[%s7222_s20 + $0x1c] sm:$0xf] %vm4522_vm9, %v4905_v59 }
 0x475   : > { %v3979_v42 = vpop.f32.mrb[16].mxu1 }
 0x476   : > { %v4210_v10 = vmax.f32 %v3979_v42, 0.0  ;;  %v3981_v39 = vpop.f32.mrb[17].mxu1 }
 0x477   : > { %v3982_v13 = vpop.f32.mrb[18].mxu1  ;;  %v3526_v28 = vpop.permute.xlu0 %3525 }
 0x478   : > { %v4906_v17 = vpack.c.bf16 %v4210_v10, %v4210_v10  ;;  %v4211_v31 = vmax.f32 %v3982_v13, 0.0  ;;  %v3984_v21 = vpop.f32.mrb[19].mxu1  ;;  %v3588_v34 = vpop.permute.xlu1 %3587  ;;  %v3656_v12 = vsel %vm1565_vm4, %v6997_v46, %v3526_v28 }
 0x479   : > { %4816 = vmatprep.mubr.msk.bf16.mxu1 %vm1221_vm2, %v3588_v34  ;;  %v3733_v58 = vsel %vm1638_vm5, %v3652_v4, %v3588_v34 }
 0x47a   : > { %4531 = vst.msk [vmem:[%s7222_s20 + $0x20] sm:$0xf] %vm4522_vm9, %v4906_v17  ;;  %v4907_v37 = vpack.c.bf16 %v4211_v31, %v4211_v31  ;;  %4082 = vmatmul.mubr.bf16.gmra.mrb[68].mxu1 %v3733_v58 }
 0x47b   : > { %v3104_v44 = vpop.permute.xlu0 %3103 }
 0x47c   : > { %4532 = vst.msk [vmem:[%s7222_s20 + $0x24] sm:$0xf] %vm4522_vm9, %v4907_v37  ;;  %v3298_v61 = vpop.permute.xlu1 %3297  ;;  %v3374_v57 = vsel %vm1221_vm2, %v6838_v60, %v3104_v44 }
 0x47d   : > { %v7264_v8 = vsel %vm1302_vm3, %v3370_v22, %v3298_v61  ;;  %v3987_v38 = vpop.f32.mrb[20].mxu1 }
 0x47e   : > { %v4212_v52 = vmax.f32 %v3987_v38, 0.0  ;;  %v3989_v51 = vpop.f32.mrb[21].mxu1  ;;  %3541 = vrot.lane.b32.xlu0 %v7264_v8, %s5129_s28  ;;  %3603 = vrot.lane.b32.xlu1 %v7264_v8, %s5130_s29 }
 0x47f   : > { %v3990_v63 = vpop.f32.mrb[22].mxu1  ;;  %v3528_v30 = vpop.permute.xlu0 %3527 }
 0x480   : > { %v4908_v9 = vpack.c.bf16 %v4212_v52, %v4212_v52  ;;  %v4213_v3 = vmax.f32 %v3990_v63, 0.0  ;;  %v3992_v14 = vpop.f32.mrb[23].mxu1  ;;  %v3590_v54 = vpop.permute.xlu1 %3589  ;;  %v3658_v60 = vsel %vm1565_vm4, %v7045_v45, %v3528_v30 }
 0x481   : > { %4817 = vmatprep.mubr.msk.bf16.mxu1 %vm1221_vm2, %v3590_v54  ;;  %v3736_v56 = vsel %vm1638_vm5, %v3654_v26, %v3590_v54 }
 0x482   : > { %4533 = vst.msk [vmem:[%s7222_s20 + $0x28] sm:$0xf] %vm4522_vm9, %v4908_v9  ;;  %v4909_v2 = vpack.c.bf16 %v4213_v3, %v4213_v3  ;;  %4090 = vmatmul.mubr.bf16.gmra.mrb[72].mxu1 %v3736_v56 }
 0x483   : > { %v3106_v15 = vpop.permute.xlu0 %3105 }
 0x484   : > { %4534 = vst.msk [vmem:[%s7222_s20 + $0x2c] sm:$0xf] %vm4522_vm9, %v4909_v2  ;;  %v3300_v20 = vpop.permute.xlu1 %3299  ;;  %v3376_v21 = vsel %vm1221_vm2, %v7074_v35, %v3106_v15 }
 0x485   : > { %v7281_v23 = vsel %vm1302_vm3, %v3372_v36, %v3300_v20  ;;  %v3995_v27 = vpop.f32.mrb[24].mxu1 }
 0x486   : > { %v4214_v7 = vmax.f32 %v3995_v27, 0.0  ;;  %v3997_v53 = vpop.f32.mrb[25].mxu1  ;;  %3543 = vrot.lane.b32.xlu0 %v7281_v23, %s5129_s28  ;;  %3605 = vrot.lane.b32.xlu1 %v7281_v23, %s5130_s29 }
 0x487   : > { %v3998_v29 = vpop.f32.mrb[26].mxu1  ;;  %v3530_v62 = vpop.permute.xlu0 %3529 }
 0x488   : > { %v4910_v5 = vpack.c.bf16 %v4214_v7, %v4214_v7  ;;  %v4215_v55 = vmax.f32 %v3998_v29, 0.0  ;;  %v4000_v43 = vpop.f32.mrb[27].mxu1  ;;  %v3592_v19 = vpop.permute.xlu1 %3591  ;;  %v3660_v37 = vsel %vm1565_vm4, %v7077_v18, %v3530_v62 }
 0x489   : > { %4818 = vmatprep.mubr.msk.bf16.mxu1 %vm1221_vm2, %v3592_v19  ;;  %v3739_v11 = vsel %vm1638_vm5, %v3656_v12, %v3592_v19 }
 0x48a   : > { %4535 = vst.msk [vmem:[%s7222_s20 + $0x30] sm:$0xf] %vm4522_vm9, %v4910_v5  ;;  %v4911_v41 = vpack.c.bf16 %v4215_v55, %v4215_v55  ;;  %4098 = vmatmul.mubr.bf16.gmra.mrb[76].mxu1 %v3739_v11 }
 0x48b   : > { %v3108_v4 = vpop.permute.xlu0 %3107 }
 0x48c   : > { %4536 = vst.msk [vmem:[%s7222_s20 + $0x34] sm:$0xf] %vm4522_vm9, %v4911_v41  ;;  %v3302_v1 = vpop.permute.xlu1 %3301  ;;  %v3378_v35 = vsel %vm1221_vm2, %v7016_v47, %v3108_v4 }
 0x48d   : > { %v7298_v46 = vsel %vm1302_vm3, %v3374_v57, %v3302_v1  ;;  %v4003_v0 = vpop.f32.mrb[28].mxu1 }
 0x48e   : > { %v4216_v59 = vmax.f32 %v4003_v0, 0.0  ;;  %v4005_v16 = vpop.f32.mrb[29].mxu1  ;;  %3545 = vrot.lane.b32.xlu0 %v7298_v46, %s5129_s28  ;;  %3607 = vrot.lane.b32.xlu1 %v7298_v46, %s5130_s29 }
 0x48f   : > { %v4006_v42 = vpop.f32.mrb[30].mxu1  ;;  %v3532_v58 = vpop.permute.xlu0 %3531 }
 0x490   : > { %v4912_v10 = vpack.c.bf16 %v4216_v59, %v4216_v59  ;;  %v4217_v39 = vmax.f32 %v4006_v42, 0.0  ;;  %v4008_v13 = vpop.f32.mrb[31].mxu1  ;;  %v3594_v28 = vpop.permute.xlu1 %3593  ;;  %v3662_v18 = vsel %vm1565_vm4, %v7097_v48, %v3532_v58 }
 0x491   : > { %4819 = vmatprep.mubr.msk.bf16.mxu1 %vm1221_vm2, %v3594_v28  ;;  %v3742_v17 = vsel %vm1638_vm5, %v3658_v60, %v3594_v28 }
 0x492   : > { %4537 = vst.msk [vmem:[%s7222_s20 + $0x38] sm:$0xf] %vm4522_vm9, %v4912_v10  ;;  %v4913_v31 = vpack.c.bf16 %v4217_v39, %v4217_v39  ;;  %4106 = vmatmul.mubr.bf16.gmra.mrb[80].mxu1 %v3742_v17 }
 0x493   : > { %v3110_v38 = vpop.permute.xlu0 %3109 }
 0x494   : > { %4538 = vst.msk [vmem:[%s7222_s20 + $0x3c] sm:$0xf] %vm4522_vm9, %v4913_v31  ;;  %v3304_v34 = vpop.permute.xlu1 %3303  ;;  %v3380_v47 = vsel %vm1221_vm2, %v7125_v50, %v3110_v38 }
 0x495   : > { %v3448_v45 = vsel %vm1302_vm3, %v3376_v21, %v3304_v34 }
 0x496   : > { %3547 = vrot.lane.b32.xlu0 %v3448_v45, %s5129_s28  ;;  %3609 = vrot.lane.b32.xlu1 %v3448_v45, %s5130_s29 }
 0x497   : > { %v3534_v30 = vpop.permute.xlu0 %3533 }
 0x498   : > { %v3596_v44 = vpop.permute.xlu1 %3595  ;;  %v3664_v3 = vsel %vm1565_vm4, %v7130_v49, %v3534_v30 }
 0x499   : > { %4820 = vmatprep.mubr.msk.bf16.mxu1 %vm1221_vm2, %v3596_v44  ;;  %v3745_v22 = vsel %vm1638_vm5, %v3660_v37, %v3596_v44 }
 0x49a   : > { %4114 = vmatmul.mubr.bf16.gmra.mrb[84].mxu1 %v3745_v22 }
 0x49b   : > { %v3112_v48 = vpop.permute.xlu0 %3111 }
 0x49c   : > { %v3306_v61 = vpop.permute.xlu1 %3305  ;;  %v3382_v50 = vsel %vm1221_vm2, %v7040_v33, %v3112_v48 }
 0x49d   : > { %v3450_v52 = vsel %vm1302_vm3, %v3378_v35, %v3306_v61 }
 0x49e   : > { %3549 = vrot.lane.b32.xlu0 %v3450_v52, %s5129_s28  ;;  %3611 = vrot.lane.b32.xlu1 %v3450_v52, %s5130_s29 }
 0x49f   : > { %v3536_v33 = vpop.permute.xlu0 %3535 }
 0x4a0   : > { %v3598_v51 = vpop.permute.xlu1 %3597  ;;  %v3666_v19 = vsel %vm1565_vm4, %v7150_v40, %v3536_v33 }
 0x4a1   : > { %4821 = vmatprep.mubr.msk.bf16.mxu1 %vm1221_vm2, %v3598_v51  ;;  %v3748_v63 = vsel %vm1638_vm5, %v3662_v18, %v3598_v51 }
 0x4a2   : > { %4122 = vmatmul.mubr.bf16.gmra.mrb[88].mxu1 %v3748_v63 }
 0x4a4   : > { %v3308_v26 = vpop.permute.xlu1 %3307 }
 0x4a5   : > { %v3452_v9 = vsel %vm1302_vm3, %v3380_v47, %v3308_v26 }
 0x4a6   : > { %3613 = vrot.lane.b32.xlu1 %v3452_v9, %s5130_s29 }
 0x4a7   : > { %v3538_v44 = vpop.permute.xlu0 %3537 }
 0x4a8   : > { %v3600_v14 = vpop.permute.xlu1 %3599  ;;  %v3668_v51 = vsel %vm1565_vm4, %v7174_v6, %v3538_v44 }
 0x4a9   : > { %4822 = vmatprep.mubr.msk.bf16.mxu1 %vm1221_vm2, %v3600_v14  ;;  %v3751_v54 = vsel %vm1638_vm5, %v3664_v3, %v3600_v14 }
 0x4aa   : > { %4130 = vmatmul.mubr.bf16.gmra.mrb[92].mxu1 %v3751_v54 }
 0x4ac   : > { %v3310_v56 = vpop.permute.xlu1 %3309 }
 0x4ad   : > { %v3454_v2 = vsel %vm1302_vm3, %v3382_v50, %v3310_v56 }
 0x4ae   : > { %3615 = vrot.lane.b32.xlu1 %v3454_v2, %s5130_s29 }
 0x4ba   : > { %v4011_v36 = vpop.f32.mrb[32].mxu1 }
 0x4bb   : > { %v4218_v20 = vmax.f32 %v4011_v36, 0.0  ;;  %v4013_v49 = vpop.f32.mrb[33].mxu1 }
 0x4bc   : > { %v4014_v15 = vpop.f32.mrb[34].mxu1 }
 0x4bd   : > { %v4914_v27 = vpack.c.bf16 %v4218_v20, %v4218_v20  ;;  %v4219_v7 = vmax.f32 %v4014_v15, 0.0  ;;  %v4016_v53 = vpop.f32.mrb[35].mxu1 }
 0x4bf   : > { %4539 = vst.msk [vmem:[%s7222_s20 + $0x40] sm:$0xf] %vm4522_vm9, %v4914_v27  ;;  %v4915_v29 = vpack.c.bf16 %v4219_v7, %v4219_v7 }
 0x4c1   : > { %4540 = vst.msk [vmem:[%s7222_s20 + $0x44] sm:$0xf] %vm4522_vm9, %v4915_v29 }
 0x4d4   : > { %v4019_v12 = vpop.f32.mrb[36].mxu1 }
 0x4d5   : > { %v4220_v5 = vmax.f32 %v4019_v12, 0.0  ;;  %v4021_v55 = vpop.f32.mrb[37].mxu1  ;;  %v3602_v57 = vpop.permute.xlu1 %3601 }
 0x4d6   : > { %v4022_v43 = vpop.f32.mrb[38].mxu1  ;;  %4823 = vmatprep.mubr.msk.bf16.mxu1 %vm1221_vm2, %v3602_v57  ;;  %v3754_v1 = vsel %vm1638_vm5, %v3666_v19, %v3602_v57  ;;  %v3540_v9 = vpop.permute.xlu0 %3539 }
 0x4d7   : > { %v4916_v11 = vpack.c.bf16 %v4220_v5, %v4220_v5  ;;  %v4221_v41 = vmax.f32 %v4022_v43, 0.0  ;;  %v4024_v62 = vpop.f32.mrb[39].mxu1  ;;  %4138 = vmatmul.mubr.bf16.gmra.mrb[96].mxu1 %v3754_v1  ;;  %v3670_v56 = vsel %vm1565_vm4, %v7192_v25, %v3540_v9 }
 0x4d9   : > { %4541 = vst.msk [vmem:[%s7222_s20 + $0x48] sm:$0xf] %vm4522_vm9, %v4916_v11  ;;  %v4917_v0 = vpack.c.bf16 %v4221_v41, %v4221_v41 }
 0x4db   : > { %4542 = vst.msk [vmem:[%s7222_s20 + $0x4c] sm:$0xf] %vm4522_vm9, %v4917_v0 }
 0x4dd   : > { %v4027_v59 = vpop.f32.mrb[40].mxu1 }
 0x4de   : > { %v4222_v16 = vmax.f32 %v4027_v59, 0.0  ;;  %v4029_v40 = vpop.f32.mrb[41].mxu1 }
 0x4df   : > { %v4030_v42 = vpop.f32.mrb[42].mxu1 }
 0x4e0   : > { %v4918_v60 = vpack.c.bf16 %v4222_v16, %v4222_v16  ;;  %v4223_v10 = vmax.f32 %v4030_v42, 0.0  ;;  %v4032_v39 = vpop.f32.mrb[43].mxu1 }
 0x4e2   : > { %4543 = vst.msk [vmem:[%s7222_s20 + $0x50] sm:$0xf] %vm4522_vm9, %v4918_v60  ;;  %v4919_v13 = vpack.c.bf16 %v4223_v10, %v4223_v10 }
 0x4e4   : > { %4544 = vst.msk [vmem:[%s7222_s20 + $0x54] sm:$0xf] %vm4522_vm9, %v4919_v13 }
 0x4e5   : > { %v4035_v28 = vpop.f32.mrb[44].mxu1 }
 0x4e6   : > { %v4224_v4 = vmax.f32 %v4035_v28, 0.0  ;;  %v4037_v17 = vpop.f32.mrb[45].mxu1 }
 0x4e7   : > { %v4038_v31 = vpop.f32.mrb[46].mxu1 }
 0x4e8   : > { %v4920_v21 = vpack.c.bf16 %v4224_v4, %v4224_v4  ;;  %v4225_v34 = vmax.f32 %v4038_v31, 0.0  ;;  %v4040_v45 = vpop.f32.mrb[47].mxu1 }
 0x4ea   : > { %4545 = vst.msk [vmem:[%s7222_s20 + $0x58] sm:$0xf] %vm4522_vm9, %v4920_v21  ;;  %v4921_v58 = vpack.c.bf16 %v4225_v34, %v4225_v34 }
 0x4ec   : > { %4546 = vst.msk [vmem:[%s7222_s20 + $0x5c] sm:$0xf] %vm4522_vm9, %v4921_v58 }
 0x4ed   : > { %v4043_v37 = vpop.f32.mrb[48].mxu1 }
 0x4ee   : > { %v4226_v22 = vmax.f32 %v4043_v37, 0.0  ;;  %v4045_v35 = vpop.f32.mrb[49].mxu1 }
 0x4ef   : > { %v4046_v61 = vpop.f32.mrb[50].mxu1 }
 0x4f0   : > { %v4922_v38 = vpack.c.bf16 %v4226_v22, %v4226_v22  ;;  %v4227_v52 = vmax.f32 %v4046_v61, 0.0  ;;  %v4048_v18 = vpop.f32.mrb[51].mxu1  ;;  %v3604_v63 = vpop.permute.xlu1 %3603 }
 0x4f1   : > { %4824 = vmatprep.mubr.msk.bf16.mxu1 %vm1221_vm2, %v3604_v63  ;;  %v3757_v47 = vsel %vm1638_vm5, %v3668_v51, %v3604_v63  ;;  %v3542_v15 = vpop.permute.xlu0 %3541 }
 0x4f2   : > { %4547 = vst.msk [vmem:[%s7222_s20 + $0x60] sm:$0xf] %vm4522_vm9, %v4922_v38  ;;  %v4923_v30 = vpack.c.bf16 %v4227_v52, %v4227_v52  ;;  %4146 = vmatmul.mubr.bf16.gmra.mrb[100].mxu1 %v3757_v47  ;;  %v3672_v12 = vsel %vm1565_vm4, %v7209_v24, %v3542_v15 }
 0x4f4   : > { %4548 = vst.msk [vmem:[%s7222_s20 + $0x64] sm:$0xf] %vm4522_vm9, %v4923_v30 }
 0x4f5   : > { %v4051_v26 = vpop.f32.mrb[52].mxu1 }
 0x4f6   : > { %v4228_v3 = vmax.f32 %v4051_v26, 0.0  ;;  %v4053_v14 = vpop.f32.mrb[53].mxu1 }
 0x4f7   : > { %v4054_v48 = vpop.f32.mrb[54].mxu1 }
 0x4f8   : > { %v4924_v54 = vpack.c.bf16 %v4228_v3, %v4228_v3  ;;  %v4229_v6 = vmax.f32 %v4054_v48, 0.0  ;;  %v4056_v50 = vpop.f32.mrb[55].mxu1  ;;  %v3606_v2 = vpop.permute.xlu1 %3605 }
 0x4f9   : > { %4825 = vmatprep.mubr.msk.bf16.mxu1 %vm1221_vm2, %v3606_v2  ;;  %v3760_v20 = vsel %vm1638_vm5, %v3670_v56, %v3606_v2  ;;  %v3544_v11 = vpop.permute.xlu0 %3543 }
 0x4fa   : > { %4549 = vst.msk [vmem:[%s7222_s20 + $0x68] sm:$0xf] %vm4522_vm9, %v4924_v54  ;;  %v4925_v36 = vpack.c.bf16 %v4229_v6, %v4229_v6  ;;  %4154 = vmatmul.mubr.bf16.gmra.mrb[104].mxu1 %v3760_v20  ;;  %v3674_v59 = vsel %vm1565_vm4, %v7239_v32, %v3544_v11 }
 0x4fc   : > { %4550 = vst.msk [vmem:[%s7222_s20 + $0x6c] sm:$0xf] %vm4522_vm9, %v4925_v36 }
 0x4fd   : > { %v4059_v49 = vpop.f32.mrb[56].mxu1 }
 0x4fe   : > { %v4230_v27 = vmax.f32 %v4059_v49, 0.0  ;;  %v4061_v7 = vpop.f32.mrb[57].mxu1 }
 0x4ff   : > { %v4062_v53 = vpop.f32.mrb[58].mxu1 }
 0x500   : > { %v4926_v29 = vpack.c.bf16 %v4230_v27, %v4230_v27  ;;  %v4231_v25 = vmax.f32 %v4062_v53, 0.0  ;;  %v4064_v33 = vpop.f32.mrb[59].mxu1  ;;  %v3608_v5 = vpop.permute.xlu1 %3607 }
 0x501   : > { %4826 = vmatprep.mubr.msk.bf16.mxu1 %vm1221_vm2, %v3608_v5  ;;  %v3763_v43 = vsel %vm1638_vm5, %v3672_v12, %v3608_v5  ;;  %v3546_v60 = vpop.permute.xlu0 %3545 }
 0x502   : > { %4551 = vst.msk [vmem:[%s7222_s20 + $0x70] sm:$0xf] %vm4522_vm9, %v4926_v29  ;;  %v4927_v55 = vpack.c.bf16 %v4231_v25, %v4231_v25  ;;  %4162 = vmatmul.mubr.bf16.gmra.mrb[108].mxu1 %v3763_v43  ;;  %v3676_v10 = vsel %vm1565_vm4, %v7264_v8, %v3546_v60 }
 0x504   : > { %4552 = vst.msk [vmem:[%s7222_s20 + $0x74] sm:$0xf] %vm4522_vm9, %v4927_v55 }
 0x505   : > { %v4067_v19 = vpop.f32.mrb[60].mxu1 }
 0x506   : > { %v4232_v41 = vmax.f32 %v4067_v19, 0.0  ;;  %v4069_v62 = vpop.f32.mrb[61].mxu1 }
 0x507   : > { %v4070_v57 = vpop.f32.mrb[62].mxu1 }
 0x508   : > { %v4928_v1 = vpack.c.bf16 %v4232_v41, %v4232_v41  ;;  %v4233_v24 = vmax.f32 %v4070_v57, 0.0  ;;  %v4072_v0 = vpop.f32.mrb[63].mxu1  ;;  %v3610_v16 = vpop.permute.xlu1 %3609 }
 0x509   : > { %4827 = vmatprep.mubr.msk.bf16.mxu1 %vm1221_vm2, %v3610_v16  ;;  %v3766_v42 = vsel %vm1638_vm5, %v3674_v59, %v3610_v16  ;;  %v3548_v13 = vpop.permute.xlu0 %3547 }
 0x50a   : > { %4553 = vst.msk [vmem:[%s7222_s20 + $0x78] sm:$0xf] %vm4522_vm9, %v4928_v1  ;;  %v4929_v40 = vpack.c.bf16 %v4233_v24, %v4233_v24  ;;  %4170 = vmatmul.mubr.bf16.gmra.mrb[112].mxu1 %v3766_v42  ;;  %v3678_v28 = vsel %vm1565_vm4, %v7281_v23, %v3548_v13 }
 0x50c   : > { %4554 = vst.msk [vmem:[%s7222_s20 + $0x7c] sm:$0xf] %vm4522_vm9, %v4929_v40 }
 0x510   : > { %v3612_v39 = vpop.permute.xlu1 %3611  ;;  %v3550_v31 = vpop.permute.xlu0 %3549 }
 0x511   : > { %4828 = vmatprep.mubr.msk.bf16.mxu1 %vm1221_vm2, %v3612_v39  ;;  %v3769_v32 = vsel %vm1638_vm5, %v3676_v10, %v3612_v39  ;;  %v3680_v8 = vsel %vm1565_vm4, %v7298_v46, %v3550_v31 }
 0x512   : > { %4178 = vmatmul.mubr.bf16.gmra.mrb[116].mxu1 %v3769_v32 }
 0x518   : > { %v3614_v4 = vpop.permute.xlu1 %3613 }
 0x519   : > { %4829 = vmatprep.mubr.msk.bf16.mxu1 %vm1221_vm2, %v3614_v4  ;;  %v3772_v17 = vsel %vm1638_vm5, %v3678_v28, %v3614_v4 }
 0x51a   : > { %4186 = vmatmul.mubr.bf16.gmra.mrb[120].mxu1 %v3772_v17 }
 0x520   : > { %v3616_v21 = vpop.permute.xlu1 %3615 }
 0x521   : > { %4830 = vmatprep.mubr.msk.bf16.mxu1 %vm1221_vm2, %v3616_v21  ;;  %v3775_v34 = vsel %vm1638_vm5, %v3680_v8, %v3616_v21 }
 0x522   : > { %4194 = vmatmul.mubr.bf16.gmra.mrb[124].mxu1 %v3775_v34 }
 0x532   : > { %v4075_v45 = vpop.f32.mrb[64].mxu1 }
 0x533   : > { %v4234_v23 = vmax.f32 %v4075_v45, 0.0  ;;  %v4077_v58 = vpop.f32.mrb[65].mxu1 }
 0x534   : > { %v4078_v37 = vpop.f32.mrb[66].mxu1 }
 0x535   : > { %v4930_v44 = vpack.c.bf16 %v4234_v23, %v4234_v23  ;;  %v4235_v22 = vmax.f32 %v4078_v37, 0.0  ;;  %v4080_v35 = vpop.f32.mrb[67].mxu1 }
 0x537   : > { %4555 = vst.msk [vmem:[%s7222_s20 + $0x80] sm:$0xf] %vm4522_vm9, %v4930_v44  ;;  %v4931_v61 = vpack.c.bf16 %v4235_v22, %v4235_v22 }
 0x539   : > { %4556 = vst.msk [vmem:[%s7222_s20 + $0x84] sm:$0xf] %vm4522_vm9, %v4931_v61 }
 0x54d   : > { %v4083_v46 = vpop.f32.mrb[68].mxu1 }
 0x54e   : > { %v4236_v38 = vmax.f32 %v4083_v46, 0.0  ;;  %v4085_v52 = vpop.f32.mrb[69].mxu1 }
 0x54f   : > { %v4086_v18 = vpop.f32.mrb[70].mxu1 }
 0x550   : > { %v4932_v51 = vpack.c.bf16 %v4236_v38, %v4236_v38  ;;  %v4237_v63 = vmax.f32 %v4086_v18, 0.0  ;;  %v4088_v30 = vpop.f32.mrb[71].mxu1 }
 0x552   : > { %4557 = vst.msk [vmem:[%s7222_s20 + $0x88] sm:$0xf] %vm4522_vm9, %v4932_v51  ;;  %v4933_v47 = vpack.c.bf16 %v4237_v63, %v4237_v63 }
 0x554   : > { %4558 = vst.msk [vmem:[%s7222_s20 + $0x8c] sm:$0xf] %vm4522_vm9, %v4933_v47 }
 0x555   : > { %v4091_v26 = vpop.f32.mrb[72].mxu1 }
 0x556   : > { %v4238_v9 = vmax.f32 %v4091_v26, 0.0  ;;  %v4093_v3 = vpop.f32.mrb[73].mxu1 }
 0x557   : > { %v4094_v14 = vpop.f32.mrb[74].mxu1 }
 0x558   : > { %v4934_v48 = vpack.c.bf16 %v4238_v9, %v4238_v9  ;;  %v4239_v54 = vmax.f32 %v4094_v14, 0.0  ;;  %v4096_v6 = vpop.f32.mrb[75].mxu1 }
 0x55a   : > { %4559 = vst.msk [vmem:[%s7222_s20 + $0x90] sm:$0xf] %vm4522_vm9, %v4934_v48  ;;  %v4935_v50 = vpack.c.bf16 %v4239_v54, %v4239_v54 }
 0x55c   : > { %4560 = vst.msk [vmem:[%s7222_s20 + $0x94] sm:$0xf] %vm4522_vm9, %v4935_v50 }
 0x55d   : > { %v4099_v56 = vpop.f32.mrb[76].mxu1 }
 0x55e   : > { %v4240_v2 = vmax.f32 %v4099_v56, 0.0  ;;  %v4101_v36 = vpop.f32.mrb[77].mxu1 }
 0x55f   : > { %v4102_v20 = vpop.f32.mrb[78].mxu1 }
 0x560   : > { %v4936_v49 = vpack.c.bf16 %v4240_v2, %v4240_v2  ;;  %v4241_v15 = vmax.f32 %v4102_v20, 0.0  ;;  %v4104_v27 = vpop.f32.mrb[79].mxu1 }
 0x562   : > { %4561 = vst.msk [vmem:[%s7222_s20 + $0x98] sm:$0xf] %vm4522_vm9, %v4936_v49  ;;  %v4937_v7 = vpack.c.bf16 %v4241_v15, %v4241_v15 }
 0x564   : > { %4562 = vst.msk [vmem:[%s7222_s20 + $0x9c] sm:$0xf] %vm4522_vm9, %v4937_v7 }
 0x565   : > { %v4107_v53 = vpop.f32.mrb[80].mxu1 }
 0x566   : > { %v4242_v29 = vmax.f32 %v4107_v53, 0.0  ;;  %v4109_v25 = vpop.f32.mrb[81].mxu1 }
 0x567   : > { %v4110_v33 = vpop.f32.mrb[82].mxu1 }
 0x568   : > { %v4938_v12 = vpack.c.bf16 %v4242_v29, %v4242_v29  ;;  %v4243_v5 = vmax.f32 %v4110_v33, 0.0  ;;  %v4112_v55 = vpop.f32.mrb[83].mxu1 }
 0x56a   : > { %4563 = vst.msk [vmem:[%s7222_s20 + $0xa0] sm:$0xf] %vm4522_vm9, %v4938_v12  ;;  %v4939_v43 = vpack.c.bf16 %v4243_v5, %v4243_v5 }
 0x56c   : > { %4564 = vst.msk [vmem:[%s7222_s20 + $0xa4] sm:$0xf] %vm4522_vm9, %v4939_v43 }
 0x56d   : > { %v4115_v19 = vpop.f32.mrb[84].mxu1 }
 0x56e   : > { %v4244_v11 = vmax.f32 %v4115_v19, 0.0  ;;  %v4117_v41 = vpop.f32.mrb[85].mxu1 }
 0x56f   : > { %v4118_v62 = vpop.f32.mrb[86].mxu1 }
 0x570   : > { %v4940_v57 = vpack.c.bf16 %v4244_v11, %v4244_v11  ;;  %v4245_v1 = vmax.f32 %v4118_v62, 0.0  ;;  %v4120_v24 = vpop.f32.mrb[87].mxu1 }
 0x572   : > { %4565 = vst.msk [vmem:[%s7222_s20 + $0xa8] sm:$0xf] %vm4522_vm9, %v4940_v57  ;;  %v4941_v0 = vpack.c.bf16 %v4245_v1, %v4245_v1 }
 0x574   : > { %4566 = vst.msk [vmem:[%s7222_s20 + $0xac] sm:$0xf] %vm4522_vm9, %v4941_v0 }
 0x575   : > { %v4123_v59 = vpop.f32.mrb[88].mxu1 }
 0x576   : > { %v4246_v16 = vmax.f32 %v4123_v59, 0.0  ;;  %v4125_v40 = vpop.f32.mrb[89].mxu1 }
 0x577   : > { %v4126_v42 = vpop.f32.mrb[90].mxu1 }
 0x578   : > { %v4942_v60 = vpack.c.bf16 %v4246_v16, %v4246_v16  ;;  %v4247_v10 = vmax.f32 %v4126_v42, 0.0  ;;  %v4128_v39 = vpop.f32.mrb[91].mxu1 }
 0x57a   : > { %4567 = vst.msk [vmem:[%s7222_s20 + $0xb0] sm:$0xf] %vm4522_vm9, %v4942_v60  ;;  %v4943_v32 = vpack.c.bf16 %v4247_v10, %v4247_v10 }
 0x57c   : > { %4568 = vst.msk [vmem:[%s7222_s20 + $0xb4] sm:$0xf] %vm4522_vm9, %v4943_v32 }
 0x57d   : > { %v4131_v13 = vpop.f32.mrb[92].mxu1 }
 0x57e   : > { %v4248_v28 = vmax.f32 %v4131_v13, 0.0  ;;  %v4133_v4 = vpop.f32.mrb[93].mxu1 }
 0x57f   : > { %v4134_v17 = vpop.f32.mrb[94].mxu1 }
 0x580   : > { %v4944_v31 = vpack.c.bf16 %v4248_v28, %v4248_v28  ;;  %v4249_v8 = vmax.f32 %v4134_v17, 0.0  ;;  %v4136_v21 = vpop.f32.mrb[95].mxu1 }
 0x582   : > { %4569 = vst.msk [vmem:[%s7222_s20 + $0xb8] sm:$0xf] %vm4522_vm9, %v4944_v31  ;;  %v4945_v34 = vpack.c.bf16 %v4249_v8, %v4249_v8 }
 0x584   : > { %4570 = vst.msk [vmem:[%s7222_s20 + $0xbc] sm:$0xf] %vm4522_vm9, %v4945_v34 }
 0x5aa   : > { %v4139_v45 = vpop.f32.mrb[96].mxu1 }
 0x5ab   : > { %v4250_v23 = vmax.f32 %v4139_v45, 0.0  ;;  %v4141_v58 = vpop.f32.mrb[97].mxu1 }
 0x5ac   : > { %v4142_v37 = vpop.f32.mrb[98].mxu1 }
 0x5ad   : > { %v4946_v44 = vpack.c.bf16 %v4250_v23, %v4250_v23  ;;  %v4251_v22 = vmax.f32 %v4142_v37, 0.0  ;;  %v4144_v35 = vpop.f32.mrb[99].mxu1 }
 0x5af   : > { %4571 = vst.msk [vmem:[%s7222_s20 + $0xc0] sm:$0xf] %vm4522_vm9, %v4946_v44  ;;  %v4947_v61 = vpack.c.bf16 %v4251_v22, %v4251_v22 }
 0x5b1   : > { %4572 = vst.msk [vmem:[%s7222_s20 + $0xc4] sm:$0xf] %vm4522_vm9, %v4947_v61 }
 0x5c5   : > { %v4147_v46 = vpop.f32.mrb[100].mxu1 }
 0x5c6   : > { %v4252_v38 = vmax.f32 %v4147_v46, 0.0  ;;  %v4149_v52 = vpop.f32.mrb[101].mxu1 }
 0x5c7   : > { %v4150_v18 = vpop.f32.mrb[102].mxu1 }
 0x5c8   : > { %v4948_v51 = vpack.c.bf16 %v4252_v38, %v4252_v38  ;;  %v4253_v63 = vmax.f32 %v4150_v18, 0.0  ;;  %v4152_v30 = vpop.f32.mrb[103].mxu1 }
 0x5ca   : > { %4573 = vst.msk [vmem:[%s7222_s20 + $0xc8] sm:$0xf] %vm4522_vm9, %v4948_v51  ;;  %v4949_v47 = vpack.c.bf16 %v4253_v63, %v4253_v63 }
 0x5cc   : > { %4574 = vst.msk [vmem:[%s7222_s20 + $0xcc] sm:$0xf] %vm4522_vm9, %v4949_v47 }
 0x5cd   : > { %v4155_v26 = vpop.f32.mrb[104].mxu1 }
 0x5ce   : > { %v4254_v9 = vmax.f32 %v4155_v26, 0.0  ;;  %v4157_v3 = vpop.f32.mrb[105].mxu1 }
 0x5cf   : > { %v4158_v14 = vpop.f32.mrb[106].mxu1 }
 0x5d0   : > { %v4950_v48 = vpack.c.bf16 %v4254_v9, %v4254_v9  ;;  %v4255_v54 = vmax.f32 %v4158_v14, 0.0  ;;  %v4160_v6 = vpop.f32.mrb[107].mxu1 }
 0x5d2   : > { %4575 = vst.msk [vmem:[%s7222_s20 + $0xd0] sm:$0xf] %vm4522_vm9, %v4950_v48  ;;  %v4951_v50 = vpack.c.bf16 %v4255_v54, %v4255_v54 }
 0x5d4   : > { %4576 = vst.msk [vmem:[%s7222_s20 + $0xd4] sm:$0xf] %vm4522_vm9, %v4951_v50 }
 0x5d5   : > { %v4163_v56 = vpop.f32.mrb[108].mxu1 }
 0x5d6   : > { %v4256_v2 = vmax.f32 %v4163_v56, 0.0  ;;  %v4165_v36 = vpop.f32.mrb[109].mxu1 }
 0x5d7   : > { %v4166_v20 = vpop.f32.mrb[110].mxu1 }
 0x5d8   : > { %v4952_v49 = vpack.c.bf16 %v4256_v2, %v4256_v2  ;;  %v4257_v15 = vmax.f32 %v4166_v20, 0.0  ;;  %v4168_v27 = vpop.f32.mrb[111].mxu1 }
 0x5da   : > { %4577 = vst.msk [vmem:[%s7222_s20 + $0xd8] sm:$0xf] %vm4522_vm9, %v4952_v49  ;;  %v4953_v7 = vpack.c.bf16 %v4257_v15, %v4257_v15 }
 0x5dc   : > { %4578 = vst.msk [vmem:[%s7222_s20 + $0xdc] sm:$0xf] %vm4522_vm9, %v4953_v7 }
 0x5dd   : > { %v4171_v53 = vpop.f32.mrb[112].mxu1 }
 0x5de   : > { %v4258_v29 = vmax.f32 %v4171_v53, 0.0  ;;  %v4173_v25 = vpop.f32.mrb[113].mxu1 }
 0x5df   : > { %v4174_v33 = vpop.f32.mrb[114].mxu1 }
 0x5e0   : > { %v4954_v12 = vpack.c.bf16 %v4258_v29, %v4258_v29  ;;  %v4259_v5 = vmax.f32 %v4174_v33, 0.0  ;;  %v4176_v55 = vpop.f32.mrb[115].mxu1 }
 0x5e2   : > { %4579 = vst.msk [vmem:[%s7222_s20 + $0xe0] sm:$0xf] %vm4522_vm9, %v4954_v12  ;;  %v4955_v43 = vpack.c.bf16 %v4259_v5, %v4259_v5 }
 0x5e4   : > { %4580 = vst.msk [vmem:[%s7222_s20 + $0xe4] sm:$0xf] %vm4522_vm9, %v4955_v43 }
 0x5e5   : > { %v4179_v19 = vpop.f32.mrb[116].mxu1 }
 0x5e6   : > { %v4260_v11 = vmax.f32 %v4179_v19, 0.0  ;;  %v4181_v41 = vpop.f32.mrb[117].mxu1 }
 0x5e7   : > { %v4182_v62 = vpop.f32.mrb[118].mxu1 }
 0x5e8   : > { %v4956_v57 = vpack.c.bf16 %v4260_v11, %v4260_v11  ;;  %v4261_v1 = vmax.f32 %v4182_v62, 0.0  ;;  %v4184_v24 = vpop.f32.mrb[119].mxu1 }
 0x5ea   : > { %4581 = vst.msk [vmem:[%s7222_s20 + $0xe8] sm:$0xf] %vm4522_vm9, %v4956_v57  ;;  %v4957_v0 = vpack.c.bf16 %v4261_v1, %v4261_v1 }
 0x5ec   : > { %4582 = vst.msk [vmem:[%s7222_s20 + $0xec] sm:$0xf] %vm4522_vm9, %v4957_v0 }
 0x5ed   : > { %v4187_v59 = vpop.f32.mrb[120].mxu1 }
 0x5ee   : > { %v4262_v16 = vmax.f32 %v4187_v59, 0.0  ;;  %v4189_v40 = vpop.f32.mrb[121].mxu1 }
 0x5ef   : > { %v4190_v42 = vpop.f32.mrb[122].mxu1 }
 0x5f0   : > { %v4958_v60 = vpack.c.bf16 %v4262_v16, %v4262_v16  ;;  %v4263_v10 = vmax.f32 %v4190_v42, 0.0  ;;  %v4192_v39 = vpop.f32.mrb[123].mxu1 }
 0x5f2   : > { %4583 = vst.msk [vmem:[%s7222_s20 + $0xf0] sm:$0xf] %vm4522_vm9, %v4958_v60  ;;  %v4959_v32 = vpack.c.bf16 %v4263_v10, %v4263_v10 }
 0x5f4   : > { %4584 = vst.msk [vmem:[%s7222_s20 + $0xf4] sm:$0xf] %vm4522_vm9, %v4959_v32 }
 0x5f5   : > { %v4195_v13 = vpop.f32.mrb[124].mxu1 }
 0x5f6   : > { %v4264_v28 = vmax.f32 %v4195_v13, 0.0  ;;  %v4197_v4 = vpop.f32.mrb[125].mxu1 }
 0x5f7   : > { %v4198_v17 = vpop.f32.mrb[126].mxu1 }
 0x5f8   : > { %v4960_v31 = vpack.c.bf16 %v4264_v28, %v4264_v28  ;;  %v4265_v8 = vmax.f32 %v4198_v17, 0.0  ;;  %v4200_v21 = vpop.f32.mrb[127].mxu1 }
 0x5fa   : > { %4585 = vst.msk [vmem:[%s7222_s20 + $0xf8] sm:$0xf] %vm4522_vm9, %v4960_v31  ;;  %v4961_v34 = vpack.c.bf16 %v4265_v8, %v4265_v8 }
 0x5fc   : > { %4586 = vst.msk [vmem:[%s7222_s20 + $0xfc] sm:$0xf] %vm4522_vm9, %v4961_v34 }
 0x5fd PF: > { %s13_s16 = sadd.s32 1, %s5124_s16   ;;  %s7491_s12 = smov %s5116_s14 }
 0x5fe   : > { %p10_p9 = scmp.ge.s32.totalorder %s13_s16, 6   ;;  %s7492_s13 = smov %s5120_s15 }
 0x5ff   : > { %s7493_s14 = smov %s7496_s17  ;;  %s7494_s15 = smov %s7500_s18 }
 0x600   :  { %12 = sbr.rel (!%p10_p9) target bundleno = 3 (0x3), region = 63 }

</bundles_post_ra>
